<compile_context>
chip_gen: v7x
topology: tpu7x:2x2x1
jax: 0.10.0
libtpu: 0.0.40
codegen_flags: <defaults>
</compile_context>

<pallas_src>
import functools
import math

import jax
import jax.numpy as jnp
from jax.experimental import pallas as pl
from jax.experimental.pallas import tpu as pltpu


def _round_up(x, m):
    return (x + m - 1) // m * m


def _cdiv(a, b):
    return (a + b - 1) // b


# ---------------------------------------------------------------------------
# Fused kernel: tiled adjacency propagation (K reduction) with on-the-fly
# feature transform + attention epilogue on the last contraction step.
# grid = (row tiles [parallel], contraction tiles [arbitrary/reduction])
# ---------------------------------------------------------------------------
def _propagation_kernel(adj_l_ref, adj_h_ref, xk_ref, xi_ref, w_lh_ref,
                        w_mlp_ref, av_ref, att_vec_ref, out_ref,
                        acc_l_ref, acc_h_ref, *, n_valid, tile_k, fp, mask_k):
    k = pl.program_id(1)

    @pl.when(k == 0)
    def _init():
        acc_l_ref[...] = jnp.zeros_like(acc_l_ref)
        acc_h_ref[...] = jnp.zeros_like(acc_h_ref)

    adj_l = adj_l_ref[...]                                  # (tile_n, tile_k)
    adj_h = adj_h_ref[...]
    xk = xk_ref[...]                                        # (tile_k, f_in)
    if mask_k:
        # Ragged last contraction tile: zero OOB adjacency columns and OOB x rows
        # so garbage from the partial block never reaches the accumulators.
        col = k * tile_k + jax.lax.broadcasted_iota(jnp.int32, adj_l.shape, 1)
        cmask = col < n_valid
        adj_l = jnp.where(cmask, adj_l, 0.0)
        adj_h = jnp.where(cmask, adj_h, 0.0)
        row = k * tile_k + jax.lax.broadcasted_iota(jnp.int32, xk.shape, 0)
        xk = jnp.where(row < n_valid, xk, 0.0)

    # On-the-fly feature transform for this contraction tile (saves all xw HBM traffic).
    xw = jnp.dot(xk, w_lh_ref[...], preferred_element_type=jnp.float32)  # (tile_k, 2*fp)

    # Dominant MXU work: partial adj_low @ xw_low and adj_high @ xw_high.
    acc_l_ref[...] += jnp.dot(adj_l, xw[:, :fp], preferred_element_type=jnp.float32)
    acc_h_ref[...] += jnp.dot(adj_h, xw[:, fp:], preferred_element_type=jnp.float32)

    # Epilogue once per row tile, after the full contraction has been accumulated.
    @pl.when(k == pl.num_programs(1) - 1)
    def _epilogue():
        out_low = jnp.maximum(acc_l_ref[...], 0.0)          # relu (VPU)
        out_high = jnp.maximum(acc_h_ref[...], 0.0)
        out_mlp = jnp.maximum(
            jnp.dot(xi_ref[...], w_mlp_ref[...], preferred_element_type=jnp.float32),
            0.0)

        av = av_ref[...]                                    # (3, fp), zero-padded lanes
        s_l = jax.nn.sigmoid(jnp.sum(out_low * av[0:1, :], axis=-1, keepdims=True))
        s_h = jax.nn.sigmoid(jnp.sum(out_high * av[1:2, :], axis=-1, keepdims=True))
        s_m = jax.nn.sigmoid(jnp.sum(out_mlp * av[2:3, :], axis=-1, keepdims=True))

        inv_T = 1.0 / 3.0
        a = att_vec_ref                                     # (3,3) scalars in SMEM
        z0 = (s_l * a[0, 0] + s_h * a[1, 0] + s_m * a[2, 0]) * inv_T
        z1 = (s_l * a[0, 1] + s_h * a[1, 1] + s_m * a[2, 1]) * inv_T
        z2 = (s_l * a[0, 2] + s_h * a[1, 2] + s_m * a[2, 2]) * inv_T

        m = jnp.maximum(jnp.maximum(z0, z1), z2)
        e0 = jnp.exp(z0 - m)
        e1 = jnp.exp(z1 - m)
        e2 = jnp.exp(z2 - m)
        inv_denom = 1.0 / (e0 + e1 + e2)    # exact divide; epilogue is off critical path

        out_ref[...] = 3.0 * ((e0 * inv_denom) * out_low +
                              (e1 * inv_denom) * out_high +
                              (e2 * inv_denom) * out_mlp)


def graph_convolution_acmgcn(x, adj_low, adj_high,
                             w_low, w_high, w_mlp,
                             av_low, av_high, av_mlp, att_vec,
                             *, tile_n=512, tile_k=512):
    """x: [N, F_in]; adj_*: [N, N]; w_*: [F_in, F_out]; av_*: [F_out, 1]; att_vec: [3, 3]."""
    f32 = jnp.float32
    n, f_in = x.shape
    f_out = w_low.shape[1]
    fp = _round_up(f_out, 128)          # lane-dense accumulator / output width

    # ---- tile selection: HBM-bound, so large (8,128)-aligned tiles; no wrapper pad ----
    def fit(requested):
        if n <= 128:
            return n                    # full-dim block (allowed: equals array dim)
        return max(128, min(requested, (n // 128) * 128))

    tile_n = fit(tile_n)
    tile_k = fit(tile_k)
    # Keep >= 2 row tiles so the "parallel" axis can feed both TensorCores (v7x megacore).
    if n > 256 and _cdiv(n, tile_n) < 2:
        tile_n = max(128, _round_up(_cdiv(n, 2), 128))

    # ---- VMEM policy: derive the limit from the actual chip, ~25% headroom ----
    try:
        vmem_cap = int(pltpu.get_tpu_info().vmem_capacity_bytes)
    except Exception:
        vmem_cap = 64 * 1024 * 1024     # conservative (v7x-sized) fallback
    vmem_limit = int(vmem_cap * 0.75)

    def working_set(tn, tk):
        adj = 2 * 2 * tn * tk * 4                     # 2 adjacencies, double-buffered
        x_tiles = 2 * (tk + tn) * f_in * 4            # contraction + row tiles of x
        acc_out = (2 * tn * fp + 2 * tn * fp) * 4     # accumulators + out double-buffer
        weights = (f_in * 3 * fp + 3 * fp) * 4
        return adj + x_tiles + acc_out + weights

    while working_set(tile_n, tile_k) > 0.8 * vmem_limit and tile_k > 128:
        tile_k = max(128, tile_k // 2)
    while working_set(tile_n, tile_k) > 0.8 * vmem_limit and tile_n > 128:
        tile_n = max(128, tile_n // 2)

    grid_i = _cdiv(n, tile_n)
    grid_k = _cdiv(n, tile_k)
    needs_k_mask = (n % tile_k) != 0

    x_f = x.astype(f32)
    adj_l = adj_low.astype(f32)
    adj_h = adj_high.astype(f32)

    def pad_w(w):
        return jnp.pad(w.astype(f32), ((0, 0), (0, fp - f_out)))

    w_lh = jnp.concatenate([pad_w(w_low), pad_w(w_high)], axis=1)     # (f_in, 2*fp)
    w_m = pad_w(w_mlp)                                                # (f_in, fp)
    av_cat = jnp.stack([
        jnp.pad(av_low[:, 0].astype(f32), (0, fp - f_out)),
        jnp.pad(av_high[:, 0].astype(f32), (0, fp - f_out)),
        jnp.pad(av_mlp[:, 0].astype(f32), (0, fp - f_out)),
    ], axis=0)                                                        # (3, fp)

    kernel = functools.partial(_propagation_kernel, n_valid=n, tile_k=tile_k,
                               fp=fp, mask_k=needs_k_mask)

    out = pl.pallas_call(
        kernel,
        out_shape=jax.ShapeDtypeStruct((n, fp), f32),
        grid_spec=pltpu.PrefetchScalarGridSpec(
            num_scalar_prefetch=0,
            grid=(grid_i, grid_k),
            in_specs=[
                pl.BlockSpec((tile_n, tile_k), lambda i, k: (i, k)),   # adj_low tile
                pl.BlockSpec((tile_n, tile_k), lambda i, k: (i, k)),   # adj_high tile
                pl.BlockSpec((tile_k, f_in), lambda i, k: (k, 0)),     # x, contraction tile
                pl.BlockSpec((tile_n, f_in), lambda i, k: (i, 0)),     # x, row tile (mlp)
                pl.BlockSpec((f_in, 2 * fp), lambda i, k: (0, 0)),     # [W_low | W_high]
                pl.BlockSpec((f_in, fp), lambda i, k: (0, 0)),         # W_mlp
                pl.BlockSpec((3, fp), lambda i, k: (0, 0)),            # attention vectors
                pl.BlockSpec(memory_space=pltpu.MemorySpace.SMEM),     # att_vec 3x3 scalars
            ],
            out_specs=pl.BlockSpec((tile_n, fp), lambda i, k: (i, 0)),
            scratch_shapes=[pltpu.VMEM((tile_n, fp), f32),
                            pltpu.VMEM((tile_n, fp), f32)],
        ),
        compiler_params=pltpu.CompilerParams(
            dimension_semantics=("parallel", "arbitrary"),
            vmem_limit_bytes=vmem_limit),
    )(adj_l, adj_h, x_f, x_f, w_lh, w_m, av_cat, att_vec.astype(f32))

    return out[:, :f_out]


def ref_forward(x, adj_low, adj_high, w_low, w_high, w_mlp,
                av_low, av_high, av_mlp, att_vec):
    out_low = jax.nn.relu(adj_low @ (x @ w_low))
    out_high = jax.nn.relu(adj_high @ (x @ w_high))
    out_mlp = jax.nn.relu(x @ w_mlp)
    s = jax.nn.sigmoid(jnp.concatenate(
        [out_low @ av_low, out_high @ av_high, out_mlp @ av_mlp], axis=1))
    att = jax.nn.softmax((s @ att_vec) / 3.0, axis=1)
    return 3.0 * (att[:, 0:1] * out_low + att[:, 1:2] * out_high + att[:, 2:3] * out_mlp)


if __name__ == "__main__":
    # Small but multi-tile demo: N=300 with auto-fitted 256 tiles -> grid (2, 2),
    # exercising the K-reduction accumulators, the ragged-tile masking, and the
    # last-step attention epilogue.
    N = 300
    in_features = 48
    out_features = 32

    key = jax.random.PRNGKey(0)
    keys = jax.random.split(key, 10)

    stdv = 1.0 / math.sqrt(out_features)   # weight_*.size(1) == out_features
    std_att = 1.0 / math.sqrt(1.0)         # att_vec_*.size(1) == 1
    std_att_vec = 1.0 / math.sqrt(3.0)     # att_vec.size(1) == 3

    # Deterministic parameter init mirroring reset_parameters() (uniform in [-std, std]).
    w_low = jax.random.uniform(keys[0], (in_features, out_features), jnp.float32, -stdv, stdv)
    w_high = jax.random.uniform(keys[1], (in_features, out_features), jnp.float32, -stdv, stdv)
    w_mlp = jax.random.uniform(keys[2], (in_features, out_features), jnp.float32, -stdv, stdv)
    av_low = jax.random.uniform(keys[3], (out_features, 1), jnp.float32, -std_att, std_att)
    av_high = jax.random.uniform(keys[4], (out_features, 1), jnp.float32, -std_att, std_att)
    av_mlp = jax.random.uniform(keys[5], (out_features, 1), jnp.float32, -std_att, std_att)
    att_vec = jax.random.uniform(keys[6], (3, 3), jnp.float32, -std_att_vec, std_att_vec)

    # Inputs: node features + dense low/high-pass adjacencies.
    x = jax.random.normal(keys[7], (N, in_features), jnp.float32)
    adj_low = jax.random.uniform(keys[8], (N, N), jnp.float32) / N
    adj_high = jnp.eye(N, dtype=jnp.float32) - adj_low

    out = graph_convolution_acmgcn(x, adj_low, adj_high,
                                   w_low, w_high, w_mlp,
                                   av_low, av_high, av_mlp, att_vec)
    out = jax.block_until_ready(out)

    ref = ref_forward(x, adj_low, adj_high, w_low, w_high, w_mlp,
                      av_low, av_high, av_mlp, att_vec)
    assert out.shape == (N, out_features)
    max_err = float(jnp.max(jnp.abs(out - ref)))
    assert jnp.allclose(out, ref, atol=2e-3, rtol=2e-3), f"max abs err {max_err}"
    print("KERNEL_OK")
</pallas_src>

<mosaic_0001>
module attributes {stable_mosaic.version = 11 : i64} {
  func.func @_propagation_kernel(%arg0: i32, %arg1: i32, %arg2: memref<256x256xf32, #tpu.memory_space<vmem>>, %arg3: memref<256x256xf32, #tpu.memory_space<vmem>>, %arg4: memref<256x48xf32, #tpu.memory_space<vmem>>, %arg5: memref<256x48xf32, #tpu.memory_space<vmem>>, %arg6: memref<48x256xf32, #tpu.memory_space<vmem>>, %arg7: memref<48x128xf32, #tpu.memory_space<vmem>>, %arg8: memref<3x128xf32, #tpu.memory_space<vmem>>, %arg9: memref<3x3xf32, #tpu.memory_space<smem>>, %arg10: memref<256x128xf32, #tpu.memory_space<vmem>>, %arg11: memref<256x128xf32, #tpu.memory_space<vmem>>, %arg12: memref<256x128xf32, #tpu.memory_space<vmem>>) attributes {dimension_semantics = [#tpu.dimension_semantics<parallel>, #tpu.dimension_semantics<arbitrary>], iteration_bounds = array<i64: 2, 2>, scalar_prefetch = 0 : i64, scratch_operands = 2 : i64, tpu.core_type = #tpu.core_type<tc>, window_params = [{transform_indices = @transform_0, window_bounds = array<i64: 256, 256>}, {transform_indices = @transform_1, window_bounds = array<i64: 256, 256>}, {transform_indices = @transform_2, window_bounds = array<i64: 256, 48>}, {transform_indices = @transform_3, window_bounds = array<i64: 256, 48>}, {pipeline_mode = #tpu.pipeline_mode<synchronous>, transform_indices = @transform_4, window_bounds = array<i64: 48, 256>}, {pipeline_mode = #tpu.pipeline_mode<synchronous>, transform_indices = @transform_5, window_bounds = array<i64: 48, 128>}, {pipeline_mode = #tpu.pipeline_mode<synchronous>, transform_indices = @transform_6, window_bounds = array<i64: 3, 128>}, {transform_indices = @transform_7, window_bounds = array<i64: 3, 3>}, {transform_indices = @transform_8, window_bounds = array<i64: 256, 128>}]} {
    %c0_i32 = arith.constant 0 : i32
    %0 = arith.cmpi eq, %arg1, %c0_i32 : i32
    %1 = arith.extui %0 : i1 to i32
    %c0_i32_0 = arith.constant 0 : i32
    %2 = arith.cmpi ne, %1, %c0_i32_0 : i32
    scf.if %2 {
      %cst_24 = arith.constant 0.000000e+00 : f32
      %39 = vector.broadcast %cst_24 : f32 to vector<256x128xf32>
      %c0_25 = arith.constant 0 : index
      %c0_26 = arith.constant 0 : index
      %40 = vector.load %arg11[%c0_25, %c0_26] : memref<256x128xf32, #tpu.memory_space<vmem>>, vector<256x128xf32>
      tpu.vector_store %arg11[%c0_25, %c0_26], %39 {strides = array<i32>} : memref<256x128xf32, #tpu.memory_space<vmem>>, vector<256x128xf32>,
      %cst_27 = arith.constant 0.000000e+00 : f32
      %41 = vector.broadcast %cst_27 : f32 to vector<256x128xf32>
      %c0_28 = arith.constant 0 : index
      %c0_29 = arith.constant 0 : index
      %42 = vector.load %arg12[%c0_28, %c0_29] : memref<256x128xf32, #tpu.memory_space<vmem>>, vector<256x128xf32>
      tpu.vector_store %arg12[%c0_28, %c0_29], %41 {strides = array<i32>} : memref<256x128xf32, #tpu.memory_space<vmem>>, vector<256x128xf32>,
    } else {
    }
    %c0 = arith.constant 0 : index
    %c0_1 = arith.constant 0 : index
    %3 = vector.load %arg2[%c0, %c0_1] : memref<256x256xf32, #tpu.memory_space<vmem>>, vector<256x256xf32>
    %c0_2 = arith.constant 0 : index
    %c0_3 = arith.constant 0 : index
    %4 = vector.load %arg3[%c0_2, %c0_3] : memref<256x256xf32, #tpu.memory_space<vmem>>, vector<256x256xf32>
    %c0_4 = arith.constant 0 : index
    %c0_5 = arith.constant 0 : index
    %5 = vector.load %arg4[%c0_4, %c0_5] : memref<256x48xf32, #tpu.memory_space<vmem>>, vector<256x48xf32>
    %c256_i32 = arith.constant 256 : i32
    %6 = arith.muli %arg1, %c256_i32 : i32
    %7 = tpu.iota {dimensions = array<i32: 1>} : vector<256x256xi32>
    %8 = vector.broadcast %6 : i32 to vector<256x256xi32>
    %9 = arith.addi %8, %7 : vector<256x256xi32>
    %c300_i32 = arith.constant 300 : i32
    %10 = vector.broadcast %c300_i32 : i32 to vector<256x256xi32>
    %11 = arith.cmpi slt, %9, %10 : vector<256x256xi32>
    %cst = arith.constant 0.000000e+00 : f32
    %12 = vector.broadcast %cst : f32 to vector<256x256xf32>
    %13 = arith.select %11, %3, %12 : vector<256x256xi1>, vector<256x256xf32>
    %cst_6 = arith.constant 0.000000e+00 : f32
    %14 = vector.broadcast %cst_6 : f32 to vector<256x256xf32>
    %15 = arith.select %11, %4, %14 : vector<256x256xi1>, vector<256x256xf32>
    %c256_i32_7 = arith.constant 256 : i32
    %16 = arith.muli %arg1, %c256_i32_7 : i32
    %17 = tpu.iota {dimensions = array<i32: 0>} : vector<256x48xi32>
    %18 = vector.broadcast %16 : i32 to vector<256x48xi32>
    %19 = arith.addi %18, %17 : vector<256x48xi32>
    %c300_i32_8 = arith.constant 300 : i32
    %20 = vector.broadcast %c300_i32_8 : i32 to vector<256x48xi32>
    %21 = arith.cmpi slt, %19, %20 : vector<256x48xi32>
    %cst_9 = arith.constant 0.000000e+00 : f32
    %22 = vector.broadcast %cst_9 : f32 to vector<256x48xf32>
    %23 = arith.select %21, %5, %22 : vector<256x48xi1>, vector<256x48xf32>
    %c0_10 = arith.constant 0 : index
    %c0_11 = arith.constant 0 : index
    %24 = vector.load %arg6[%c0_10, %c0_11] : memref<48x256xf32, #tpu.memory_space<vmem>>, vector<48x256xf32>
    %cst_12 = arith.constant dense<0.000000e+00> : vector<256x256xf32>
    %25 = tpu.matmul %23, %24, %cst_12 {dimension_numbers = #tpu.dot_dimension_numbers<[1], [0], [0], [1], [0, 0, 1, 1], [], []>} : vector<256x48xf32>, vector<48x256xf32>, vector<256x256xf32> -> vector<256x256xf32>
    %c0_13 = arith.constant 0 : index
    %c0_14 = arith.constant 0 : index
    %26 = vector.load %arg11[%c0_13, %c0_14] : memref<256x128xf32, #tpu.memory_space<vmem>>, vector<256x128xf32>
    %27 = vector.extract_strided_slice %25 {offsets = [0, 0], sizes = [256, 128], strides = [1, 1]} : vector<256x256xf32> to vector<256x128xf32>
    %cst_15 = arith.constant dense<0.000000e+00> : vector<256x128xf32>
    %28 = tpu.matmul %13, %27, %cst_15 {dimension_numbers = #tpu.dot_dimension_numbers<[1], [0], [0], [1], [0, 0, 1, 1], [], []>} : vector<256x256xf32>, vector<256x128xf32>, vector<256x128xf32> -> vector<256x128xf32>
    %29 = arith.addf %26, %28 : vector<256x128xf32>
    %c0_16 = arith.constant 0 : index
    %c0_17 = arith.constant 0 : index
    %30 = vector.load %arg11[%c0_16, %c0_17] : memref<256x128xf32, #tpu.memory_space<vmem>>, vector<256x128xf32>
    tpu.vector_store %arg11[%c0_16, %c0_17], %29 {strides = array<i32>} : memref<256x128xf32, #tpu.memory_space<vmem>>, vector<256x128xf32>,
    %c0_18 = arith.constant 0 : index
    %c0_19 = arith.constant 0 : index
    %31 = vector.load %arg12[%c0_18, %c0_19] : memref<256x128xf32, #tpu.memory_space<vmem>>, vector<256x128xf32>
    %32 = vector.extract_strided_slice %25 {offsets = [0, 128], sizes = [256, 128], strides = [1, 1]} : vector<256x256xf32> to vector<256x128xf32>
    %cst_20 = arith.constant dense<0.000000e+00> : vector<256x128xf32>
    %33 = tpu.matmul %15, %32, %cst_20 {dimension_numbers = #tpu.dot_dimension_numbers<[1], [0], [0], [1], [0, 0, 1, 1], [], []>} : vector<256x256xf32>, vector<256x128xf32>, vector<256x128xf32> -> vector<256x128xf32>
    %34 = arith.addf %31, %33 : vector<256x128xf32>
    %c0_21 = arith.constant 0 : index
    %c0_22 = arith.constant 0 : index
    %35 = vector.load %arg12[%c0_21, %c0_22] : memref<256x128xf32, #tpu.memory_space<vmem>>, vector<256x128xf32>
    tpu.vector_store %arg12[%c0_21, %c0_22], %34 {strides = array<i32>} : memref<256x128xf32, #tpu.memory_space<vmem>>, vector<256x128xf32>,
    %c1_i32 = arith.constant 1 : i32
    %36 = arith.cmpi eq, %arg1, %c1_i32 : i32
    %37 = arith.extui %36 : i1 to i32
    %c0_i32_23 = arith.constant 0 : i32
    %38 = arith.cmpi ne, %37, %c0_i32_23 : i32
    scf.if %38 {
      %c0_24 = arith.constant 0 : index
      %c0_25 = arith.constant 0 : index
      %39 = vector.load %arg11[%c0_24, %c0_25] : memref<256x128xf32, #tpu.memory_space<vmem>>, vector<256x128xf32>
      %cst_26 = arith.constant 0.000000e+00 : f32
      %40 = vector.broadcast %cst_26 : f32 to vector<256x128xf32>
      %41 = arith.maximumf %39, %40 : vector<256x128xf32>
      %c0_27 = arith.constant 0 : index
      %c0_28 = arith.constant 0 : index
      %42 = vector.load %arg12[%c0_27, %c0_28] : memref<256x128xf32, #tpu.memory_space<vmem>>, vector<256x128xf32>
      %cst_29 = arith.constant 0.000000e+00 : f32
      %43 = vector.broadcast %cst_29 : f32 to vector<256x128xf32>
      %44 = arith.maximumf %42, %43 : vector<256x128xf32>
      %c0_30 = arith.constant 0 : index
      %c0_31 = arith.constant 0 : index
      %45 = vector.load %arg5[%c0_30, %c0_31] : memref<256x48xf32, #tpu.memory_space<vmem>>, vector<256x48xf32>
      %c0_32 = arith.constant 0 : index
      %c0_33 = arith.constant 0 : index
      %46 = vector.load %arg7[%c0_32, %c0_33] : memref<48x128xf32, #tpu.memory_space<vmem>>, vector<48x128xf32>
      %cst_34 = arith.constant dense<0.000000e+00> : vector<256x128xf32>
      %47 = tpu.matmul %45, %46, %cst_34 {dimension_numbers = #tpu.dot_dimension_numbers<[1], [0], [0], [1], [0, 0, 1, 1], [], []>} : vector<256x48xf32>, vector<48x128xf32>, vector<256x128xf32> -> vector<256x128xf32>
      %cst_35 = arith.constant 0.000000e+00 : f32
      %48 = vector.broadcast %cst_35 : f32 to vector<256x128xf32>
      %49 = arith.maximumf %47, %48 : vector<256x128xf32>
      %c0_36 = arith.constant 0 : index
      %c0_37 = arith.constant 0 : index
      %50 = vector.load %arg8[%c0_36, %c0_37] : memref<3x128xf32, #tpu.memory_space<vmem>>, vector<3x128xf32>
      %51 = vector.extract_strided_slice %50 {offsets = [0, 0], sizes = [1, 128], strides = [1, 1]} : vector<3x128xf32> to vector<1x128xf32>
      %52 = vector.broadcast %51 : vector<1x128xf32> to vector<256x128xf32>
      %53 = arith.mulf %41, %52 : vector<256x128xf32>
      %cst_38 = arith.constant dense<0.000000e+00> : vector<256xf32>
      %54 = vector.multi_reduction <add>, %53, %cst_38 [1] : vector<256x128xf32> to vector<256xf32>
      %55 = vector.shape_cast %54 : vector<256xf32> to vector<256x1xf32>
      %56 = arith.negf %55 : vector<256x1xf32>
      %57 = math.exp %56 : vector<256x1xf32>
      %cst_39 = arith.constant 1.000000e+00 : f32
      %58 = vector.broadcast %cst_39 : f32 to vector<256x1xf32>
      %59 = arith.addf %58, %57 : vector<256x1xf32>
      %60 = arith.divf %58, %59 : vector<256x1xf32>
      %61 = vector.extract_strided_slice %50 {offsets = [1, 0], sizes = [1, 128], strides = [1, 1]} : vector<3x128xf32> to vector<1x128xf32>
      %62 = vector.broadcast %61 : vector<1x128xf32> to vector<256x128xf32>
      %63 = arith.mulf %44, %62 : vector<256x128xf32>
      %cst_40 = arith.constant dense<0.000000e+00> : vector<256xf32>
      %64 = vector.multi_reduction <add>, %63, %cst_40 [1] : vector<256x128xf32> to vector<256xf32>
      %65 = vector.shape_cast %64 : vector<256xf32> to vector<256x1xf32>
      %66 = arith.negf %65 : vector<256x1xf32>
      %67 = math.exp %66 : vector<256x1xf32>
      %cst_41 = arith.constant 1.000000e+00 : f32
      %68 = vector.broadcast %cst_41 : f32 to vector<256x1xf32>
      %69 = arith.addf %68, %67 : vector<256x1xf32>
      %70 = arith.divf %68, %69 : vector<256x1xf32>
      %71 = vector.extract_strided_slice %50 {offsets = [2, 0], sizes = [1, 128], strides = [1, 1]} : vector<3x128xf32> to vector<1x128xf32>
      %72 = vector.broadcast %71 : vector<1x128xf32> to vector<256x128xf32>
      %73 = arith.mulf %49, %72 : vector<256x128xf32>
      %cst_42 = arith.constant dense<0.000000e+00> : vector<256xf32>
      %74 = vector.multi_reduction <add>, %73, %cst_42 [1] : vector<256x128xf32> to vector<256xf32>
      %75 = vector.shape_cast %74 : vector<256xf32> to vector<256x1xf32>
      %76 = arith.negf %75 : vector<256x1xf32>
      %77 = math.exp %76 : vector<256x1xf32>
      %cst_43 = arith.constant 1.000000e+00 : f32
      %78 = vector.broadcast %cst_43 : f32 to vector<256x1xf32>
      %79 = arith.addf %78, %77 : vector<256x1xf32>
      %80 = arith.divf %78, %79 : vector<256x1xf32>
      %c0_44 = arith.constant 0 : index
      %c0_45 = arith.constant 0 : index
      %81 = memref.load %arg9[%c0_44, %c0_45] : memref<3x3xf32, #tpu.memory_space<smem>>
      %82 = vector.broadcast %81 : f32 to vector<256x1xf32>
      %83 = arith.mulf %60, %82 : vector<256x1xf32>
      %c1 = arith.constant 1 : index
      %c0_46 = arith.constant 0 : index
      %84 = memref.load %arg9[%c1, %c0_46] : memref<3x3xf32, #tpu.memory_space<smem>>
      %85 = vector.broadcast %84 : f32 to vector<256x1xf32>
      %86 = arith.mulf %70, %85 : vector<256x1xf32>
      %87 = arith.addf %83, %86 : vector<256x1xf32>
      %c2 = arith.constant 2 : index
      %c0_47 = arith.constant 0 : index
      %88 = memref.load %arg9[%c2, %c0_47] : memref<3x3xf32, #tpu.memory_space<smem>>
      %89 = vector.broadcast %88 : f32 to vector<256x1xf32>
      %90 = arith.mulf %80, %89 : vector<256x1xf32>
      %91 = arith.addf %87, %90 : vector<256x1xf32>
      %cst_48 = arith.constant 0.333333343 : f32
      %92 = vector.broadcast %cst_48 : f32 to vector<256x1xf32>
      %93 = arith.mulf %91, %92 : vector<256x1xf32>
      %c0_49 = arith.constant 0 : index
      %c1_50 = arith.constant 1 : index
      %94 = memref.load %arg9[%c0_49, %c1_50] : memref<3x3xf32, #tpu.memory_space<smem>>
      %95 = vector.broadcast %94 : f32 to vector<256x1xf32>
      %96 = arith.mulf %60, %95 : vector<256x1xf32>
      %c1_51 = arith.constant 1 : index
      %c1_52 = arith.constant 1 : index
      %97 = memref.load %arg9[%c1_51, %c1_52] : memref<3x3xf32, #tpu.memory_space<smem>>
      %98 = vector.broadcast %97 : f32 to vector<256x1xf32>
      %99 = arith.mulf %70, %98 : vector<256x1xf32>
      %100 = arith.addf %96, %99 : vector<256x1xf32>
      %c2_53 = arith.constant 2 : index
      %c1_54 = arith.constant 1 : index
      %101 = memref.load %arg9[%c2_53, %c1_54] : memref<3x3xf32, #tpu.memory_space<smem>>
      %102 = vector.broadcast %101 : f32 to vector<256x1xf32>
      %103 = arith.mulf %80, %102 : vector<256x1xf32>
      %104 = arith.addf %100, %103 : vector<256x1xf32>
      %cst_55 = arith.constant 0.333333343 : f32
      %105 = vector.broadcast %cst_55 : f32 to vector<256x1xf32>
      %106 = arith.mulf %104, %105 : vector<256x1xf32>
      %c0_56 = arith.constant 0 : index
      %c2_57 = arith.constant 2 : index
      %107 = memref.load %arg9[%c0_56, %c2_57] : memref<3x3xf32, #tpu.memory_space<smem>>
      %108 = vector.broadcast %107 : f32 to vector<256x1xf32>
      %109 = arith.mulf %60, %108 : vector<256x1xf32>
      %c1_58 = arith.constant 1 : index
      %c2_59 = arith.constant 2 : index
      %110 = memref.load %arg9[%c1_58, %c2_59] : memref<3x3xf32, #tpu.memory_space<smem>>
      %111 = vector.broadcast %110 : f32 to vector<256x1xf32>
      %112 = arith.mulf %70, %111 : vector<256x1xf32>
      %113 = arith.addf %109, %112 : vector<256x1xf32>
      %c2_60 = arith.constant 2 : index
      %c2_61 = arith.constant 2 : index
      %114 = memref.load %arg9[%c2_60, %c2_61] : memref<3x3xf32, #tpu.memory_space<smem>>
      %115 = vector.broadcast %114 : f32 to vector<256x1xf32>
      %116 = arith.mulf %80, %115 : vector<256x1xf32>
      %117 = arith.addf %113, %116 : vector<256x1xf32>
      %cst_62 = arith.constant 0.333333343 : f32
      %118 = vector.broadcast %cst_62 : f32 to vector<256x1xf32>
      %119 = arith.mulf %117, %118 : vector<256x1xf32>
      %120 = arith.maximumf %93, %106 : vector<256x1xf32>
      %121 = arith.maximumf %120, %119 : vector<256x1xf32>
      %122 = arith.subf %93, %121 : vector<256x1xf32>
      %123 = math.exp %122 : vector<256x1xf32>
      %124 = arith.subf %106, %121 : vector<256x1xf32>
      %125 = math.exp %124 : vector<256x1xf32>
      %126 = arith.subf %119, %121 : vector<256x1xf32>
      %127 = math.exp %126 : vector<256x1xf32>
      %128 = arith.addf %123, %125 : vector<256x1xf32>
      %129 = arith.addf %128, %127 : vector<256x1xf32>
      %cst_63 = arith.constant 1.000000e+00 : f32
      %130 = vector.broadcast %cst_63 : f32 to vector<256x1xf32>
      %131 = arith.divf %130, %129 : vector<256x1xf32>
      %132 = arith.mulf %123, %131 : vector<256x1xf32>
      %133 = vector.broadcast %132 : vector<256x1xf32> to vector<256x128xf32>
      %134 = arith.mulf %133, %41 : vector<256x128xf32>
      %135 = arith.mulf %125, %131 : vector<256x1xf32>
      %136 = vector.broadcast %135 : vector<256x1xf32> to vector<256x128xf32>
      %137 = arith.mulf %136, %44 : vector<256x128xf32>
      %138 = arith.addf %134, %137 : vector<256x128xf32>
      %139 = arith.mulf %127, %131 : vector<256x1xf32>
      %140 = vector.broadcast %139 : vector<256x1xf32> to vector<256x128xf32>
      %141 = arith.mulf %140, %49 : vector<256x128xf32>
      %142 = arith.addf %138, %141 : vector<256x128xf32>
      %cst_64 = arith.constant 3.000000e+00 : f32
      %143 = vector.broadcast %cst_64 : f32 to vector<256x128xf32>
      %144 = arith.mulf %143, %142 : vector<256x128xf32>
      %c0_65 = arith.constant 0 : index
      %c0_66 = arith.constant 0 : index
      %145 = vector.load %arg10[%c0_65, %c0_66] : memref<256x128xf32, #tpu.memory_space<vmem>>, vector<256x128xf32>
      tpu.vector_store %arg10[%c0_65, %c0_66], %144 {strides = array<i32>} : memref<256x128xf32, #tpu.memory_space<vmem>>, vector<256x128xf32>,
    } else {
    }
    return
  }
  func.func @transform_0(%arg0: i32, %arg1: i32) -> (i32, i32) {
    %c0_i32 = arith.constant 0 : i32
    return %arg0, %arg1 : i32, i32
  }
  func.func @transform_1(%arg0: i32, %arg1: i32) -> (i32, i32) {
    %c0_i32 = arith.constant 0 : i32
    return %arg0, %arg1 : i32, i32
  }
  func.func @transform_2(%arg0: i32, %arg1: i32) -> (i32, i32) {
    %c0_i32 = arith.constant 0 : i32
    %c0_i32_0 = arith.constant 0 : i32
    return %arg1, %c0_i32 : i32, i32
  }
  func.func @transform_3(%arg0: i32, %arg1: i32) -> (i32, i32) {
    %c0_i32 = arith.constant 0 : i32
    %c0_i32_0 = arith.constant 0 : i32
    return %arg0, %c0_i32 : i32, i32
  }
  func.func @transform_4(%arg0: i32, %arg1: i32) -> (i32, i32) {
    %c0_i32 = arith.constant 0 : i32
    %c0_i32_0 = arith.constant 0 : i32
    %c0_i32_1 = arith.constant 0 : i32
    return %c0_i32, %c0_i32_0 : i32, i32
  }
  func.func @transform_5(%arg0: i32, %arg1: i32) -> (i32, i32) {
    %c0_i32 = arith.constant 0 : i32
    %c0_i32_0 = arith.constant 0 : i32
    %c0_i32_1 = arith.constant 0 : i32
    return %c0_i32, %c0_i32_0 : i32, i32
  }
  func.func @transform_6(%arg0: i32, %arg1: i32) -> (i32, i32) {
    %c0_i32 = arith.constant 0 : i32
    %c0_i32_0 = arith.constant 0 : i32
    %c0_i32_1 = arith.constant 0 : i32
    return %c0_i32, %c0_i32_0 : i32, i32
  }
  func.func @transform_7(%arg0: i32, %arg1: i32) -> (i32, i32) {
    %c0_i32 = arith.constant 0 : i32
    %c0_i32_0 = arith.constant 0 : i32
    %c0_i32_1 = arith.constant 0 : i32
    return %c0_i32, %c0_i32_0 : i32, i32
  }
  func.func @transform_8(%arg0: i32, %arg1: i32) -> (i32, i32) {
    %c0_i32 = arith.constant 0 : i32
    %c0_i32_0 = arith.constant 0 : i32
    return %arg0, %c0_i32 : i32, i32
  }
}

</mosaic_0001>

<bundles_post_ra>
// kernel: tpu_custom_call.1
= control target key start
LH: loop header
LB: loop body
LE: loop exit
PB: predicated region body
PF: predicated region fallthrough
CT: control target
= control target key end

     0   :  { %s9925_s0 = inlined_call_operand.hbm [shape: f32[300,300], index: 0, kind: input, shape index: {}]   ;;  %s9926_s1 = inlined_call_operand.hbm [shape: f32[300,300], index: 1, kind: input, shape index: {}]   ;;  %s9927_s2 = inlined_call_operand.vmem [shape: f32[300,48], index: 2, kind: input, shape index: {}]   ;;  %s9928_s3 = inlined_call_operand.vmem [shape: f32[300,48], index: 3, kind: input, shape index: {}]   ;;  %s9929_s4 = inlined_call_operand.vmem [shape: f32[48,256], index: 4, kind: input, shape index: {}]   ;;  %s9930_s5 = inlined_call_operand.vmem [shape: f32[48,128], index: 5, kind: input, shape index: {}]   ;;  %s9931_s6 = inlined_call_operand.vmem [shape: f32[3,128], index: 6, kind: input, shape index: {}]   ;;  %s9932_s7 = inlined_call_operand.vmem [shape: f32[3,3], index: 7, kind: input, shape index: {}]   ;;  %s9933_s8 = inlined_call_operand.hbm [shape: f32[300,128], index: 8, kind: output, shape index: {}]  }
   0x1   :  { %10128 = sst [smem:[#allocation193_spill]] %s9928_s3 }
   0x2   :  { %10129 = sst [smem:[#allocation194_spill]] %s9929_s4 }
   0x3   :  { %10130 = sst [smem:[#allocation195_spill]] %s9930_s5 }
   0x4   :  { %10131 = sst [smem:[#allocation196_spill]] %s9931_s6 }
   0x5   :  { %10132 = sst [smem:[#allocation197_spill]] %s9932_s7 }
   0x6   :  { %10133 = sst [smem:[#allocation198_spill]] %s9933_s8 }
   0x7   :  { %13 = vsyncpa [#allocation5], 0 }
   0x8   :  { %15 = vsyncpa [#allocation5 + $0x1], 0 }
   0x9   :  { %16 = vsyncpa [#allocation9], 0 }
   0xa   :  { %18 = vsyncpa [#allocation9 + $0x1], 0 }
   0xb   :  { %19 = vsyncpa [#allocation7], 0 }
   0xc   :  { %20 = vsyncpa [#allocation6], 0 }
   0xd   :  { %22 = vsyncpa [#allocation6 + $0x1], 0  ;;  %s6584_s27 = smov 0   ;;  %s6586_s28 = smov 0  }
   0xe   :  { %s6588_s29 = smov 0   ;;  %s6590_s30 = smov 0  }
   0xf   :  { %s6592_s9 = smov 0   ;;  %s6594_s10 = smov 0  }
  0x10   :  { %s6596_s11 = smov 0   ;;  %s6598_s12 = smov 0  }
  0x11   :  { %s6600_s13 = smov 0   ;;  %s6602_s14 = smov 0  }
  0x12   :  { %s6604_s15 = smov 0  }
  0x13 LB: > { %10134 = sst [smem:[#allocation16_spill]] %s6484_s27  ;;  %s4996_s16 = sadd.s32 4294967295, %s6524_s15   ;;  %s6524_s15 = sphi %s6604_s15, %s28_s15   ;;  %s6520_s14 = sphi %s6602_s14, %s10701_s14   ;;  %s6516_s13 = sphi %s6600_s13, %s10700_s13   ;;  %s6512_s12 = sphi %s6598_s12, %s10699_s12   ;;  %s6508_s11 = sphi %s6596_s11, %s10698_s11   ;;  %s6504_s10 = sphi %s6594_s10, %s10697_s10   ;;  %s6500_s9 = sphi %s6592_s9, %s10696_s9   ;;  %s6496_s30 = sphi %s6590_s30, %s10695_s30   ;;  %s6492_s29 = sphi %s6588_s29, %s10689_s29   ;;  %s6488_s28 = sphi %s6586_s28, %s10694_s28   ;;  %s6484_s27 = sphi %s6584_s27, %s10693_s27  }
  0x14   : > { %10135 = sst [smem:[#allocation17_spill]] %s6492_s29  ;;  %s4997_s17 = sadd.s32 4294967294, %s6524_s15  }
  0x15   : > { %10136 = sst [smem:[#allocation18_spill]] %s6524_s15  ;;  %s37_s18 = sadd.s32 1, %s6516_s13 }
  0x16   : > { %s40_s19 = sadd.s32 1, %s6520_s14  ;;  %p38_p0 = scmp.ge.s32.totalorder %s37_s18, 2 }
  0x17   : > { %s49_s20 = sadd.s32 1, %s6504_s10  ;;  %p56_p1 = scmp.ne.s32.totalorder %s6504_s10, %s6500_s9 }
  0x18   : > { %p57_p2 = scmp.eq.s32.totalorder %s6524_s15, 0  ;;  %s10703_s18 = smov (%p38_p0, %s37_s18), 0 }
  0x19   : > { %10137 = sst [smem:[#allocation19_spill]] %s10703_s18  ;;  %s10705_s19 = smov (!%p38_p0, %s40_s19), %s6520_s14 }
  0x1a   : > { %s45_s21 = ssub.s32 %s6516_s13, %s10703_s18  ;;  %p6650_p3 = por %p57_p2, %p56_p1 }
  0x1b   : > { %p42_p4 = scmp.ge.s32.totalorder %s10705_s19, 2  ;;  %p62_p5 = scmp.ne.s32.totalorder %s6500_s9, %s6496_s30 }
  0x1c   : > { %p6655_p6 = scmp.eq.s32.totalorder %s4996_s16, 0  ;;  %s239_s24 = sadd.s32 1, %s6492_s29 }
  0x1d   : > { %s10707_s19 = smov (%p42_p4, %s10705_s19), 0  ;;  %p249_p8 = scmp.ne.s32.totalorder %s6492_s29, %s6488_s28 }
  0x1e   : > { %s10139_s23 = scalar_select %p6655_p6, 1, 0 }
  0x1f   : > { %10140 = sst [smem:[#allocation20_spill]] %s10707_s19  ;;  %p6664_p7 = por %p6655_p6, %p62_p5 }
  0x20   : > { %s44_s26 = ssub.s32 %s6520_s14, %s10707_s19  ;;  %p250_p9 = scmp.eq.s32.totalorder %s4996_s16, 3 }
  0x21   : > { %s10141_s25 = scalar_select %p6664_p7, 1, 0 }
  0x22   : > { %s46_s30 = sor.u32 %s45_s21, %s44_s26  ;;  %p237_p10 = scmp.eq.s32.totalorder %s44_s26, 0 }
  0x23   : > { %p47_p11 = scmp.eq.s32.totalorder %s46_s30, 0  ;;  %p6672_p12 = por %p250_p9, %p249_p8 }
  0x24   : > { %s6677_s8 = scalar_select %p237_p10, %s6492_s29, %s239_s24  }
  0x25   : > { %s10142_s18 = scalar_select %p6672_p12, 1, 0 }
  0x26   : > { %10144 = sst [smem:[#allocation22_spill]] %s6677_s8  ;;  %p255_p13 = scmp.ne.s32.totalorder %s6488_s28, %s6484_s27 }
  0x27   : > { %10143 = sst [smem:[#allocation21_spill]] %s10142_s18  ;;  %p256_p0 = scmp.eq.s32.totalorder %s4997_s17, 3 }
  0x28   : > { %s6680_s6 = scalar_select %p47_p11, %s6504_s10, %s49_s20  }
  0x29   : > { %p4998_p1 = scmp.ge.s32.totalorder %s6524_s15, 1  ;;  %p263_p2 = scmp.lt.s32.totalorder %s6524_s15, 5 }
  0x2a   : > { %10145 = sst [smem:[#allocation23_spill]] %s6680_s6  ;;  %p6686_p4 = por %p256_p0, %p255_p13 }
  0x2b   : > { %p6690_p5 = pnand %p4998_p1, %p263_p2  ;;  %s10149_s7 = sld [smem:[#allocation197_spill]] }
  0x2c   : > { %s10146_s5 = scalar_select %p6686_p4, 1, 0 }
  0x2d   : > { %p5574_p8 = pneg %p6690_p5 }
  0x2e   : > { %10147 = sst [smem:[#allocation24_spill]] %s10146_s5 }
  0x2f   : > { %p5575_p9 = pnand %p5574_p8, %p6655_p6 }
  0x31   : > { %s285_s24 = sshll.u32 %s10149_s7, 4  ;;  %p6325_p11 = pneg %p5575_p9  ;;  %s286_s24 = int_to_ptr.vmem [resolvable:$true] %s285_s24 }
  0x32   : > { %s6323_s17 = scalar_lea.vmem %s286_s24, 64  ;;  %p6331_p4 = scmp.lt.s32.totalorder %s286_s24, %s286_s24 }
  0x33   : > { %p6324_p10 = scmp.ne.s32.totalorder %s286_s24, %s6323_s17  ;;  %p6332_p1 = scmp.lt.s32.totalorder %s6323_s17, %s6323_s17 }
  0x35   : > { %p6326_p13 = pnand %p6325_p11, %p6324_p10  ;;  %p6333_p2 = por %p6332_p1, %p6331_p4 }
  0x37   : > { %p6327_p0 = pneg %p6326_p13 }
  0x39   : > { %p6334_p12 = pnand %p6333_p2, %p6327_p0 }
  0x3b   : > { %6337 = shalt.err (!%p6334_p12)
}
  0x3c   : > { %s6526_s20 = smov [#allocation10]   ;;  %p5000_p7 = scmp.ge.s32.totalorder %s6524_s15, 4 }
  0x3d   : > { %5577 = dma.vmem_to_smem (!%p5575_p9), %s286_s24, 64, %s6526_s20, [#allocation7]  }
  0x3e   : > { %292 = sbr.rel (%p5000_p7) target bundleno = 147 (0x93), region = 32 }
  0x45   : > { %295 = sbr.rel (!%p6650_p3) target bundleno = 108 (0x6c), region = 36  ;;  %s296_s30 = sand.u32 (%p6650_p3), 1, %s6504_s10  }
  0x46   : > { %s5002_s21 = sshll.u32 (%p6650_p3), %s6520_s14, 5  ;;  %s5001_s26 = sshll.u32 (%p6650_p3), %s296_s30, 9 }
  0x47   : > { %s5003_s7 = sshll.u32 (%p6650_p3), %s6516_s13, 1  ;;  %s303_s19 = ssub.s32 (%p6650_p3), 38, %s5002_s21 }
  0x48   : > { %s307_s17 = ssub.s32 (%p6650_p3), 3, %s5003_s7  ;;  %p304_p4 = scmp.lt.s32.totalorder (%p6650_p3), %s303_s19, 32 }
  0x49   : > { %p308_p8 = scmp.lt.s32.totalorder (%p6650_p3), %s307_s17, 2  ;;  %s6713_s8 = scalar_lea.sflag (%p6650_p3), [#allocation5], %s296_s30 }
  0x4a   : > { %s300_s29 = scalar_lea.vmem (%p6650_p3), [#allocation4], %s5001_s26 }
  0x4c   : > { %s10709_s19 = smov (!%p304_p4, %s303_s19), 32  ;;  %s10711_s17 = smov (!%p308_p8, %s307_s17), 2 }
  0x4d   : > { %s5004_s24 = sshll.u32 %s10709_s19, 7 }
  0x4e   : > { %s6710_s20 = smul.u32 %s5004_s24, %s10711_s17 }
  0x50   : > { %s312_s6 = ssub.s32 8192, %s6710_s20 }
  0x51   : > { %313 = vsyncadd %s6713_s8, %s312_s6  ;;  %p5005_p7 = scmp.ne.s32.totalorder %s6710_s20, 0  ;;  %s5565_s21 = smul.u32 96, %s6520_s14 }
  0x52   : > { %s5008_s5 = sshll.u32 %s10711_s17, 3  ;;  %s321_s27 = sshll.u32 %s300_s29, 4  ;;  %s6721_s27 = int_to_ptr.vmem [resolvable:$true] %s321_s27 }
  0x53   : > { %s316_s15 = sadd.s32 %s5565_s21, %s5003_s7  ;;  %s320_s24 = smul.u32 %s5008_s5, %s10709_s19 }
  0x54   : > { %s5007_s18 = sshll.u32 %s316_s15, 7  ;;  %s6342_s15 = scalar_lea.hbm %s9925_s0, 14592 }
  0x55   : > { %s6726_s26 = scalar_lea.hbm %s9925_s0, %s5007_s18  ;;  %s6728_s6 = sshll.u32 %s320_s24, 4 }
  0x56   : > { %s6338_s3 = scalar_lea.hbm %s6726_s26, %s6728_s6  ;;  %p6343_p11 = scmp.lt.u32.totalorder %s6726_s26, %s9925_s0 }
  0x57   : > { %p6339_p12 = scmp.ne.s32.totalorder %s6726_s26, %s6338_s3  ;;  %p6344_p13 = scmp.lt.u32.totalorder %s6342_s15, %s6338_s3 }
  0x58   : > { %p6346_p1 = scmp.lt.u32.totalorder %s6338_s3, %s6726_s26 }
  0x59   : > { %p6340_p9 = pnand %p6339_p12, %p5005_p7  ;;  %p6345_p0 = por %p6344_p13, %p6343_p11 }
  0x5b   : > { %p6341_p10 = pneg %p6340_p9  ;;  %p6347_p2 = por %p6346_p1, %p6345_p0 }
  0x5d   : > { %p6348_p4 = pnand %p6347_p2, %p6341_p10 }
  0x5f   : > { %6351 = shalt.err (!%p6348_p4)
}
  0x60   : > { %s6352_s18 = scalar_lea.vmem %s6721_s27, %s6728_s6  ;;  %s6527_s21 = smov [#allocation4]  }
  0x61   : > { %p6353_p8 = scmp.ne.s32.totalorder %s6721_s27, %s6352_s18  ;;  %s6356_s24 = sshll.u32 %s6527_s21, 4  ;;  %s6357_s24 = int_to_ptr.vmem [resolvable:$false] %s6356_s24 }
  0x62   : > { %s6358_s30 = scalar_lea.vmem %s6357_s24, 16384  ;;  %p6359_p6 = scmp.lt.s32.totalorder %s6721_s27, %s6357_s24 }
  0x63   : > { %p6354_p12 = pnand %p6353_p8, %p5005_p7  ;;  %p6360_p11 = scmp.lt.s32.totalorder %s6358_s30, %s6352_s18 }
  0x65   : > { %p6355_p9 = pneg %p6354_p12  ;;  %p6361_p13 = por %p6360_p11, %p6359_p6 }
  0x67   : > { %p6362_p0 = pnand %p6361_p13, %p6355_p9 }
  0x69   : > { %6365 = shalt.err (!%p6362_p0)
}
  0x6a   : > { %s6528_s3 = smov 384   ;;  %s6529_s7 = smov 256  }
  0x6b   : > { %327 = dma.hbm_to_vmem [thread:$0]  (%p5005_p7), %s6726_s26, %s6728_s6, %s6721_s27, %s6713_s8, %s6528_s3, %s6529_s7, %s5008_s5  }
  0x6c PF: > { %330 = sbr.rel (!%p6650_p3) target bundleno = 147 (0x93), region = 40  ;;  %s331_s29 = sand.u32 (%p6650_p3), 1, %s6504_s10  }
  0x6d   : > { %s5010_s15 = sshll.u32 (%p6650_p3), %s6520_s14, 5  ;;  %s5009_s19 = sshll.u32 (%p6650_p3), %s331_s29, 9 }
  0x6e   : > { %s5011_s4 = sshll.u32 (%p6650_p3), %s6516_s13, 1  ;;  %s338_s18 = ssub.s32 (%p6650_p3), 38, %s5010_s15 }
  0x6f   : > { %s342_s21 = ssub.s32 (%p6650_p3), 3, %s5011_s4  ;;  %p339_p6 = scmp.lt.s32.totalorder (%p6650_p3), %s338_s18, 32 }
  0x70   : > { %p343_p10 = scmp.lt.s32.totalorder (%p6650_p3), %s342_s21, 2  ;;  %s6768_s22 = scalar_lea.sflag (%p6650_p3), [#allocation9], %s331_s29 }
  0x71   : > { %s335_s17 = scalar_lea.vmem (%p6650_p3), [#allocation8], %s5009_s19 }
  0x73   : > { %s10713_s18 = smov (!%p339_p6, %s338_s18), 32  ;;  %s10715_s21 = smov (!%p343_p10, %s342_s21), 2 }
  0x74   : > { %s5012_s5 = sshll.u32 %s10713_s18, 7 }
  0x75   : > { %s6765_s8 = smul.u32 %s5012_s5, %s10715_s21 }
  0x77   : > { %s347_s27 = ssub.s32 8192, %s6765_s8 }
  0x78   : > { %348 = vsyncadd %s6768_s22, %s347_s27  ;;  %p5013_p3 = scmp.ne.s32.totalorder %s6765_s8, 0  ;;  %s5566_s20 = smul.u32 96, %s6520_s14 }
  0x79   : > { %s5016_s26 = sshll.u32 %s10715_s21, 3  ;;  %s356_s6 = sshll.u32 %s335_s17, 4  ;;  %s6776_s6 = int_to_ptr.vmem [resolvable:$true] %s356_s6 }
  0x7a   : > { %s351_s24 = sadd.s32 %s5566_s20, %s5011_s4  ;;  %s355_s30 = smul.u32 %s5016_s26, %s10713_s18 }
  0x7b   : > { %s5015_s3 = sshll.u32 %s351_s24, 7  ;;  %s6370_s27 = scalar_lea.hbm %s9926_s1, 14592 }
  0x7c   : > { %s6781_s15 = scalar_lea.hbm %s9926_s1, %s5015_s3  ;;  %s6783_s19 = sshll.u32 %s355_s30, 4 }
  0x7d   : > { %s6366_s5 = scalar_lea.hbm %s6781_s15, %s6783_s19  ;;  %p6371_p4 = scmp.lt.u32.totalorder %s6781_s15, %s9926_s1 }
  0x7e   : > { %p6367_p7 = scmp.ne.s32.totalorder %s6781_s15, %s6366_s5  ;;  %p6372_p8 = scmp.lt.u32.totalorder %s6370_s27, %s6366_s5 }
  0x7f   : > { %p6374_p9 = scmp.lt.u32.totalorder %s6366_s5, %s6781_s15 }
  0x80   : > { %p6368_p1 = pnand %p6367_p7, %p5013_p3  ;;  %p6373_p12 = por %p6372_p8, %p6371_p4 }
  0x82   : > { %p6369_p2 = pneg %p6368_p1  ;;  %p6375_p11 = por %p6374_p9, %p6373_p12 }
  0x84   : > { %p6376_p13 = pnand %p6375_p11, %p6369_p2 }
  0x86   : > { %6379 = shalt.err (!%p6376_p13)
}
  0x87   : > { %s6380_s24 = scalar_lea.vmem %s6776_s6, %s6783_s19  ;;  %s6530_s30 = smov [#allocation8]  }
  0x88   : > { %p6381_p0 = scmp.ne.s32.totalorder %s6776_s6, %s6380_s24  ;;  %s6384_s3 = sshll.u32 %s6530_s30, 4  ;;  %s6385_s3 = int_to_ptr.vmem [resolvable:$false] %s6384_s3 }
  0x89   : > { %s6386_s7 = scalar_lea.vmem %s6385_s3, 16384  ;;  %p6387_p7 = scmp.lt.s32.totalorder %s6776_s6, %s6385_s3 }
  0x8a   : > { %p6382_p6 = pnand %p6381_p0, %p5013_p3  ;;  %p6388_p1 = scmp.lt.s32.totalorder %s6386_s7, %s6380_s24 }
  0x8c   : > { %p6383_p10 = pneg %p6382_p6  ;;  %p6389_p4 = por %p6388_p1, %p6387_p7 }
  0x8e   : > { %p6390_p8 = pnand %p6389_p4, %p6383_p10 }
  0x90   : > { %6393 = shalt.err (!%p6390_p8)
}
  0x91   : > { %s6531_s29 = smov 384   ;;  %s6532_s5 = smov 256  }
  0x92   : > { %362 = dma.hbm_to_vmem [thread:$0]  (%p5013_p3), %s6781_s15, %s6783_s19, %s6776_s6, %s6768_s22, %s6531_s29, %s6532_s5, %s5016_s26  }
  0x93 PF: > { %402 = sbr.rel (%p6690_p5) target bundleno = 1670 (0x686), region = 52  ;;  %s404_s4 = sand.u32 (!%p6690_p5), 1, %s6500_s9  }
  0x94   : > { %s5018_s18 = sshll.u32 (!%p6690_p5), %s404_s4, 9  ;;  %s405_s27 = scalar_lea.sflag (!%p6690_p5), [#allocation5], %s404_s4 }
  0x95   : > { %s6815_s17 = scalar_lea.vmem (!%p6690_p5), [#allocation4], %s5018_s18  ;;  %p10150_p2 = scmp.ne.s32.totalorder (!%p6690_p5), %s10141_s25, 0 }
  0x9a   : > { %6467 = dma.done.wait (%p10150_p2), %s405_s27, 8192  }
  0x9b   : > { %6469 = vsyncadd (%p10150_p2), %s405_s27, 4294959104  ;;  %s414_s21 = scalar_lea.sflag [#allocation9], %s404_s4  ;;  %s6821_s8 = scalar_lea.vmem [#allocation8], %s5018_s18 }
  0x9c   : > { %6471 = dma.done.wait (%p10150_p2), %s414_s21, 8192  }
  0x9d   : > { %6473 = vsyncadd (%p10150_p2), %s414_s21, 4294959104  ;;  %p10151_p5 = scmp.ne.s32.totalorder %s10139_s23, 0 }
  0x9f   : > { %6475 = dma.done.wait (%p10151_p5), [#allocation7], 64  }
  0xa0   : > { %6477 = vsyncadd (%p10151_p5), [#allocation7], 4294967232 }
  0xa1   : > { %426 = sfence }
  0xa2   : > { %s475_s16 = sand.u32 1, %s6488_s28   ;;  %s5022_s22 = sshll.u32 %s6508_s11, 5 }
  0xa3   : > { %s5021_s26 = sshll.u32 %s475_s16, 8  ;;  %p503_p3 = scmp.lt.s32.totalorder %s5022_s22, 37 }
  0xa4   : > { %s6836_s6 = sshll.u32 %s6512_s12, 5  ;;  %s10152_s7 = sld [smem:[#allocation193_spill]] }
  0xa5   : > { %s10717_s22 = smov (!%p503_p3, %s5022_s22), 37  ;;  %p517_p12 = scmp.lt.s32.totalorder %s6836_s6, 37 }
  0xa6   : > { %s5023_s25 = sshll.u32 %s10717_s22, 3  ;;  %s6850_s5 = scalar_lea.vmem [#allocation11], %s5021_s26 }
  0xa7   : > { %s6842_s19 = scalar_lea.vmem %s9927_s2, %s5023_s25  ;;  %p5026_p9 = scmp.ne.s32.totalorder %s6508_s11, 0 }
  0xa8   : > { %s518_s20 = scalar_select %p517_p12, %s6836_s6, 37 }
  0xa9   : > { %534 = sbr.rel (%p5026_p9) target bundleno = 202 (0xca), region = 68  ;;  %v6533_v0 = vmov (!%p5026_p9), 0.0  }
  0xaa   : > { %s5025_s24 = sshll.u32 %s518_s20, 3  ;;  %535 = vst [vmem:[#allocation2] sm:$0xff] (!%p5026_p9), %v6533_v0  ;;  %536 = vst [vmem:[#allocation2 + $0x8] sm:$0xff] (!%p5026_p9), %v6533_v0 }
  0xab   : > { %s6848_s29 = scalar_lea.vmem %s10152_s7, %s5025_s24  ;;  %537 = vst [vmem:[#allocation2 + $0x10] sm:$0xff] (!%p5026_p9), %v6533_v0  ;;  %538 = vst [vmem:[#allocation2 + $0x18] sm:$0xff] (!%p5026_p9), %v6533_v0 }
  0xac   : > { %539 = vst [vmem:[#allocation2 + $0x20] sm:$0xff] (!%p5026_p9), %v6533_v0  ;;  %540 = vst [vmem:[#allocation2 + $0x28] sm:$0xff] (!%p5026_p9), %v6533_v0 }
  0xad   : > { %541 = vst [vmem:[#allocation2 + $0x30] sm:$0xff] (!%p5026_p9), %v6533_v0  ;;  %542 = vst [vmem:[#allocation2 + $0x38] sm:$0xff] (!%p5026_p9), %v6533_v0 }
  0xae   : > { %543 = vst [vmem:[#allocation2 + $0x40] sm:$0xff] (!%p5026_p9), %v6533_v0  ;;  %544 = vst [vmem:[#allocation2 + $0x48] sm:$0xff] (!%p5026_p9), %v6533_v0 }
  0xaf   : > { %545 = vst [vmem:[#allocation2 + $0x50] sm:$0xff] (!%p5026_p9), %v6533_v0  ;;  %546 = vst [vmem:[#allocation2 + $0x58] sm:$0xff] (!%p5026_p9), %v6533_v0 }
  0xb0   : > { %547 = vst [vmem:[#allocation2 + $0x60] sm:$0xff] %v6533_v0  ;;  %548 = vst [vmem:[#allocation2 + $0x68] sm:$0xff] %v6533_v0 }
  0xb1   : > { %549 = vst [vmem:[#allocation2 + $0x70] sm:$0xff] %v6533_v0  ;;  %550 = vst [vmem:[#allocation2 + $0x78] sm:$0xff] %v6533_v0 }
  0xb2   : > { %551 = vst [vmem:[#allocation2 + $0x80] sm:$0xff] %v6533_v0  ;;  %552 = vst [vmem:[#allocation2 + $0x88] sm:$0xff] %v6533_v0 }
  0xb3   : > { %553 = vst [vmem:[#allocation2 + $0x90] sm:$0xff] %v6533_v0  ;;  %554 = vst [vmem:[#allocation2 + $0x98] sm:$0xff] %v6533_v0 }
  0xb4   : > { %555 = vst [vmem:[#allocation2 + $0xa0] sm:$0xff] %v6533_v0  ;;  %556 = vst [vmem:[#allocation2 + $0xa8] sm:$0xff] %v6533_v0 }
  0xb5   : > { %557 = vst [vmem:[#allocation2 + $0xb0] sm:$0xff] %v6533_v0  ;;  %558 = vst [vmem:[#allocation2 + $0xb8] sm:$0xff] %v6533_v0 }
  0xb6   : > { %559 = vst [vmem:[#allocation2 + $0xc0] sm:$0xff] %v6533_v0  ;;  %560 = vst [vmem:[#allocation2 + $0xc8] sm:$0xff] %v6533_v0 }
  0xb7   : > { %561 = vst [vmem:[#allocation2 + $0xd0] sm:$0xff] %v6533_v0  ;;  %562 = vst [vmem:[#allocation2 + $0xd8] sm:$0xff] %v6533_v0 }
  0xb8   : > { %563 = vst [vmem:[#allocation2 + $0xe0] sm:$0xff] %v6533_v0  ;;  %564 = vst [vmem:[#allocation2 + $0xe8] sm:$0xff] %v6533_v0 }
  0xb9   : > { %565 = vst [vmem:[#allocation2 + $0xf0] sm:$0xff] %v6533_v0  ;;  %566 = vst [vmem:[#allocation2 + $0xf8] sm:$0xff] %v6533_v0 }
  0xba   : > { %567 = vst [vmem:[#allocation3] sm:$0xff] %v6533_v0  ;;  %568 = vst [vmem:[#allocation3 + $0x8] sm:$0xff] %v6533_v0 }
  0xbb   : > { %569 = vst [vmem:[#allocation3 + $0x10] sm:$0xff] %v6533_v0  ;;  %570 = vst [vmem:[#allocation3 + $0x18] sm:$0xff] %v6533_v0 }
  0xbc   : > { %571 = vst [vmem:[#allocation3 + $0x20] sm:$0xff] %v6533_v0  ;;  %572 = vst [vmem:[#allocation3 + $0x28] sm:$0xff] %v6533_v0 }
  0xbd   : > { %573 = vst [vmem:[#allocation3 + $0x30] sm:$0xff] %v6533_v0  ;;  %574 = vst [vmem:[#allocation3 + $0x38] sm:$0xff] %v6533_v0 }
  0xbe   : > { %575 = vst [vmem:[#allocation3 + $0x40] sm:$0xff] %v6533_v0  ;;  %576 = vst [vmem:[#allocation3 + $0x48] sm:$0xff] %v6533_v0 }
  0xbf   : > { %577 = vst [vmem:[#allocation3 + $0x50] sm:$0xff] %v6533_v0  ;;  %578 = vst [vmem:[#allocation3 + $0x58] sm:$0xff] %v6533_v0 }
  0xc0   : > { %579 = vst [vmem:[#allocation3 + $0x60] sm:$0xff] %v6533_v0  ;;  %580 = vst [vmem:[#allocation3 + $0x68] sm:$0xff] %v6533_v0 }
  0xc1   : > { %581 = vst [vmem:[#allocation3 + $0x70] sm:$0xff] %v6533_v0  ;;  %582 = vst [vmem:[#allocation3 + $0x78] sm:$0xff] %v6533_v0 }
  0xc2   : > { %583 = vst [vmem:[#allocation3 + $0x80] sm:$0xff] %v6533_v0  ;;  %584 = vst [vmem:[#allocation3 + $0x88] sm:$0xff] %v6533_v0 }
  0xc3   : > { %585 = vst [vmem:[#allocation3 + $0x90] sm:$0xff] %v6533_v0  ;;  %586 = vst [vmem:[#allocation3 + $0x98] sm:$0xff] %v6533_v0 }
  0xc4   : > { %587 = vst [vmem:[#allocation3 + $0xa0] sm:$0xff] %v6533_v0  ;;  %588 = vst [vmem:[#allocation3 + $0xa8] sm:$0xff] %v6533_v0 }
  0xc5   : > { %589 = vst [vmem:[#allocation3 + $0xb0] sm:$0xff] %v6533_v0  ;;  %590 = vst [vmem:[#allocation3 + $0xb8] sm:$0xff] %v6533_v0 }
  0xc6   : > { %591 = vst [vmem:[#allocation3 + $0xc0] sm:$0xff] %v6533_v0  ;;  %592 = vst [vmem:[#allocation3 + $0xc8] sm:$0xff] %v6533_v0 }
  0xc7   : > { %593 = vst [vmem:[#allocation3 + $0xd0] sm:$0xff] %v6533_v0  ;;  %594 = vst [vmem:[#allocation3 + $0xd8] sm:$0xff] %v6533_v0 }
  0xc8   : > { %595 = vst [vmem:[#allocation3 + $0xe0] sm:$0xff] %v6533_v0  ;;  %596 = vst [vmem:[#allocation3 + $0xe8] sm:$0xff] %v6533_v0 }
  0xc9   : > { %597 = vst [vmem:[#allocation3 + $0xf0] sm:$0xff] %v6533_v0  ;;  %598 = vst [vmem:[#allocation3 + $0xf8] sm:$0xff] %v6533_v0 }
  0xca PF: > { %s10153_s27 = sld [smem:[#allocation194_spill]]  ;;  %s5027_s23 = sshll.u32 %s6508_s11, 8  ;;  %v760_v4 = vlaneseq  ;;  %v6534_v9 = vmov 0.0   ;;  %v727_v29 = vld [vmem:[%s6842_s19] sm:$0xff]  ;;  %vm1037_vm1 = vcmask 392192   ;;  %v728_v36 = vld [vmem:[%s6842_s19 + $0x8] sm:$0xff] }
  0xcb   : > { %1198 = vmatprep.mubr.f32.mxu0 %v6534_v9  ;;  %v6937_v10 = vstv %s5027_s23  ;;  %1294 = vmatprep.mubr.f32.mxu1 %v6534_v9  ;;  %v743_v38 = vld [vmem:[%s6842_s19 + $0x80] sm:$0xff]  ;;  %v744_v42 = vld [vmem:[%s6842_s19 + $0x88] sm:$0xff]  ;;  %v729_v47 = vld [vmem:[%s6842_s19 + $0x10] sm:$0xff]  ;;  %p5188_p11 = scmp.ne.s32.totalorder %s6508_s11, 1 }
  0xcc   : > { %v761_v16 = vand.u32 127, %v760_v4  ;;  %v6949_v17 = vshrl.u32 %v760_v4, 7  ;;  %v745_v51 = vld [vmem:[%s6842_s19 + $0x90] sm:$0xff]  ;;  %v730_v55 = vld [vmem:[%s6842_s19 + $0x18] sm:$0xff]  ;;  %v731_v63 = vld [vmem:[%s6842_s19 + $0x20] sm:$0xff] }
  0xcd   : > { %v746_v59 = vld [vmem:[%s6842_s19 + $0x98] sm:$0xff] }
  0xce   : > { %v762_v20 = vadd.s32 128, %v761_v16  ;;  %v6955_v21 = vadd.s32 %v6937_v10, %v761_v16  ;;  %v929_v25 = vadd.s32 %v6949_v17, %v6937_v10  ;;  %v898_v26 = vadd.s32 8, %v6949_v17 }
  0xcf   : > { %v899_v31 = vadd.s32 16, %v6949_v17  ;;  %v913_v32 = vadd.s32 128, %v6949_v17  ;;  %v900_v34 = vadd.s32 24, %v6949_v17  ;;  %v914_v35 = vadd.s32 136, %v6949_v17 }
  0xd0   : > { %s10154_s21 = smov %s10153_s27  ;;  %v1026_v1 = vld [vmem:[%s10153_s27 + $0x8] sm:$0xff]  ;;  %v6967_v27 = vadd.s32 %v6937_v10, %v762_v20  ;;  %vm961_vm0 = vcmp.lt.s32.totalorder %v929_v25, 300  ;;  %v930_v30 = vadd.s32 %v898_v26, %v6937_v10  ;;  %v915_v40 = vadd.s32 144, %v6949_v17 }
  0xd1   : > { %v1028_v2 = vld [vmem:[%s10154_s21 + $0x18] sm:$0xff]  ;;  %v1025_v3 = vld [vmem:[%s10154_s21] sm:$0xff]  ;;  %v1027_v6 = vld [vmem:[%s10154_s21 + $0x10] sm:$0xff]  ;;  %v993_v33 = vsel %vm961_vm0, %v727_v29, 0.0  ;;  %v931_v37 = vadd.s32 %v899_v31, %v6937_v10  ;;  %v945_v39 = vadd.s32 %v913_v32, %v6937_v10  ;;  %v946_v41 = vadd.s32 %v914_v35, %v6937_v10 }
  0xd2   : > { %v5433_v5 = vpack.c.bf16 %v1028_v2, %v1026_v1  ;;  %v1030_v7 = vld [vmem:[%s10154_s21 + $0x28] sm:$0xff]  ;;  %v1032_v8 = vld [vmem:[%s10154_s21 + $0x38] sm:$0xff]  ;;  %v5435_v11 = vpack.c.bf16 %v1027_v6, %v1025_v3  ;;  %v1029_v13 = vld [vmem:[%s10154_s21 + $0x20] sm:$0xff]  ;;  %vm962_vm2 = vcmp.lt.s32.totalorder %v930_v30, 300  ;;  %v947_v43 = vadd.s32 %v915_v40, %v6937_v10 }
  0xd3   : > { %v5437_v12 = vpack.c.bf16 %v1032_v8, %v1030_v7  ;;  %v1031_v14 = vld [vmem:[%s10154_s21 + $0x30] sm:$0xff]  ;;  %v1034_v15 = vld [vmem:[%s10154_s21 + $0x48] sm:$0xff]  ;;  %v1036_v18 = vld [vmem:[%s10154_s21 + $0x58] sm:$0xff]  ;;  %vm977_vm3 = vcmp.lt.s32.totalorder %v945_v39, 300  ;;  %v916_v44 = vadd.s32 152, %v6949_v17  ;;  %v994_v45 = vsel %vm962_vm2, %v728_v36, 0.0 }
  0xd4   : > { %5434 = vmatprep.subr.bf16.mxu0 %v5433_v5  ;;  %5553 = vmatprep.subr.bf16.mxu1 %v5433_v5  ;;  %v5439_v19 = vpack.c.bf16 %v1031_v14, %v1029_v13  ;;  %v5441_v22 = vpack.c.bf16 %v1036_v18, %v1034_v15  ;;  %v1033_v23 = vld [vmem:[%s10154_s21 + $0x40] sm:$0xff]  ;;  %v1035_v24 = vld [vmem:[%s10154_s21 + $0x50] sm:$0xff]  ;;  %v1009_v46 = vsel %vm977_vm3, %v743_v38, 0.0  ;;  %vm978_vm4 = vcmp.lt.s32.totalorder %v946_v41, 300  ;;  %v732_v7 = vld [vmem:[%s6842_s19 + $0x28] sm:$0xff] }
  0xd5   : > { %5436 = vmatpush1.bf16.msra.mxu0 %v5435_v11  ;;  %5556 = vmatpush1.bf16.msra.mxu1 %v5435_v11  ;;  %v5443_v28 = vpack.c.bf16 %v1035_v24, %v1033_v23  ;;  %vm963_vm5 = vcmp.lt.s32.totalorder %v931_v37, 300  ;;  %v932_v48 = vadd.s32 %v900_v34, %v6937_v10  ;;  %v901_v49 = vadd.s32 32, %v6949_v17  ;;  %v747_v3 = vld [vmem:[%s6842_s19 + $0xa0] sm:$0xff]  ;;  %v748_v13 = vld [vmem:[%s6842_s19 + $0xa8] sm:$0xff]  ;;  %v733_v18 = vld [vmem:[%s6842_s19 + $0x30] sm:$0xff] }
  0xd6   : > { %5438 = vmatprep.subr.bf16.mxu0 %v5437_v12  ;;  %5554 = vmatprep.subr.bf16.mxu1 %v5437_v12  ;;  %v1010_v50 = vsel %vm978_vm4, %v744_v42, 0.0  ;;  %vm979_vm6 = vcmp.lt.s32.totalorder %v947_v43, 300  ;;  %v948_v52 = vadd.s32 %v916_v44, %v6937_v10  ;;  %v917_v53 = vadd.s32 160, %v6949_v17  ;;  %v749_v23 = vld [vmem:[%s6842_s19 + $0xb0] sm:$0xff]  ;;  %v750_v32 = vld [vmem:[%s6842_s19 + $0xb8] sm:$0xff]  ;;  %v735_v36 = vld [vmem:[%s6842_s19 + $0x40] sm:$0xff] }
  0xd7   : > { %v995_v54 = vsel %vm963_vm5, %v729_v47, 0.0  ;;  %vm964_vm7 = vcmp.lt.s32.totalorder %v932_v48, 300  ;;  %v933_v56 = vadd.s32 %v901_v49, %v6937_v10  ;;  %v902_v57 = vadd.s32 40, %v6949_v17  ;;  %v751_v40 = vld [vmem:[%s6842_s19 + $0xc0] sm:$0xff]  ;;  %v736_v44 = vld [vmem:[%s6842_s19 + $0x48] sm:$0xff] }
  0xd8   : > { %v1011_v58 = vsel %vm979_vm6, %v745_v51, 0.0  ;;  %vm980_vm8 = vcmp.lt.s32.totalorder %v948_v52, 300  ;;  %v949_v60 = vadd.s32 %v917_v53, %v6937_v10  ;;  %v918_v61 = vadd.s32 168, %v6949_v17  ;;  %v752_v48 = vld [vmem:[%s6842_s19 + $0xc8] sm:$0xff]  ;;  %v737_v52 = vld [vmem:[%s6842_s19 + $0x50] sm:$0xff] }
  0xd9   : > { %5440 = vmatpush1.bf16.msra.mxu0 %v5439_v19  ;;  %5557 = vmatpush1.bf16.msra.mxu1 %v5439_v19  ;;  %v996_v62 = vsel %vm964_vm7, %v730_v55, 0.0  ;;  %vm965_vm9 = vcmp.lt.s32.totalorder %v933_v56, 300  ;;  %v934_v0 = vadd.s32 %v902_v57, %v6937_v10  ;;  %v903_v1 = vadd.s32 48, %v6949_v17  ;;  %v753_v56 = vld [vmem:[%s6842_s19 + $0xd0] sm:$0xff] }
  0xda   : > { %5442 = vmatprep.subr.bf16.mxu0 %v5441_v22  ;;  %5555 = vmatprep.subr.bf16.mxu1 %v5441_v22  ;;  %v1012_v2 = vsel %vm980_vm8, %v746_v59, 0.0  ;;  %vm981_vm10 = vcmp.lt.s32.totalorder %v949_v60, 300  ;;  %v950_v4 = vadd.s32 %v918_v61, %v6937_v10  ;;  %v919_v5 = vadd.s32 176, %v6949_v17  ;;  %v738_v60 = vld [vmem:[%s6842_s19 + $0x58] sm:$0xff] }
  0xdb   : > { %v997_v6 = vsel %vm965_vm9, %v731_v63, 0.0  ;;  %vm966_vm11 = vcmp.lt.s32.totalorder %v934_v0, 300  ;;  %v935_v8 = vadd.s32 %v903_v1, %v6937_v10  ;;  %v904_v11 = vadd.s32 56, %v6949_v17  ;;  %v754_v0 = vld [vmem:[%s6842_s19 + $0xd8] sm:$0xff] }
  0xdc   : > { %v1013_v12 = vsel %vm981_vm10, %v747_v3, 0.0  ;;  %vm982_vm12 = vcmp.lt.s32.totalorder %v950_v4, 300  ;;  %v951_v14 = vadd.s32 %v919_v5, %v6937_v10  ;;  %v920_v15 = vadd.s32 184, %v6949_v17  ;;  %v739_v4 = vld [vmem:[%s6842_s19 + $0x60] sm:$0xff] }
  0xdd   : > { %5444 = vmatpush1.bf16.msra.mxu0 %v5443_v28  ;;  %5558 = vmatpush1.bf16.msra.mxu1 %v5443_v28  ;;  %v998_v16 = vsel %vm966_vm11, %v732_v7, 0.0  ;;  %vm967_vm13 = vcmp.lt.s32.totalorder %v935_v8, 300  ;;  %v936_v19 = vadd.s32 %v904_v11, %v6937_v10  ;;  %v905_v20 = vadd.s32 64, %v6949_v17  ;;  %v734_v28 = vld [vmem:[%s6842_s19 + $0x38] sm:$0xff]  ;;  %v755_v8 = vld [vmem:[%s6842_s19 + $0xe0] sm:$0xff] }
  0xde   : > { %v1014_v22 = vsel %vm982_vm12, %v748_v13, 0.0  ;;  %vm983_vm14 = vcmp.lt.s32.totalorder %v951_v14, 300  ;;  %v952_v24 = vadd.s32 %v920_v15, %v6937_v10  ;;  %v921_v25 = vadd.s32 192, %v6949_v17  ;;  %v740_v14 = vld [vmem:[%s6842_s19 + $0x68] sm:$0xff] }
  0xdf   : > { %v999_v26 = vsel %vm967_vm13, %v733_v18, 0.0  ;;  %vm968_vm15 = vcmp.lt.s32.totalorder %v936_v19, 300  ;;  %v937_v29 = vadd.s32 %v905_v20, %v6937_v10  ;;  %v906_v30 = vadd.s32 72, %v6949_v17  ;;  %v756_v19 = vld [vmem:[%s6842_s19 + $0xe8] sm:$0xff] }
  0xe0   : > { %5028 = vmatmul.mubr.msk.f32.vlgmr.msra.gmra.mrb[0].mxu0 %vm1037_vm1, %v993_v33  ;;  %5044 = vmatmul.mubr.msk.f32.vlgmr.msra.gmra.mrb[0].mxu1 %vm1037_vm1, %v1009_v46  ;;  %v1015_v31 = vsel %vm983_vm14, %v749_v23, 0.0  ;;  %vm984_vm0 = vcmp.lt.s32.totalorder %v952_v24, 300  ;;  %v953_v33 = vadd.s32 %v921_v25, %v6937_v10  ;;  %v922_v34 = vadd.s32 200, %v6949_v17  ;;  %v741_v24 = vld [vmem:[%s6842_s19 + $0x70] sm:$0xff] }
  0xe1   : > { %1204 = vmatprep.mubr.f32.mxu0 %v6534_v9  ;;  %1300 = vmatprep.mubr.f32.mxu1 %v6534_v9  ;;  %v1000_v35 = vsel %vm968_vm15, %v734_v28, 0.0  ;;  %vm969_vm2 = vcmp.lt.s32.totalorder %v937_v29, 300  ;;  %v938_v37 = vadd.s32 %v906_v30, %v6937_v10  ;;  %v907_v38 = vadd.s32 80, %v6949_v17  ;;  %v757_v28 = vld [vmem:[%s6842_s19 + $0xf0] sm:$0xff] }
  0xe2   : > { %v1016_v39 = vsel %vm984_vm0, %v750_v32, 0.0  ;;  %vm985_vm3 = vcmp.lt.s32.totalorder %v953_v33, 300  ;;  %v954_v41 = vadd.s32 %v922_v34, %v6937_v10  ;;  %v923_v42 = vadd.s32 208, %v6949_v17  ;;  %v758_v33 = vld [vmem:[%s6842_s19 + $0xf8] sm:$0xff] }
  0xe3   : > { %v1001_v43 = vsel %vm969_vm2, %v735_v36, 0.0  ;;  %vm970_vm4 = vcmp.lt.s32.totalorder %v938_v37, 300  ;;  %v908_v46 = vadd.s32 88, %v6949_v17  ;;  %v1017_v47 = vsel %vm985_vm3, %v751_v40, 0.0  ;;  %v600_v36 = vld [vmem:[%s6815_s17 + $0x8] sm:$0xff] }
  0xe4   : > { %5029 = vmatmul.mubr.msk.f32.gmra.mrb[2].mxu0 %vm1037_vm1, %v994_v45  ;;  %5045 = vmatmul.mubr.msk.f32.gmra.mrb[2].mxu1 %vm1037_vm1, %v1010_v50  ;;  %v939_v45 = vadd.s32 %v907_v38, %v6937_v10  ;;  %vm986_vm5 = vcmp.lt.s32.totalorder %v954_v41, 300  ;;  %v955_v49 = vadd.s32 %v923_v42, %v6937_v10  ;;  %v924_v50 = vadd.s32 216, %v6949_v17  ;;  %v664_v37 = vld [vmem:[%s6821_s8 + $0x8] sm:$0xff] }
  0xe5   : > { %1210 = vmatprep.mubr.f32.mxu0 %v6534_v9  ;;  %1306 = vmatprep.mubr.f32.mxu1 %v6534_v9  ;;  %v1002_v51 = vsel %vm970_vm4, %v736_v44, 0.0  ;;  %v940_v53 = vadd.s32 %v908_v46, %v6937_v10  ;;  %v1018_v55 = vsel %vm986_vm5, %v752_v48, 0.0  ;;  %vm767_vm3 = vcmp.lt.s32.totalorder %v6967_v27, 300 }
  0xe6   : > { %vm971_vm6 = vcmp.lt.s32.totalorder %v939_v45, 300  ;;  %vm987_vm7 = vcmp.lt.s32.totalorder %v955_v49, 300  ;;  %v956_v57 = vadd.s32 %v924_v50, %v6937_v10  ;;  %vm766_vm4 = vcmp.lt.s32.totalorder %v6955_v21, 300  ;;  %v1393_v21 = vld [vmem:[#allocation2 + $0x10] sm:$0xff] }
  0xe7   : > { %v1003_v59 = vsel %vm971_vm6, %v737_v52, 0.0  ;;  %vm972_vm8 = vcmp.lt.s32.totalorder %v940_v53, 300  ;;  %v1019_v63 = vsel %vm987_vm7, %v753_v56, 0.0 }
  0xe8   : > { %5030 = vmatmul.mubr.msk.f32.gmra.mrb[4].mxu0 %vm1037_vm1, %v995_v54  ;;  %5046 = vmatmul.mubr.msk.f32.gmra.mrb[4].mxu1 %vm1037_vm1, %v1011_v58  ;;  %v909_v54 = vadd.s32 96, %v6949_v17  ;;  %v925_v58 = vadd.s32 224, %v6949_v17  ;;  %vm988_vm9 = vcmp.lt.s32.totalorder %v956_v57, 300  ;;  %v1004_v3 = vsel %vm972_vm8, %v738_v60, 0.0 }
  0xe9   : > { %1216 = vmatprep.mubr.f32.mxu0 %v6534_v9  ;;  %1312 = vmatprep.mubr.f32.mxu1 %v6534_v9  ;;  %v1020_v7 = vsel %vm988_vm9, %v754_v0, 0.0 }
  0xea   : > { %v941_v61 = vadd.s32 %v909_v54, %v6937_v10  ;;  %v957_v1 = vadd.s32 %v925_v58, %v6937_v10 }
  0xec   : > { %5031 = vmatmul.mubr.msk.f32.gmra.mrb[6].mxu0 %vm1037_vm1, %v996_v62  ;;  %5047 = vmatmul.mubr.msk.f32.gmra.mrb[6].mxu1 %vm1037_vm1, %v1012_v2  ;;  %v910_v62 = vadd.s32 104, %v6949_v17  ;;  %v926_v2 = vadd.s32 232, %v6949_v17  ;;  %vm973_vm10 = vcmp.lt.s32.totalorder %v941_v61, 300  ;;  %vm989_vm11 = vcmp.lt.s32.totalorder %v957_v1, 300 }
  0xed   : > { %1222 = vmatprep.mubr.f32.mxu0 %v6534_v9  ;;  %1318 = vmatprep.mubr.f32.mxu1 %v6534_v9  ;;  %v1005_v13 = vsel %vm973_vm10, %v739_v4, 0.0  ;;  %v1021_v18 = vsel %vm989_vm11, %v755_v8, 0.0 }
  0xee   : > { %v942_v5 = vadd.s32 %v910_v62, %v6937_v10  ;;  %v958_v11 = vadd.s32 %v926_v2, %v6937_v10 }
  0xf0   : > { %5032 = vmatmul.mubr.msk.f32.gmra.mrb[8].mxu0 %vm1037_vm1, %v997_v6  ;;  %5048 = vmatmul.mubr.msk.f32.gmra.mrb[8].mxu1 %vm1037_vm1, %v1013_v12  ;;  %v911_v6 = vadd.s32 112, %v6949_v17  ;;  %v927_v12 = vadd.s32 240, %v6949_v17  ;;  %vm974_vm12 = vcmp.lt.s32.totalorder %v942_v5, 300  ;;  %vm990_vm13 = vcmp.lt.s32.totalorder %v958_v11, 300 }
  0xf1   : > { %1228 = vmatprep.mubr.f32.mxu0 %v6534_v9  ;;  %1324 = vmatprep.mubr.f32.mxu1 %v6534_v9  ;;  %v1006_v23 = vsel %vm974_vm12, %v740_v14, 0.0 }
  0xf2   : > { %v943_v15 = vadd.s32 %v911_v6, %v6937_v10  ;;  %v959_v20 = vadd.s32 %v927_v12, %v6937_v10 }
  0xf4   : > { %5033 = vmatmul.mubr.msk.f32.gmra.mrb[10].mxu0 %vm1037_vm1, %v998_v16  ;;  %5049 = vmatmul.mubr.msk.f32.gmra.mrb[10].mxu1 %vm1037_vm1, %v1014_v22  ;;  %v912_v16 = vadd.s32 120, %v6949_v17  ;;  %v928_v22 = vadd.s32 248, %v6949_v17  ;;  %vm975_vm14 = vcmp.lt.s32.totalorder %v943_v15, 300  ;;  %vm991_vm15 = vcmp.lt.s32.totalorder %v959_v20, 300 }
  0xf5   : > { %1234 = vmatprep.mubr.f32.mxu0 %v6534_v9  ;;  %1330 = vmatprep.mubr.f32.mxu1 %v6534_v9  ;;  %v1007_v30 = vsel %vm975_vm14, %v741_v24, 0.0  ;;  %v1023_v32 = vsel %vm991_vm15, %v757_v28, 0.0 }
  0xf6   : > { %v944_v25 = vadd.s32 %v912_v16, %v6937_v10  ;;  %v960_v29 = vadd.s32 %v928_v22, %v6937_v10 }
  0xf8   : > { %5034 = vmatmul.mubr.msk.f32.gmra.mrb[12].mxu0 %vm1037_vm1, %v999_v26  ;;  %5050 = vmatmul.mubr.msk.f32.gmra.mrb[12].mxu1 %vm1037_vm1, %v1015_v31  ;;  %v1022_v26 = vsel %vm990_vm13, %v756_v19, 0.0  ;;  %v742_v31 = vld [vmem:[%s6842_s19 + $0x78] sm:$0xff]  ;;  %vm976_vm0 = vcmp.lt.s32.totalorder %v944_v25, 300  ;;  %vm992_vm2 = vcmp.lt.s32.totalorder %v960_v29, 300 }
  0xf9   : > { %1240 = vmatprep.mubr.f32.mxu0 %v6534_v9  ;;  %1336 = vmatprep.mubr.f32.mxu1 %v6534_v9  ;;  %v1008_v34 = vsel %vm976_vm0, %v742_v31, 0.0  ;;  %v1024_v10 = vsel %vm992_vm2, %v758_v33, 0.0 }
  0xfc   : > { %5035 = vmatmul.mubr.msk.f32.gmra.mrb[14].mxu0 %vm1037_vm1, %v1000_v35  ;;  %5051 = vmatmul.mubr.msk.f32.gmra.mrb[14].mxu1 %vm1037_vm1, %v1016_v39  ;;  %v6535_v35 = vmov 0.0|0.0  }
  0xfd   : > { %1246 = vmatprep.mubr.f32.mxu0 %v6534_v9  ;;  %1342 = vmatprep.mubr.f32.mxu1 %v6534_v9 }
  0xfe   : > { %5445 = vmatprep.subr.bf16.mxu1 %v6535_v35  ;;  %5493 = vmatprep.subr.bf16.mxu0 %v6535_v35 }
 0x100   : > { %5036 = vmatmul.mubr.msk.f32.gmra.mrb[16].mxu0 %vm1037_vm1, %v1001_v43  ;;  %5052 = vmatmul.mubr.msk.f32.gmra.mrb[16].mxu1 %vm1037_vm1, %v1017_v47 }
 0x101   : > { %1252 = vmatprep.mubr.f32.mxu0 %v6534_v9  ;;  %1348 = vmatprep.mubr.f32.mxu1 %v6534_v9 }
 0x104   : > { %5037 = vmatmul.mubr.msk.f32.gmra.mrb[18].mxu0 %vm1037_vm1, %v1002_v51  ;;  %5053 = vmatmul.mubr.msk.f32.gmra.mrb[18].mxu1 %vm1037_vm1, %v1018_v55 }
 0x105   : > { %1258 = vmatprep.mubr.f32.mxu0 %v6534_v9  ;;  %1354 = vmatprep.mubr.f32.mxu1 %v6534_v9 }
 0x108   : > { %5038 = vmatmul.mubr.msk.f32.gmra.mrb[20].mxu0 %vm1037_vm1, %v1003_v59  ;;  %5054 = vmatmul.mubr.msk.f32.gmra.mrb[20].mxu1 %vm1037_vm1, %v1019_v63 }
 0x109   : > { %1264 = vmatprep.mubr.f32.mxu0 %v6534_v9  ;;  %1360 = vmatprep.mubr.f32.mxu1 %v6534_v9 }
 0x10c   : > { %5039 = vmatmul.mubr.msk.f32.gmra.mrb[22].mxu0 %vm1037_vm1, %v1004_v3  ;;  %5055 = vmatmul.mubr.msk.f32.gmra.mrb[22].mxu1 %vm1037_vm1, %v1020_v7 }
 0x10d   : > { %1270 = vmatprep.mubr.f32.mxu0 %v6534_v9  ;;  %1366 = vmatprep.mubr.f32.mxu1 %v6534_v9 }
 0x110   : > { %5040 = vmatmul.mubr.msk.f32.gmra.mrb[24].mxu0 %vm1037_vm1, %v1005_v13  ;;  %5056 = vmatmul.mubr.msk.f32.gmra.mrb[24].mxu1 %vm1037_vm1, %v1021_v18 }
 0x111   : > { %1276 = vmatprep.mubr.f32.mxu0 %v6534_v9  ;;  %1372 = vmatprep.mubr.f32.mxu1 %v6534_v9 }
 0x114   : > { %5041 = vmatmul.mubr.msk.f32.gmra.mrb[26].mxu0 %vm1037_vm1, %v1006_v23  ;;  %5057 = vmatmul.mubr.msk.f32.gmra.mrb[26].mxu1 %vm1037_vm1, %v1022_v26 }
 0x115   : > { %1282 = vmatprep.mubr.f32.mxu0 %v6534_v9  ;;  %1378 = vmatprep.mubr.f32.mxu1 %v6534_v9 }
 0x118   : > { %5042 = vmatmul.mubr.msk.f32.gmra.mrb[28].mxu0 %vm1037_vm1, %v1007_v30  ;;  %5058 = vmatmul.mubr.msk.f32.gmra.mrb[28].mxu1 %vm1037_vm1, %v1023_v32 }
 0x119   : > { %1288 = vmatprep.mubr.f32.mxu0 %v6534_v9  ;;  %1384 = vmatprep.mubr.f32.mxu1 %v6534_v9 }
 0x11c   : > { %5043 = vmatmul.mubr.msk.f32.gmra.mrb[30].mxu0 %vm1037_vm1, %v1008_v34  ;;  %5059 = vmatmul.mubr.msk.f32.gmra.mrb[30].mxu1 %vm1037_vm1, %v1024_v10 }
 0x11d   : > { %5060 = vmatprep.mubr.msk.f32.mxu1 %vm767_vm3, %v600_v36  ;;  %5124 = vmatprep.mubr.msk.f32.mxu0 %vm767_vm3, %v664_v37 }
 0x1b3   : > { %v1200_v9 = vpop.f32.mrb[0].mxu0  ;;  %v7133_v39 = vpop.f32.mrb[0].mxu1 }
 0x1b4   : > { %v1202_v38 = vpop.f32.mrb[1].mxu0  ;;  %v7135_v40 = vpop.f32.mrb[1].mxu1 }
 0x1b7   : > { %v1206_v41 = vpop.f32.mrb[2].mxu0  ;;  %v7137_v45 = vpop.f32.mrb[2].mxu1 }
 0x1b8   : > { %v5446_v42 = vpack.c.bf16 %v1206_v41, %v1200_v9  ;;  %v1208_v43 = vpop.f32.mrb[3].mxu0  ;;  %v5470_v46 = vpack.c.bf16 %v7137_v45, %v7133_v39  ;;  %v7141_v47 = vpop.f32.mrb[3].mxu1  ;;  %v599_v39 = vld [vmem:[%s6815_s17] sm:$0xff]  ;;  %v602_v45 = vld [vmem:[%s6815_s17 + $0x18] sm:$0xff] }
 0x1b9   : > { %v5494_v44 = vpack.c.bf16 %v1208_v43, %v1202_v38  ;;  %v5518_v49 = vpack.c.bf16 %v7141_v47, %v7135_v40  ;;  %v663_v40 = vld [vmem:[%s6821_s8] sm:$0xff]  ;;  %v665_v47 = vld [vmem:[%s6821_s8 + $0x10] sm:$0xff] }
 0x1ba   : > { %5447 = vmatpush1.bf16.msra.mxu1 %v5446_v42 }
 0x1bb   : > { %v1212_v48 = vpop.f32.mrb[4].mxu0  ;;  %5495 = vmatpush1.bf16.msra.mxu0 %v5494_v44  ;;  %5448 = vmatprep.subr.bf16.mxu1 %v6535_v35  ;;  %v7147_v51 = vpop.f32.mrb[4].mxu1 }
 0x1bc   : > { %v1214_v50 = vpop.f32.mrb[5].mxu0  ;;  %5496 = vmatprep.subr.bf16.mxu0 %v6535_v35  ;;  %v7149_v52 = vpop.f32.mrb[5].mxu1 }
 0x1bf   : > { %v1218_v53 = vpop.f32.mrb[6].mxu0  ;;  %v7151_v57 = vpop.f32.mrb[6].mxu1 }
 0x1c0   : > { %v5449_v54 = vpack.c.bf16 %v1218_v53, %v1212_v48  ;;  %v1220_v55 = vpop.f32.mrb[7].mxu0  ;;  %v5473_v58 = vpack.c.bf16 %v7151_v57, %v7147_v51  ;;  %v7155_v59 = vpop.f32.mrb[7].mxu1  ;;  %v668_v51 = vld [vmem:[%s6821_s8 + $0x28] sm:$0xff]  ;;  %v667_v57 = vld [vmem:[%s6821_s8 + $0x20] sm:$0xff] }
 0x1c1   : > { %v5497_v56 = vpack.c.bf16 %v1220_v55, %v1214_v50  ;;  %v5521_v61 = vpack.c.bf16 %v7155_v59, %v7149_v52  ;;  %v603_v52 = vld [vmem:[%s6815_s17 + $0x20] sm:$0xff]  ;;  %v670_v59 = vld [vmem:[%s6821_s8 + $0x38] sm:$0xff] }
 0x1c2   : > { %5450 = vmatpush1.bf16.msra.mxu1 %v5449_v54 }
 0x1c3   : > { %v1224_v60 = vpop.f32.mrb[8].mxu0  ;;  %5498 = vmatpush1.bf16.msra.mxu0 %v5497_v56  ;;  %5451 = vmatprep.subr.bf16.mxu1 %v6535_v35  ;;  %v7161_v63 = vpop.f32.mrb[8].mxu1 }
 0x1c4   : > { %v1226_v62 = vpop.f32.mrb[9].mxu0  ;;  %5499 = vmatprep.subr.bf16.mxu0 %v6535_v35  ;;  %v7163_v0 = vpop.f32.mrb[9].mxu1 }
 0x1c7   : > { %v1230_v1 = vpop.f32.mrb[10].mxu0  ;;  %v7165_v5 = vpop.f32.mrb[10].mxu1 }
 0x1c8   : > { %v5452_v2 = vpack.c.bf16 %v1230_v1, %v1224_v60  ;;  %v1232_v3 = vpop.f32.mrb[11].mxu0  ;;  %v5476_v6 = vpack.c.bf16 %v7165_v5, %v7161_v63  ;;  %v7169_v7 = vpop.f32.mrb[11].mxu1  ;;  %v669_v63 = vld [vmem:[%s6821_s8 + $0x30] sm:$0xff]  ;;  %v672_v5 = vld [vmem:[%s6821_s8 + $0x48] sm:$0xff] }
 0x1c9   : > { %v5500_v4 = vpack.c.bf16 %v1232_v3, %v1226_v62  ;;  %v5524_v11 = vpack.c.bf16 %v7169_v7, %v7163_v0  ;;  %v608_v0 = vld [vmem:[%s6815_s17 + $0x48] sm:$0xff]  ;;  %v671_v7 = vld [vmem:[%s6821_s8 + $0x40] sm:$0xff] }
 0x1ca   : > { %5453 = vmatpush1.bf16.msra.mxu1 %v5452_v2 }
 0x1cb   : > { %v1236_v8 = vpop.f32.mrb[12].mxu0  ;;  %5501 = vmatpush1.bf16.msra.mxu0 %v5500_v4  ;;  %5454 = vmatprep.subr.bf16.mxu1 %v6535_v35  ;;  %v7175_v13 = vpop.f32.mrb[12].mxu1 }
 0x1cc   : > { %v1238_v12 = vpop.f32.mrb[13].mxu0  ;;  %5502 = vmatprep.subr.bf16.mxu0 %v6535_v35  ;;  %v7177_v14 = vpop.f32.mrb[13].mxu1 }
 0x1cf   : > { %v1242_v15 = vpop.f32.mrb[14].mxu0  ;;  %v7179_v20 = vpop.f32.mrb[14].mxu1 }
 0x1d0   : > { %v5455_v16 = vpack.c.bf16 %v1242_v15, %v1236_v8  ;;  %v1244_v18 = vpop.f32.mrb[15].mxu0  ;;  %v5479_v22 = vpack.c.bf16 %v7179_v20, %v7175_v13  ;;  %v7183_v23 = vpop.f32.mrb[15].mxu1  ;;  %v674_v13 = vld [vmem:[%s6821_s8 + $0x58] sm:$0xff]  ;;  %v673_v20 = vld [vmem:[%s6821_s8 + $0x50] sm:$0xff] }
 0x1d1   : > { %v5503_v19 = vpack.c.bf16 %v1244_v18, %v1238_v12  ;;  %v5527_v25 = vpack.c.bf16 %v7183_v23, %v7177_v14  ;;  %v609_v14 = vld [vmem:[%s6815_s17 + $0x50] sm:$0xff]  ;;  %v676_v23 = vld [vmem:[%s6821_s8 + $0x68] sm:$0xff] }
 0x1d2   : > { %5456 = vmatpush1.bf16.msra.mxu1 %v5455_v16 }
 0x1d3   : > { %v1248_v24 = vpop.f32.mrb[16].mxu0  ;;  %5504 = vmatpush1.bf16.msra.mxu0 %v5503_v19  ;;  %5457 = vmatprep.subr.bf16.mxu1 %v6535_v35  ;;  %v7189_v28 = vpop.f32.mrb[16].mxu1 }
 0x1d4   : > { %v1250_v26 = vpop.f32.mrb[17].mxu0  ;;  %5505 = vmatprep.subr.bf16.mxu0 %v6535_v35  ;;  %v7191_v29 = vpop.f32.mrb[17].mxu1 }
 0x1d7   : > { %v1254_v30 = vpop.f32.mrb[18].mxu0  ;;  %v7193_v34 = vpop.f32.mrb[18].mxu1 }
 0x1d8   : > { %v5458_v31 = vpack.c.bf16 %v1254_v30, %v1248_v24  ;;  %v1256_v32 = vpop.f32.mrb[19].mxu0  ;;  %v5482_v10 = vpack.c.bf16 %v7193_v34, %v7189_v28  ;;  %v7197_v36 = vpop.f32.mrb[19].mxu1  ;;  %v675_v28 = vld [vmem:[%s6821_s8 + $0x60] sm:$0xff]  ;;  %v678_v34 = vld [vmem:[%s6821_s8 + $0x78] sm:$0xff] }
 0x1d9   : > { %v5506_v33 = vpack.c.bf16 %v1256_v32, %v1250_v26  ;;  %v5530_v9 = vpack.c.bf16 %v7197_v36, %v7191_v29  ;;  %v614_v29 = vld [vmem:[%s6815_s17 + $0x78] sm:$0xff]  ;;  %v677_v36 = vld [vmem:[%s6821_s8 + $0x70] sm:$0xff] }
 0x1da   : > { %5459 = vmatpush1.bf16.msra.mxu1 %v5458_v31 }
 0x1db   : > { %v1260_v37 = vpop.f32.mrb[20].mxu0  ;;  %5507 = vmatpush1.bf16.msra.mxu0 %v5506_v33  ;;  %5460 = vmatprep.subr.bf16.mxu1 %v6535_v35  ;;  %v7203_v41 = vpop.f32.mrb[20].mxu1 }
 0x1dc   : > { %v1262_v38 = vpop.f32.mrb[21].mxu0  ;;  %5508 = vmatprep.subr.bf16.mxu0 %v6535_v35  ;;  %v7205_v42 = vpop.f32.mrb[21].mxu1 }
 0x1df   : > { %v1266_v43 = vpop.f32.mrb[22].mxu0  ;;  %v1362_v53 = vpop.f32.mrb[22].mxu1 }
 0x1e0   : > { %v5461_v44 = vpack.c.bf16 %v1266_v43, %v1260_v37  ;;  %v1268_v48 = vpop.f32.mrb[23].mxu0  ;;  %v5485_v54 = vpack.c.bf16 %v1362_v53, %v7203_v41  ;;  %v1364_v55 = vpop.f32.mrb[23].mxu1  ;;  %v679_v53 = vld [vmem:[%s6821_s8 + $0x80] sm:$0xff] }
 0x1e1   : > { %v5509_v50 = vpack.c.bf16 %v1268_v48, %v1262_v38  ;;  %v5533_v60 = vpack.c.bf16 %v1364_v55, %v7205_v42  ;;  %v680_v48 = vld [vmem:[%s6821_s8 + $0x88] sm:$0xff]  ;;  %v682_v55 = vld [vmem:[%s6821_s8 + $0x98] sm:$0xff] }
 0x1e2   : > { %5462 = vmatpush1.bf16.msra.mxu1 %v5461_v44 }
 0x1e3   : > { %v1272_v56 = vpop.f32.mrb[24].mxu0  ;;  %5510 = vmatpush1.bf16.msra.mxu0 %v5509_v50  ;;  %5463 = vmatprep.subr.bf16.mxu1 %v6535_v35  ;;  %v1368_v1 = vpop.f32.mrb[24].mxu1  ;;  %v615_v50 = vld [vmem:[%s6815_s17 + $0x80] sm:$0xff] }
 0x1e4   : > { %v1274_v62 = vpop.f32.mrb[25].mxu0  ;;  %5511 = vmatprep.subr.bf16.mxu0 %v6535_v35  ;;  %v1370_v2 = vpop.f32.mrb[25].mxu1 }
 0x1e7   : > { %v1278_v3 = vpop.f32.mrb[26].mxu0  ;;  %v1374_v15 = vpop.f32.mrb[26].mxu1 }
 0x1e8   : > { %v5464_v4 = vpack.c.bf16 %v1278_v3, %v1272_v56  ;;  %v1280_v8 = vpop.f32.mrb[27].mxu0  ;;  %v5488_v16 = vpack.c.bf16 %v1374_v15, %v1368_v1  ;;  %v1376_v18 = vpop.f32.mrb[27].mxu1  ;;  %v617_v56 = vld [vmem:[%s6815_s17 + $0x90] sm:$0xff]  ;;  %v684_v1 = vld [vmem:[%s6821_s8 + $0xa8] sm:$0xff]  ;;  %v683_v3 = vld [vmem:[%s6821_s8 + $0xa0] sm:$0xff] }
 0x1e9   : > { %v5512_v12 = vpack.c.bf16 %v1280_v8, %v1274_v62  ;;  %v5536_v24 = vpack.c.bf16 %v1376_v18, %v1370_v2  ;;  %v620_v62 = vld [vmem:[%s6815_s17 + $0xa8] sm:$0xff]  ;;  %v619_v2 = vld [vmem:[%s6815_s17 + $0xa0] sm:$0xff]  ;;  %v686_v8 = vld [vmem:[%s6821_s8 + $0xb8] sm:$0xff] }
 0x1ea   : > { %5465 = vmatpush1.bf16.msra.mxu1 %v5464_v4  ;;  %v622_v4 = vld [vmem:[%s6815_s17 + $0xb8] sm:$0xff]  ;;  %v685_v15 = vld [vmem:[%s6821_s8 + $0xb0] sm:$0xff]  ;;  %v688_v18 = vld [vmem:[%s6821_s8 + $0xc8] sm:$0xff] }
 0x1eb   : > { %v1284_v19 = vpop.f32.mrb[28].mxu0  ;;  %5513 = vmatpush1.bf16.msra.mxu0 %v5512_v12  ;;  %5466 = vmatprep.subr.bf16.mxu1 %v6535_v35  ;;  %v1380_v30 = vpop.f32.mrb[28].mxu1  ;;  %v621_v12 = vld [vmem:[%s6815_s17 + $0xb0] sm:$0xff] }
 0x1ec   : > { %v1286_v26 = vpop.f32.mrb[29].mxu0  ;;  %5514 = vmatprep.subr.bf16.mxu0 %v6535_v35  ;;  %v1382_v31 = vpop.f32.mrb[29].mxu1 }
 0x1ef   : > { %v1290_v32 = vpop.f32.mrb[30].mxu0  ;;  %v1386_v41 = vpop.f32.mrb[30].mxu1 }
 0x1f0   : > { %v5467_v33 = vpack.c.bf16 %v1290_v32, %v1284_v19  ;;  %v1292_v37 = vpop.f32.mrb[31].mxu0  ;;  %v5491_v42 = vpack.c.bf16 %v1386_v41, %v1380_v30  ;;  %v1388_v43 = vpop.f32.mrb[31].mxu1  ;;  %v623_v19 = vld [vmem:[%s6815_s17 + $0xc0] sm:$0xff]  ;;  %v690_v30 = vld [vmem:[%s6821_s8 + $0xd8] sm:$0xff]  ;;  %v689_v32 = vld [vmem:[%s6821_s8 + $0xd0] sm:$0xff] }
 0x1f1   : > { %v5515_v38 = vpack.c.bf16 %v1292_v37, %v1286_v26  ;;  %v5539_v44 = vpack.c.bf16 %v1388_v43, %v1382_v31  ;;  %v626_v26 = vld [vmem:[%s6815_s17 + $0xd8] sm:$0xff]  ;;  %v625_v31 = vld [vmem:[%s6815_s17 + $0xd0] sm:$0xff]  ;;  %v692_v37 = vld [vmem:[%s6821_s8 + $0xe8] sm:$0xff] }
 0x1f2   : > { %5468 = vmatpush1.bf16.msra.mxu1 %v5467_v33  ;;  %v628_v33 = vld [vmem:[%s6815_s17 + $0xe8] sm:$0xff]  ;;  %v691_v41 = vld [vmem:[%s6821_s8 + $0xe0] sm:$0xff]  ;;  %v694_v43 = vld [vmem:[%s6821_s8 + $0xf8] sm:$0xff] }
 0x1f3   : > { %5516 = vmatpush1.bf16.msra.mxu0 %v5515_v38  ;;  %5469 = vmatprep.subr.bf16.mxu1 %v6535_v35  ;;  %v627_v38 = vld [vmem:[%s6815_s17 + $0xe0] sm:$0xff] }
 0x1f4   : > { %5517 = vmatprep.subr.bf16.mxu0 %v6535_v35 }
 0x1f6   : > { %5471 = vmatpush1.bf16.msra.mxu1 %v5470_v46  ;;  %v666_v46 = vld [vmem:[%s6821_s8 + $0x18] sm:$0xff] }
 0x1f7   : > { %5519 = vmatpush1.bf16.msra.mxu0 %v5518_v49  ;;  %5472 = vmatprep.subr.bf16.mxu1 %v6535_v35  ;;  %v604_v49 = vld [vmem:[%s6815_s17 + $0x28] sm:$0xff] }
 0x1f8   : > { %5520 = vmatprep.subr.bf16.mxu0 %v6535_v35 }
 0x1fa   : > { %5474 = vmatpush1.bf16.msra.mxu1 %v5473_v58  ;;  %v606_v58 = vld [vmem:[%s6815_s17 + $0x38] sm:$0xff] }
 0x1fb   : > { %5522 = vmatpush1.bf16.msra.mxu0 %v5521_v61  ;;  %5475 = vmatprep.subr.bf16.mxu1 %v6535_v35  ;;  %v605_v61 = vld [vmem:[%s6815_s17 + $0x30] sm:$0xff] }
 0x1fc   : > { %5523 = vmatprep.subr.bf16.mxu0 %v6535_v35 }
 0x1fe   : > { %5477 = vmatpush1.bf16.msra.mxu1 %v5476_v6  ;;  %v607_v6 = vld [vmem:[%s6815_s17 + $0x40] sm:$0xff] }
 0x1ff   : > { %5525 = vmatpush1.bf16.msra.mxu0 %v5524_v11  ;;  %5478 = vmatprep.subr.bf16.mxu1 %v6535_v35  ;;  %v610_v11 = vld [vmem:[%s6815_s17 + $0x58] sm:$0xff] }
 0x200   : > { %5526 = vmatprep.subr.bf16.mxu0 %v6535_v35 }
 0x202   : > { %5480 = vmatpush1.bf16.msra.mxu1 %v5479_v22  ;;  %v612_v22 = vld [vmem:[%s6815_s17 + $0x68] sm:$0xff] }
 0x203   : > { %5528 = vmatpush1.bf16.msra.mxu0 %v5527_v25  ;;  %5481 = vmatprep.subr.bf16.mxu1 %v6535_v35  ;;  %v611_v25 = vld [vmem:[%s6815_s17 + $0x60] sm:$0xff] }
 0x204   : > { %5529 = vmatprep.subr.bf16.mxu0 %v6535_v35 }
 0x206   : > { %5483 = vmatpush1.bf16.msra.mxu1 %v5482_v10  ;;  %v613_v10 = vld [vmem:[%s6815_s17 + $0x70] sm:$0xff] }
 0x207   : > { %5531 = vmatpush1.bf16.msra.mxu0 %v5530_v9  ;;  %5484 = vmatprep.subr.bf16.mxu1 %v6535_v35  ;;  %v616_v9 = vld [vmem:[%s6815_s17 + $0x88] sm:$0xff] }
 0x208   : > { %5532 = vmatprep.subr.bf16.mxu0 %v6535_v35 }
 0x20a   : > { %5486 = vmatpush1.bf16.msra.mxu1 %v5485_v54  ;;  %v618_v54 = vld [vmem:[%s6815_s17 + $0x98] sm:$0xff] }
 0x20b   : > { %5534 = vmatpush1.bf16.msra.mxu0 %v5533_v60  ;;  %5487 = vmatprep.subr.bf16.mxu1 %v6535_v35  ;;  %v681_v60 = vld [vmem:[%s6821_s8 + $0x90] sm:$0xff] }
 0x20c   : > { %5535 = vmatprep.subr.bf16.mxu0 %v6535_v35 }
 0x20e   : > { %5489 = vmatpush1.bf16.msra.mxu1 %v5488_v16  ;;  %v624_v16 = vld [vmem:[%s6815_s17 + $0xc8] sm:$0xff] }
 0x20f   : > { %5537 = vmatpush1.bf16.msra.mxu0 %v5536_v24  ;;  %5490 = vmatprep.subr.bf16.mxu1 %v6535_v35  ;;  %v687_v24 = vld [vmem:[%s6821_s8 + $0xc0] sm:$0xff] }
 0x210   : > { %5538 = vmatprep.subr.bf16.mxu0 %v6535_v35  ;;  %v601_v35 = vld [vmem:[%s6815_s17 + $0x10] sm:$0xff] }
 0x212   : > { %5492 = vmatpush1.bf16.msra.mxu1 %v5491_v42  ;;  %v630_v42 = vld [vmem:[%s6815_s17 + $0xf8] sm:$0xff] }
 0x213   : > { %5540 = vmatpush1.bf16.msra.mxu0 %v5539_v44  ;;  %v629_v44 = vld [vmem:[%s6815_s17 + $0xf0] sm:$0xff] }
 0x215   : > { %5061 = vmatmul.mubr.msk.f32.vlgmr.msra.gmra.mrb[32].mxu1 %vm766_vm4, %v599_v39  ;;  %v693_v39 = vld [vmem:[%s6821_s8 + $0xf0] sm:$0xff] }
 0x216   : > { %5125 = vmatmul.mubr.msk.f32.vlgmr.msra.gmra.mrb[32].mxu0 %vm766_vm4, %v663_v40  ;;  %5062 = vmatprep.mubr.msk.f32.mxu1 %vm767_vm3, %v602_v45  ;;  %v632_v40 = vld [vmem:[%s6815_s17 + $0x108] sm:$0xff] }
 0x217   : > { %5126 = vmatprep.mubr.msk.f32.mxu0 %vm767_vm3, %v666_v46  ;;  %v696_v45 = vld [vmem:[%s6821_s8 + $0x108] sm:$0xff]  ;;  %v631_v46 = vld [vmem:[%s6815_s17 + $0x100] sm:$0xff] }
 0x219   : > { %5063 = vmatmul.mubr.msk.f32.gmra.mrb[34].mxu1 %vm766_vm4, %v601_v35  ;;  %v695_v35 = vld [vmem:[%s6821_s8 + $0x100] sm:$0xff] }
 0x21a   : > { %5127 = vmatmul.mubr.msk.f32.gmra.mrb[34].mxu0 %vm766_vm4, %v665_v47  ;;  %5064 = vmatprep.mubr.msk.f32.mxu1 %vm767_vm3, %v604_v49  ;;  %v634_v47 = vld [vmem:[%s6815_s17 + $0x118] sm:$0xff] }
 0x21b   : > { %5128 = vmatprep.mubr.msk.f32.mxu0 %vm767_vm3, %v668_v51  ;;  %v698_v49 = vld [vmem:[%s6821_s8 + $0x118] sm:$0xff]  ;;  %v633_v51 = vld [vmem:[%s6815_s17 + $0x110] sm:$0xff] }
 0x21d   : > { %5065 = vmatmul.mubr.msk.f32.gmra.mrb[36].mxu1 %vm766_vm4, %v603_v52  ;;  %v697_v52 = vld [vmem:[%s6821_s8 + $0x110] sm:$0xff] }
 0x21e   : > { %5129 = vmatmul.mubr.msk.f32.gmra.mrb[36].mxu0 %vm766_vm4, %v667_v57  ;;  %5066 = vmatprep.mubr.msk.f32.mxu1 %vm767_vm3, %v606_v58  ;;  %v636_v57 = vld [vmem:[%s6815_s17 + $0x128] sm:$0xff] }
 0x21f   : > { %5130 = vmatprep.mubr.msk.f32.mxu0 %vm767_vm3, %v670_v59  ;;  %v700_v58 = vld [vmem:[%s6821_s8 + $0x128] sm:$0xff]  ;;  %v635_v59 = vld [vmem:[%s6815_s17 + $0x120] sm:$0xff] }
 0x221   : > { %5067 = vmatmul.mubr.msk.f32.gmra.mrb[38].mxu1 %vm766_vm4, %v605_v61  ;;  %v699_v61 = vld [vmem:[%s6821_s8 + $0x120] sm:$0xff] }
 0x222   : > { %5131 = vmatmul.mubr.msk.f32.gmra.mrb[38].mxu0 %vm766_vm4, %v669_v63  ;;  %5068 = vmatprep.mubr.msk.f32.mxu1 %vm767_vm3, %v608_v0  ;;  %v638_v63 = vld [vmem:[%s6815_s17 + $0x138] sm:$0xff] }
 0x223   : > { %5132 = vmatprep.mubr.msk.f32.mxu0 %vm767_vm3, %v672_v5  ;;  %v702_v0 = vld [vmem:[%s6821_s8 + $0x138] sm:$0xff]  ;;  %v637_v5 = vld [vmem:[%s6815_s17 + $0x130] sm:$0xff] }
 0x225   : > { %5069 = vmatmul.mubr.msk.f32.gmra.mrb[40].mxu1 %vm766_vm4, %v607_v6  ;;  %v701_v6 = vld [vmem:[%s6821_s8 + $0x130] sm:$0xff] }
 0x226   : > { %5133 = vmatmul.mubr.msk.f32.gmra.mrb[40].mxu0 %vm766_vm4, %v671_v7  ;;  %5070 = vmatprep.mubr.msk.f32.mxu1 %vm767_vm3, %v610_v11  ;;  %v640_v7 = vld [vmem:[%s6815_s17 + $0x148] sm:$0xff] }
 0x227   : > { %5134 = vmatprep.mubr.msk.f32.mxu0 %vm767_vm3, %v674_v13  ;;  %v704_v11 = vld [vmem:[%s6821_s8 + $0x148] sm:$0xff]  ;;  %v639_v13 = vld [vmem:[%s6815_s17 + $0x140] sm:$0xff] }
 0x229   : > { %5071 = vmatmul.mubr.msk.f32.gmra.mrb[42].mxu1 %vm766_vm4, %v609_v14  ;;  %v703_v14 = vld [vmem:[%s6821_s8 + $0x140] sm:$0xff] }
 0x22a   : > { %5135 = vmatmul.mubr.msk.f32.gmra.mrb[42].mxu0 %vm766_vm4, %v673_v20  ;;  %5072 = vmatprep.mubr.msk.f32.mxu1 %vm767_vm3, %v612_v22  ;;  %v642_v20 = vld [vmem:[%s6815_s17 + $0x158] sm:$0xff] }
 0x22b   : > { %5136 = vmatprep.mubr.msk.f32.mxu0 %vm767_vm3, %v676_v23  ;;  %v706_v22 = vld [vmem:[%s6821_s8 + $0x158] sm:$0xff]  ;;  %v641_v23 = vld [vmem:[%s6815_s17 + $0x150] sm:$0xff] }
 0x22d   : > { %5073 = vmatmul.mubr.msk.f32.gmra.mrb[44].mxu1 %vm766_vm4, %v611_v25  ;;  %v705_v25 = vld [vmem:[%s6821_s8 + $0x150] sm:$0xff] }
 0x22e   : > { %5137 = vmatmul.mubr.msk.f32.gmra.mrb[44].mxu0 %vm766_vm4, %v675_v28  ;;  %5074 = vmatprep.mubr.msk.f32.mxu1 %vm767_vm3, %v614_v29  ;;  %v644_v28 = vld [vmem:[%s6815_s17 + $0x168] sm:$0xff] }
 0x22f   : > { %5138 = vmatprep.mubr.msk.f32.mxu0 %vm767_vm3, %v678_v34  ;;  %v708_v29 = vld [vmem:[%s6821_s8 + $0x168] sm:$0xff]  ;;  %v643_v34 = vld [vmem:[%s6815_s17 + $0x160] sm:$0xff] }
 0x231   : > { %5075 = vmatmul.mubr.msk.f32.gmra.mrb[46].mxu1 %vm766_vm4, %v613_v10  ;;  %v707_v10 = vld [vmem:[%s6821_s8 + $0x160] sm:$0xff] }
 0x232   : > { %5139 = vmatmul.mubr.msk.f32.gmra.mrb[46].mxu0 %vm766_vm4, %v677_v36  ;;  %5076 = vmatprep.mubr.msk.f32.mxu1 %vm767_vm3, %v616_v9  ;;  %v646_v36 = vld [vmem:[%s6815_s17 + $0x178] sm:$0xff] }
 0x233   : > { %5140 = vmatprep.mubr.msk.f32.mxu0 %vm767_vm3, %v680_v48  ;;  %v710_v9 = vld [vmem:[%s6821_s8 + $0x178] sm:$0xff]  ;;  %v645_v48 = vld [vmem:[%s6815_s17 + $0x170] sm:$0xff] }
 0x235   : > { %5077 = vmatmul.mubr.msk.f32.gmra.mrb[48].mxu1 %vm766_vm4, %v615_v50  ;;  %v709_v50 = vld [vmem:[%s6821_s8 + $0x170] sm:$0xff] }
 0x236   : > { %5141 = vmatmul.mubr.msk.f32.gmra.mrb[48].mxu0 %vm766_vm4, %v679_v53  ;;  %5078 = vmatprep.mubr.msk.f32.mxu1 %vm767_vm3, %v618_v54  ;;  %v648_v53 = vld [vmem:[%s6815_s17 + $0x188] sm:$0xff] }
 0x237   : > { %5142 = vmatprep.mubr.msk.f32.mxu0 %vm767_vm3, %v682_v55  ;;  %v712_v54 = vld [vmem:[%s6821_s8 + $0x188] sm:$0xff]  ;;  %v647_v55 = vld [vmem:[%s6815_s17 + $0x180] sm:$0xff] }
 0x239   : > { %5079 = vmatmul.mubr.msk.f32.gmra.mrb[50].mxu1 %vm766_vm4, %v617_v56  ;;  %v711_v56 = vld [vmem:[%s6821_s8 + $0x180] sm:$0xff] }
 0x23a   : > { %5143 = vmatmul.mubr.msk.f32.gmra.mrb[50].mxu0 %vm766_vm4, %v681_v60  ;;  %5080 = vmatprep.mubr.msk.f32.mxu1 %vm767_vm3, %v620_v62  ;;  %v650_v60 = vld [vmem:[%s6815_s17 + $0x198] sm:$0xff] }
 0x23b   : > { %5144 = vmatprep.mubr.msk.f32.mxu0 %vm767_vm3, %v684_v1  ;;  %v714_v62 = vld [vmem:[%s6821_s8 + $0x198] sm:$0xff]  ;;  %v649_v1 = vld [vmem:[%s6815_s17 + $0x190] sm:$0xff] }
 0x23d   : > { %5081 = vmatmul.mubr.msk.f32.gmra.mrb[52].mxu1 %vm766_vm4, %v619_v2  ;;  %v713_v2 = vld [vmem:[%s6821_s8 + $0x190] sm:$0xff] }
 0x23e   : > { %5145 = vmatmul.mubr.msk.f32.gmra.mrb[52].mxu0 %vm766_vm4, %v683_v3  ;;  %5082 = vmatprep.mubr.msk.f32.mxu1 %vm767_vm3, %v622_v4  ;;  %v652_v3 = vld [vmem:[%s6815_s17 + $0x1a8] sm:$0xff] }
 0x23f   : > { %5146 = vmatprep.mubr.msk.f32.mxu0 %vm767_vm3, %v686_v8  ;;  %v716_v4 = vld [vmem:[%s6821_s8 + $0x1a8] sm:$0xff]  ;;  %v651_v8 = vld [vmem:[%s6815_s17 + $0x1a0] sm:$0xff] }
 0x241   : > { %5083 = vmatmul.mubr.msk.f32.gmra.mrb[54].mxu1 %vm766_vm4, %v621_v12  ;;  %v715_v12 = vld [vmem:[%s6821_s8 + $0x1a0] sm:$0xff] }
 0x242   : > { %5147 = vmatmul.mubr.msk.f32.gmra.mrb[54].mxu0 %vm766_vm4, %v685_v15  ;;  %5084 = vmatprep.mubr.msk.f32.mxu1 %vm767_vm3, %v624_v16  ;;  %v654_v15 = vld [vmem:[%s6815_s17 + $0x1b8] sm:$0xff] }
 0x243   : > { %5148 = vmatprep.mubr.msk.f32.mxu0 %vm767_vm3, %v688_v18  ;;  %v718_v16 = vld [vmem:[%s6821_s8 + $0x1b8] sm:$0xff]  ;;  %v653_v18 = vld [vmem:[%s6815_s17 + $0x1b0] sm:$0xff] }
 0x245   : > { %5085 = vmatmul.mubr.msk.f32.gmra.mrb[56].mxu1 %vm766_vm4, %v623_v19  ;;  %v717_v19 = vld [vmem:[%s6821_s8 + $0x1b0] sm:$0xff] }
 0x246   : > { %5149 = vmatmul.mubr.msk.f32.gmra.mrb[56].mxu0 %vm766_vm4, %v687_v24  ;;  %5086 = vmatprep.mubr.msk.f32.mxu1 %vm767_vm3, %v626_v26  ;;  %v656_v24 = vld [vmem:[%s6815_s17 + $0x1c8] sm:$0xff] }
 0x247   : > { %5150 = vmatprep.mubr.msk.f32.mxu0 %vm767_vm3, %v690_v30  ;;  %v720_v26 = vld [vmem:[%s6821_s8 + $0x1c8] sm:$0xff]  ;;  %v655_v30 = vld [vmem:[%s6815_s17 + $0x1c0] sm:$0xff] }
 0x249   : > { %5087 = vmatmul.mubr.msk.f32.gmra.mrb[58].mxu1 %vm766_vm4, %v625_v31  ;;  %v719_v31 = vld [vmem:[%s6821_s8 + $0x1c0] sm:$0xff] }
 0x24a   : > { %5151 = vmatmul.mubr.msk.f32.gmra.mrb[58].mxu0 %vm766_vm4, %v689_v32  ;;  %5088 = vmatprep.mubr.msk.f32.mxu1 %vm767_vm3, %v628_v33  ;;  %v658_v32 = vld [vmem:[%s6815_s17 + $0x1d8] sm:$0xff] }
 0x24b   : > { %5152 = vmatprep.mubr.msk.f32.mxu0 %vm767_vm3, %v692_v37  ;;  %v722_v33 = vld [vmem:[%s6821_s8 + $0x1d8] sm:$0xff]  ;;  %v657_v37 = vld [vmem:[%s6815_s17 + $0x1d0] sm:$0xff] }
 0x24d   : > { %5089 = vmatmul.mubr.msk.f32.gmra.mrb[60].mxu1 %vm766_vm4, %v627_v38  ;;  %v721_v38 = vld [vmem:[%s6821_s8 + $0x1d0] sm:$0xff] }
 0x24e   : > { %5153 = vmatmul.mubr.msk.f32.gmra.mrb[60].mxu0 %vm766_vm4, %v691_v41  ;;  %5090 = vmatprep.mubr.msk.f32.mxu1 %vm767_vm3, %v630_v42  ;;  %v660_v41 = vld [vmem:[%s6815_s17 + $0x1e8] sm:$0xff] }
 0x24f   : > { %5154 = vmatprep.mubr.msk.f32.mxu0 %vm767_vm3, %v694_v43  ;;  %v724_v42 = vld [vmem:[%s6821_s8 + $0x1e8] sm:$0xff]  ;;  %v659_v43 = vld [vmem:[%s6815_s17 + $0x1e0] sm:$0xff] }
 0x251   : > { %5091 = vmatmul.mubr.msk.f32.gmra.mrb[62].mxu1 %vm766_vm4, %v629_v44  ;;  %v723_v44 = vld [vmem:[%s6821_s8 + $0x1e0] sm:$0xff] }
 0x252   : > { %5155 = vmatmul.mubr.msk.f32.gmra.mrb[62].mxu0 %vm766_vm4, %v693_v39  ;;  %5092 = vmatprep.mubr.msk.f32.mxu1 %vm767_vm3, %v632_v40  ;;  %v662_v39 = vld [vmem:[%s6815_s17 + $0x1f8] sm:$0xff] }
 0x253   : > { %5156 = vmatprep.mubr.msk.f32.mxu0 %vm767_vm3, %v696_v45  ;;  %v726_v40 = vld [vmem:[%s6821_s8 + $0x1f8] sm:$0xff]  ;;  %v661_v45 = vld [vmem:[%s6815_s17 + $0x1f0] sm:$0xff] }
 0x255   : > { %5093 = vmatmul.mubr.msk.f32.gmra.mrb[64].mxu1 %vm766_vm4, %v631_v46  ;;  %v725_v46 = vld [vmem:[%s6821_s8 + $0x1f0] sm:$0xff] }
 0x256   : > { %5157 = vmatmul.mubr.msk.f32.gmra.mrb[64].mxu0 %vm766_vm4, %v695_v35  ;;  %5094 = vmatprep.mubr.msk.f32.mxu1 %vm767_vm3, %v634_v47  ;;  %v1391_v35 = vld [vmem:[#allocation2] sm:$0xff] }
 0x257   : > { %5158 = vmatprep.mubr.msk.f32.mxu0 %vm767_vm3, %v698_v49  ;;  %v1712_v47 = vld [vmem:[#allocation3] sm:$0xff] }
 0x259   : > { %5095 = vmatmul.mubr.msk.f32.gmra.mrb[66].mxu1 %vm766_vm4, %v633_v51 }
 0x25a   : > { %5159 = vmatmul.mubr.msk.f32.gmra.mrb[66].mxu0 %vm766_vm4, %v697_v52  ;;  %5096 = vmatprep.mubr.msk.f32.mxu1 %vm767_vm3, %v636_v57 }
 0x25b   : > { %5160 = vmatprep.mubr.msk.f32.mxu0 %vm767_vm3, %v700_v58 }
 0x25d   : > { %5097 = vmatmul.mubr.msk.f32.gmra.mrb[68].mxu1 %vm766_vm4, %v635_v59 }
 0x25e   : > { %5161 = vmatmul.mubr.msk.f32.gmra.mrb[68].mxu0 %vm766_vm4, %v699_v61  ;;  %5098 = vmatprep.mubr.msk.f32.mxu1 %vm767_vm3, %v638_v63  ;;  %v1392_v61 = vld [vmem:[#allocation2 + $0x8] sm:$0xff] }
 0x25f   : > { %5162 = vmatprep.mubr.msk.f32.mxu0 %vm767_vm3, %v702_v0  ;;  %v1713_v63 = vld [vmem:[#allocation3 + $0x8] sm:$0xff] }
 0x261   : > { %5099 = vmatmul.mubr.msk.f32.gmra.mrb[70].mxu1 %vm766_vm4, %v637_v5 }
 0x262   : > { %5163 = vmatmul.mubr.msk.f32.gmra.mrb[70].mxu0 %vm766_vm4, %v701_v6  ;;  %5100 = vmatprep.mubr.msk.f32.mxu1 %vm767_vm3, %v640_v7 }
 0x263   : > { %5164 = vmatprep.mubr.msk.f32.mxu0 %vm767_vm3, %v704_v11 }
 0x265   : > { %5101 = vmatmul.mubr.msk.f32.gmra.mrb[72].mxu1 %vm766_vm4, %v639_v13  ;;  %v1714_v13 = vld [vmem:[#allocation3 + $0x10] sm:$0xff] }
 0x266   : > { %5165 = vmatmul.mubr.msk.f32.gmra.mrb[72].mxu0 %vm766_vm4, %v703_v14  ;;  %5102 = vmatprep.mubr.msk.f32.mxu1 %vm767_vm3, %v642_v20 }
 0x267   : > { %5166 = vmatprep.mubr.msk.f32.mxu0 %vm767_vm3, %v706_v22 }
 0x269   : > { %5103 = vmatmul.mubr.msk.f32.gmra.mrb[74].mxu1 %vm766_vm4, %v641_v23 }
 0x26a   : > { %5167 = vmatmul.mubr.msk.f32.gmra.mrb[74].mxu0 %vm766_vm4, %v705_v25  ;;  %5104 = vmatprep.mubr.msk.f32.mxu1 %vm767_vm3, %v644_v28 }
 0x26b   : > { %5168 = vmatprep.mubr.msk.f32.mxu0 %vm767_vm3, %v708_v29  ;;  %v1394_v29 = vld [vmem:[#allocation2 + $0x18] sm:$0xff] }
 0x26d   : > { %5105 = vmatmul.mubr.msk.f32.gmra.mrb[76].mxu1 %vm766_vm4, %v643_v34  ;;  %v1715_v34 = vld [vmem:[#allocation3 + $0x18] sm:$0xff] }
 0x26e   : > { %5169 = vmatmul.mubr.msk.f32.gmra.mrb[76].mxu0 %vm766_vm4, %v707_v10  ;;  %5106 = vmatprep.mubr.msk.f32.mxu1 %vm767_vm3, %v646_v36 }
 0x26f   : > { %5170 = vmatprep.mubr.msk.f32.mxu0 %vm767_vm3, %v710_v9 }
 0x271   : > { %5107 = vmatmul.mubr.msk.f32.gmra.mrb[78].mxu1 %vm766_vm4, %v645_v48 }
 0x272   : > { %5171 = vmatmul.mubr.msk.f32.gmra.mrb[78].mxu0 %vm766_vm4, %v709_v50  ;;  %5108 = vmatprep.mubr.msk.f32.mxu1 %vm767_vm3, %v648_v53 }
 0x273   : > { %5172 = vmatprep.mubr.msk.f32.mxu0 %vm767_vm3, %v712_v54  ;;  %v1395_v54 = vld [vmem:[#allocation2 + $0x20] sm:$0xff] }
 0x275   : > { %5109 = vmatmul.mubr.msk.f32.gmra.mrb[80].mxu1 %vm766_vm4, %v647_v55  ;;  %v1716_v55 = vld [vmem:[#allocation3 + $0x20] sm:$0xff] }
 0x276   : > { %5173 = vmatmul.mubr.msk.f32.gmra.mrb[80].mxu0 %vm766_vm4, %v711_v56  ;;  %5110 = vmatprep.mubr.msk.f32.mxu1 %vm767_vm3, %v650_v60 }
 0x277   : > { %5174 = vmatprep.mubr.msk.f32.mxu0 %vm767_vm3, %v714_v62 }
 0x279   : > { %5111 = vmatmul.mubr.msk.f32.gmra.mrb[82].mxu1 %vm766_vm4, %v649_v1 }
 0x27a   : > { %5175 = vmatmul.mubr.msk.f32.gmra.mrb[82].mxu0 %vm766_vm4, %v713_v2  ;;  %5112 = vmatprep.mubr.msk.f32.mxu1 %vm767_vm3, %v652_v3 }
 0x27b   : > { %5176 = vmatprep.mubr.msk.f32.mxu0 %vm767_vm3, %v716_v4  ;;  %v1396_v4 = vld [vmem:[#allocation2 + $0x28] sm:$0xff] }
 0x27d   : > { %5113 = vmatmul.mubr.msk.f32.gmra.mrb[84].mxu1 %vm766_vm4, %v651_v8  ;;  %v1717_v8 = vld [vmem:[#allocation3 + $0x28] sm:$0xff] }
 0x27e   : > { %5177 = vmatmul.mubr.msk.f32.gmra.mrb[84].mxu0 %vm766_vm4, %v715_v12  ;;  %5114 = vmatprep.mubr.msk.f32.mxu1 %vm767_vm3, %v654_v15 }
 0x27f   : > { %5178 = vmatprep.mubr.msk.f32.mxu0 %vm767_vm3, %v718_v16 }
 0x281   : > { %5115 = vmatmul.mubr.msk.f32.gmra.mrb[86].mxu1 %vm766_vm4, %v653_v18 }
 0x282   : > { %5179 = vmatmul.mubr.msk.f32.gmra.mrb[86].mxu0 %vm766_vm4, %v717_v19  ;;  %5116 = vmatprep.mubr.msk.f32.mxu1 %vm767_vm3, %v656_v24 }
 0x283   : > { %5180 = vmatprep.mubr.msk.f32.mxu0 %vm767_vm3, %v720_v26  ;;  %v1397_v26 = vld [vmem:[#allocation2 + $0x30] sm:$0xff] }
 0x285   : > { %5117 = vmatmul.mubr.msk.f32.gmra.mrb[88].mxu1 %vm766_vm4, %v655_v30  ;;  %v1718_v30 = vld [vmem:[#allocation3 + $0x30] sm:$0xff] }
 0x286   : > { %5181 = vmatmul.mubr.msk.f32.gmra.mrb[88].mxu0 %vm766_vm4, %v719_v31  ;;  %5118 = vmatprep.mubr.msk.f32.mxu1 %vm767_vm3, %v658_v32 }
 0x287   : > { %5182 = vmatprep.mubr.msk.f32.mxu0 %vm767_vm3, %v722_v33 }
 0x289   : > { %5119 = vmatmul.mubr.msk.f32.gmra.mrb[90].mxu1 %vm766_vm4, %v657_v37 }
 0x28a   : > { %5183 = vmatmul.mubr.msk.f32.gmra.mrb[90].mxu0 %vm766_vm4, %v721_v38  ;;  %5120 = vmatprep.mubr.msk.f32.mxu1 %vm767_vm3, %v660_v41 }
 0x28b   : > { %5184 = vmatprep.mubr.msk.f32.mxu0 %vm767_vm3, %v724_v42  ;;  %v1398_v42 = vld [vmem:[#allocation2 + $0x38] sm:$0xff] }
 0x28d   : > { %5121 = vmatmul.mubr.msk.f32.gmra.mrb[92].mxu1 %vm766_vm4, %v659_v43  ;;  %v1719_v43 = vld [vmem:[#allocation3 + $0x38] sm:$0xff] }
 0x28e   : > { %5185 = vmatmul.mubr.msk.f32.gmra.mrb[92].mxu0 %vm766_vm4, %v723_v44  ;;  %5122 = vmatprep.mubr.msk.f32.mxu1 %vm767_vm3, %v662_v39 }
 0x28f   : > { %5186 = vmatprep.mubr.msk.f32.mxu0 %vm767_vm3, %v726_v40 }
 0x291   : > { %5123 = vmatmul.mubr.msk.f32.gmra.mrb[94].mxu1 %vm766_vm4, %v661_v45 }
 0x292   : > { %5187 = vmatmul.mubr.msk.f32.gmra.mrb[94].mxu0 %vm766_vm4, %v725_v46 }
 0x2e8   : > { %v1489_v49 = vpop.f32.mrb[32].mxu1 }
 0x2e9   : > { %v1648_v51 = vadd.f32 %v1489_v49, %v1391_v35  ;;  %v1810_v52 = vpop.f32.mrb[32].mxu0  ;;  %v1491_v57 = vpop.f32.mrb[33].mxu1  ;;  %v1720_v49 = vld [vmem:[#allocation3 + $0x40] sm:$0xff] }
 0x2ea   : > { %v1969_v58 = vadd.f32 %v1810_v52, %v1712_v47  ;;  %v1812_v59 = vpop.f32.mrb[33].mxu0  ;;  %v1399_v47 = vld [vmem:[#allocation2 + $0x40] sm:$0xff] }
 0x2eb   : > { %1680 = vst [vmem:[#allocation2] sm:$0xff] %v1648_v51 }
 0x2ec   : > { %2001 = vst [vmem:[#allocation3] sm:$0xff] %v1969_v58  ;;  %v1494_v27 = vpop.f32.mrb[34].mxu1 }
 0x2ed   : > { %v1649_v0 = vadd.f32 %v1494_v27, %v1392_v61  ;;  %v1815_v5 = vpop.f32.mrb[34].mxu0  ;;  %v1496_v6 = vpop.f32.mrb[35].mxu1  ;;  %v1721_v27 = vld [vmem:[#allocation3 + $0x48] sm:$0xff] }
 0x2ee   : > { %v1970_v7 = vadd.f32 %v1815_v5, %v1713_v63  ;;  %v1817_v11 = vpop.f32.mrb[35].mxu0  ;;  %v1400_v63 = vld [vmem:[#allocation2 + $0x48] sm:$0xff] }
 0x2ef   : > { %1681 = vst [vmem:[#allocation2 + $0x8] sm:$0xff] %v1649_v0 }
 0x2f0   : > { %2002 = vst [vmem:[#allocation3 + $0x8] sm:$0xff] %v1970_v7  ;;  %v1499_v14 = vpop.f32.mrb[36].mxu1 }
 0x2f1   : > { %v1650_v20 = vadd.f32 %v1499_v14, %v1393_v21  ;;  %v1820_v22 = vpop.f32.mrb[36].mxu0  ;;  %v1501_v23 = vpop.f32.mrb[37].mxu1  ;;  %v1722_v14 = vld [vmem:[#allocation3 + $0x50] sm:$0xff] }
 0x2f2   : > { %v1971_v25 = vadd.f32 %v1820_v22, %v1714_v13  ;;  %v1822_v28 = vpop.f32.mrb[37].mxu0  ;;  %v1401_v13 = vld [vmem:[#allocation2 + $0x50] sm:$0xff] }
 0x2f3   : > { %1682 = vst [vmem:[#allocation2 + $0x10] sm:$0xff] %v1650_v20 }
 0x2f4   : > { %2003 = vst [vmem:[#allocation3 + $0x10] sm:$0xff] %v1971_v25  ;;  %v1504_v10 = vpop.f32.mrb[38].mxu1 }
 0x2f5   : > { %v1651_v36 = vadd.f32 %v1504_v10, %v1394_v29  ;;  %v1825_v9 = vpop.f32.mrb[38].mxu0  ;;  %v1506_v48 = vpop.f32.mrb[39].mxu1  ;;  %v1723_v10 = vld [vmem:[#allocation3 + $0x58] sm:$0xff] }
 0x2f6   : > { %v1972_v50 = vadd.f32 %v1825_v9, %v1715_v34  ;;  %v1827_v53 = vpop.f32.mrb[39].mxu0  ;;  %v1402_v34 = vld [vmem:[#allocation2 + $0x58] sm:$0xff] }
 0x2f7   : > { %1683 = vst [vmem:[#allocation2 + $0x18] sm:$0xff] %v1651_v36 }
 0x2f8   : > { %2004 = vst [vmem:[#allocation3 + $0x18] sm:$0xff] %v1972_v50  ;;  %v1509_v56 = vpop.f32.mrb[40].mxu1 }
 0x2f9   : > { %v1652_v60 = vadd.f32 %v1509_v56, %v1395_v54  ;;  %v1830_v62 = vpop.f32.mrb[40].mxu0  ;;  %v1511_v1 = vpop.f32.mrb[41].mxu1  ;;  %v1724_v56 = vld [vmem:[#allocation3 + $0x60] sm:$0xff] }
 0x2fa   : > { %v1973_v2 = vadd.f32 %v1830_v62, %v1716_v55  ;;  %v1832_v3 = vpop.f32.mrb[41].mxu0  ;;  %v1403_v55 = vld [vmem:[#allocation2 + $0x60] sm:$0xff] }
 0x2fb   : > { %1684 = vst [vmem:[#allocation2 + $0x20] sm:$0xff] %v1652_v60 }
 0x2fc   : > { %2005 = vst [vmem:[#allocation3 + $0x20] sm:$0xff] %v1973_v2  ;;  %v1514_v12 = vpop.f32.mrb[42].mxu1 }
 0x2fd   : > { %v1653_v15 = vadd.f32 %v1514_v12, %v1396_v4  ;;  %v1835_v16 = vpop.f32.mrb[42].mxu0  ;;  %v1516_v18 = vpop.f32.mrb[43].mxu1  ;;  %v1725_v12 = vld [vmem:[#allocation3 + $0x68] sm:$0xff] }
 0x2fe   : > { %v1974_v19 = vadd.f32 %v1835_v16, %v1717_v8  ;;  %v1837_v24 = vpop.f32.mrb[43].mxu0  ;;  %v1404_v8 = vld [vmem:[#allocation2 + $0x68] sm:$0xff] }
 0x2ff   : > { %1685 = vst [vmem:[#allocation2 + $0x28] sm:$0xff] %v1653_v15 }
 0x300   : > { %2006 = vst [vmem:[#allocation3 + $0x28] sm:$0xff] %v1974_v19  ;;  %v1519_v31 = vpop.f32.mrb[44].mxu1 }
 0x301   : > { %v1654_v32 = vadd.f32 %v1519_v31, %v1397_v26  ;;  %v1840_v33 = vpop.f32.mrb[44].mxu0  ;;  %v1521_v37 = vpop.f32.mrb[45].mxu1  ;;  %v1726_v31 = vld [vmem:[#allocation3 + $0x70] sm:$0xff] }
 0x302   : > { %v1975_v38 = vadd.f32 %v1840_v33, %v1718_v30  ;;  %v1842_v41 = vpop.f32.mrb[45].mxu0  ;;  %v1405_v30 = vld [vmem:[#allocation2 + $0x70] sm:$0xff] }
 0x303   : > { %1686 = vst [vmem:[#allocation2 + $0x30] sm:$0xff] %v1654_v32 }
 0x304   : > { %2007 = vst [vmem:[#allocation3 + $0x30] sm:$0xff] %v1975_v38  ;;  %v1524_v44 = vpop.f32.mrb[46].mxu1 }
 0x305   : > { %v1655_v39 = vadd.f32 %v1524_v44, %v1398_v42  ;;  %v1845_v40 = vpop.f32.mrb[46].mxu0  ;;  %v1526_v45 = vpop.f32.mrb[47].mxu1  ;;  %v1727_v44 = vld [vmem:[#allocation3 + $0x78] sm:$0xff] }
 0x306   : > { %v1976_v46 = vadd.f32 %v1845_v40, %v1719_v43  ;;  %v1847_v35 = vpop.f32.mrb[47].mxu0  ;;  %v1406_v43 = vld [vmem:[#allocation2 + $0x78] sm:$0xff] }
 0x307   : > { %1687 = vst [vmem:[#allocation2 + $0x38] sm:$0xff] %v1655_v39 }
 0x308   : > { %2008 = vst [vmem:[#allocation3 + $0x38] sm:$0xff] %v1976_v46  ;;  %v1529_v51 = vpop.f32.mrb[48].mxu1 }
 0x309   : > { %v1656_v52 = vadd.f32 %v1529_v51, %v1399_v47  ;;  %v1850_v57 = vpop.f32.mrb[48].mxu0  ;;  %v1531_v58 = vpop.f32.mrb[49].mxu1  ;;  %v1728_v51 = vld [vmem:[#allocation3 + $0x80] sm:$0xff] }
 0x30a   : > { %v1977_v59 = vadd.f32 %v1850_v57, %v1720_v49  ;;  %v1852_v61 = vpop.f32.mrb[49].mxu0  ;;  %v1407_v49 = vld [vmem:[#allocation2 + $0x80] sm:$0xff] }
 0x30b   : > { %1688 = vst [vmem:[#allocation2 + $0x40] sm:$0xff] %v1656_v52 }
 0x30c   : > { %2009 = vst [vmem:[#allocation3 + $0x40] sm:$0xff] %v1977_v59  ;;  %v1534_v0 = vpop.f32.mrb[50].mxu1 }
 0x30d   : > { %v1657_v5 = vadd.f32 %v1534_v0, %v1400_v63  ;;  %v1855_v6 = vpop.f32.mrb[50].mxu0  ;;  %v1536_v7 = vpop.f32.mrb[51].mxu1  ;;  %v1729_v0 = vld [vmem:[#allocation3 + $0x88] sm:$0xff] }
 0x30e   : > { %v1978_v11 = vadd.f32 %v1855_v6, %v1721_v27  ;;  %v1857_v21 = vpop.f32.mrb[51].mxu0  ;;  %v1408_v27 = vld [vmem:[#allocation2 + $0x88] sm:$0xff] }
 0x30f   : > { %1689 = vst [vmem:[#allocation2 + $0x48] sm:$0xff] %v1657_v5 }
 0x310   : > { %2010 = vst [vmem:[#allocation3 + $0x48] sm:$0xff] %v1978_v11  ;;  %v1539_v20 = vpop.f32.mrb[52].mxu1 }
 0x311   : > { %v1658_v22 = vadd.f32 %v1539_v20, %v1401_v13  ;;  %v1860_v23 = vpop.f32.mrb[52].mxu0  ;;  %v1541_v25 = vpop.f32.mrb[53].mxu1  ;;  %v1730_v20 = vld [vmem:[#allocation3 + $0x90] sm:$0xff] }
 0x312   : > { %v1979_v28 = vadd.f32 %v1860_v23, %v1722_v14  ;;  %v1862_v29 = vpop.f32.mrb[53].mxu0  ;;  %v1409_v14 = vld [vmem:[#allocation2 + $0x90] sm:$0xff] }
 0x313   : > { %1690 = vst [vmem:[#allocation2 + $0x50] sm:$0xff] %v1658_v22 }
 0x314   : > { %2011 = vst [vmem:[#allocation3 + $0x50] sm:$0xff] %v1979_v28  ;;  %v1544_v36 = vpop.f32.mrb[54].mxu1 }
 0x315   : > { %v1659_v9 = vadd.f32 %v1544_v36, %v1402_v34  ;;  %v1865_v48 = vpop.f32.mrb[54].mxu0  ;;  %v1546_v50 = vpop.f32.mrb[55].mxu1  ;;  %v1731_v36 = vld [vmem:[#allocation3 + $0x98] sm:$0xff] }
 0x316   : > { %v1980_v53 = vadd.f32 %v1865_v48, %v1723_v10  ;;  %v1867_v54 = vpop.f32.mrb[55].mxu0  ;;  %v1410_v10 = vld [vmem:[#allocation2 + $0x98] sm:$0xff] }
 0x317   : > { %1691 = vst [vmem:[#allocation2 + $0x58] sm:$0xff] %v1659_v9 }
 0x318   : > { %2012 = vst [vmem:[#allocation3 + $0x58] sm:$0xff] %v1980_v53  ;;  %v1549_v60 = vpop.f32.mrb[56].mxu1 }
 0x319   : > { %v1660_v62 = vadd.f32 %v1549_v60, %v1403_v55  ;;  %v1870_v1 = vpop.f32.mrb[56].mxu0  ;;  %v1551_v2 = vpop.f32.mrb[57].mxu1  ;;  %v1732_v60 = vld [vmem:[#allocation3 + $0xa0] sm:$0xff] }
 0x31a   : > { %v1981_v3 = vadd.f32 %v1870_v1, %v1724_v56  ;;  %v1872_v4 = vpop.f32.mrb[57].mxu0  ;;  %v1411_v56 = vld [vmem:[#allocation2 + $0xa0] sm:$0xff] }
 0x31b   : > { %1692 = vst [vmem:[#allocation2 + $0x60] sm:$0xff] %v1660_v62 }
 0x31c   : > { %2013 = vst [vmem:[#allocation3 + $0x60] sm:$0xff] %v1981_v3  ;;  %v1554_v15 = vpop.f32.mrb[58].mxu1 }
 0x31d   : > { %v1661_v16 = vadd.f32 %v1554_v15, %v1404_v8  ;;  %v1875_v18 = vpop.f32.mrb[58].mxu0  ;;  %v1556_v19 = vpop.f32.mrb[59].mxu1  ;;  %v1733_v15 = vld [vmem:[#allocation3 + $0xa8] sm:$0xff] }
 0x31e   : > { %v1982_v24 = vadd.f32 %v1875_v18, %v1725_v12  ;;  %v1877_v26 = vpop.f32.mrb[59].mxu0  ;;  %v1412_v12 = vld [vmem:[#allocation2 + $0xa8] sm:$0xff] }
 0x31f   : > { %1693 = vst [vmem:[#allocation2 + $0x68] sm:$0xff] %v1661_v16 }
 0x320   : > { %2014 = vst [vmem:[#allocation3 + $0x68] sm:$0xff] %v1982_v24  ;;  %v1559_v32 = vpop.f32.mrb[60].mxu1 }
 0x321   : > { %v1662_v33 = vadd.f32 %v1559_v32, %v1405_v30  ;;  %v1880_v37 = vpop.f32.mrb[60].mxu0  ;;  %v1561_v38 = vpop.f32.mrb[61].mxu1  ;;  %v1734_v32 = vld [vmem:[#allocation3 + $0xb0] sm:$0xff] }
 0x322   : > { %v1983_v41 = vadd.f32 %v1880_v37, %v1726_v31  ;;  %v1882_v42 = vpop.f32.mrb[61].mxu0  ;;  %v1413_v31 = vld [vmem:[#allocation2 + $0xb0] sm:$0xff] }
 0x323   : > { %1694 = vst [vmem:[#allocation2 + $0x70] sm:$0xff] %v1662_v33 }
 0x324   : > { %2015 = vst [vmem:[#allocation3 + $0x70] sm:$0xff] %v1983_v41  ;;  %v1564_v39 = vpop.f32.mrb[62].mxu1 }
 0x325   : > { %v1663_v40 = vadd.f32 %v1564_v39, %v1406_v43  ;;  %v1885_v45 = vpop.f32.mrb[62].mxu0  ;;  %v1566_v46 = vpop.f32.mrb[63].mxu1  ;;  %v1735_v39 = vld [vmem:[#allocation3 + $0xb8] sm:$0xff] }
 0x326   : > { %v1984_v35 = vadd.f32 %v1885_v45, %v1727_v44  ;;  %v1887_v47 = vpop.f32.mrb[63].mxu0  ;;  %v1414_v44 = vld [vmem:[#allocation2 + $0xb8] sm:$0xff] }
 0x327   : > { %1695 = vst [vmem:[#allocation2 + $0x78] sm:$0xff] %v1663_v40 }
 0x328   : > { %2016 = vst [vmem:[#allocation3 + $0x78] sm:$0xff] %v1984_v35  ;;  %v1569_v52 = vpop.f32.mrb[64].mxu1 }
 0x329   : > { %v1664_v57 = vadd.f32 %v1569_v52, %v1407_v49  ;;  %v1890_v58 = vpop.f32.mrb[64].mxu0  ;;  %v1571_v59 = vpop.f32.mrb[65].mxu1  ;;  %v1736_v52 = vld [vmem:[#allocation3 + $0xc0] sm:$0xff] }
 0x32a   : > { %v1985_v61 = vadd.f32 %v1890_v58, %v1728_v51  ;;  %v1892_v63 = vpop.f32.mrb[65].mxu0  ;;  %v1415_v51 = vld [vmem:[#allocation2 + $0xc0] sm:$0xff] }
 0x32b   : > { %1696 = vst [vmem:[#allocation2 + $0x80] sm:$0xff] %v1664_v57 }
 0x32c   : > { %2017 = vst [vmem:[#allocation3 + $0x80] sm:$0xff] %v1985_v61  ;;  %v1574_v5 = vpop.f32.mrb[66].mxu1 }
 0x32d   : > { %v1665_v6 = vadd.f32 %v1574_v5, %v1408_v27  ;;  %v1895_v7 = vpop.f32.mrb[66].mxu0  ;;  %v1576_v11 = vpop.f32.mrb[67].mxu1  ;;  %v1737_v5 = vld [vmem:[#allocation3 + $0xc8] sm:$0xff] }
 0x32e   : > { %v1986_v21 = vadd.f32 %v1895_v7, %v1729_v0  ;;  %v1897_v13 = vpop.f32.mrb[67].mxu0  ;;  %v1416_v0 = vld [vmem:[#allocation2 + $0xc8] sm:$0xff] }
 0x32f   : > { %1697 = vst [vmem:[#allocation2 + $0x88] sm:$0xff] %v1665_v6 }
 0x330   : > { %2018 = vst [vmem:[#allocation3 + $0x88] sm:$0xff] %v1986_v21  ;;  %v1579_v22 = vpop.f32.mrb[68].mxu1 }
 0x331   : > { %v1666_v23 = vadd.f32 %v1579_v22, %v1409_v14  ;;  %v1900_v25 = vpop.f32.mrb[68].mxu0  ;;  %v1581_v28 = vpop.f32.mrb[69].mxu1  ;;  %v1738_v22 = vld [vmem:[#allocation3 + $0xd0] sm:$0xff] }
 0x332   : > { %v1987_v29 = vadd.f32 %v1900_v25, %v1730_v20  ;;  %v1902_v34 = vpop.f32.mrb[69].mxu0  ;;  %v1417_v20 = vld [vmem:[#allocation2 + $0xd0] sm:$0xff] }
 0x333   : > { %1698 = vst [vmem:[#allocation2 + $0x90] sm:$0xff] %v1666_v23 }
 0x334   : > { %2019 = vst [vmem:[#allocation3 + $0x90] sm:$0xff] %v1987_v29  ;;  %v1584_v9 = vpop.f32.mrb[70].mxu1 }
 0x335   : > { %v1667_v48 = vadd.f32 %v1584_v9, %v1410_v10  ;;  %v1905_v50 = vpop.f32.mrb[70].mxu0  ;;  %v1586_v53 = vpop.f32.mrb[71].mxu1  ;;  %v1739_v9 = vld [vmem:[#allocation3 + $0xd8] sm:$0xff] }
 0x336   : > { %v1988_v54 = vadd.f32 %v1905_v50, %v1731_v36  ;;  %v1907_v55 = vpop.f32.mrb[71].mxu0  ;;  %v1418_v36 = vld [vmem:[#allocation2 + $0xd8] sm:$0xff] }
 0x337   : > { %1699 = vst [vmem:[#allocation2 + $0x98] sm:$0xff] %v1667_v48 }
 0x338   : > { %2020 = vst [vmem:[#allocation3 + $0x98] sm:$0xff] %v1988_v54  ;;  %v1589_v62 = vpop.f32.mrb[72].mxu1 }
 0x339   : > { %v1668_v1 = vadd.f32 %v1589_v62, %v1411_v56  ;;  %v1910_v2 = vpop.f32.mrb[72].mxu0  ;;  %v1591_v3 = vpop.f32.mrb[73].mxu1  ;;  %v1740_v62 = vld [vmem:[#allocation3 + $0xe0] sm:$0xff] }
 0x33a   : > { %v1989_v4 = vadd.f32 %v1910_v2, %v1732_v60  ;;  %v1912_v8 = vpop.f32.mrb[73].mxu0  ;;  %v1419_v60 = vld [vmem:[#allocation2 + $0xe0] sm:$0xff] }
 0x33b   : > { %1700 = vst [vmem:[#allocation2 + $0xa0] sm:$0xff] %v1668_v1 }
 0x33c   : > { %2021 = vst [vmem:[#allocation3 + $0xa0] sm:$0xff] %v1989_v4  ;;  %v1594_v16 = vpop.f32.mrb[74].mxu1 }
 0x33d   : > { %v1669_v18 = vadd.f32 %v1594_v16, %v1412_v12  ;;  %v1915_v19 = vpop.f32.mrb[74].mxu0  ;;  %v1596_v24 = vpop.f32.mrb[75].mxu1  ;;  %v1741_v16 = vld [vmem:[#allocation3 + $0xe8] sm:$0xff] }
 0x33e   : > { %v1990_v26 = vadd.f32 %v1915_v19, %v1733_v15  ;;  %v1917_v30 = vpop.f32.mrb[75].mxu0  ;;  %v1420_v15 = vld [vmem:[#allocation2 + $0xe8] sm:$0xff] }
 0x33f   : > { %1701 = vst [vmem:[#allocation2 + $0xa8] sm:$0xff] %v1669_v18 }
 0x340   : > { %2022 = vst [vmem:[#allocation3 + $0xa8] sm:$0xff] %v1990_v26  ;;  %v1599_v33 = vpop.f32.mrb[76].mxu1 }
 0x341   : > { %v1670_v37 = vadd.f32 %v1599_v33, %v1413_v31  ;;  %v1920_v38 = vpop.f32.mrb[76].mxu0  ;;  %v1601_v41 = vpop.f32.mrb[77].mxu1  ;;  %v1742_v33 = vld [vmem:[#allocation3 + $0xf0] sm:$0xff] }
 0x342   : > { %v1991_v42 = vadd.f32 %v1920_v38, %v1734_v32  ;;  %v1922_v43 = vpop.f32.mrb[77].mxu0  ;;  %v1421_v32 = vld [vmem:[#allocation2 + $0xf0] sm:$0xff] }
 0x343   : > { %1702 = vst [vmem:[#allocation2 + $0xb0] sm:$0xff] %v1670_v37 }
 0x344   : > { %2023 = vst [vmem:[#allocation3 + $0xb0] sm:$0xff] %v1991_v42  ;;  %v1604_v40 = vpop.f32.mrb[78].mxu1 }
 0x345   : > { %v1671_v45 = vadd.f32 %v1604_v40, %v1414_v44  ;;  %v1925_v46 = vpop.f32.mrb[78].mxu0  ;;  %v1606_v35 = vpop.f32.mrb[79].mxu1  ;;  %v1743_v40 = vld [vmem:[#allocation3 + $0xf8] sm:$0xff] }
 0x346   : > { %v1992_v47 = vadd.f32 %v1925_v46, %v1735_v39  ;;  %v1927_v49 = vpop.f32.mrb[79].mxu0  ;;  %v1422_v39 = vld [vmem:[#allocation2 + $0xf8] sm:$0xff] }
 0x347   : > { %1703 = vst [vmem:[#allocation2 + $0xb8] sm:$0xff] %v1671_v45 }
 0x348   : > { %2024 = vst [vmem:[#allocation3 + $0xb8] sm:$0xff] %v1992_v47  ;;  %v1609_v57 = vpop.f32.mrb[80].mxu1 }
 0x349   : > { %v1672_v58 = vadd.f32 %v1609_v57, %v1415_v51  ;;  %v1930_v59 = vpop.f32.mrb[80].mxu0  ;;  %v1611_v61 = vpop.f32.mrb[81].mxu1 }
 0x34a   : > { %v1993_v63 = vadd.f32 %v1930_v59, %v1736_v52  ;;  %v1932_v27 = vpop.f32.mrb[81].mxu0 }
 0x34b   : > { %1704 = vst [vmem:[#allocation2 + $0xc0] sm:$0xff] %v1672_v58 }
 0x34c   : > { %2025 = vst [vmem:[#allocation3 + $0xc0] sm:$0xff] %v1993_v63  ;;  %v1614_v6 = vpop.f32.mrb[82].mxu1 }
 0x34d   : > { %v1673_v7 = vadd.f32 %v1614_v6, %v1416_v0  ;;  %v1935_v11 = vpop.f32.mrb[82].mxu0  ;;  %v1616_v21 = vpop.f32.mrb[83].mxu1 }
 0x34e   : > { %v1994_v13 = vadd.f32 %v1935_v11, %v1737_v5  ;;  %v1937_v14 = vpop.f32.mrb[83].mxu0 }
 0x34f   : > { %1705 = vst [vmem:[#allocation2 + $0xc8] sm:$0xff] %v1673_v7 }
 0x350   : > { %2026 = vst [vmem:[#allocation3 + $0xc8] sm:$0xff] %v1994_v13  ;;  %v1619_v23 = vpop.f32.mrb[84].mxu1 }
 0x351   : > { %v1674_v25 = vadd.f32 %v1619_v23, %v1417_v20  ;;  %v1940_v28 = vpop.f32.mrb[84].mxu0  ;;  %v1621_v29 = vpop.f32.mrb[85].mxu1 }
 0x352   : > { %v1995_v34 = vadd.f32 %v1940_v28, %v1738_v22  ;;  %v1942_v10 = vpop.f32.mrb[85].mxu0 }
 0x353   : > { %1706 = vst [vmem:[#allocation2 + $0xd0] sm:$0xff] %v1674_v25 }
 0x354   : > { %2027 = vst [vmem:[#allocation3 + $0xd0] sm:$0xff] %v1995_v34  ;;  %v1624_v48 = vpop.f32.mrb[86].mxu1 }
 0x355   : > { %v1675_v50 = vadd.f32 %v1624_v48, %v1418_v36  ;;  %v1945_v53 = vpop.f32.mrb[86].mxu0  ;;  %v1626_v54 = vpop.f32.mrb[87].mxu1 }
 0x356   : > { %v1996_v55 = vadd.f32 %v1945_v53, %v1739_v9  ;;  %v1947_v56 = vpop.f32.mrb[87].mxu0 }
 0x357   : > { %1707 = vst [vmem:[#allocation2 + $0xd8] sm:$0xff] %v1675_v50 }
 0x358   : > { %2028 = vst [vmem:[#allocation3 + $0xd8] sm:$0xff] %v1996_v55  ;;  %v1629_v1 = vpop.f32.mrb[88].mxu1 }
 0x359   : > { %v1676_v2 = vadd.f32 %v1629_v1, %v1419_v60  ;;  %v1950_v3 = vpop.f32.mrb[88].mxu0  ;;  %v1631_v4 = vpop.f32.mrb[89].mxu1 }
 0x35a   : > { %v1997_v8 = vadd.f32 %v1950_v3, %v1740_v62  ;;  %v1952_v12 = vpop.f32.mrb[89].mxu0 }
 0x35b   : > { %1708 = vst [vmem:[#allocation2 + $0xe0] sm:$0xff] %v1676_v2 }
 0x35c   : > { %2029 = vst [vmem:[#allocation3 + $0xe0] sm:$0xff] %v1997_v8  ;;  %v1634_v18 = vpop.f32.mrb[90].mxu1 }
 0x35d   : > { %v1677_v19 = vadd.f32 %v1634_v18, %v1420_v15  ;;  %v1955_v24 = vpop.f32.mrb[90].mxu0  ;;  %v1636_v26 = vpop.f32.mrb[91].mxu1 }
 0x35e   : > { %v1998_v30 = vadd.f32 %v1955_v24, %v1741_v16  ;;  %v1957_v31 = vpop.f32.mrb[91].mxu0 }
 0x35f   : > { %1709 = vst [vmem:[#allocation2 + $0xe8] sm:$0xff] %v1677_v19 }
 0x360   : > { %2030 = vst [vmem:[#allocation3 + $0xe8] sm:$0xff] %v1998_v30  ;;  %v1639_v37 = vpop.f32.mrb[92].mxu1 }
 0x361   : > { %v1678_v38 = vadd.f32 %v1639_v37, %v1421_v32  ;;  %v1960_v41 = vpop.f32.mrb[92].mxu0  ;;  %v1641_v42 = vpop.f32.mrb[93].mxu1 }
 0x362   : > { %v1999_v43 = vadd.f32 %v1960_v41, %v1742_v33  ;;  %v1962_v44 = vpop.f32.mrb[93].mxu0  ;;  %2036 = sbr.rel (%p5188_p11) target bundleno = 1626 (0x65a), region = 72 }
 0x363   : > { %1710 = vst [vmem:[#allocation2 + $0xf0] sm:$0xff] %v1678_v38 }
 0x364   : > { %2031 = vst [vmem:[#allocation3 + $0xf0] sm:$0xff] %v1999_v43  ;;  %v1644_v45 = vpop.f32.mrb[94].mxu1 }
 0x365   : > { %v1679_v46 = vadd.f32 %v1644_v45, %v1422_v39  ;;  %v1965_v35 = vpop.f32.mrb[94].mxu0  ;;  %v1646_v47 = vpop.f32.mrb[95].mxu1 }
 0x366   : > { %v2000_v49 = vadd.f32 %v1965_v35, %v1743_v40  ;;  %v1967_v51 = vpop.f32.mrb[95].mxu0 }
 0x367   : > { %1711 = vst [vmem:[#allocation2 + $0xf8] sm:$0xff] %v1679_v46 }
 0x368   : > { %2032 = vst [vmem:[#allocation3 + $0xf8] sm:$0xff] %v2000_v49 }
 0x369   : > { %s10155_s19 = sld [smem:[#allocation195_spill]]  ;;  %v2165_v5 = vld [vmem:[%s6848_s29] sm:$0xff]  ;;  %v2559_v7 = vsub.s32 0, %v6949_v17  ;;  %s10157_s3 = sld [smem:[#allocation196_spill]]  ;;  %v7673_v22 = vld [vmem:[#allocation2 + $0x10] sm:$0xff]  ;;  %v7675_v23 = vld [vmem:[#allocation2 + $0x8] sm:$0xff] }
 0x36a   : > { %v2181_v6 = vld [vmem:[%s6848_s29 + $0x80] sm:$0xff]  ;;  %5385 = vmatprep.mubr.msk.f32.mxu0 %vm1037_vm1, %v2165_v5  ;;  %10158 = vst [vmem:[#allocation26_spill] sm:$0xff] %v7673_v22  ;;  %10159 = vst [vmem:[#allocation27_spill] sm:$0xff] %v7675_v23  ;;  %v9979_v25 = vmax.f32 %v7673_v22, 0.0  ;;  %v7678_v28 = vld [vmem:[#allocation2 + $0x18] sm:$0xff]  ;;  %v9995_v34 = vmax.f32 %v7675_v23, 0.0 }
 0x36b   : > { %5409 = vmatprep.mubr.msk.f32.mxu1 %vm1037_vm1, %v2181_v6  ;;  %v7662_v21 = vld [vmem:[#allocation2] sm:$0xff]  ;;  %10160 = vst [vmem:[#allocation28_spill] sm:$0xff] %v7678_v28  ;;  %v9983_v10 = vmax.f32 %v7678_v28, 0.0  ;;  %v7690_v48 = vld [vmem:[#allocation2 + $0x28] sm:$0xff]  ;;  %v2167_v54 = vld [vmem:[%s6848_s29 + $0x10] sm:$0xff]  ;;  %s8146_s7 = sld [smem:[#allocation10 + $0x1]] }
 0x36c   : > { %10156 = vst [vmem:[#allocation25_spill] sm:$0xff] %v7662_v21  ;;  %v9991_v14 = vmax.f32 %v7662_v21, 0.0  ;;  %v7688_v9 = vld [vmem:[#allocation2 + $0x20] sm:$0xff]  ;;  %10162 = vst [vmem:[#allocation30_spill] sm:$0xff] %v7690_v48  ;;  %v2166_v50 = vld [vmem:[%s6848_s29 + $0x8] sm:$0xff]  ;;  %v9971_v1 = vmax.f32 %v7690_v48, 0.0 }
 0x36d   : > { %10161 = vst [vmem:[#allocation29_spill] sm:$0xff] %v7688_v9  ;;  %v2182_v53 = vld [vmem:[%s6848_s29 + $0x88] sm:$0xff]  ;;  %v2183_v55 = vld [vmem:[%s6848_s29 + $0x90] sm:$0xff]  ;;  %v9970_v62 = vmax.f32 %v7688_v9, 0.0  ;;  %v7706_v3 = vld [vmem:[#allocation2 + $0x38] sm:$0xff]  ;;  %s8148_s17 = sld [smem:[#allocation10 + $0x2]] }
 0x36e   : > { %v7704_v2 = vld [vmem:[#allocation2 + $0x30] sm:$0xff]  ;;  %10164 = vst [vmem:[#allocation32_spill] sm:$0xff] %v7706_v3  ;;  %v2168_v4 = vld [vmem:[%s6848_s29 + $0x18] sm:$0xff]  ;;  %v2169_v12 = vld [vmem:[%s6848_s29 + $0x20] sm:$0xff]  ;;  %v9967_v24 = vmax.f32 %v7706_v3, 0.0  ;;  %s8154_s8 = sld [smem:[#allocation10 + $0x80]] }
 0x36f   : > { %v2197_v52 = vld [vmem:[%s10155_s19] sm:$0xff]  ;;  %v2198_v57 = vld [vmem:[%s10155_s19 + $0x8] sm:$0xff]  ;;  %v2199_v58 = vld [vmem:[%s10155_s19 + $0x10] sm:$0xff]  ;;  %10163 = vst [vmem:[#allocation31_spill] sm:$0xff] %v7704_v2  ;;  %v9966_v19 = vmax.f32 %v7704_v2, 0.0  ;;  %s8156_s4 = sld [smem:[#allocation10 + $0x81]] }
 0x370   : > { %v5541_v59 = vpack.c.bf16 %v2198_v57, %v2197_v52  ;;  %v2200_v61 = vld [vmem:[%s10155_s19 + $0x18] sm:$0xff]  ;;  %v2201_v27 = vld [vmem:[%s10155_s19 + $0x20] sm:$0xff]  ;;  %v2202_v0 = vld [vmem:[%s10155_s19 + $0x28] sm:$0xff]  ;;  %s8158_s18 = sld [smem:[#allocation10 + $0x82]]  ;;  %s8975_s27 = sld [smem:[#allocation10 + $0x100]] }
 0x371   : > { %v5545_v63 = vpack.c.bf16 %v2200_v61, %v2199_v58  ;;  %v5549_v11 = vpack.c.bf16 %v2202_v0, %v2201_v27  ;;  %v7667_v13 = vld [vmem:[%s10157_s3] sm:$0x7]  ;;  %v2184_v8 = vld [vmem:[%s6848_s29 + $0x98] sm:$0xff]  ;;  %v7726_v30 = vld [vmem:[#allocation2 + $0x48] sm:$0xff]  ;;  %s8987_s22 = sld [smem:[#allocation10 + $0x101]]  ;;  %s8989_s26 = sld [smem:[#allocation10 + $0x102]] }
 0x372   : > { %5542 = vmatprep.subr.bf16.mxu0 %v5541_v59  ;;  %5559 = vmatprep.subr.bf16.mxu1 %v5541_v59  ;;  %v7671_v20 = vrot.slane %v7667_v13, %v2559_v7  ;;  %v2185_v15 = vld [vmem:[%s6848_s29 + $0xa0] sm:$0xff]  ;;  %10166 = vst [vmem:[#allocation34_spill] sm:$0xff] %v7726_v30  ;;  %v2170_v31 = vld [vmem:[%s6848_s29 + $0x28] sm:$0xff]  ;;  %v2171_v33 = vld [vmem:[%s6848_s29 + $0x30] sm:$0xff]  ;;  %v9961_v43 = vmax.f32 %v7726_v30, 0.0 }
 0x373   : > { %5544 = vmatpush3.bf16.msra.mxu0 %v5541_v59  ;;  %5562 = vmatpush3.bf16.msra.mxu1 %v5541_v59  ;;  %v7724_v26 = vld [vmem:[#allocation2 + $0x40] sm:$0xff]  ;;  %v2186_v32 = vld [vmem:[%s6848_s29 + $0xa8] sm:$0xff]  ;;  %v2187_v37 = vld [vmem:[%s6848_s29 + $0xb0] sm:$0xff] }
 0x374   : > { %5546 = vmatprep.subr.bf16.mxu0 %v5545_v63  ;;  %5560 = vmatprep.subr.bf16.mxu1 %v5545_v63  ;;  %v2561_v29 = vmul.f32 %v7671_v20, %v9991_v14  ;;  %v2563_v36 = vmul.f32 %v7671_v20, %v9979_v25  ;;  %v2562_v56 = vmul.f32 %v7671_v20, %v9995_v34  ;;  %v9958_v42 = vmax.f32 %v7724_v26, 0.0  ;;  %v7744_v44 = vld [vmem:[#allocation2 + $0x50] sm:$0xff]  ;;  %v7746_v39 = vld [vmem:[#allocation2 + $0x58] sm:$0xff]  ;;  %v2173_v46 = vld [vmem:[%s6848_s29 + $0x40] sm:$0xff] }
 0x375   : > { %v2564_v60 = vmul.f32 %v7671_v20, %v9983_v10  ;;  %v2565_v16 = vmul.f32 %v7671_v20, %v9970_v62  ;;  %v2566_v18 = vmul.f32 %v7671_v20, %v9971_v1  ;;  %10165 = vst [vmem:[#allocation33_spill] sm:$0xff] %v7724_v26  ;;  %v2567_v38 = vmul.f32 %v7671_v20, %v9966_v19  ;;  %v2172_v40 = vld [vmem:[%s6848_s29 + $0x38] sm:$0xff]  ;;  %v2189_v35 = vld [vmem:[%s6848_s29 + $0xc0] sm:$0xff]  ;;  %v7766_v58 = vld [vmem:[#allocation2 + $0x68] sm:$0xff] }
 0x376   : > { %2593 = vadd.xlane.f32.xlu0 %v2561_v29  ;;  %2597 = vadd.xlane.f32.xlu1 %v2563_v36  ;;  %v2568_v41 = vmul.f32 %v7671_v20, %v9967_v24  ;;  %10167 = vst [vmem:[#allocation35_spill] sm:$0xff] %v7744_v44  ;;  %10168 = vst [vmem:[#allocation36_spill] sm:$0xff] %v7746_v39  ;;  %v2188_v45 = vld [vmem:[%s6848_s29 + $0xb8] sm:$0xff]  ;;  %v2569_v47 = vmul.f32 %v7671_v20, %v9958_v42  ;;  %v9952_v51 = vmax.f32 %v7744_v44, 0.0  ;;  %v7764_v57 = vld [vmem:[#allocation2 + $0x60] sm:$0xff] }
 0x377   : > { %5548 = vmatpush3.bf16.msra.mxu0 %v5545_v63  ;;  %5563 = vmatpush3.bf16.msra.mxu1 %v5545_v63  ;;  %v2570_v49 = vmul.f32 %v7671_v20, %v9961_v43  ;;  %v9953_v52 = vmax.f32 %v7746_v39, 0.0  ;;  %10169 = vst [vmem:[#allocation37_spill] sm:$0xff] %v7764_v57  ;;  %10170 = vst [vmem:[#allocation38_spill] sm:$0xff] %v7766_v58  ;;  %v2174_v59 = vld [vmem:[%s6848_s29 + $0x48] sm:$0xff]  ;;  %v2175_v63 = vld [vmem:[%s6848_s29 + $0x50] sm:$0xff]  ;;  %v9950_v6 = vmax.f32 %v7764_v57, 0.0  ;;  %v8192_v2 = vstv %s8158_s18 }
 0x378   : > { %5550 = vmatprep.subr.bf16.mxu0 %v5549_v11  ;;  %5561 = vmatprep.subr.bf16.mxu1 %v5549_v11  ;;  %v2190_v61 = vld [vmem:[%s6848_s29 + $0xc8] sm:$0xff]  ;;  %v2571_v27 = vmul.f32 %v7671_v20, %v9952_v51  ;;  %v2191_v0 = vld [vmem:[%s6848_s29 + $0xd0] sm:$0xff]  ;;  %v9951_v7 = vmax.f32 %v7766_v58, 0.0  ;;  %v7786_v29 = vld [vmem:[#allocation2 + $0x78] sm:$0xff]  ;;  %10235 = vst [vmem:[#allocation103_spill] sm:$0xff] %v8192_v2 }
 0x379   : > { %v2572_v5 = vmul.f32 %v7671_v20, %v9953_v52  ;;  %10172 = vst [vmem:[#allocation40_spill] sm:$0xff] %v7786_v29  ;;  %v2176_v36 = vld [vmem:[%s6848_s29 + $0x58] sm:$0xff]  ;;  %v2851_v52 = vsub.s32 1, %v6949_v17  ;;  %v7932_v43 = vld [vmem:[#allocation3 + $0x10] sm:$0xff]  ;;  %v7968_v1 = vld [vmem:[#allocation3 + $0x48] sm:$0xff] }
 0x37a   : > { %2595 = vadd.xlane.f32.xlu0 %v2562_v56  ;;  %2599 = vadd.xlane.f32.xlu1 %v2564_v60  ;;  %v2193_v60 = vld [vmem:[%s6848_s29 + $0xe0] sm:$0xff]  ;;  %v7906_v51 = vld [vmem:[#allocation2 + $0xf8] sm:$0xff]  ;;  %10191 = vst [vmem:[#allocation59_spill] sm:$0xff] %v7932_v43  ;;  %10197 = vst [vmem:[#allocation65_spill] sm:$0xff] %v7968_v1 }
 0x37b   : > { %5552 = vmatpush3.bf16.msra.mxu0 %v5549_v11  ;;  %5564 = vmatpush3.bf16.msra.mxu1 %v5549_v11  ;;  %v7784_v11 = vld [vmem:[#allocation2 + $0x70] sm:$0xff]  ;;  %10188 = vst [vmem:[#allocation56_spill] sm:$0xff] %v7906_v51  ;;  %v7922_v42 = vrot.slane %v7667_v13, %v2851_v52  ;;  %v7956_v24 = vld [vmem:[#allocation3 + $0x38] sm:$0xff]  ;;  %v7992_v25 = vld [vmem:[#allocation3 + $0x68] sm:$0xff] }
 0x37c   : > { %10171 = vst [vmem:[#allocation39_spill] sm:$0xff] %v7784_v11  ;;  %v9948_v56 = vmax.f32 %v7784_v11, 0.0  ;;  %10195 = vst [vmem:[#allocation63_spill] sm:$0xff] %v7956_v24  ;;  %v8004_v10 = vld [vmem:[#allocation3 + $0x78] sm:$0xff]  ;;  %v8040_v34 = vld [vmem:[#allocation3 + $0xa8] sm:$0xff] }
 0x37d   : > { %10201 = vst [vmem:[#allocation69_spill] sm:$0xff] %v7992_v25  ;;  %10203 = vst [vmem:[#allocation71_spill] sm:$0xff] %v8004_v10  ;;  %v8028_v14 = vld [vmem:[#allocation3 + $0x98] sm:$0xff]  ;;  %v8064_v11 = vld [vmem:[#allocation3 + $0xc8] sm:$0xff] }
 0x37e   : > { %5386 = vmatmul.mubr.msk.f32.vlgmr.msra.gmra.mrb[0].mxu0 %vm1037_vm1, %v2166_v50  ;;  %5410 = vmatmul.mubr.msk.f32.vlgmr.msra.gmra.mrb[0].mxu1 %vm1037_vm1, %v2182_v53  ;;  %v2192_v50 = vld [vmem:[%s6848_s29 + $0xd8] sm:$0xff]  ;;  %v2573_v53 = vmul.f32 %v7671_v20, %v9950_v6  ;;  %10207 = vst [vmem:[#allocation75_spill] sm:$0xff] %v8028_v14  ;;  %10209 = vst [vmem:[#allocation77_spill] sm:$0xff] %v8040_v34 }
 0x37f   : > { %5388 = vmatprep.mubr.msk.f32.mxu0 %vm1037_vm1, %v2167_v54  ;;  %5412 = vmatprep.mubr.msk.f32.mxu1 %vm1037_vm1, %v2183_v55  ;;  %v2177_v54 = vld [vmem:[%s6848_s29 + $0x60] sm:$0xff]  ;;  %v2574_v55 = vmul.f32 %v7671_v20, %v9951_v7  ;;  %v7904_v7 = vld [vmem:[#allocation2 + $0xf0] sm:$0xff]  ;;  %10213 = vst [vmem:[#allocation81_spill] sm:$0xff] %v8064_v11  ;;  %v8100_v57 = vld [vmem:[#allocation3 + $0xf8] sm:$0xff] }
 0x380   : > { %2601 = vadd.xlane.f32.xlu0 %v2565_v16  ;;  %2603 = vadd.xlane.f32.xlu1 %v2566_v18  ;;  %v2194_v16 = vld [vmem:[%s6848_s29 + $0xe8] sm:$0xff]  ;;  %v2575_v18 = vmul.f32 %v7671_v20, %v9948_v56  ;;  %10187 = vst [vmem:[#allocation55_spill] sm:$0xff] %v7904_v7  ;;  %10219 = vst [vmem:[#allocation87_spill] sm:$0xff] %v8100_v57 }
 0x381   : > { %v7894_v56 = vld [vmem:[#allocation2 + $0xe8] sm:$0xff] }
 0x382   : > { %5389 = vmatmul.mubr.msk.f32.gmra.mrb[2].mxu0 %vm1037_vm1, %v2168_v4  ;;  %5413 = vmatmul.mubr.msk.f32.gmra.mrb[2].mxu1 %vm1037_vm1, %v2184_v8  ;;  %v9949_v4 = vmax.f32 %v7786_v29, 0.0  ;;  %v7804_v8 = vld [vmem:[#allocation2 + $0x80] sm:$0xff]  ;;  %10186 = vst [vmem:[#allocation54_spill] sm:$0xff] %v7894_v56  ;;  %v9960_v6 = vmax.f32 %v7894_v56, 0.0  ;;  %v8076_v29 = vld [vmem:[#allocation3 + $0xd8] sm:$0xff]  ;;  %v8088_v56 = vld [vmem:[#allocation3 + $0xe8] sm:$0xff] }
 0x383   : > { %5391 = vmatprep.mubr.msk.f32.mxu0 %vm1037_vm1, %v2169_v12  ;;  %5415 = vmatprep.mubr.msk.f32.mxu1 %vm1037_vm1, %v2185_v15  ;;  %10173 = vst [vmem:[#allocation41_spill] sm:$0xff] %v7804_v8  ;;  %v7806_v12 = vld [vmem:[#allocation2 + $0x88] sm:$0xff]  ;;  %10215 = vst [vmem:[#allocation83_spill] sm:$0xff] %v8076_v29 }
 0x384   : > { %2605 = vadd.xlane.f32.xlu0 %v2567_v38  ;;  %2607 = vadd.xlane.f32.xlu1 %v2568_v41  ;;  %10174 = vst [vmem:[#allocation42_spill] sm:$0xff] %v7806_v12  ;;  %v2178_v15 = vld [vmem:[%s6848_s29 + $0x68] sm:$0xff]  ;;  %v2195_v38 = vld [vmem:[%s6848_s29 + $0xf0] sm:$0xff]  ;;  %10217 = vst [vmem:[#allocation85_spill] sm:$0xff] %v8088_v56 }
 0x385   : > { %v7824_v41 = vld [vmem:[#allocation2 + $0x90] sm:$0xff] }
 0x386   : > { %5392 = vmatmul.mubr.msk.f32.gmra.mrb[4].mxu0 %vm1037_vm1, %v2170_v31  ;;  %5416 = vmatmul.mubr.msk.f32.gmra.mrb[4].mxu1 %vm1037_vm1, %v2186_v32  ;;  %v2576_v31 = vmul.f32 %v7671_v20, %v9949_v4  ;;  %v9984_v32 = vmax.f32 %v7804_v8, 0.0  ;;  %10175 = vst [vmem:[#allocation43_spill] sm:$0xff] %v7824_v41 }
 0x387   : > { %5394 = vmatprep.mubr.msk.f32.mxu0 %vm1037_vm1, %v2171_v33  ;;  %5418 = vmatprep.mubr.msk.f32.mxu1 %vm1037_vm1, %v2187_v37  ;;  %v2179_v33 = vld [vmem:[%s6848_s29 + $0x70] sm:$0xff]  ;;  %v9987_v37 = vmax.f32 %v7806_v12, 0.0 }
 0x388   : > { %2609 = vadd.xlane.f32.xlu0 %v2569_v47  ;;  %2611 = vadd.xlane.f32.xlu1 %v2570_v49  ;;  %v9972_v49 = vmax.f32 %v7824_v41, 0.0 }
 0x389   : > { %v2578_v47 = vmul.f32 %v7671_v20, %v9987_v37  ;;  %v8016_v37 = vld [vmem:[#allocation3 + $0x88] sm:$0xff] }
 0x38a   : > { %5395 = vmatmul.mubr.msk.f32.gmra.mrb[6].mxu0 %vm1037_vm1, %v2172_v40  ;;  %5419 = vmatmul.mubr.msk.f32.gmra.mrb[6].mxu1 %vm1037_vm1, %v2188_v45  ;;  %v7826_v40 = vld [vmem:[#allocation2 + $0x98] sm:$0xff]  ;;  %10205 = vst [vmem:[#allocation73_spill] sm:$0xff] %v8016_v37 }
 0x38b   : > { %5397 = vmatprep.mubr.msk.f32.mxu0 %vm1037_vm1, %v2173_v46  ;;  %5421 = vmatprep.mubr.msk.f32.mxu1 %vm1037_vm1, %v2189_v35  ;;  %10176 = vst [vmem:[#allocation44_spill] sm:$0xff] %v7826_v40  ;;  %v2180_v45 = vld [vmem:[%s6848_s29 + $0x78] sm:$0xff]  ;;  %v2577_v35 = vmul.f32 %v7671_v20, %v9984_v32  ;;  %v8006_v32 = vld [vmem:[#allocation3 + $0x70] sm:$0xff] }
 0x38c   : > { %2613 = vadd.xlane.f32.xlu0 %v2571_v27  ;;  %2615 = vadd.xlane.f32.xlu1 %v2572_v5  ;;  %v2196_v46 = vld [vmem:[%s6848_s29 + $0xf8] sm:$0xff]  ;;  %v2579_v27 = vmul.f32 %v7671_v20, %v9972_v49  ;;  %v7970_v49 = vld [vmem:[#allocation3 + $0x40] sm:$0xff]  ;;  %10204 = vst [vmem:[#allocation72_spill] sm:$0xff] %v8006_v32  ;;  %s8144_s29 = sld [smem:[#allocation10]] }
 0x38d   : > { %10198 = vst [vmem:[#allocation66_spill] sm:$0xff] %v7970_v49 }
 0x38e   : > { %5398 = vmatmul.mubr.msk.f32.gmra.mrb[8].mxu0 %vm1037_vm1, %v2174_v59  ;;  %5422 = vmatmul.mubr.msk.f32.gmra.mrb[8].mxu1 %vm1037_vm1, %v2190_v61  ;;  %v9975_v59 = vmax.f32 %v7826_v40, 0.0  ;;  %v7842_v61 = vld [vmem:[#allocation2 + $0xa0] sm:$0xff] }
 0x38f   : > { %5400 = vmatprep.mubr.msk.f32.mxu0 %vm1037_vm1, %v2175_v63  ;;  %5424 = vmatprep.mubr.msk.f32.mxu1 %vm1037_vm1, %v2191_v0  ;;  %10177 = vst [vmem:[#allocation45_spill] sm:$0xff] %v7842_v61  ;;  %v7844_v63 = vld [vmem:[#allocation2 + $0xa8] sm:$0xff]  ;;  %v9968_v5 = vmax.f32 %v7842_v61, 0.0 }
 0x390   : > { %2617 = vadd.xlane.f32.xlu0 %v2573_v53  ;;  %2619 = vadd.xlane.f32.xlu1 %v2574_v55  ;;  %10178 = vst [vmem:[#allocation46_spill] sm:$0xff] %v7844_v63  ;;  %v2580_v0 = vmul.f32 %v7671_v20, %v9975_v59  ;;  %v7858_v53 = vld [vmem:[#allocation2 + $0xb8] sm:$0xff] }
 0x391   : > { %10180 = vst [vmem:[#allocation48_spill] sm:$0xff] %v7858_v53  ;;  %v7980_v59 = vld [vmem:[#allocation3 + $0x58] sm:$0xff] }
 0x392   : > { %5401 = vmatmul.mubr.msk.f32.gmra.mrb[10].mxu0 %vm1037_vm1, %v2176_v36  ;;  %5425 = vmatmul.mubr.msk.f32.gmra.mrb[10].mxu1 %vm1037_vm1, %v2192_v50  ;;  %v9969_v36 = vmax.f32 %v7844_v63, 0.0  ;;  %v7856_v50 = vld [vmem:[#allocation2 + $0xb0] sm:$0xff]  ;;  %10199 = vst [vmem:[#allocation67_spill] sm:$0xff] %v7980_v59 }
 0x393   : > { %5403 = vmatprep.mubr.msk.f32.mxu0 %vm1037_vm1, %v2177_v54  ;;  %5427 = vmatprep.mubr.msk.f32.mxu1 %vm1037_vm1, %v2193_v60  ;;  %10179 = vst [vmem:[#allocation47_spill] sm:$0xff] %v7856_v50  ;;  %v2581_v54 = vmul.f32 %v7671_v20, %v9968_v5  ;;  %v9962_v60 = vmax.f32 %v7856_v50, 0.0  ;;  %v7958_v5 = vld [vmem:[#allocation3 + $0x30] sm:$0xff] }
 0x394   : > { %2621 = vadd.xlane.f32.xlu0 %v2575_v18  ;;  %2623 = vadd.xlane.f32.xlu1 %v2576_v31  ;;  %v2582_v55 = vmul.f32 %v7671_v20, %v9969_v36  ;;  %v7870_v18 = vld [vmem:[#allocation2 + $0xc8] sm:$0xff]  ;;  %10196 = vst [vmem:[#allocation64_spill] sm:$0xff] %v7958_v5  ;;  %v9978_v36 = vmax.f32 %v7956_v24, 0.0  ;;  %v9977_v62 = vmax.f32 %v7958_v5, 0.0 }
 0x395   : > { %10182 = vst [vmem:[#allocation50_spill] sm:$0xff] %v7870_v18  ;;  %v2583_v31 = vmul.f32 %v7671_v20, %v9962_v60  ;;  %v7934_v60 = vld [vmem:[#allocation3 + $0x18] sm:$0xff] }
 0x396   : > { %5404 = vmatmul.mubr.msk.f32.gmra.mrb[12].mxu0 %vm1037_vm1, %v2178_v15  ;;  %5428 = vmatmul.mubr.msk.f32.gmra.mrb[12].mxu1 %vm1037_vm1, %v2194_v16  ;;  %v9965_v15 = vmax.f32 %v7858_v53, 0.0  ;;  %v7868_v16 = vld [vmem:[#allocation2 + $0xc0] sm:$0xff]  ;;  %10192 = vst [vmem:[#allocation60_spill] sm:$0xff] %v7934_v60 }
 0x397   : > { %5406 = vmatprep.mubr.msk.f32.mxu0 %vm1037_vm1, %v2179_v33  ;;  %5430 = vmatprep.mubr.msk.f32.mxu1 %vm1037_vm1, %v2195_v38  ;;  %10181 = vst [vmem:[#allocation49_spill] sm:$0xff] %v7868_v16  ;;  %v9956_v38 = vmax.f32 %v7868_v16, 0.0 }
 0x398   : > { %2625 = vadd.xlane.f32.xlu0 %v2577_v35  ;;  %2627 = vadd.xlane.f32.xlu1 %v2578_v47  ;;  %v2584_v33 = vmul.f32 %v7671_v20, %v9965_v15  ;;  %v7882_v35 = vld [vmem:[#allocation2 + $0xd8] sm:$0xff] }
 0x399   : > { %10184 = vst [vmem:[#allocation52_spill] sm:$0xff] %v7882_v35  ;;  %v2585_v47 = vmul.f32 %v7671_v20, %v9956_v38  ;;  %v7917_v38 = vld [vmem:[#allocation3] sm:$0xff] }
 0x39a   : > { %5407 = vmatmul.mubr.msk.f32.gmra.mrb[14].mxu0 %vm1037_vm1, %v2180_v45  ;;  %5431 = vmatmul.mubr.msk.f32.gmra.mrb[14].mxu1 %vm1037_vm1, %v2196_v46  ;;  %v9957_v45 = vmax.f32 %v7870_v18, 0.0  ;;  %v7880_v46 = vld [vmem:[#allocation2 + $0xd0] sm:$0xff]  ;;  %10189 = vst [vmem:[#allocation57_spill] sm:$0xff] %v7917_v38 }
 0x39b   : > { %10183 = vst [vmem:[#allocation51_spill] sm:$0xff] %v7880_v46 }
 0x39c   : > { %2629 = vadd.xlane.f32.xlu0 %v2579_v27  ;;  %2631 = vadd.xlane.f32.xlu1 %v2580_v0  ;;  %v2586_v27 = vmul.f32 %v7671_v20, %v9957_v45  ;;  %v9954_v0 = vmax.f32 %v7880_v46, 0.0  ;;  %v7919_v45 = vld [vmem:[#allocation3 + $0x8] sm:$0xff] }
 0x39d   : > { %10190 = vst [vmem:[#allocation58_spill] sm:$0xff] %v7919_v45 }
 0x3a0   : > { %2633 = vadd.xlane.f32.xlu0 %v2581_v54  ;;  %2635 = vadd.xlane.f32.xlu1 %v2582_v55  ;;  %v9955_v54 = vmax.f32 %v7882_v35, 0.0  ;;  %v7892_v55 = vld [vmem:[#allocation2 + $0xe0] sm:$0xff] }
 0x3a1   : > { %10185 = vst [vmem:[#allocation53_spill] sm:$0xff] %v7892_v55  ;;  %v9959_v4 = vmax.f32 %v7892_v55, 0.0  ;;  %v8078_v55 = vld [vmem:[#allocation3 + $0xd0] sm:$0xff] }
 0x3a2   : > { %10216 = vst [vmem:[#allocation84_spill] sm:$0xff] %v8078_v55 }
 0x3a4   : > { %2637 = vadd.xlane.f32.xlu0 %v2583_v31  ;;  %2639 = vadd.xlane.f32.xlu1 %v2584_v33  ;;  %v2587_v31 = vmul.f32 %v7671_v20, %v9954_v0  ;;  %v2588_v33 = vmul.f32 %v7671_v20, %v9955_v54  ;;  %v9963_v0 = vmax.f32 %v7904_v7, 0.0  ;;  %v9964_v54 = vmax.f32 %v7906_v51, 0.0  ;;  %v8042_v7 = vld [vmem:[#allocation3 + $0xa0] sm:$0xff]  ;;  %v8052_v51 = vld [vmem:[#allocation3 + $0xb8] sm:$0xff] }
 0x3a5   : > { %10210 = vst [vmem:[#allocation78_spill] sm:$0xff] %v8042_v7  ;;  %10211 = vst [vmem:[#allocation79_spill] sm:$0xff] %v8052_v51 }
 0x3a8   : > { %2641 = vadd.xlane.f32.xlu0 %v2585_v47  ;;  %2643 = vadd.xlane.f32.xlu1 %v2586_v27  ;;  %v2589_v47 = vmul.f32 %v7671_v20, %v9959_v4  ;;  %v2590_v27 = vmul.f32 %v7671_v20, %v9960_v6  ;;  %v9988_v4 = vmax.f32 %v7917_v38, 0.0  ;;  %v9992_v6 = vmax.f32 %v7919_v45, 0.0 }
 0x3aa   : > { %v2853_v52 = vmul.f32 %v7922_v42, %v9988_v4  ;;  %v8018_v4 = vld [vmem:[#allocation3 + $0x80] sm:$0xff] }
 0x3ab   : > { %10206 = vst [vmem:[#allocation74_spill] sm:$0xff] %v8018_v4 }
 0x3ac   : > { %2645 = vadd.xlane.f32.xlu0 %v2587_v31  ;;  %2647 = vadd.xlane.f32.xlu1 %v2588_v33  ;;  %v2591_v31 = vmul.f32 %v7671_v20, %v9963_v0  ;;  %v2592_v33 = vmul.f32 %v7671_v20, %v9964_v54  ;;  %v9976_v20 = vmax.f32 %v7932_v43, 0.0  ;;  %v7944_v0 = vld [vmem:[#allocation3 + $0x28] sm:$0xff]  ;;  %v7946_v54 = vld [vmem:[#allocation3 + $0x20] sm:$0xff] }
 0x3ad   : > { %10193 = vst [vmem:[#allocation61_spill] sm:$0xff] %v7944_v0  ;;  %10194 = vst [vmem:[#allocation62_spill] sm:$0xff] %v7946_v54  ;;  %v9974_v15 = vmax.f32 %v7944_v0, 0.0  ;;  %v9973_v19 = vmax.f32 %v7946_v54, 0.0 }
 0x3b0   : > { %2649 = vadd.xlane.f32.xlu0 %v2589_v47  ;;  %2651 = vadd.xlane.f32.xlu1 %v2590_v27  ;;  %v2854_v47 = vmul.f32 %v7922_v42, %v9992_v6  ;;  %v9980_v27 = vmax.f32 %v7934_v60, 0.0  ;;  %v8030_v6 = vld [vmem:[#allocation3 + $0x90] sm:$0xff] }
 0x3b1   : > { %10208 = vst [vmem:[#allocation76_spill] sm:$0xff] %v8030_v6 }
 0x3b4   : > { %2653 = vadd.xlane.f32.xlu0 %v2591_v31  ;;  %2655 = vadd.xlane.f32.xlu1 %v2592_v33  ;;  %v2855_v31 = vmul.f32 %v7922_v42, %v9976_v20  ;;  %v2856_v33 = vmul.f32 %v7922_v42, %v9980_v27  ;;  %v7982_v20 = vld [vmem:[#allocation3 + $0x50] sm:$0xff]  ;;  %v7994_v27 = vld [vmem:[#allocation3 + $0x60] sm:$0xff] }
 0x3b5   : > { %10200 = vst [vmem:[#allocation68_spill] sm:$0xff] %v7982_v20  ;;  %10202 = vst [vmem:[#allocation70_spill] sm:$0xff] %v7994_v27 }
 0x3b8   : > { %2885 = vadd.xlane.f32.xlu0 %v2853_v52  ;;  %2887 = vadd.xlane.f32.xlu1 %v2854_v47  ;;  %v2858_v52 = vmul.f32 %v7922_v42, %v9974_v15  ;;  %v2857_v47 = vmul.f32 %v7922_v42, %v9973_v19  ;;  %v9982_v19 = vmax.f32 %v7968_v1, 0.0  ;;  %v9981_v15 = vmax.f32 %v7970_v49, 0.0 }
 0x3bc   : > { %2889 = vadd.xlane.f32.xlu0 %v2855_v31  ;;  %2891 = vadd.xlane.f32.xlu1 %v2856_v33  ;;  %v2860_v31 = vmul.f32 %v7922_v42, %v9978_v36  ;;  %v2859_v33 = vmul.f32 %v7922_v42, %v9977_v62  ;;  %v9986_v62 = vmax.f32 %v7980_v59, 0.0  ;;  %v9985_v36 = vmax.f32 %v7982_v20, 0.0 }
 0x3c0   : > { %2895 = vadd.xlane.f32.xlu1 %v2858_v52  ;;  %2893 = vadd.xlane.f32.xlu0 %v2857_v47  ;;  %v2862_v52 = vmul.f32 %v7922_v42, %v9982_v19  ;;  %v2861_v47 = vmul.f32 %v7922_v42, %v9981_v15  ;;  %v9990_v15 = vmax.f32 %v7992_v25, 0.0  ;;  %v9989_v19 = vmax.f32 %v7994_v27, 0.0  ;;  %v8090_v27 = vld [vmem:[#allocation3 + $0xe0] sm:$0xff]  ;;  %v8102_v25 = vld [vmem:[#allocation3 + $0xf0] sm:$0xff] }
 0x3c1   : > { %10218 = vst [vmem:[#allocation86_spill] sm:$0xff] %v8090_v27  ;;  %10220 = vst [vmem:[#allocation88_spill] sm:$0xff] %v8102_v25 }
 0x3c4   : > { %2899 = vadd.xlane.f32.xlu1 %v2860_v31  ;;  %2897 = vadd.xlane.f32.xlu0 %v2859_v33  ;;  %v2864_v31 = vmul.f32 %v7922_v42, %v9986_v62  ;;  %v2863_v33 = vmul.f32 %v7922_v42, %v9985_v36  ;;  %v9994_v36 = vmax.f32 %v8004_v10, 0.0  ;;  %v9993_v62 = vmax.f32 %v8006_v32, 0.0  ;;  %v8054_v32 = vld [vmem:[#allocation3 + $0xb0] sm:$0xff]  ;;  %v8066_v10 = vld [vmem:[#allocation3 + $0xc0] sm:$0xff] }
 0x3c5   : > { %10212 = vst [vmem:[#allocation80_spill] sm:$0xff] %v8054_v32  ;;  %10214 = vst [vmem:[#allocation82_spill] sm:$0xff] %v8066_v10 }
 0x3c8   : > { %2903 = vadd.xlane.f32.xlu1 %v2862_v52  ;;  %2901 = vadd.xlane.f32.xlu0 %v2861_v47  ;;  %v2866_v52 = vmul.f32 %v7922_v42, %v9990_v15  ;;  %v2865_v47 = vmul.f32 %v7922_v42, %v9989_v19  ;;  %v9998_v19 = vmax.f32 %v8016_v37, 0.0  ;;  %v9997_v15 = vmax.f32 %v8018_v4, 0.0 }
 0x3cc   : > { %2907 = vadd.xlane.f32.xlu1 %v2864_v31  ;;  %2905 = vadd.xlane.f32.xlu0 %v2863_v33  ;;  %v2868_v31 = vmul.f32 %v7922_v42, %v9994_v36  ;;  %v2867_v33 = vmul.f32 %v7922_v42, %v9993_v62  ;;  %v10002_v62 = vmax.f32 %v8028_v14, 0.0  ;;  %v10001_v36 = vmax.f32 %v8030_v6, 0.0 }
 0x3d0   : > { %2911 = vadd.xlane.f32.xlu1 %v2866_v52  ;;  %2909 = vadd.xlane.f32.xlu0 %v2865_v47  ;;  %v2870_v52 = vmul.f32 %v7922_v42, %v9998_v19  ;;  %v2869_v47 = vmul.f32 %v7922_v42, %v9997_v15  ;;  %v10006_v15 = vmax.f32 %v8040_v34, 0.0  ;;  %v10005_v19 = vmax.f32 %v8042_v7, 0.0 }
 0x3d4   : > { %2915 = vadd.xlane.f32.xlu1 %v2868_v31  ;;  %2913 = vadd.xlane.f32.xlu0 %v2867_v33  ;;  %v2872_v31 = vmul.f32 %v7922_v42, %v10002_v62  ;;  %v2871_v33 = vmul.f32 %v7922_v42, %v10001_v36  ;;  %v10010_v36 = vmax.f32 %v8052_v51, 0.0  ;;  %v10009_v62 = vmax.f32 %v8054_v32, 0.0 }
 0x3d8   : > { %2919 = vadd.xlane.f32.xlu1 %v2870_v52  ;;  %2917 = vadd.xlane.f32.xlu0 %v2869_v47  ;;  %v2874_v52 = vmul.f32 %v7922_v42, %v10006_v15  ;;  %v2873_v47 = vmul.f32 %v7922_v42, %v10005_v19  ;;  %v10014_v19 = vmax.f32 %v8064_v11, 0.0  ;;  %v10013_v15 = vmax.f32 %v8066_v10, 0.0 }
 0x3dc   : > { %2923 = vadd.xlane.f32.xlu1 %v2872_v31  ;;  %2921 = vadd.xlane.f32.xlu0 %v2871_v33  ;;  %v2876_v31 = vmul.f32 %v7922_v42, %v10010_v36  ;;  %v2875_v33 = vmul.f32 %v7922_v42, %v10009_v62  ;;  %v10018_v62 = vmax.f32 %v8076_v29, 0.0  ;;  %v10017_v36 = vmax.f32 %v8078_v55, 0.0 }
 0x3e0   : > { %2927 = vadd.xlane.f32.xlu1 %v2874_v52  ;;  %2925 = vadd.xlane.f32.xlu0 %v2873_v47  ;;  %v2878_v52 = vmul.f32 %v7922_v42, %v10014_v19  ;;  %v2877_v47 = vmul.f32 %v7922_v42, %v10013_v15  ;;  %v10020_v15 = vmax.f32 %v8088_v56, 0.0  ;;  %v10021_v19 = vmax.f32 %v8090_v27, 0.0 }
 0x3e4   : > { %2931 = vadd.xlane.f32.xlu1 %v2876_v31  ;;  %2929 = vadd.xlane.f32.xlu0 %v2875_v33  ;;  %v2880_v31 = vmul.f32 %v7922_v42, %v10018_v62  ;;  %v2879_v33 = vmul.f32 %v7922_v42, %v10017_v36  ;;  %v10028_v36 = vmax.f32 %v8100_v57, 0.0  ;;  %v10032_v62 = vmax.f32 %v8102_v25, 0.0 }
 0x3e6   : > { %v2884_v58 = vmul.f32 %v7922_v42, %v10028_v36 }
 0x3e8   : > { %2935 = vadd.xlane.f32.xlu1 %v2878_v52  ;;  %2933 = vadd.xlane.f32.xlu0 %v2877_v47  ;;  %v2882_v52 = vmul.f32 %v7922_v42, %v10020_v15  ;;  %v2881_v47 = vmul.f32 %v7922_v42, %v10021_v19 }
 0x3ec   : > { %2939 = vadd.xlane.f32.xlu1 %v2880_v31  ;;  %2937 = vadd.xlane.f32.xlu0 %v2879_v33  ;;  %v2883_v31 = vmul.f32 %v7922_v42, %v10032_v62 }
 0x3f0   : > { %2943 = vadd.xlane.f32.xlu1 %v2882_v52  ;;  %2941 = vadd.xlane.f32.xlu0 %v2881_v47 }
 0x3f4   : > { %2947 = vadd.xlane.f32.xlu1 %v2884_v58  ;;  %2945 = vadd.xlane.f32.xlu0 %v2883_v31 }
 0x403   : > { %v8118_v33 = vpop.xlane.xlu0 %2593  ;;  %v2598_v15 = vpop.xlane.xlu1 %2597 }
 0x404   : > { %10221 = vst [vmem:[#allocation89_spill] sm:$0xff] %v8118_v33  ;;  %v5223_v58 = vmul.f32 -1.442695, %v2598_v15 }
 0x406   : > { %5683 = vpow2.f32 %v5223_v58 }
 0x407   : > { %v8120_v19 = vpop.xlane.xlu0 %2595  ;;  %v2600_v27 = vpop.xlane.xlu1 %2599 }
 0x408   : > { %10222 = vst [vmem:[#allocation90_spill] sm:$0xff] %v8120_v19  ;;  %v5224_v31 = vmul.f32 -1.442695, %v2600_v27 }
 0x40a   : > { %5685 = vpow2.f32 %v5224_v31 }
 0x40d   : > { %v2602_v56 = vpop.xlane.xlu0 %2601  ;;  %v2604_v55 = vpop.xlane.xlu1 %2603 }
 0x40e   : > { %v5225_v59 = vmul.f32 -1.442695, %v2602_v56  ;;  %v5226_v39 = vmul.f32 -1.442695, %v2604_v55 }
 0x410   : > { %5687 = vpow2.f32 %v5225_v59  ;;  %v5684_v26 = vpop.eup %5683 }
 0x411   : > { %v2606_v52 = vpop.xlane.xlu0 %2605  ;;  %v2608_v47 = vpop.xlane.xlu1 %2607  ;;  %5689 = vpow2.f32 %v5226_v39  ;;  %v2755_v59 = vadd.f32 1.0, %v5684_v26 }
 0x412   : > { %v5227_v10 = vmul.f32 -1.442695, %v2606_v52  ;;  %v5228_v18 = vmul.f32 -1.442695, %v2608_v47 }
 0x414   : > { %5691 = vpow2.f32 %v5227_v10  ;;  %v5686_v55 = vpop.eup %5685 }
 0x415   : > { %v2610_v46 = vpop.xlane.xlu0 %2609  ;;  %v2612_v57 = vpop.xlane.xlu1 %2611  ;;  %5693 = vpow2.f32 %v5228_v18  ;;  %v2756_v47 = vadd.f32 1.0, %v5686_v55 }
 0x416   : > { %v5229_v27 = vmul.f32 -1.442695, %v2610_v46  ;;  %v5230_v1 = vmul.f32 -1.442695, %v2612_v57 }
 0x418   : > { %5695 = vpow2.f32 %v5229_v27 }
 0x419   : > { %v2614_v29 = vpop.xlane.xlu0 %2613  ;;  %v2616_v36 = vpop.xlane.xlu1 %2615  ;;  %5697 = vpow2.f32 %v5230_v1 }
 0x41a   : > { %v5231_v52 = vmul.f32 -1.442695, %v2614_v29  ;;  %v5688_v31 = vpop.eup %5687  ;;  %v5232_v18 = vmul.f32 -1.442695, %v2616_v36 }
 0x41b   : > { %v5690_v30 = vpop.eup %5689  ;;  %v2757_v57 = vadd.f32 1.0, %v5688_v31 }
 0x41c   : > { %5699 = vpow2.f32 %v5231_v52  ;;  %v2758_v51 = vadd.f32 1.0, %v5690_v30 }
 0x41d   : > { %v2618_v35 = vpop.xlane.xlu0 %2617  ;;  %v2620_v25 = vpop.xlane.xlu1 %2619  ;;  %5701 = vrcp.f32 %v2755_v59 }
 0x41e   : > { %v5692_v46 = vpop.eup %5691  ;;  %v5233_v32 = vmul.f32 -1.442695, %v2618_v35  ;;  %5703 = vrcp.f32 %v2756_v47  ;;  %v5234_v1 = vmul.f32 -1.442695, %v2620_v25 }
 0x41f   : > { %v5694_v50 = vpop.eup %5693  ;;  %v2759_v26 = vadd.f32 1.0, %v5692_v46  ;;  %5705 = vpow2.f32 %v5232_v18  ;;  %v3143_v18 = vsub.s32 2, %v6949_v17 }
 0x420   : > { %5707 = vrcp.f32 %v2757_v57  ;;  %v2760_v52 = vadd.f32 1.0, %v5694_v50 }
 0x421   : > { %v2622_v20 = vpop.xlane.xlu0 %2621  ;;  %v2624_v42 = vpop.xlane.xlu1 %2623  ;;  %5709 = vpow2.f32 %v5233_v32 }
 0x422   : > { %v5696_v55 = vpop.eup %5695  ;;  %5711 = vrcp.f32 %v2758_v51  ;;  %v5235_v36 = vmul.f32 -1.442695, %v2622_v20  ;;  %v5236_v31 = vmul.f32 -1.442695, %v2624_v42 }
 0x423   : > { %5713 = vrcp.f32 %v2759_v26  ;;  %v5698_v25 = vpop.eup %5697  ;;  %v2761_v59 = vadd.f32 1.0, %v5696_v55 }
 0x424   : > { %5715 = vpow2.f32 %v5234_v1  ;;  %v2762_v47 = vadd.f32 1.0, %v5698_v25  ;;  %v8166_v1 = vstv %s8144_s29 }
 0x425   : > { %v8122_v62 = vpop.xlane.xlu0 %2625  ;;  %v8124_v44 = vpop.xlane.xlu1 %2627  ;;  %5717 = vrcp.f32 %v2760_v52  ;;  %10228 = vst [vmem:[#allocation96_spill] sm:$0xff] %v8166_v1  ;;  %v8170_v52 = vstv %s8146_s7 }
 0x426   : > { %10223 = vst [vmem:[#allocation91_spill] sm:$0xff] %v8122_v62  ;;  %10224 = vst [vmem:[#allocation92_spill] sm:$0xff] %v8124_v44  ;;  %v5700_v32 = vpop.eup %5699  ;;  %5719 = vpow2.f32 %v5235_v36  ;;  %v8173_v36 = vstv %s8148_s17 }
 0x427   : > { %v5702_v42 = vpop.eup %5701  ;;  %5721 = vpow2.f32 %v5236_v31  ;;  %v2763_v57 = vadd.f32 1.0, %v5700_v32  ;;  %10229 = vst [vmem:[#allocation97_spill] sm:$0xff] %v8170_v52  ;;  %10230 = vst [vmem:[#allocation98_spill] sm:$0xff] %v8173_v36  ;;  %v8183_v32 = vstv %s8154_s8 }
 0x428   : > { %v5704_v46 = vpop.eup %5703  ;;  %5723 = vrcp.f32 %v2761_v59  ;;  %v8180_v59 = vrot.slane %v7667_v13, %v3143_v18  ;;  %10233 = vst [vmem:[#allocation101_spill] sm:$0xff] %v8183_v32  ;;  %v8195_v3 = vmul.f32 %v5702_v42, %v8170_v52 }
 0x429   : > { %v2630_v16 = vpop.xlane.xlu0 %2629  ;;  %v8126_v11 = vpop.xlane.xlu1 %2631  ;;  %v8202_v7 = vmul.f32 %v5704_v46, %v8166_v1  ;;  %v8205_v61 = vmul.f32 %v5704_v46, %v8170_v52 }
 0x42a   : > { %10225 = vst [vmem:[#allocation93_spill] sm:$0xff] %v8126_v11  ;;  %v5239_v51 = vmul.f32 -1.442695, %v2630_v16  ;;  %v5706_v26 = vpop.eup %5705 }
 0x42b   : > { %v5708_v55 = vpop.eup %5707  ;;  %v2764_v5 = vadd.f32 1.0, %v5706_v26 }
 0x42c   : > { %5725 = vpow2.f32 %v5239_v51  ;;  %v5710_v25 = vpop.eup %5709  ;;  %v8186_v51 = vstv %s8156_s4 }
 0x42d   : > { %v8128_v49 = vpop.xlane.xlu0 %2633  ;;  %v8130_v15 = vpop.xlane.xlu1 %2635  ;;  %5727 = vrcp.f32 %v2762_v47  ;;  %10234 = vst [vmem:[#allocation102_spill] sm:$0xff] %v8186_v51  ;;  %v8198_v47 = vmul.f32 %v5702_v42, %v8173_v36  ;;  %v2765_v26 = vadd.f32 1.0, %v5710_v25 }
 0x42e   : > { %v5241_v16 = vmul.f32 -1.442695, %v8128_v49  ;;  %v5712_v53 = vpop.eup %5711  ;;  %v8189_v49 = vmul.f32 %v5702_v42, %v8166_v1  ;;  %5729 = vrcp.f32 %v2763_v57  ;;  %v5242_v13 = vmul.f32 -1.442695, %v8130_v15 }
 0x42f   : > { %v5714_v24 = vpop.eup %5713  ;;  %v8208_v57 = vmul.f32 %v5704_v46, %v8173_v36  ;;  %v8213_v42 = vmul.f32 %v5708_v55, %v8166_v1  ;;  %v8219_v15 = vmul.f32 %v5708_v55, %v8173_v36  ;;  %v8223_v0 = vmul.f32 %v5712_v53, %v8166_v1 }
 0x430   : > { %5731 = vpow2.f32 %v5241_v16  ;;  %v5716_v18 = vpop.eup %5715  ;;  %v8216_v16 = vmul.f32 %v5708_v55, %v8170_v52  ;;  %v8226_v46 = vmul.f32 %v5712_v53, %v8170_v52  ;;  %v8229_v25 = vmul.f32 %v5712_v53, %v8173_v36 }
 0x431   : > { %v8132_v56 = vpop.xlane.xlu0 %2637  ;;  %v8134_v58 = vpop.xlane.xlu1 %2639  ;;  %5733 = vrcp.f32 %v2764_v5  ;;  %v8234_v41 = vmul.f32 %v5714_v24, %v8166_v1  ;;  %v8237_v55 = vmul.f32 %v5714_v24, %v8170_v52  ;;  %v8240_v40 = vmul.f32 %v5714_v24, %v8173_v36 }
 0x432   : > { %v5718_v63 = vpop.eup %5717  ;;  %v5243_v54 = vmul.f32 -1.442695, %v8132_v56  ;;  %v2766_v56 = vadd.f32 1.0, %v5716_v18  ;;  %5735 = vpow2.f32 %v5242_v13 }
 0x433   : > { %v5720_v9 = vpop.eup %5719  ;;  %v8243_v43 = vmul.f32 %v5718_v63, %v8166_v1  ;;  %v8246_v5 = vmul.f32 %v5718_v63, %v8170_v52  ;;  %5737 = vrcp.f32 %v2765_v26  ;;  %v8253_v28 = vmul.f32 %v5718_v63, %v8173_v36 }
 0x434   : > { %v5722_v6 = vpop.eup %5721  ;;  %v2767_v13 = vadd.f32 1.0, %v5720_v9  ;;  %5739 = vpow2.f32 %v5243_v54  ;;  %v5244_v54 = vmul.f32 -1.442695, %v8134_v58 }
 0x435   : > { %v8136_v10 = vpop.xlane.xlu0 %2641  ;;  %v8138_v39 = vpop.xlane.xlu1 %2643  ;;  %v2768_v8 = vadd.f32 1.0, %v5722_v6  ;;  %5741 = vrcp.f32 %v2766_v56 }
 0x436   : > { %v5724_v14 = vpop.eup %5723  ;;  %5743 = vrcp.f32 %v2767_v13 }
 0x437   : > { %v5726_v60 = vpop.eup %5725  ;;  %v8268_v9 = vmul.f32 %v5724_v14, %v8166_v1  ;;  %v8275_v26 = vmul.f32 %v5724_v14, %v8170_v52  ;;  %v8278_v12 = vmul.f32 %v5724_v14, %v8173_v36  ;;  %5745 = vrcp.f32 %v2768_v8 }
 0x438   : > { %v5728_v63 = vpop.eup %5727  ;;  %v2771_v45 = vadd.f32 1.0, %v5726_v60  ;;  %5747 = vpow2.f32 %v5244_v54 }
 0x439   : > { %v8140_v27 = vpop.xlane.xlu0 %2645  ;;  %v8142_v29 = vpop.xlane.xlu1 %2647  ;;  %10240 = vst [vmem:[#allocation108_spill] sm:$0xff] %v8275_v26  ;;  %10241 = vst [vmem:[#allocation109_spill] sm:$0xff] %v8278_v12 }
 0x43a   : > { %v5730_v37 = vpop.eup %5729  ;;  %v5247_v8 = vmul.f32 -1.442695, %v8140_v27  ;;  %5749 = vrcp.f32 %v2771_v45  ;;  %v5248_v54 = vmul.f32 -1.442695, %v8142_v29 }
 0x43b   : > { %v5732_v58 = vpop.eup %5731 }
 0x43d   : > { %v8150_v30 = vpop.xlane.xlu0 %2649  ;;  %v8152_v35 = vpop.xlane.xlu1 %2651 }
 0x441   : > { %v8160_v50 = vpop.xlane.xlu0 %2653  ;;  %v8162_v20 = vpop.xlane.xlu1 %2655 }
 0x442   : > { %10226 = vst [vmem:[#allocation94_spill] sm:$0xff] %v8160_v50  ;;  %10227 = vst [vmem:[#allocation95_spill] sm:$0xff] %v8162_v20 }
 0x445   : > { %v8175_v31 = vpop.xlane.xlu0 %2885  ;;  %v8177_v17 = vpop.xlane.xlu1 %2887 }
 0x446   : > { %10231 = vst [vmem:[#allocation99_spill] sm:$0xff] %v8175_v31  ;;  %10232 = vst [vmem:[#allocation100_spill] sm:$0xff] %v8177_v17  ;;  %v8316_v31 = vmul.f32 %v5730_v37, %v8166_v1 }
 0x448   : > { %10249 = vst [vmem:[#allocation114_spill] sm:$0xff] %v8316_v31  ;;  %v8342_v31 = vmul.f32 %v5730_v37, %v8173_v36 }
 0x449   : > { %v8210_v34 = vpop.xlane.xlu1 %2891  ;;  %v8231_v48 = vpop.xlane.xlu0 %2889 }
 0x44a   : > { %10257 = vst [vmem:[#allocation120_spill] sm:$0xff] %v8342_v31 }
 0x44d   : > { %v8263_v38 = vpop.xlane.xlu1 %2895  ;;  %v8265_v21 = vpop.xlane.xlu0 %2893 }
 0x451   : > { %v8248_v53 = vpop.f32.mrb[0].mxu0  ;;  %v8250_v22 = vpop.f32.mrb[0].mxu1 }
 0x452   : > { %10236 = vst [vmem:[#allocation104_spill] sm:$0xff] %v8248_v53  ;;  %10237 = vst [vmem:[#allocation105_spill] sm:$0xff] %v8250_v22  ;;  %v10076_v24 = vmax.f32 %v8248_v53, 0.0  ;;  %v8256_v18 = vpop.f32.mrb[1].mxu0  ;;  %v8258_v4 = vpop.f32.mrb[1].mxu1  ;;  %v10246_v14 = vmax.f32 %v8250_v22, 0.0  ;;  %v8304_v53 = vmul.f32 %v5728_v63, %v8166_v1  ;;  %v8307_v22 = vmul.f32 %v5728_v63, %v8170_v52 }
 0x453   : > { %10238 = vst [vmem:[#allocation106_spill] sm:$0xff] %v8256_v18  ;;  %10239 = vst [vmem:[#allocation107_spill] sm:$0xff] %v8258_v4  ;;  %v10242_v23 = vmax.f32 %v8256_v18, 0.0  ;;  %v10248_v13 = vmax.f32 %v8258_v4, 0.0 }
 0x454   : > { %v3146_v6 = vmul.f32 %v8180_v59, %v10076_v24  ;;  %v5245_v24 = vmul.f32 -1.442695, %v8136_v10  ;;  %v3162_v60 = vmul.f32 %v8180_v59, %v10246_v14  ;;  %v8310_v14 = vpop.xlane.xlu0 %2897 }
 0x455   : > { %v3145_v20 = vmul.f32 %v8180_v59, %v10242_v23  ;;  %v8283_v50 = vpop.f32.mrb[2].mxu0  ;;  %v8285_v56 = vpop.f32.mrb[2].mxu1  ;;  %v5246_v23 = vmul.f32 -1.442695, %v8138_v39  ;;  %v3161_v10 = vmul.f32 %v8180_v59, %v10248_v13  ;;  %v2773_v13 = vadd.f32 1.0, %v5732_v58 }
 0x456   : > { %10243 = vst [vmem:[#allocation110_spill] sm:$0xff] %v8283_v50  ;;  %10244 = vst [vmem:[#allocation111_spill] sm:$0xff] %v8285_v56  ;;  %3179 = vadd.xlane.f32.xlu1 %v3146_v6  ;;  %v8289_v17 = vpop.f32.mrb[3].mxu0  ;;  %v8294_v18 = vpop.f32.mrb[3].mxu1  ;;  %5751 = vpow2.f32 %v5245_v24  ;;  %v10252_v62 = vmax.f32 %v8283_v50, 0.0 }
 0x457   : > { %10245 = vst [vmem:[#allocation112_spill] sm:$0xff] %v8289_v17  ;;  %10247 = vst [vmem:[#allocation113_spill] sm:$0xff] %v8294_v18  ;;  %3177 = vadd.xlane.f32.xlu0 %v3145_v20  ;;  %v8301_v6 = vpop.xlane.xlu1 %2899  ;;  %v5734_v39 = vpop.eup %5733  ;;  %v8313_v20 = vmul.f32 %v5728_v63, %v8173_v36  ;;  %5753 = vpow2.f32 %v5246_v23  ;;  %v10255_v24 = vmax.f32 %v8289_v17, 0.0  ;;  %v5256_v23 = vmul.f32 -1.442695, %v8210_v34 }
 0x458   : > { %v5736_v44 = vpop.eup %5735  ;;  %v3148_v63 = vmul.f32 %v8180_v59, %v10252_v62  ;;  %v8339_v62 = vmul.f32 %v5730_v37, %v8170_v52  ;;  %5755 = vpow2.f32 %v5247_v8  ;;  %v8349_v58 = vmul.f32 %v5734_v39, %v8170_v52 }
 0x459   : > { %v8318_v4 = vpop.f32.mrb[4].mxu0  ;;  %v8320_v11 = vpop.f32.mrb[4].mxu1  ;;  %v3147_v29 = vmul.f32 %v8180_v59, %v10255_v24  ;;  %5757 = vrcp.f32 %v2773_v13  ;;  %v10262_v8 = vmax.f32 %v8285_v56, 0.0  ;;  %v8369_v56 = vmul.f32 %v5734_v39, %v8173_v36 }
 0x45a   : > { %10250 = vst [vmem:[#allocation115_spill] sm:$0xff] %v8318_v4  ;;  %10251 = vst [vmem:[#allocation116_spill] sm:$0xff] %v8320_v11  ;;  %3211 = vadd.xlane.f32.xlu1 %v3162_v60  ;;  %v8327_v19 = vpop.f32.mrb[5].mxu0  ;;  %v8329_v33 = vpop.f32.mrb[5].mxu1  ;;  %v5255_v60 = vmul.f32 -1.442695, %v8231_v48  ;;  %5759 = vpow2.f32 %v5248_v54 }
 0x45b   : > { %10253 = vst [vmem:[#allocation117_spill] sm:$0xff] %v8327_v19  ;;  %10254 = vst [vmem:[#allocation118_spill] sm:$0xff] %v8329_v33  ;;  %v5738_v45 = vpop.eup %5737  ;;  %3209 = vadd.xlane.f32.xlu0 %v3161_v10  ;;  %v8336_v27 = vpop.xlane.xlu1 %2903  ;;  %v8346_v10 = vmul.f32 %v5734_v39, %v8166_v1  ;;  %v2774_v48 = vadd.f32 1.0, %v5736_v44  ;;  %v3164_v34 = vmul.f32 %v8180_v59, %v10262_v8 }
 0x45c   : > { %v5740_v50 = vpop.eup %5739  ;;  %10256 = vst [vmem:[#allocation119_spill] sm:$0xff] %v8339_v62  ;;  %10259 = vst [vmem:[#allocation122_spill] sm:$0xff] %v8349_v58  ;;  %v5258_v62 = vmul.f32 -1.442695, %v8263_v38  ;;  %5761 = vpow2.f32 %v5255_v60  ;;  %v8372_v8 = vmul.f32 %v5738_v45, %v8166_v1  ;;  %v5249_v38 = vmul.f32 -1.442695, %v8150_v30 }
 0x45d   : > { %10258 = vst [vmem:[#allocation121_spill] sm:$0xff] %v8346_v10  ;;  %v8351_v24 = vpop.f32.mrb[6].mxu0  ;;  %v8353_v17 = vpop.f32.mrb[6].mxu1  ;;  %v2775_v44 = vadd.f32 1.0, %v5740_v50  ;;  %v10265_v10 = vmax.f32 %v8294_v18, 0.0  ;;  %10266 = vst [vmem:[#allocation127_spill] sm:$0xff] %v8369_v56  ;;  %5763 = vpow2.f32 %v5256_v23  ;;  %v8380_v13 = vmul.f32 %v5738_v45, %v8170_v52 }
 0x45e   : > { %10260 = vst [vmem:[#allocation123_spill] sm:$0xff] %v8351_v24  ;;  %10261 = vst [vmem:[#allocation124_spill] sm:$0xff] %v8353_v17  ;;  %v5742_v12 = vpop.eup %5741  ;;  %3183 = vadd.xlane.f32.xlu1 %v3148_v63  ;;  %v8359_v31 = vpop.f32.mrb[7].mxu0  ;;  %v8383_v60 = vmul.f32 %v5738_v45, %v8173_v36  ;;  %5765 = vrcp.f32 %v2774_v48  ;;  %v5250_v23 = vmul.f32 -1.442695, %v8152_v35  ;;  %v10273_v56 = vmax.f32 %v8318_v4, 0.0 }
 0x45f   : > { %10263 = vst [vmem:[#allocation125_spill] sm:$0xff] %v8359_v31  ;;  %v8362_v58 = vpop.f32.mrb[7].mxu1  ;;  %3181 = vadd.xlane.f32.xlu0 %v3147_v29  ;;  %v3163_v54 = vmul.f32 %v8180_v59, %v10265_v10  ;;  %v2902_v63 = vpop.xlane.xlu0 %2901  ;;  %10267 = vst [vmem:[#allocation128_spill] sm:$0xff] %v8372_v8  ;;  %v8386_v10 = vmul.f32 %v5742_v12, %v8166_v1  ;;  %5767 = vpow2.f32 %v5258_v62  ;;  %v10277_v35 = vmax.f32 %v8327_v19, 0.0 }
 0x460   : > { %10264 = vst [vmem:[#allocation126_spill] sm:$0xff] %v8362_v58  ;;  %v5744_v37 = vpop.eup %5743  ;;  %v8375_v50 = vpop.xlane.xlu1 %2907  ;;  %10268 = vst [vmem:[#allocation129_spill] sm:$0xff] %v8380_v13  ;;  %v3150_v13 = vmul.f32 %v8180_v59, %v10273_v56  ;;  %5769 = vrcp.f32 %v2775_v44  ;;  %v5257_v8 = vmul.f32 -1.442695, %v8265_v21  ;;  %v8409_v56 = vmul.f32 %v5742_v12, %v8170_v52 }
 0x461   : > { %v8377_v29 = vpop.eup %5745  ;;  %10269 = vst [vmem:[#allocation130_spill] sm:$0xff] %v8383_v60  ;;  %10270 = vst [vmem:[#allocation131_spill] sm:$0xff] %v8386_v10  ;;  %v8388_v39 = vpop.f32.mrb[8].mxu0  ;;  %v8412_v62 = vmul.f32 %v5742_v12, %v8173_v36  ;;  %v8415_v26 = vmul.f32 %v5744_v37, %v8166_v1  ;;  %5771 = vpow2.f32 %v5249_v38  ;;  %v5260_v10 = vmul.f32 -1.442695, %v8301_v6 }
 0x462   : > { %10271 = vst [vmem:[#allocation132_spill] sm:$0xff] %v8388_v39  ;;  %v8390_v18 = vpop.f32.mrb[8].mxu1  ;;  %v5748_v30 = vpop.eup %5747  ;;  %3215 = vadd.xlane.f32.xlu1 %v3164_v34  ;;  %v3149_v34 = vmul.f32 %v8180_v59, %v10277_v35  ;;  %10278 = vst [vmem:[#allocation137_spill] sm:$0xff] %v8409_v56  ;;  %5773 = vpow2.f32 %v5257_v8  ;;  %v5259_v35 = vmul.f32 -1.442695, %v8310_v14 }
 0x463   : > { %10272 = vst [vmem:[#allocation133_spill] sm:$0xff] %v8390_v18  ;;  %v8397_v45 = vpop.f32.mrb[9].mxu0  ;;  %v8399_v60 = vpop.f32.mrb[9].mxu1  ;;  %3213 = vadd.xlane.f32.xlu0 %v3163_v54  ;;  %10279 = vst [vmem:[#allocation138_spill] sm:$0xff] %v8412_v62  ;;  %v2776_v54 = vadd.f32 1.0, %v5748_v30  ;;  %5775 = vpow2.f32 %v5250_v23  ;;  %v10287_v23 = vmax.f32 %v8329_v33, 0.0 }
 0x464   : > { %10274 = vst [vmem:[#allocation134_spill] sm:$0xff] %v8397_v45  ;;  %10275 = vst [vmem:[#allocation135_spill] sm:$0xff] %v8399_v60  ;;  %v8401_v48 = vpop.eup %5749  ;;  %v2906_v19 = vpop.xlane.xlu0 %2905  ;;  %v5262_v30 = vmul.f32 -1.442695, %v8336_v27  ;;  %5777 = vpow2.f32 %v5260_v10  ;;  %v5261_v12 = vmul.f32 -1.442695, %v2902_v63  ;;  %v8445_v27 = vmul.f32 %v5744_v37, %v8170_v52 }
 0x465   : > { %10276 = vst [vmem:[#allocation136_spill] sm:$0xff] %v8401_v48  ;;  %v5752_v4 = vpop.eup %5751  ;;  %10280 = vst [vmem:[#allocation139_spill] sm:$0xff] %v8415_v26  ;;  %v8421_v21 = vpop.f32.mrb[10].mxu0  ;;  %v10283_v26 = vmax.f32 %v8320_v11, 0.0  ;;  %5779 = vpow2.f32 %v5259_v35  ;;  %v8456_v63 = vmul.f32 %v8377_v29, %v8170_v52  ;;  %v10296_v35 = vmax.f32 %v8351_v24, 0.0 }
 0x466   : > { %v8417_v44 = vpop.eup %5753  ;;  %10281 = vst [vmem:[#allocation140_spill] sm:$0xff] %v8421_v21  ;;  %3187 = vadd.xlane.f32.xlu1 %v3150_v13  ;;  %v8430_v8 = vpop.f32.mrb[11].mxu0  ;;  %v3165_v13 = vmul.f32 %v8180_v59, %v10287_v23  ;;  %10290 = vst [vmem:[#allocation147_spill] sm:$0xff] %v8445_v27  ;;  %v2777_v10 = vadd.f32 1.0, %v5752_v4  ;;  %5781 = vpow2.f32 %v5262_v30  ;;  %v10304_v24 = vmax.f32 %v8353_v17, 0.0 }
 0x467   : > { %v8423_v48 = vpop.eup %5755  ;;  %v3166_v38 = vmul.f32 %v8180_v59, %v10283_v26  ;;  %10284 = vst [vmem:[#allocation142_spill] sm:$0xff] %v8430_v8  ;;  %v8432_v6 = vpop.f32.mrb[10].mxu1  ;;  %3185 = vadd.xlane.f32.xlu0 %v3149_v34  ;;  %v8452_v34 = vmul.f32 %v8377_v29, %v8166_v1  ;;  %10293 = vst [vmem:[#allocation150_spill] sm:$0xff] %v8456_v63  ;;  %v3152_v27 = vmul.f32 %v8180_v59, %v10296_v35 }
 0x468   : > { %10282 = vst [vmem:[#allocation141_spill] sm:$0xff] %v8423_v48  ;;  %10285 = vst [vmem:[#allocation143_spill] sm:$0xff] %v8432_v6  ;;  %v8434_v14 = vpop.eup %5757  ;;  %v2912_v11 = vpop.xlane.xlu1 %2911  ;;  %v8448_v48 = vmul.f32 %v5744_v37, %v8173_v36  ;;  %5783 = vpow2.f32 %v5261_v12  ;;  %v10300_v63 = vmax.f32 %v8359_v31, 0.0  ;;  %v3168_v12 = vmul.f32 %v8180_v59, %v10304_v24 }
 0x469   : > { %10286 = vst [vmem:[#allocation144_spill] sm:$0xff] %v8434_v14  ;;  %v8440_v56 = vpop.f32.mrb[11].mxu1  ;;  %v8442_v26 = vpop.eup %5759  ;;  %10292 = vst [vmem:[#allocation149_spill] sm:$0xff] %v8452_v34  ;;  %5785 = vrcp.f32 %v2776_v54 }
 0x46a   : > { %10288 = vst [vmem:[#allocation145_spill] sm:$0xff] %v8440_v56  ;;  %10289 = vst [vmem:[#allocation146_spill] sm:$0xff] %v8442_v26  ;;  %v5762_v62 = vpop.eup %5761  ;;  %v8459_v33 = vpop.f32.mrb[12].mxu0  ;;  %3219 = vadd.xlane.f32.xlu1 %v3166_v38 }
 0x46b   : > { %10291 = vst [vmem:[#allocation148_spill] sm:$0xff] %v8448_v48  ;;  %10294 = vst [vmem:[#allocation151_spill] sm:$0xff] %v8459_v33  ;;  %v8461_v14 = vpop.f32.mrb[12].mxu1  ;;  %v5764_v37 = vpop.eup %5763  ;;  %v3047_v48 = vadd.f32 1.0, %v5762_v62  ;;  %3217 = vadd.xlane.f32.xlu0 %v3165_v13  ;;  %v3151_v62 = vmul.f32 %v8180_v59, %v10300_v63  ;;  %v5264_v13 = vmul.f32 -1.442695, %v8375_v50 }
 0x46c   : > { %10295 = vst [vmem:[#allocation152_spill] sm:$0xff] %v8461_v14  ;;  %v8467_v52 = vpop.f32.mrb[13].mxu0  ;;  %v8469_v4 = vpop.f32.mrb[13].mxu1  ;;  %v3048_v30 = vadd.f32 1.0, %v5764_v37  ;;  %v5263_v37 = vmul.f32 -1.442695, %v2906_v19 }
 0x46d   : > { %10297 = vst [vmem:[#allocation153_spill] sm:$0xff] %v8467_v52  ;;  %10298 = vst [vmem:[#allocation154_spill] sm:$0xff] %v8469_v4  ;;  %v8471_v23 = vpop.eup %5765  ;;  %5787 = vrcp.f32 %v3047_v48  ;;  %v2910_v34 = vpop.xlane.xlu0 %2909  ;;  %v8488_v48 = vadd.f32 1.0, %v8417_v44 }
 0x46e   : > { %10299 = vst [vmem:[#allocation155_spill] sm:$0xff] %v8471_v23  ;;  %v5768_v1 = vpop.eup %5767  ;;  %5789 = vrcp.f32 %v3048_v30  ;;  %v2916_v31 = vpop.xlane.xlu1 %2915  ;;  %3191 = vadd.xlane.f32.xlu1 %v3152_v27  ;;  %v10305_v30 = vmax.f32 %v8362_v58, 0.0  ;;  %v10313_v27 = vmax.f32 %v8399_v60, 0.0 }
 0x46f   : > { %v8480_v26 = vpop.eup %5769  ;;  %v3050_v54 = vadd.f32 1.0, %v5768_v1  ;;  %v8483_v63 = vpop.f32.mrb[14].mxu0  ;;  %5791 = vrcp.f32 %v2777_v10  ;;  %3189 = vadd.xlane.f32.xlu0 %v3151_v62  ;;  %v10308_v10 = vmax.f32 %v8388_v39, 0.0  ;;  %v10312_v39 = vmax.f32 %v8390_v18, 0.0 }
 0x470   : > { %10301 = vst [vmem:[#allocation156_spill] sm:$0xff] %v8480_v26  ;;  %10302 = vst [vmem:[#allocation157_spill] sm:$0xff] %v8483_v63  ;;  %v8485_v38 = vpop.eup %5771  ;;  %v3167_v1 = vmul.f32 %v8180_v59, %v10305_v30  ;;  %v8496_v50 = vpop.f32.mrb[15].mxu0  ;;  %v10311_v26 = vmax.f32 %v8397_v45, 0.0  ;;  %v3169_v17 = vmul.f32 %v8180_v59, %v10313_v27  ;;  %v5265_v45 = vmul.f32 -1.442695, %v2910_v34 }
 0x471   : > { %10303 = vst [vmem:[#allocation158_spill] sm:$0xff] %v8485_v38  ;;  %10306 = vst [vmem:[#allocation159_spill] sm:$0xff] %v8496_v50  ;;  %v8498_v19 = vpop.f32.mrb[14].mxu1  ;;  %v5774_v35 = vpop.eup %5773  ;;  %5793 = vrcp.f32 %v3050_v54  ;;  %v3154_v44 = vmul.f32 %v8180_v59, %v10308_v10  ;;  %v5266_v54 = vmul.f32 -1.442695, %v2912_v11  ;;  %v3170_v10 = vmul.f32 %v8180_v59, %v10312_v39 }
 0x472   : > { %10307 = vst [vmem:[#allocation160_spill] sm:$0xff] %v8498_v19  ;;  %v8505_v24 = vpop.f32.mrb[15].mxu1  ;;  %v8507_v58 = vpop.eup %5775  ;;  %v3049_v30 = vadd.f32 1.0, %v5774_v35  ;;  %v3153_v23 = vmul.f32 %v8180_v59, %v10311_v26  ;;  %5795 = vpow2.f32 %v5264_v13  ;;  %3223 = vadd.xlane.f32.xlu1 %v3168_v12  ;;  %v10314_v39 = vmax.f32 %v8421_v21, 0.0 }
 0x473   : > { %10309 = vst [vmem:[#allocation161_spill] sm:$0xff] %v8505_v24  ;;  %10310 = vst [vmem:[#allocation162_spill] sm:$0xff] %v8507_v58  ;;  %v5778_v62 = vpop.eup %5777  ;;  %5797 = vpow2.f32 %v5263_v37  ;;  %v2914_v11 = vpop.xlane.xlu0 %2913  ;;  %3221 = vadd.xlane.f32.xlu0 %v3167_v1  ;;  %v10315_v27 = vmax.f32 %v8430_v8, 0.0  ;;  %v5268_v26 = vmul.f32 -1.442695, %v2916_v31 }
 0x474   : > { %v5780_v58 = vpop.eup %5779  ;;  %5799 = vrcp.f32 %v3049_v30  ;;  %v3052_v35 = vadd.f32 1.0, %v5778_v62  ;;  %v3156_v60 = vmul.f32 %v8180_v59, %v10314_v39  ;;  %v8528_v30 = vpop.xlane.xlu1 %2919 }
 0x475   : > { %v5782_v13 = vpop.eup %5781  ;;  %v3051_v37 = vadd.f32 1.0, %v5780_v58  ;;  %5801 = vpow2.f32 %v5266_v54  ;;  %v8526_v38 = vmul.f32 %v8180_v59, %v10315_v27  ;;  %v5267_v54 = vmul.f32 -1.442695, %v2914_v11 }
 0x476   : > { %v5784_v12 = vpop.eup %5783  ;;  %5803 = vrcp.f32 %v3052_v35  ;;  %v3054_v34 = vadd.f32 1.0, %v5782_v13  ;;  %3195 = vadd.xlane.f32.xlu1 %v3154_v44  ;;  %v10316_v27 = vmax.f32 %v8432_v6, 0.0  ;;  %v10317_v35 = vmax.f32 %v8440_v56, 0.0 }
 0x477   : > { %v8531_v58 = vpop.eup %5785  ;;  %5805 = vrcp.f32 %v3051_v37  ;;  %v3053_v1 = vadd.f32 1.0, %v5784_v12  ;;  %3193 = vadd.xlane.f32.xlu0 %v3153_v23  ;;  %v8553_v62 = vpop.xlane.xlu0 %2917 }
 0x478   : > { %v5788_v21 = vpop.eup %5787  ;;  %5807 = vrcp.f32 %v3054_v34  ;;  %v8537_v8 = vmul.f32 %v8180_v59, %v10316_v27  ;;  %v8542_v13 = vmul.f32 %v8180_v59, %v10317_v35  ;;  %v8564_v23 = vpop.xlane.xlu1 %2923 }
 0x479   : > { %v5790_v37 = vpop.eup %5789  ;;  %v3471_v11 = vmul.f32 %v5788_v21, %v8183_v32  ;;  %v3669_v12 = vmul.f32 %v5788_v21, %v8186_v51  ;;  %v3867_v34 = vmul.f32 %v5788_v21, %v8192_v2  ;;  %5809 = vrcp.f32 %v3053_v1 }
 0x47a   : > { %v8548_v44 = vpop.eup %5791  ;;  %v3472_v27 = vmul.f32 %v5790_v37, %v8183_v32  ;;  %v3670_v39 = vmul.f32 %v5790_v37, %v8186_v51  ;;  %v3868_v35 = vmul.f32 %v5790_v37, %v8192_v2  ;;  %5811 = vpow2.f32 %v5265_v45  ;;  %3227 = vadd.xlane.f32.xlu1 %v3170_v10 }
 0x47b   : > { %v5794_v31 = vpop.eup %5793  ;;  %v8556_v56 = vadd.f32 %v3471_v11, %v8189_v49  ;;  %v8559_v6 = vadd.f32 %v3669_v12, %v8195_v3  ;;  %v8562_v21 = vadd.f32 %v3867_v34, %v8198_v47  ;;  %5813 = vpow2.f32 %v5268_v26  ;;  %3225 = vadd.xlane.f32.xlu0 %v3169_v17 }
 0x47c   : > { %v5796_v1 = vpop.eup %5795  ;;  %v8567_v18 = vadd.f32 %v3472_v27, %v8202_v7  ;;  %v8570_v45 = vadd.f32 %v3670_v39, %v8205_v61  ;;  %v8573_v37 = vadd.f32 %v3868_v35, %v8208_v57  ;;  %v3474_v49 = vmul.f32 %v5794_v31, %v8183_v32 }
 0x47d   : > { %v5798_v3 = vpop.eup %5797  ;;  %v3672_v47 = vmul.f32 %v5794_v31, %v8186_v51  ;;  %v3870_v26 = vmul.f32 %v5794_v31, %v8192_v2  ;;  %v3056_v11 = vadd.f32 1.0, %v5796_v1  ;;  %5815 = vpow2.f32 %v5267_v54 }
 0x47e   : > { %v5800_v12 = vpop.eup %5799  ;;  %v8579_v7 = vadd.f32 %v3474_v49, %v8223_v0  ;;  %v3055_v61 = vadd.f32 1.0, %v5798_v3  ;;  %v10318_v57 = vmax.f32 %v8459_v33, 0.0  ;;  %3199 = vadd.xlane.f32.xlu1 %v3156_v60  ;;  %v10319_v49 = vmax.f32 %v8467_v52, 0.0 }
 0x47f   : > { %v5802_v10 = vpop.eup %5801  ;;  %v8586_v27 = vadd.f32 %v3672_v47, %v8226_v46  ;;  %v8589_v31 = vadd.f32 %v3870_v26, %v8229_v25  ;;  %v3473_v17 = vmul.f32 %v5800_v12, %v8183_v32  ;;  %v3671_v54 = vmul.f32 %v5800_v12, %v8186_v51  ;;  %3197 = vadd.xlane.f32.xlu0 %v8526_v38 }
 0x480   : > { %v3158_v34 = vmul.f32 %v8180_v59, %v10318_v57  ;;  %v5804_v0 = vpop.eup %5803  ;;  %v3869_v35 = vmul.f32 %v5800_v12, %v8192_v2  ;;  %5817 = vrcp.f32 %v3056_v11  ;;  %v3058_v1 = vadd.f32 1.0, %v5802_v10  ;;  %v2922_v57 = vpop.xlane.xlu0 %2921 }
 0x481   : > { %v3157_v3 = vmul.f32 %v8180_v59, %v10319_v49  ;;  %v5806_v46 = vpop.eup %5805  ;;  %v8598_v47 = vadd.f32 %v3473_v17, %v8213_v42  ;;  %v8601_v25 = vadd.f32 %v3671_v54, %v8216_v16  ;;  %v3476_v26 = vmul.f32 %v5804_v0, %v8183_v32  ;;  %v2928_v11 = vpop.xlane.xlu1 %2927 }
 0x482   : > { %v3674_v39 = vmul.f32 %v5804_v0, %v8186_v51  ;;  %v5808_v60 = vpop.eup %5807  ;;  %v8607_v12 = vadd.f32 %v3869_v35, %v8219_v15  ;;  %v3872_v10 = vmul.f32 %v5804_v0, %v8192_v2  ;;  %v3475_v49 = vmul.f32 %v5806_v46, %v8183_v32  ;;  %3231 = vadd.xlane.f32.xlu1 %v8537_v8 }
 0x483   : > { %v3673_v42 = vmul.f32 %v5806_v46, %v8186_v51  ;;  %v5810_v17 = vpop.eup %5809  ;;  %v8613_v16 = vadd.f32 %v3476_v26, %v8243_v43  ;;  %v3871_v38 = vmul.f32 %v5806_v46, %v8192_v2  ;;  %v3478_v52 = vmul.f32 %v5808_v60, %v8183_v32  ;;  %3229 = vadd.xlane.f32.xlu0 %v8542_v13  ;;  %v10330_v13 = vld [vmem:[#allocation108_spill] sm:$0xff] }
 0x484   : > { %v8616_v54 = vadd.f32 %v3674_v39, %v8246_v5  ;;  %v5812_v33 = vpop.eup %5811  ;;  %v8621_v15 = vadd.f32 %v3872_v10, %v8253_v28  ;;  %v8624_v0 = vadd.f32 %v3475_v49, %v8234_v41  ;;  %v3676_v43 = vmul.f32 %v5808_v60, %v8186_v51  ;;  %v2926_v10 = vpop.xlane.xlu0 %2925 }
 0x485   : > { %10320 = vst [vmem:[#allocation163_spill] sm:$0xff] %v8613_v16  ;;  %v8627_v35 = vadd.f32 %v3673_v42, %v8237_v55  ;;  %v5814_v5 = vpop.eup %5813  ;;  %v8632_v39 = vadd.f32 %v3871_v38, %v8240_v40  ;;  %v8635_v46 = vadd.f32 %v3478_v52, %v8304_v53  ;;  %v3874_v28 = vmul.f32 %v5808_v60, %v8192_v2  ;;  %v2932_v60 = vpop.xlane.xlu1 %2931 }
 0x486   : > { %10321 = vst [vmem:[#allocation164_spill] sm:$0xff] %v8616_v54  ;;  %10322 = vst [vmem:[#allocation165_spill] sm:$0xff] %v8621_v15  ;;  %v3477_v26 = vmul.f32 %v5810_v17, %v8183_v32  ;;  %v8641_v41 = vadd.f32 %v3676_v43, %v8307_v22  ;;  %v3675_v55 = vmul.f32 %v5810_v17, %v8186_v51  ;;  %5819 = vrcp.f32 %v3055_v61  ;;  %v10332_v22 = vld [vmem:[#allocation109_spill] sm:$0xff] }
 0x487   : > { %10323 = vst [vmem:[#allocation166_spill] sm:$0xff] %v8624_v0  ;;  %10324 = vst [vmem:[#allocation167_spill] sm:$0xff] %v8627_v35  ;;  %v3873_v8 = vmul.f32 %v5810_v17, %v8192_v2  ;;  %v5816_v40 = vpop.eup %5815  ;;  %v8646_v49 = vadd.f32 %v3874_v28, %v8313_v20  ;;  %5821 = vrcp.f32 %v3058_v1  ;;  %v3057_v53 = vadd.f32 1.0, %v5812_v33  ;;  %3203 = vadd.xlane.f32.xlu1 %v3158_v34  ;;  %v10341_v1 = vld [vmem:[#allocation127_spill] sm:$0xff] }
 0x488   : > { %10325 = vst [vmem:[#allocation168_spill] sm:$0xff] %v8632_v39  ;;  %10326 = vst [vmem:[#allocation169_spill] sm:$0xff] %v8635_v46  ;;  %v8649_v52 = vadd.f32 %v3477_v26, %v8268_v9  ;;  %v8652_v42 = vadd.f32 %v3675_v55, %v10330_v13  ;;  %v3060_v43 = vadd.f32 1.0, %v5814_v5  ;;  %v3059_v17 = vadd.f32 1.0, %v5816_v40  ;;  %3201 = vadd.xlane.f32.xlu0 %v3157_v3  ;;  %v2930_v13 = vpop.xlane.xlu0 %2929 }
 0x489   : > { %10327 = vst [vmem:[#allocation170_spill] sm:$0xff] %v8641_v41  ;;  %10328 = vst [vmem:[#allocation171_spill] sm:$0xff] %v8646_v49  ;;  %v8655_v38 = vadd.f32 %v3873_v8, %v10332_v22  ;;  %v8659_v61 = vmul.f32 %v8377_v29, %v8173_v36  ;;  %5823 = vrcp.f32 %v3057_v53  ;;  %v5271_v20 = vmul.f32 -1.442695, %v2922_v57  ;;  %v10336_v57 = vld [vmem:[#allocation141_spill] sm:$0xff] }
 0x48a   : > { %10329 = vst [vmem:[#allocation172_spill] sm:$0xff] %v8649_v52  ;;  %10331 = vst [vmem:[#allocation108_spill] sm:$0xff] %v8652_v42  ;;  %v5818_v33 = vpop.eup %5817  ;;  %5825 = vrcp.f32 %v3060_v43  ;;  %v10334_v28 = vmax.f32 %v8461_v14, 0.0  ;;  %v10335_v5 = vmax.f32 %v8469_v4, 0.0  ;;  %v8674_v8 = vadd.f32 1.0, %v10336_v57  ;;  %v10337_v22 = vld [vmem:[#allocation121_spill] sm:$0xff] }
 0x48b   : > { %10333 = vst [vmem:[#allocation109_spill] sm:$0xff] %v8655_v38  ;;  %v3480_v29 = vmul.f32 %v5818_v33, %v8183_v32  ;;  %v3678_v55 = vmul.f32 %v5818_v33, %v8186_v51  ;;  %v3876_v3 = vmul.f32 %v5818_v33, %v8192_v2  ;;  %5827 = vrcp.f32 %v3059_v17  ;;  %v10343_v33 = vld [vmem:[#allocation146_spill] sm:$0xff]  ;;  %v10356_v14 = vld [vmem:[#allocation137_spill] sm:$0xff] }
 0x48c   : > { %v3174_v26 = vmul.f32 %v8180_v59, %v10334_v28  ;;  %v3173_v34 = vmul.f32 %v8180_v59, %v10335_v5  ;;  %5829 = vrcp.f32 %v8488_v48  ;;  %v5274_v53 = vmul.f32 -1.442695, %v2928_v11  ;;  %v10339_v28 = vld [vmem:[#allocation122_spill] sm:$0xff]  ;;  %v2936_v48 = vpop.xlane.xlu1 %2935 }
 0x48d   : > { %v8678_v43 = vadd.f32 %v3480_v29, %v10337_v22  ;;  %v8681_v5 = vadd.f32 %v3678_v55, %v10339_v28  ;;  %v8684_v9 = vadd.f32 %v3876_v3, %v10341_v1  ;;  %v5273_v17 = vmul.f32 -1.442695, %v2926_v10  ;;  %v10346_v22 = vld [vmem:[#allocation158_spill] sm:$0xff] }
 0x48e   : > { %3235 = vadd.xlane.f32.xlu1 %v3174_v26  ;;  %3233 = vadd.xlane.f32.xlu0 %v3173_v34  ;;  %v8687_v57 = vadd.f32 1.0, %v10343_v33  ;;  %v10113_v26 = vmax.f32 %v8505_v24, 0.0  ;;  %v10344_v11 = vmax.f32 %v8483_v63, 0.0  ;;  %v10345_v29 = vmax.f32 %v8496_v50, 0.0  ;;  %v10352_v24 = vld [vmem:[#allocation120_spill] sm:$0xff] }
 0x48f   : > { %10338 = vst [vmem:[#allocation141_spill] sm:$0xff] %v8678_v43  ;;  %10340 = vst [vmem:[#allocation121_spill] sm:$0xff] %v8681_v5  ;;  %v2781_v28 = vadd.f32 1.0, %v10346_v22  ;;  %5831 = vpow2.f32 %v5271_v20  ;;  %v5276_v1 = vmul.f32 -1.442695, %v2932_v60  ;;  %v10347_v3 = vmax.f32 %v8498_v19, 0.0 }
 0x490   : > { %10342 = vst [vmem:[#allocation122_spill] sm:$0xff] %v8684_v9  ;;  %v3160_v40 = vmul.f32 %v8180_v59, %v10344_v11  ;;  %v3159_v55 = vmul.f32 %v8180_v59, %v10345_v29  ;;  %v5275_v34 = vmul.f32 -1.442695, %v2930_v13  ;;  %v5820_v10 = vpop.eup %5819  ;;  %5833 = vpow2.f32 %v5274_v53 }
 0x491   : > { %v3176_v33 = vmul.f32 %v8180_v59, %v10347_v3  ;;  %v3175_v11 = vmul.f32 %v8180_v59, %v10113_v26  ;;  %v5278_v63 = vmul.f32 -1.442695, %v2936_v48  ;;  %v5822_v50 = vpop.eup %5821  ;;  %v3479_v29 = vmul.f32 %v5820_v10, %v8183_v32  ;;  %v10348_v3 = vld [vmem:[#allocation114_spill] sm:$0xff]  ;;  %v10350_v48 = vld [vmem:[#allocation119_spill] sm:$0xff] }
 0x492   : > { %3207 = vadd.xlane.f32.xlu1 %v3160_v40  ;;  %v3677_v22 = vmul.f32 %v5820_v10, %v8186_v51  ;;  %v3875_v60 = vmul.f32 %v5820_v10, %v8192_v2  ;;  %5835 = vpow2.f32 %v5273_v17  ;;  %3205 = vadd.xlane.f32.xlu0 %v3159_v55  ;;  %v3482_v20 = vmul.f32 %v5822_v50, %v8183_v32  ;;  %v2934_v17 = vpop.xlane.xlu0 %2933  ;;  %v10354_v10 = vld [vmem:[#allocation131_spill] sm:$0xff] }
 0x493   : > { %v3680_v40 = vmul.f32 %v5822_v50, %v8186_v51  ;;  %v3878_v53 = vmul.f32 %v5822_v50, %v8192_v2  ;;  %5837 = vpow2.f32 %v5276_v1  ;;  %v5824_v13 = vpop.eup %5823  ;;  %v8710_v59 = vadd.f32 %v3479_v29, %v10348_v3  ;;  %v10358_v50 = vld [vmem:[#allocation138_spill] sm:$0xff] }
 0x494   : > { %v8713_v26 = vadd.f32 %v3677_v22, %v10350_v48  ;;  %v8716_v19 = vadd.f32 %v3875_v60, %v10352_v24  ;;  %5839 = vpow2.f32 %v5275_v34  ;;  %v5826_v55 = vpop.eup %5825  ;;  %v8719_v4 = vadd.f32 %v3482_v20, %v10354_v10  ;;  %v10362_v10 = vld [vmem:[#allocation129_spill] sm:$0xff] }
 0x495   : > { %10349 = vst [vmem:[#allocation127_spill] sm:$0xff] %v8710_v59  ;;  %v8722_v9 = vadd.f32 %v3680_v40, %v10356_v14  ;;  %v8725_v1 = vadd.f32 %v3878_v53, %v10358_v50  ;;  %v3481_v29 = vmul.f32 %v5824_v13, %v8183_v32  ;;  %v5828_v22 = vpop.eup %5827  ;;  %v3679_v3 = vmul.f32 %v5824_v13, %v8186_v51  ;;  %v10360_v14 = vld [vmem:[#allocation128_spill] sm:$0xff] }
 0x496   : > { %10351 = vst [vmem:[#allocation146_spill] sm:$0xff] %v8713_v26  ;;  %10353 = vst [vmem:[#allocation158_spill] sm:$0xff] %v8716_v19  ;;  %3239 = vadd.xlane.f32.xlu1 %v3176_v33  ;;  %v3877_v24 = vmul.f32 %v5824_v13, %v8192_v2  ;;  %v3484_v34 = vmul.f32 %v5826_v55, %v8183_v32  ;;  %v3682_v60 = vmul.f32 %v5826_v55, %v8186_v51  ;;  %v8732_v20 = vpop.eup %5829  ;;  %v10364_v13 = vld [vmem:[#allocation130_spill] sm:$0xff] }
 0x497   : > { %10355 = vst [vmem:[#allocation114_spill] sm:$0xff] %v8719_v4  ;;  %10357 = vst [vmem:[#allocation119_spill] sm:$0xff] %v8722_v9  ;;  %3237 = vadd.xlane.f32.xlu0 %v3175_v11  ;;  %v8735_v40 = vadd.f32 %v3481_v29, %v10360_v14  ;;  %v3880_v53 = vmul.f32 %v5826_v55, %v8192_v2  ;;  %v3483_v48 = vmul.f32 %v5828_v22, %v8183_v32  ;;  %v10366_v9 = vld [vmem:[#allocation149_spill] sm:$0xff]  ;;  %v10368_v11 = vld [vmem:[#allocation150_spill] sm:$0xff] }
 0x498   : > { %10359 = vst [vmem:[#allocation120_spill] sm:$0xff] %v8725_v1  ;;  %v3681_v33 = vmul.f32 %v5828_v22, %v8186_v51  ;;  %v8741_v50 = vadd.f32 %v3679_v3, %v10362_v10  ;;  %v8744_v1 = vadd.f32 %v3877_v24, %v10364_v13  ;;  %v8747_v4 = vadd.f32 %v3484_v34, %v10366_v9  ;;  %v10371_v55 = vld [vmem:[#allocation139_spill] sm:$0xff]  ;;  %v2940_v10 = vpop.xlane.xlu1 %2939  ;;  %v2938_v9 = vpop.xlane.xlu0 %2937  ;;  %v10375_v13 = vld [vmem:[#allocation148_spill] sm:$0xff] }
 0x499   : > { %10361 = vst [vmem:[#allocation131_spill] sm:$0xff] %v8735_v40  ;;  %v8750_v19 = vadd.f32 %v3682_v60, %v10368_v11  ;;  %v8753_v29 = vadd.f32 %v3880_v53, %v8659_v61  ;;  %v8756_v14 = vadd.f32 %v3483_v48, %v10371_v55  ;;  %v10373_v40 = vld [vmem:[#allocation147_spill] sm:$0xff]  ;;  %v3879_v3 = vmul.f32 %v5828_v22, %v8192_v2  ;;  %v5832_v24 = vpop.eup %5831 }
 0x49a   : > { %10363 = vst [vmem:[#allocation137_spill] sm:$0xff] %v8741_v50  ;;  %10365 = vst [vmem:[#allocation138_spill] sm:$0xff] %v8744_v1  ;;  %v8759_v26 = vadd.f32 %v3681_v33, %v10373_v40  ;;  %5841 = vrcp.f32 %v8674_v8  ;;  %v5834_v34 = vpop.eup %5833  ;;  %v3063_v11 = vadd.f32 1.0, %v5832_v24  ;;  %v5277_v8 = vmul.f32 -1.442695, %v2934_v17 }
 0x49b   : > { %10367 = vst [vmem:[#allocation128_spill] sm:$0xff] %v8747_v4  ;;  %10369 = vst [vmem:[#allocation129_spill] sm:$0xff] %v8750_v19  ;;  %v8764_v60 = vadd.f32 %v3879_v3, %v10375_v13  ;;  %5843 = vpow2.f32 %v5278_v63  ;;  %v3066_v40 = vadd.f32 1.0, %v5834_v34  ;;  %v5279_v24 = vmul.f32 -1.442695, %v2938_v9  ;;  %v10378_v34 = vld [vmem:[#allocation136_spill] sm:$0xff] }
 0x49c   : > { %10370 = vst [vmem:[#allocation130_spill] sm:$0xff] %v8753_v29  ;;  %10372 = vst [vmem:[#allocation149_spill] sm:$0xff] %v8756_v14  ;;  %v5836_v61 = vpop.eup %5835  ;;  %5845 = vrcp.f32 %v8687_v57  ;;  %v5280_v14 = vmul.f32 -1.442695, %v2940_v10  ;;  %v2942_v3 = vpop.xlane.xlu0 %2941  ;;  %v3849_v17 = vmul.f32 %v10378_v34, %v8173_v36 }
 0x49d   : > { %10374 = vst [vmem:[#allocation150_spill] sm:$0xff] %v8759_v26  ;;  %10376 = vst [vmem:[#allocation139_spill] sm:$0xff] %v8764_v60  ;;  %v5838_v53 = vpop.eup %5837  ;;  %5847 = vrcp.f32 %v2781_v28  ;;  %v3065_v48 = vadd.f32 1.0, %v5836_v61  ;;  %v2944_v26 = vpop.xlane.xlu1 %2943  ;;  %v5281_v57 = vmul.f32 -1.442695, %v2942_v3  ;;  %v10377_v28 = vld [vmem:[#allocation96_spill] sm:$0xff] }
 0x49e   : > { %v5840_v33 = vpop.eup %5839  ;;  %5849 = vrcp.f32 %v3063_v11  ;;  %v3068_v22 = vadd.f32 1.0, %v5838_v53  ;;  %v5282_v63 = vmul.f32 -1.442695, %v2944_v26  ;;  %v3453_v61 = vmul.f32 %v10378_v34, %v10377_v28  ;;  %v10379_v11 = vld [vmem:[#allocation97_spill] sm:$0xff] }
 0x49f   : > { %5851 = vrcp.f32 %v3066_v40  ;;  %v3067_v55 = vadd.f32 1.0, %v5840_v33  ;;  %v3651_v53 = vmul.f32 %v10378_v34, %v10379_v11  ;;  %v10380_v40 = vld [vmem:[#allocation144_spill] sm:$0xff]  ;;  %v3656_v1 = vmul.f32 %v8531_v58, %v10379_v11 }
 0x4a0   : > { %5853 = vrcp.f32 %v3065_v48  ;;  %v3455_v9 = vmul.f32 %v10380_v40, %v10377_v28  ;;  %v3653_v26 = vmul.f32 %v10380_v40, %v10379_v11  ;;  %v10381_v48 = vld [vmem:[#allocation162_spill] sm:$0xff]  ;;  %v3460_v59 = vmul.f32 %v8732_v20, %v10377_v28 }
 0x4a1   : > { %5855 = vrcp.f32 %v3068_v22  ;;  %v2782_v33 = vadd.f32 1.0, %v10381_v48 }
 0x4a2   : > { %5857 = vrcp.f32 %v3067_v55  ;;  %v3851_v55 = vmul.f32 %v10380_v40, %v8173_v36 }
 0x4a3   : > { %5859 = vpow2.f32 %v5277_v8  ;;  %v10382_v8 = vld [vmem:[#allocation155_spill] sm:$0xff] }
 0x4a4   : > { %v8767_v13 = vpop.eup %5841  ;;  %5861 = vpow2.f32 %v5280_v14  ;;  %v3456_v3 = vmul.f32 %v10382_v8, %v10377_v28  ;;  %v3654_v60 = vmul.f32 %v10382_v8, %v10379_v11  ;;  %v3852_v29 = vmul.f32 %v10382_v8, %v8173_v36 }
 0x4a5   : > { %v5844_v10 = vpop.eup %5843  ;;  %5863 = vpow2.f32 %v5279_v24  ;;  %v10383_v24 = vld [vmem:[#allocation156_spill] sm:$0xff]  ;;  %v3854_v8 = vmul.f32 %v8531_v58, %v8173_v36 }
 0x4a6   : > { %v8780_v22 = vpop.eup %5845  ;;  %v3070_v34 = vadd.f32 1.0, %v5844_v10  ;;  %5865 = vpow2.f32 %v5282_v63  ;;  %v3457_v48 = vmul.f32 %v10383_v24, %v10377_v28  ;;  %v3655_v40 = vmul.f32 %v10383_v24, %v10379_v11 }
 0x4a7   : > { %v8786_v14 = vpop.eup %5847  ;;  %5867 = vpow2.f32 %v5281_v57  ;;  %v3853_v10 = vmul.f32 %v10383_v24, %v8173_v36  ;;  %v3458_v63 = vmul.f32 %v8531_v58, %v10377_v28  ;;  %v3658_v24 = vmul.f32 %v8732_v20, %v10379_v11 }
 0x4a8   : > { %v5850_v19 = vpop.eup %5849  ;;  %5869 = vrcp.f32 %v3070_v34  ;;  %v3856_v34 = vmul.f32 %v8732_v20, %v8173_v36 }
 0x4a9   : > { %v5852_v4 = vpop.eup %5851  ;;  %5871 = vrcp.f32 %v2782_v33  ;;  %v3487_v57 = vmul.f32 %v5850_v19, %v8183_v32  ;;  %v3685_v5 = vmul.f32 %v5850_v19, %v8186_v51  ;;  %v3883_v58 = vmul.f32 %v5850_v19, %v8192_v2 }
 0x4aa   : > { %v5854_v50 = vpop.eup %5853  ;;  %v3490_v33 = vmul.f32 %v5852_v4, %v8183_v32  ;;  %v3688_v42 = vmul.f32 %v5852_v4, %v8186_v51  ;;  %v3886_v41 = vmul.f32 %v5852_v4, %v8192_v2 }
 0x4ab   : > { %v5856_v43 = vpop.eup %5855  ;;  %v8812_v38 = vadd.f32 %v3487_v57, %v3453_v61  ;;  %v8817_v49 = vadd.f32 %v3685_v5, %v3651_v53  ;;  %v3489_v46 = vmul.f32 %v5854_v50, %v8183_v32  ;;  %v3687_v20 = vmul.f32 %v5854_v50, %v8186_v51 }
 0x4ac   : > { %v5858_v52 = vpop.eup %5857  ;;  %v8822_v35 = vadd.f32 %v3883_v58, %v3849_v17  ;;  %v8824_v61 = vadd.f32 %v3490_v33, %v3456_v3  ;;  %v8826_v57 = vadd.f32 %v3688_v42, %v3654_v60  ;;  %v3885_v19 = vmul.f32 %v5854_v50, %v8192_v2 }
 0x4ad   : > { %v5860_v39 = vpop.eup %5859  ;;  %v8829_v15 = vadd.f32 %v3886_v41, %v3852_v29  ;;  %v8831_v5 = vadd.f32 %v3489_v46, %v3455_v9  ;;  %v8833_v53 = vadd.f32 %v3687_v20, %v3653_v26  ;;  %v3492_v4 = vmul.f32 %v5856_v43, %v8183_v32 }
 0x4ae   : > { %v5862_v0 = vpop.eup %5861  ;;  %v8836_v16 = vadd.f32 %v3885_v19, %v3851_v55  ;;  %v3690_v17 = vmul.f32 %v5856_v43, %v8186_v51  ;;  %v3888_v3 = vmul.f32 %v5856_v43, %v8192_v2  ;;  %v3491_v42 = vmul.f32 %v5858_v52, %v8183_v32 }
 0x4af   : > { %10384 = vst [vmem:[#allocation147_spill] sm:$0xff] %v8831_v5  ;;  %10385 = vst [vmem:[#allocation148_spill] sm:$0xff] %v8833_v53  ;;  %v5864_v54 = vpop.eup %5863  ;;  %v8841_v50 = vadd.f32 %v3492_v4, %v3458_v63  ;;  %v3689_v41 = vmul.f32 %v5858_v52, %v8186_v51  ;;  %v3887_v46 = vmul.f32 %v5858_v52, %v8192_v2  ;;  %v3069_v29 = vadd.f32 1.0, %v5860_v39 }
 0x4b0   : > { %10386 = vst [vmem:[#allocation136_spill] sm:$0xff] %v8836_v16  ;;  %v5866_v60 = vpop.eup %5865  ;;  %v8845_v26 = vadd.f32 %v3690_v17, %v3656_v1  ;;  %v8847_v58 = vadd.f32 %v3888_v3, %v3854_v8  ;;  %v8849_v55 = vadd.f32 %v3491_v42, %v3457_v48  ;;  %v3072_v33 = vadd.f32 1.0, %v5862_v0 }
 0x4b1   : > { %10387 = vst [vmem:[#allocation144_spill] sm:$0xff] %v8841_v50  ;;  %v5868_v9 = vpop.eup %5867  ;;  %v8851_v43 = vadd.f32 %v3689_v41, %v3655_v40  ;;  %v8853_v19 = vadd.f32 %v3887_v46, %v3853_v10  ;;  %5873 = vrcp.f32 %v3069_v29  ;;  %v3071_v63 = vadd.f32 1.0, %v5864_v54 }
 0x4b2   : > { %10388 = vst [vmem:[#allocation162_spill] sm:$0xff] %v8845_v26  ;;  %10389 = vst [vmem:[#allocation155_spill] sm:$0xff] %v8847_v58  ;;  %v5870_v20 = vpop.eup %5869  ;;  %5875 = vrcp.f32 %v3072_v33  ;;  %v3074_v1 = vadd.f32 1.0, %v5866_v60  ;;  %v3073_v48 = vadd.f32 1.0, %v5868_v9  ;;  %v3459_v54 = vmul.f32 %v8548_v44, %v10377_v28 }
 0x4b3   : > { %10390 = vst [vmem:[#allocation156_spill] sm:$0xff] %v8849_v55  ;;  %10391 = vst [vmem:[#allocation173_spill] sm:$0xff] %v8851_v43  ;;  %v5872_v4 = vpop.eup %5871  ;;  %v3494_v50 = vmul.f32 %v5870_v20, %v8183_v32  ;;  %v3692_v39 = vmul.f32 %v5870_v20, %v8186_v51  ;;  %v3890_v52 = vmul.f32 %v5870_v20, %v8192_v2  ;;  %5877 = vrcp.f32 %v3071_v63 }
 0x4b4   : > { %10392 = vst [vmem:[#allocation174_spill] sm:$0xff] %v8853_v19  ;;  %5879 = vrcp.f32 %v3074_v1  ;;  %v3657_v10 = vmul.f32 %v8548_v44, %v10379_v11  ;;  %v3855_v17 = vmul.f32 %v8548_v44, %v8173_v36  ;;  %v3461_v3 = vmul.f32 %v8767_v13, %v10377_v28 }
 0x4b5   : > { %v8858_v8 = vadd.f32 %v3494_v50, %v3460_v59  ;;  %v8860_v0 = vadd.f32 %v3692_v39, %v3658_v24  ;;  %v8862_v40 = vadd.f32 %v3890_v52, %v3856_v34  ;;  %5881 = vrcp.f32 %v3073_v48 }
 0x4b6   : > { %v3659_v59 = vmul.f32 %v8767_v13, %v10379_v11  ;;  %v3857_v24 = vmul.f32 %v8767_v13, %v8173_v36  ;;  %v3462_v34 = vmul.f32 %v8780_v22, %v10377_v28  ;;  %v3660_v42 = vmul.f32 %v8780_v22, %v10379_v11 }
 0x4b7   : > { %10393 = vst [vmem:[#allocation175_spill] sm:$0xff] %v8858_v8  ;;  %10394 = vst [vmem:[#allocation176_spill] sm:$0xff] %v8860_v0  ;;  %v3858_v60 = vmul.f32 %v8780_v22, %v8173_v36  ;;  %v3463_v44 = vmul.f32 %v8786_v14, %v10377_v28  ;;  %v3661_v41 = vmul.f32 %v8786_v14, %v10379_v11 }
 0x4b8   : > { %10395 = vst [vmem:[#allocation177_spill] sm:$0xff] %v8862_v40  ;;  %v3859_v46 = vmul.f32 %v8786_v14, %v8173_v36  ;;  %v3464_v13 = vmul.f32 %v5872_v4, %v10377_v28  ;;  %v3662_v9 = vmul.f32 %v5872_v4, %v10379_v11  ;;  %v3860_v39 = vmul.f32 %v5872_v4, %v8173_v36 }
 0x4bb   : > { %v5874_v50 = vpop.eup %5873 }
 0x4bc   : > { %v5876_v29 = vpop.eup %5875  ;;  %v3493_v33 = vmul.f32 %v5874_v50, %v8183_v32  ;;  %v3691_v20 = vmul.f32 %v5874_v50, %v8186_v51  ;;  %v3889_v22 = vmul.f32 %v5874_v50, %v8192_v2 }
 0x4bd   : > { %v5878_v63 = vpop.eup %5877  ;;  %v3496_v52 = vmul.f32 %v5876_v29, %v8183_v32  ;;  %v3694_v1 = vmul.f32 %v5876_v29, %v8186_v51  ;;  %v3892_v14 = vmul.f32 %v5876_v29, %v8192_v2 }
 0x4be   : > { %v8897_v48 = vadd.f32 %v3493_v33, %v3459_v54  ;;  %v8899_v40 = vadd.f32 %v3691_v20, %v3657_v10  ;;  %v8901_v0 = vadd.f32 %v3889_v22, %v3855_v17  ;;  %v3495_v8 = vmul.f32 %v5878_v63, %v8183_v32  ;;  %v5880_v19 = vpop.eup %5879 }
 0x4bf   : > { %v8904_v43 = vadd.f32 %v3496_v52, %v3462_v34  ;;  %v8906_v50 = vadd.f32 %v3694_v1, %v3660_v42  ;;  %v8908_v4 = vadd.f32 %v3892_v14, %v3858_v60  ;;  %v3693_v55 = vmul.f32 %v5878_v63, %v8186_v51  ;;  %v5882_v58 = vpop.eup %5881  ;;  %v10412_v1 = vld [vmem:[#allocation90_spill] sm:$0xff] }
 0x4c0   : > { %10396 = vst [vmem:[#allocation178_spill] sm:$0xff] %v8897_v48  ;;  %10397 = vst [vmem:[#allocation179_spill] sm:$0xff] %v8899_v40  ;;  %v8911_v26 = vadd.f32 %v3495_v8, %v3461_v3  ;;  %v3891_v54 = vmul.f32 %v5878_v63, %v8192_v2  ;;  %v3498_v10 = vmul.f32 %v5880_v19, %v8183_v32  ;;  %v5222_v14 = vmul.f32 -1.442695, %v10412_v1 }
 0x4c1   : > { %10398 = vst [vmem:[#allocation180_spill] sm:$0xff] %v8901_v0  ;;  %10399 = vst [vmem:[#allocation181_spill] sm:$0xff] %v8904_v43  ;;  %v3696_v17 = vmul.f32 %v5880_v19, %v8186_v51  ;;  %v8916_v29 = vadd.f32 %v3693_v55, %v3659_v59  ;;  %v3894_v34 = vmul.f32 %v5880_v19, %v8192_v2  ;;  %v10411_v19 = vld [vmem:[#allocation89_spill] sm:$0xff] }
 0x4c2   : > { %10400 = vst [vmem:[#allocation182_spill] sm:$0xff] %v8906_v50  ;;  %10401 = vst [vmem:[#allocation183_spill] sm:$0xff] %v8908_v4  ;;  %v3497_v42 = vmul.f32 %v5882_v58, %v8183_v32  ;;  %v3695_v60 = vmul.f32 %v5882_v58, %v8186_v51  ;;  %v8921_v33 = vadd.f32 %v3891_v54, %v3857_v24  ;;  %v5221_v52 = vmul.f32 -1.442695, %v10411_v19  ;;  %v10413_v24 = vld [vmem:[#allocation91_spill] sm:$0xff] }
 0x4c3   : > { %10402 = vst [vmem:[#allocation184_spill] sm:$0xff] %v8911_v26  ;;  %10403 = vst [vmem:[#allocation185_spill] sm:$0xff] %v8916_v29  ;;  %v8923_v20 = vadd.f32 %v3498_v10, %v3464_v13  ;;  %v8925_v8 = vadd.f32 %v3696_v17, %v3662_v9  ;;  %v3893_v3 = vmul.f32 %v5882_v58, %v8192_v2  ;;  %v5237_v54 = vmul.f32 -1.442695, %v10413_v24  ;;  %v10414_v13 = vld [vmem:[#allocation92_spill] sm:$0xff]  ;;  %v10415_v9 = vld [vmem:[#allocation93_spill] sm:$0xff] }
 0x4c4   : > { %10404 = vst [vmem:[#allocation186_spill] sm:$0xff] %v8921_v33  ;;  %v8928_v22 = vadd.f32 %v3894_v34, %v3860_v39  ;;  %v8930_v63 = vadd.f32 %v3497_v42, %v3463_v44  ;;  %v8932_v55 = vadd.f32 %v3695_v60, %v3661_v41  ;;  %v5238_v10 = vmul.f32 -1.442695, %v10414_v13  ;;  %v10416_v58 = vld [vmem:[#allocation99_spill] sm:$0xff]  ;;  %v10417_v44 = vld [vmem:[#allocation100_spill] sm:$0xff] }
 0x4c5   : > { %10405 = vst [vmem:[#allocation187_spill] sm:$0xff] %v8923_v20  ;;  %10406 = vst [vmem:[#allocation188_spill] sm:$0xff] %v8925_v8  ;;  %v8934_v59 = vadd.f32 %v3893_v3, %v3859_v46  ;;  %5883 = vpow2.f32 %v5221_v52  ;;  %v5240_v17 = vmul.f32 -1.442695, %v10415_v9  ;;  %v5253_v39 = vmul.f32 -1.442695, %v10416_v58  ;;  %v8946_v58 = vpop.xlane.xlu1 %2947 }
 0x4c6   : > { %10407 = vst [vmem:[#allocation189_spill] sm:$0xff] %v8928_v22  ;;  %10408 = vst [vmem:[#allocation190_spill] sm:$0xff] %v8930_v63  ;;  %5885 = vpow2.f32 %v5222_v14  ;;  %v5254_v41 = vmul.f32 -1.442695, %v10417_v44  ;;  %v5270_v46 = vmul.f32 -1.442695, %v8528_v30  ;;  %v8948_v44 = vpop.xlane.xlu0 %2945 }
 0x4c7   : > { %10409 = vst [vmem:[#allocation191_spill] sm:$0xff] %v8932_v55  ;;  %10410 = vst [vmem:[#allocation192_spill] sm:$0xff] %v8934_v59  ;;  %5887 = vpow2.f32 %v5237_v54  ;;  %v5269_v34 = vmul.f32 -1.442695, %v8553_v62  ;;  %v5272_v42 = vmul.f32 -1.442695, %v8564_v23 }
 0x4c8   : > { %5889 = vpow2.f32 %v5238_v10  ;;  %10418 = vst [vmem:[#allocation89_spill] sm:$0xff] %v8946_v58  ;;  %10419 = vst [vmem:[#allocation90_spill] sm:$0xff] %v8948_v44 }
 0x4c9   : > { %5891 = vpow2.f32 %v5240_v17 }
 0x4ca   : > { %5893 = vpow2.f32 %v5253_v39 }
 0x4cb   : > { %5895 = vpow2.f32 %v5254_v41 }
 0x4cc   : > { %5897 = vpow2.f32 %v5270_v46 }
 0x4cd   : > { %5899 = vpow2.f32 %v5269_v34 }
 0x4ce   : > { %5901 = vpow2.f32 %v5272_v42 }
 0x4cf   : > { %v5884_v60 = vpop.eup %5883 }
 0x4d0   : > { %v5886_v3 = vpop.eup %5885  ;;  %v2753_v1 = vadd.f32 1.0, %v5884_v60 }
 0x4d1   : > { %v5888_v19 = vpop.eup %5887  ;;  %v2754_v24 = vadd.f32 1.0, %v5886_v3 }
 0x4d2   : > { %v5890_v52 = vpop.eup %5889  ;;  %v2769_v13 = vadd.f32 1.0, %v5888_v19  ;;  %5903 = vrcp.f32 %v2753_v1 }
 0x4d3   : > { %v5892_v14 = vpop.eup %5891  ;;  %v2770_v10 = vadd.f32 1.0, %v5890_v52  ;;  %5905 = vrcp.f32 %v2754_v24 }
 0x4d4   : > { %v5894_v54 = vpop.eup %5893  ;;  %v2772_v17 = vadd.f32 1.0, %v5892_v14  ;;  %5907 = vrcp.f32 %v2769_v13 }
 0x4d5   : > { %v5896_v30 = vpop.eup %5895  ;;  %v3045_v62 = vadd.f32 1.0, %v5894_v54  ;;  %5909 = vrcp.f32 %v2770_v10 }
 0x4d6   : > { %v5898_v9 = vpop.eup %5897  ;;  %v3046_v23 = vadd.f32 1.0, %v5896_v30  ;;  %5911 = vrcp.f32 %v2772_v17 }
 0x4d7   : > { %v3062_v39 = vadd.f32 1.0, %v5898_v9  ;;  %v5900_v41 = vpop.eup %5899  ;;  %5913 = vrcp.f32 %v3045_v62 }
 0x4d8   : > { %v5902_v46 = vpop.eup %5901  ;;  %5915 = vrcp.f32 %v3046_v23  ;;  %v3061_v42 = vadd.f32 1.0, %v5900_v41 }
 0x4d9   : > { %5917 = vrcp.f32 %v3062_v39  ;;  %v3064_v19 = vadd.f32 1.0, %v5902_v46 }
 0x4dc   : > { %v5904_v1 = vpop.eup %5903 }
 0x4dd   : > { %v5906_v24 = vpop.eup %5905  ;;  %v3435_v17 = vmul.f32 %v5904_v1, %v10377_v28  ;;  %v3633_v62 = vmul.f32 %v5904_v1, %v10379_v11  ;;  %v3831_v23 = vmul.f32 %v5904_v1, %v8173_v36 }
 0x4de   : > { %v5908_v30 = vpop.eup %5907  ;;  %v3436_v41 = vmul.f32 %v5906_v24, %v10377_v28  ;;  %v3634_v46 = vmul.f32 %v5906_v24, %v10379_v11 }
 0x4df   : > { %v5910_v9 = vpop.eup %5909 }
 0x4e0   : > { %v5912_v39 = vpop.eup %5911  ;;  %v3650_v59 = vmul.f32 %v5910_v9, %v10379_v11  ;;  %v3848_v22 = vmul.f32 %v5910_v9, %v8173_v36 }
 0x4e1   : > { %v8970_v8 = vmul.f32 %v5912_v39, %v10377_v28  ;;  %v8973_v20 = vmul.f32 %v5912_v39, %v10379_v11 }
 0x4e3   : > { %v3180_v34 = vpop.xlane.xlu1 %3179 }
 0x4e4   : > { %v5286_v60 = vmul.f32 -1.442695, %v3180_v34  ;;  %v3178_v3 = vpop.xlane.xlu0 %3177  ;;  %v3832_v34 = vmul.f32 %v5906_v24, %v8173_v36  ;;  %v10420_v24 = vld [vmem:[#allocation94_spill] sm:$0xff] }
 0x4e5   : > { %v5285_v52 = vmul.f32 -1.442695, %v3178_v3  ;;  %v8957_v3 = vmul.f32 %v5908_v30, %v10377_v28 }
 0x4e6   : > { %5919 = vpow2.f32 %v5286_v60  ;;  %v5914_v60 = vpop.eup %5913 }
 0x4e7   : > { %5921 = vpow2.f32 %v5285_v52  ;;  %v3212_v14 = vpop.xlane.xlu1 %3211  ;;  %v8963_v52 = vmul.f32 %v5908_v30, %v8173_v36  ;;  %v3865_v33 = vmul.f32 %v5914_v60, %v8192_v2 }
 0x4e8   : > { %5923 = vrcp.f32 %v3061_v42  ;;  %v5302_v54 = vmul.f32 -1.442695, %v3212_v14  ;;  %v3210_v13 = vpop.xlane.xlu0 %3209 }
 0x4e9   : > { %5925 = vrcp.f32 %v3064_v19  ;;  %v5301_v10 = vmul.f32 -1.442695, %v3210_v13  ;;  %v8960_v19 = vmul.f32 %v5908_v30, %v10379_v11  ;;  %v3452_v13 = vmul.f32 %v5910_v9, %v10377_v28 }
 0x4ea   : > { %5927 = vpow2.f32 %v5302_v54  ;;  %v5916_v54 = vpop.eup %5915  ;;  %v3469_v30 = vmul.f32 %v5914_v60, %v8183_v32  ;;  %v8995_v48 = vadd.f32 %v3865_v33, %v3831_v23 }
 0x4eb   : > { %5929 = vpow2.f32 %v5301_v10  ;;  %v3184_v42 = vpop.xlane.xlu1 %3183  ;;  %v5251_v10 = vmul.f32 -1.442695, %v10420_v24  ;;  %v5918_v63 = vpop.eup %5917  ;;  %v3470_v9 = vmul.f32 %v5916_v54, %v8183_v32  ;;  %v3668_v28 = vmul.f32 %v5916_v54, %v8186_v51 }
 0x4ec   : > { %v5288_v1 = vmul.f32 -1.442695, %v3184_v42  ;;  %v3182_v14 = vpop.xlane.xlu0 %3181  ;;  %v3667_v42 = vmul.f32 %v5914_v60, %v8186_v51  ;;  %v3866_v29 = vmul.f32 %v5916_v54, %v8192_v2  ;;  %v3684_v50 = vmul.f32 %v5918_v63, %v8186_v51 }
 0x4ed   : > { %v5287_v55 = vmul.f32 -1.442695, %v3182_v14  ;;  %v3882_v60 = vmul.f32 %v5918_v63, %v8192_v2 }
 0x4ee   : > { %5931 = vpow2.f32 %v5288_v1  ;;  %v3486_v1 = vmul.f32 %v5918_v63, %v8183_v32  ;;  %v3898_v63 = vadd.f32 %v3866_v29, %v3832_v34 }
 0x4ef   : > { %5933 = vpow2.f32 %v5287_v55  ;;  %v3216_v14 = vpop.xlane.xlu1 %3215  ;;  %v3850_v55 = vmul.f32 %v5912_v39, %v8173_v36  ;;  %v3502_v39 = vadd.f32 %v3470_v9, %v3436_v41  ;;  %v3700_v36 = vadd.f32 %v3668_v28, %v3634_v46 }
 0x4f0   : > { %v5920_v24 = vpop.eup %5919  ;;  %v5304_v11 = vmul.f32 -1.442695, %v3216_v14  ;;  %v3214_v26 = vpop.xlane.xlu0 %3213  ;;  %5935 = vpow2.f32 %v5251_v10  ;;  %v8991_v14 = vadd.f32 %v3469_v30, %v3435_v17  ;;  %v8993_v10 = vadd.f32 %v3667_v42, %v3633_v62 }
 0x4f1   : > { %v5922_v4 = vpop.eup %5921  ;;  %v3338_v43 = vadd.f32 1.0, %v5920_v24  ;;  %v8997_v53 = vadd.f32 %v3486_v1, %v3452_v13  ;;  %v5303_v17 = vmul.f32 -1.442695, %v3214_v26  ;;  %v9001_v62 = vadd.f32 %v3882_v60, %v3848_v22 }
 0x4f2   : > { %v5924_v0 = vpop.eup %5923  ;;  %v3337_v40 = vadd.f32 1.0, %v5922_v4  ;;  %5937 = vpow2.f32 %v5304_v11  ;;  %v8999_v11 = vadd.f32 %v3684_v50, %v3650_v59  ;;  %v9004_v30 = vstv %s8975_s27 }
 0x4f3   : > { %v5926_v54 = vpop.eup %5925  ;;  %5939 = vrcp.f32 %v3338_v43  ;;  %v3188_v24 = vpop.xlane.xlu1 %3187  ;;  %v3485_v23 = vmul.f32 %v5924_v0, %v8183_v32  ;;  %v3683_v28 = vmul.f32 %v5924_v0, %v8186_v51  ;;  %v3881_v50 = vmul.f32 %v5924_v0, %v8192_v2 }
 0x4f4   : > { %v5928_v44 = vpop.eup %5927  ;;  %5941 = vrcp.f32 %v3337_v40  ;;  %v3186_v58 = vpop.xlane.xlu0 %3185  ;;  %v5290_v43 = vmul.f32 -1.442695, %v3188_v24  ;;  %v3488_v26 = vmul.f32 %v5926_v54, %v8183_v32  ;;  %v3884_v46 = vmul.f32 %v5926_v54, %v8192_v2 }
 0x4f5   : > { %v5930_v16 = vpop.eup %5929  ;;  %v3354_v4 = vadd.f32 1.0, %v5928_v44  ;;  %v5289_v40 = vmul.f32 -1.442695, %v3186_v58  ;;  %v9013_v13 = vstv %s8987_s22  ;;  %v9016_v42 = vstv %s8989_s26 }
 0x4f6   : > { %v3353_v33 = vadd.f32 1.0, %v5930_v16  ;;  %v3686_v16 = vmul.f32 %v5926_v54, %v8186_v51  ;;  %v3517_v0 = vadd.f32 %v3485_v23, %v8957_v3  ;;  %v3715_v1 = vadd.f32 %v3683_v28, %v8960_v19 }
 0x4f7   : > { %5943 = vrcp.f32 %v3354_v4  ;;  %v3220_v29 = vpop.xlane.xlu1 %3219  ;;  %v3913_v54 = vadd.f32 %v3881_v50, %v8963_v52 }
 0x4f8   : > { %v5932_v41 = vpop.eup %5931  ;;  %5945 = vrcp.f32 %v3353_v33  ;;  %v5306_v22 = vmul.f32 -1.442695, %v3220_v29  ;;  %v3218_v59 = vpop.xlane.xlu0 %3217 }
 0x4f9   : > { %v5934_v44 = vpop.eup %5933  ;;  %v3340_v34 = vadd.f32 1.0, %v5932_v41  ;;  %5947 = vpow2.f32 %v5303_v17  ;;  %v5305_v60 = vmul.f32 -1.442695, %v3218_v59  ;;  %v9024_v17 = vadd.f32 %v3488_v26, %v8970_v8 }
 0x4fa   : > { %v3339_v58 = vadd.f32 1.0, %v5934_v44  ;;  %5949 = vpow2.f32 %v5290_v43  ;;  %v9018_v9 = vpop.eup %5935  ;;  %v9027_v43 = vadd.f32 %v3686_v16, %v8973_v20  ;;  %v9029_v41 = vadd.f32 %v3884_v46, %v3850_v55 }
 0x4fb   : > { %10421 = vst [vmem:[#allocation91_spill] sm:$0xff] %v9018_v9  ;;  %5951 = vpow2.f32 %v5289_v40  ;;  %v3192_v24 = vpop.xlane.xlu1 %3191 }
 0x4fc   : > { %v5938_v4 = vpop.eup %5937  ;;  %5953 = vpow2.f32 %v5306_v22  ;;  %v5292_v33 = vmul.f32 -1.442695, %v3192_v24 }
 0x4fd   : > { %v5940_v29 = vpop.eup %5939  ;;  %5955 = vrcp.f32 %v3340_v34  ;;  %v3356_v3 = vadd.f32 1.0, %v5938_v4 }
 0x4fe   : > { %v5942_v19 = vpop.eup %5941  ;;  %v3536_v23 = vmul.f32 %v5940_v29, %v9004_v30  ;;  %v3734_v28 = vmul.f32 %v5940_v29, %v9013_v13  ;;  %v3932_v52 = vmul.f32 %v5940_v29, %v9016_v42  ;;  %5957 = vrcp.f32 %v3339_v58 }
 0x4ff   : > { %v3535_v8 = vmul.f32 %v5942_v19, %v9004_v30  ;;  %v3733_v40 = vmul.f32 %v5942_v19, %v9013_v13  ;;  %v3931_v50 = vmul.f32 %v5942_v19, %v9016_v42  ;;  %5959 = vpow2.f32 %v5305_v60 }
 0x500   : > { %v3568_v20 = vadd.f32 %v3536_v23, %v3502_v39  ;;  %v3766_v55 = vadd.f32 %v3734_v28, %v3700_v36  ;;  %v3964_v26 = vadd.f32 %v3932_v52, %v3898_v63  ;;  %5961 = vpow2.f32 %v5292_v33 }
 0x501   : > { %v5944_v22 = vpop.eup %5943  ;;  %v3567_v59 = vadd.f32 %v3535_v8, %v8991_v14  ;;  %v3765_v44 = vadd.f32 %v3733_v40, %v8993_v10  ;;  %v3963_v16 = vadd.f32 %v3931_v50, %v8995_v48  ;;  %5963 = vrcp.f32 %v3356_v3 }
 0x502   : > { %v5946_v46 = vpop.eup %5945  ;;  %v3600_v34 = vmul.f32 0.33333334, %v3568_v20  ;;  %v3798_v58 = vmul.f32 0.33333334, %v3766_v55  ;;  %v3996_v24 = vmul.f32 0.33333334, %v3964_v26  ;;  %v3552_v4 = vmul.f32 %v5944_v22, %v9004_v30 }
 0x503   : > { %v9041_v29 = vpop.eup %5947  ;;  %v3599_v39 = vmul.f32 0.33333334, %v3567_v59  ;;  %v3797_v36 = vmul.f32 0.33333334, %v3765_v44  ;;  %v3995_v63 = vmul.f32 0.33333334, %v3963_v16  ;;  %v3750_v60 = vmul.f32 %v5944_v22, %v9013_v13 }
 0x504   : > { %v9044_v33 = vpop.eup %5949  ;;  %v4028_v14 = vmax.f32 %v3600_v34, %v3798_v58  ;;  %v3584_v10 = vadd.f32 %v3552_v4, %v8997_v53  ;;  %v3948_v48 = vmul.f32 %v5944_v22, %v9016_v42  ;;  %v3551_v3 = vmul.f32 %v5946_v46, %v9004_v30 }
 0x505   : > { %v9049_v19 = vpop.eup %5951  ;;  %v4027_v23 = vmax.f32 %v3599_v39, %v3797_v36  ;;  %v3782_v28 = vadd.f32 %v3750_v60, %v8999_v11  ;;  %v3749_v52 = vmul.f32 %v5946_v46, %v9013_v13  ;;  %v3947_v8 = vmul.f32 %v5946_v46, %v9016_v42 }
 0x506   : > { %v9054_v40 = vpop.eup %5953  ;;  %v4060_v50 = vmax.f32 %v4028_v14, %v3996_v24  ;;  %v3616_v20 = vmul.f32 0.33333334, %v3584_v10  ;;  %v3980_v55 = vadd.f32 %v3948_v48, %v9001_v62  ;;  %v3583_v53 = vadd.f32 %v3551_v3, %v3517_v0 }
 0x507   : > { %v5956_v26 = vpop.eup %5955  ;;  %v4059_v22 = vmax.f32 %v4027_v23, %v3995_v63  ;;  %v3814_v59 = vmul.f32 0.33333334, %v3782_v28  ;;  %v3781_v44 = vadd.f32 %v3749_v52, %v3715_v1  ;;  %v3979_v16 = vadd.f32 %v3947_v8, %v3913_v54 }
 0x508   : > { %v5958_v4 = vpop.eup %5957  ;;  %v4092_v2 = vsub.f32 %v3600_v34, %v4060_v50  ;;  %v4188_v51 = vsub.f32 %v3798_v58, %v4060_v50  ;;  %v4284_v11 = vsub.f32 %v3996_v24, %v4060_v50  ;;  %v4012_v60 = vmul.f32 0.33333334, %v3980_v55 }
 0x509   : > { %v9057_v32 = vpop.eup %5959  ;;  %v4091_v46 = vsub.f32 %v3599_v39, %v4059_v22  ;;  %v4187_v9 = vsub.f32 %v3797_v36, %v4059_v22  ;;  %v4283_v5 = vsub.f32 %v3995_v63, %v4059_v22  ;;  %v4044_v14 = vmax.f32 %v3616_v20, %v3814_v59 }
 0x50a   : > { %v9059_v10 = vpop.eup %5961  ;;  %v4125_v62 = vmul.f32 1.442695, %v4092_v2  ;;  %v4221_v0 = vmul.f32 1.442695, %v4188_v51  ;;  %v4317_v48 = vmul.f32 1.442695, %v4284_v11  ;;  %v3538_v3 = vmul.f32 %v5956_v26, %v9004_v30 }
 0x50b   : > { %v5964_v1 = vpop.eup %5963  ;;  %v4123_v54 = vmul.f32 1.442695, %v4091_v46  ;;  %v4219_v23 = vmul.f32 1.442695, %v4187_v9  ;;  %v4315_v34 = vmul.f32 1.442695, %v4283_v5  ;;  %v4076_v58 = vmax.f32 %v4044_v14, %v4012_v60 }
 0x50c   : > { %5965 = vpow2.f32 %v4125_v62  ;;  %v3615_v24 = vmul.f32 0.33333334, %v3583_v53  ;;  %v3813_v28 = vmul.f32 0.33333334, %v3781_v44  ;;  %v4011_v52 = vmul.f32 0.33333334, %v3979_v16 }
 0x50d   : > { %5967 = vpow2.f32 %v4221_v0  ;;  %v4108_v39 = vsub.f32 %v3616_v20, %v4076_v58  ;;  %v4204_v36 = vsub.f32 %v3814_v59, %v4076_v58  ;;  %v4300_v63 = vsub.f32 %v4012_v60, %v4076_v58 }
 0x50e   : > { %5969 = vpow2.f32 %v4317_v48  ;;  %v4043_v8 = vmax.f32 %v3615_v24, %v3813_v28  ;;  %v3570_v2 = vadd.f32 %v3538_v3, %v8567_v18  ;;  %v3736_v51 = vmul.f32 %v5956_v26, %v9013_v13 }
 0x50f   : > { %5971 = vpow2.f32 %v4123_v54  ;;  %v4157_v50 = vmul.f32 1.442695, %v4108_v39  ;;  %v4253_v55 = vmul.f32 1.442695, %v4204_v36  ;;  %v4349_v9 = vmul.f32 1.442695, %v4300_v63 }
 0x510   : > { %5973 = vpow2.f32 %v4219_v23  ;;  %v4075_v5 = vmax.f32 %v4043_v8, %v4011_v52  ;;  %v3602_v22 = vmul.f32 0.33333334, %v3570_v2  ;;  %v3768_v53 = vadd.f32 %v3736_v51, %v8570_v45 }
 0x511   : > { %5975 = vpow2.f32 %v4315_v34  ;;  %v3934_v20 = vmul.f32 %v5956_v26, %v9016_v42  ;;  %v3537_v59 = vmul.f32 %v5958_v4, %v9004_v30  ;;  %v3735_v44 = vmul.f32 %v5958_v4, %v9013_v13 }
 0x512   : > { %5977 = vpow2.f32 %v4157_v50  ;;  %v4107_v18 = vsub.f32 %v3615_v24, %v4075_v5  ;;  %v4203_v16 = vsub.f32 %v3813_v28, %v4075_v5  ;;  %v4299_v11 = vsub.f32 %v4011_v52, %v4075_v5 }
 0x513   : > { %5979 = vpow2.f32 %v4253_v55  ;;  %v3800_v60 = vmul.f32 0.33333334, %v3768_v53  ;;  %v3966_v46 = vadd.f32 %v3934_v20, %v8573_v37  ;;  %v3569_v14 = vadd.f32 %v3537_v59, %v8556_v56 }
 0x514   : > { %5981 = vpow2.f32 %v4349_v9  ;;  %v4155_v62 = vmul.f32 1.442695, %v4107_v18  ;;  %v4251_v45 = vmul.f32 1.442695, %v4203_v16  ;;  %v4347_v0 = vmul.f32 1.442695, %v4299_v11 }
 0x515   : > { %v3998_v48 = vmul.f32 0.33333334, %v3966_v46  ;;  %v4030_v26 = vmax.f32 %v3602_v22, %v3800_v60  ;;  %v3601_v3 = vmul.f32 0.33333334, %v3569_v14  ;;  %v3767_v54 = vadd.f32 %v3735_v44, %v8559_v6 }
 0x516   : > { %v9071_v23 = vpop.eup %5965  ;;  %5983 = vpow2.f32 %v4155_v62  ;;  %v3933_v34 = vmul.f32 %v5958_v4, %v9016_v42  ;;  %v3554_v58 = vmul.f32 %v5964_v1, %v9004_v30  ;;  %v3752_v37 = vmul.f32 %v5964_v1, %v9013_v13 }
 0x517   : > { %v9076_v24 = vpop.eup %5967  ;;  %5985 = vpow2.f32 %v4251_v45  ;;  %v4062_v56 = vmax.f32 %v4030_v26, %v3998_v48  ;;  %v3799_v28 = vmul.f32 0.33333334, %v3767_v54  ;;  %v3950_v52 = vmul.f32 %v5964_v1, %v9016_v42 }
 0x518   : > { %v9079_v39 = vpop.eup %5969  ;;  %v4380_v6 = vadd.f32 %v9076_v24, %v9071_v23  ;;  %5987 = vpow2.f32 %v4347_v0  ;;  %v3965_v36 = vadd.f32 %v3933_v34, %v8562_v21  ;;  %v3586_v4 = vadd.f32 %v3554_v58, %v9024_v17 }
 0x519   : > { %v9085_v63 = vpop.eup %5971  ;;  %v4094_v8 = vsub.f32 %v3602_v22, %v4062_v56  ;;  %v4190_v2 = vsub.f32 %v3800_v60, %v4062_v56  ;;  %v4286_v51 = vsub.f32 %v3998_v48, %v4062_v56  ;;  %v4029_v50 = vmax.f32 %v3601_v3, %v3799_v28 }
 0x51a   : > { %v9087_v55 = vpop.eup %5973  ;;  %v4412_v1 = vadd.f32 %v9079_v39, %v4380_v6  ;;  %v3997_v9 = vmul.f32 0.33333334, %v3965_v36  ;;  %v3618_v5 = vmul.f32 0.33333334, %v3586_v4  ;;  %v3784_v53 = vadd.f32 %v3752_v37, %v9027_v43 }
 0x51b   : > { %v9091_v20 = vpop.eup %5975  ;;  %v4379_v21 = vadd.f32 %v9087_v55, %v9085_v63  ;;  %v4129_v17 = vmul.f32 1.442695, %v4094_v8  ;;  %v4225_v59 = vmul.f32 1.442695, %v4190_v2  ;;  %v4321_v44 = vmul.f32 1.442695, %v4286_v51 }
 0x51c   : > { %v9095_v22 = vpop.eup %5977  ;;  %5989 = vrcp.f32 %v4412_v1  ;;  %v4061_v18 = vmax.f32 %v4029_v50, %v3997_v9  ;;  %v3816_v16 = vmul.f32 0.33333334, %v3784_v53  ;;  %v3982_v11 = vadd.f32 %v3950_v52, %v9029_v41 }
 0x51d   : > { %v9098_v60 = vpop.eup %5979  ;;  %v4411_v46 = vadd.f32 %v9091_v20, %v4379_v21  ;;  %5991 = vpow2.f32 %v4129_v17  ;;  %v3355_v43 = vadd.f32 1.0, %v9041_v29 }
 0x51e   : > { %v9102_v14 = vpop.eup %5981  ;;  %v4396_v62 = vadd.f32 %v9098_v60, %v9095_v22  ;;  %5993 = vpow2.f32 %v4225_v59  ;;  %v4093_v45 = vsub.f32 %v3601_v3, %v4061_v18  ;;  %v4189_v0 = vsub.f32 %v3799_v28, %v4061_v18 }
 0x51f   : > { %5995 = vrcp.f32 %v4411_v46  ;;  %v4285_v48 = vsub.f32 %v3997_v9, %v4061_v18  ;;  %v4014_v26 = vmul.f32 0.33333334, %v3982_v11  ;;  %v4046_v54 = vmax.f32 %v3618_v5, %v3816_v16  ;;  %v10423_v11 = vld [vmem:[#allocation27_spill] sm:$0xff] }
 0x520   : > { %v9106_v41 = vpop.eup %5983  ;;  %v4428_v34 = vadd.f32 %v9102_v14, %v4396_v62  ;;  %5997 = vpow2.f32 %v4321_v44  ;;  %v4127_v58 = vmul.f32 1.442695, %v4093_v45  ;;  %v4223_v37 = vmul.f32 1.442695, %v4189_v0  ;;  %v10422_v44 = vld [vmem:[#allocation95_spill] sm:$0xff] }
 0x521   : > { %v9109_v29 = vpop.eup %5985  ;;  %v4319_v56 = vmul.f32 1.442695, %v4285_v48  ;;  %v4078_v52 = vmax.f32 %v4046_v54, %v4014_v26  ;;  %5999 = vrcp.f32 %v3355_v43  ;;  %v3342_v9 = vadd.f32 1.0, %v9044_v33  ;;  %v10425_v33 = vld [vmem:[#allocation58_spill] sm:$0xff] }
 0x522   : > { %v9111_v6 = vpop.eup %5987  ;;  %6001 = vrcp.f32 %v4428_v34  ;;  %v4395_v3 = vadd.f32 %v9109_v29, %v9106_v41  ;;  %v9125_v18 = vmul.f32 -1.442695, %v10422_v44  ;;  %v10424_v46 = vmax.f32 %v10423_v11, 0.0 }
 0x523   : > { %6003 = vpow2.f32 %v4127_v58  ;;  %v4110_v28 = vsub.f32 %v3618_v5, %v4078_v52  ;;  %v4206_v36 = vsub.f32 %v3816_v16, %v4078_v52  ;;  %v4302_v4 = vsub.f32 %v4014_v26, %v4078_v52  ;;  %v10427_v58 = vld [vmem:[#allocation104_spill] sm:$0xff] }
 0x524   : > { %v4427_v8 = vadd.f32 %v9111_v6, %v4395_v3  ;;  %6005 = vpow2.f32 %v4223_v37  ;;  %v10426_v62 = vmax.f32 %v10425_v33, 0.0  ;;  %v10428_v37 = vmax.f32 %v10427_v58, 0.0  ;;  %v10435_v33 = vld [vmem:[#allocation42_spill] sm:$0xff] }
 0x525   : > { %6007 = vpow2.f32 %v4319_v56  ;;  %v4161_v2 = vmul.f32 1.442695, %v4110_v28  ;;  %v4257_v51 = vmul.f32 1.442695, %v4206_v36  ;;  %v4353_v1 = vmul.f32 1.442695, %v4302_v4 }
 0x526   : > { %v5990_v50 = vpop.eup %5989  ;;  %6009 = vrcp.f32 %v4427_v8  ;;  %v10429_v28 = vld [vmem:[#allocation25_spill] sm:$0xff] }
 0x527   : > { %v9117_v53 = vpop.eup %5991  ;;  %v4508_v21 = vmul.f32 %v5990_v50, %v9071_v23  ;;  %v4572_v17 = vmul.f32 %v5990_v50, %v9076_v24  ;;  %v4668_v5 = vmul.f32 %v5990_v50, %v9079_v39  ;;  %6011 = vpow2.f32 %v4161_v2  ;;  %v10431_v4 = vld [vmem:[#allocation57_spill] sm:$0xff]  ;;  %v10433_v2 = vld [vmem:[#allocation106_spill] sm:$0xff] }
 0x528   : > { %v9122_v59 = vpop.eup %5993  ;;  %6013 = vpow2.f32 %v4257_v51  ;;  %v3341_v24 = vadd.f32 1.0, %v9049_v19  ;;  %v10430_v19 = vmax.f32 %v10429_v28, 0.0  ;;  %v10432_v8 = vmax.f32 %v10431_v4, 0.0 }
 0x529   : > { %v5996_v16 = vpop.eup %5995  ;;  %v4540_v43 = vmul.f32 %v4508_v21, %v10424_v46  ;;  %v4604_v45 = vmul.f32 %v4572_v17, %v10426_v62  ;;  %v4382_v23 = vadd.f32 %v9122_v59, %v9117_v53  ;;  %6015 = vpow2.f32 %v4353_v1 }
 0x52a   : > { %v9134_v39 = vpop.eup %5997  ;;  %v4507_v0 = vmul.f32 %v5996_v16, %v9085_v63  ;;  %v4571_v48 = vmul.f32 %v5996_v16, %v9087_v55  ;;  %v4667_v26 = vmul.f32 %v5996_v16, %v9091_v20  ;;  %v4700_v56 = vmul.f32 %v4668_v5, %v10428_v37 }
 0x52b   : > { %v6000_v54 = vpop.eup %5999  ;;  %v4636_v34 = vadd.f32 %v4604_v45, %v4540_v43  ;;  %v4414_v52 = vadd.f32 %v9134_v39, %v4382_v23  ;;  %6017 = vrcp.f32 %v3342_v9  ;;  %v10434_v55 = vmax.f32 %v10433_v2, 0.0 }
 0x52c   : > { %v6002_v3 = vpop.eup %6001  ;;  %v4539_v36 = vmul.f32 %v4507_v0, %v10430_v19  ;;  %v4603_v63 = vmul.f32 %v4571_v48, %v10432_v8  ;;  %v3553_v20 = vmul.f32 %v6000_v54, %v9004_v30  ;;  %v3751_v11 = vmul.f32 %v6000_v54, %v9013_v13  ;;  %v10439_v0 = vld [vmem:[#allocation105_spill] sm:$0xff] }
 0x52d   : > { %v4699_v51 = vmul.f32 %v4667_v26, %v10434_v55  ;;  %v9149_v50 = vpop.eup %6003  ;;  %v4732_v1 = vadd.f32 %v4700_v56, %v4636_v34  ;;  %v4524_v21 = vmul.f32 %v6002_v3, %v9095_v22  ;;  %v4588_v17 = vmul.f32 %v6002_v3, %v9098_v60  ;;  %v10437_v22 = vld [vmem:[#allocation73_spill] sm:$0xff] }
 0x52e   : > { %v4684_v9 = vmul.f32 %v6002_v3, %v9102_v14  ;;  %v9154_v5 = vpop.eup %6005  ;;  %v4635_v44 = vadd.f32 %v4603_v63, %v4539_v36  ;;  %6019 = vrcp.f32 %v4414_v52  ;;  %v3585_v16 = vadd.f32 %v3553_v20, %v8812_v38  ;;  %v10441_v55 = vld [vmem:[#allocation41_spill] sm:$0xff] }
 0x52f   : > { %v9158_v46 = vpop.eup %6007  ;;  %v4764_v43 = vmul.f32 3.0, %v4732_v1  ;;  %v10436_v62 = vmax.f32 %v10435_v33, 0.0  ;;  %v10438_v23 = vmax.f32 %v10437_v22, 0.0  ;;  %v10440_v14 = vmax.f32 %v10439_v0, 0.0  ;;  %v10443_v1 = vld [vmem:[#allocation74_spill] sm:$0xff] }
 0x530   : > { %v6010_v26 = vpop.eup %6009  ;;  %v4731_v34 = vadd.f32 %v4699_v51, %v4635_v44  ;;  %v4381_v58 = vadd.f32 %v9154_v5, %v9149_v50  ;;  %v3617_v38 = vmul.f32 0.33333334, %v3585_v16  ;;  %v3783_v37 = vadd.f32 %v3751_v11, %v8817_v49 }
 0x531   : > { %v4556_v45 = vmul.f32 %v4524_v21, %v10436_v62  ;;  %v4620_v60 = vmul.f32 %v4588_v17, %v10438_v23  ;;  %v4716_v48 = vmul.f32 %v4684_v9, %v10440_v14  ;;  %v9169_v56 = vpop.eup %6011  ;;  %4796 = vst [vmem:[%s6850_s5 + $0x8] sm:$0xff] %v4764_v43  ;;  %v4523_v3 = vmul.f32 %v6010_v26, %v9106_v41  ;;  %v10445_v43 = vld [vmem:[#allocation107_spill] sm:$0xff] }
 0x532   : > { %v4587_v28 = vmul.f32 %v6010_v26, %v9109_v29  ;;  %v4683_v19 = vmul.f32 %v6010_v26, %v9111_v6  ;;  %v9175_v36 = vpop.eup %6013  ;;  %v4763_v4 = vmul.f32 3.0, %v4731_v34  ;;  %v4413_v8 = vadd.f32 %v9158_v46, %v4381_v58 }
 0x533   : > { %v4652_v52 = vadd.f32 %v4620_v60, %v4556_v45  ;;  %v3815_v63 = vmul.f32 0.33333334, %v3783_v37  ;;  %v3949_v2 = vmul.f32 %v6000_v54, %v9016_v42  ;;  %v10442_v51 = vmax.f32 %v10441_v55, 0.0  ;;  %v9184_v29 = vpop.eup %6015 }
 0x534   : > { %v10444_v21 = vmax.f32 %v10443_v1, 0.0  ;;  %v3358_v41 = vadd.f32 1.0, %v9054_v40  ;;  %4795 = vst [vmem:[%s6850_s5] sm:$0xff] %v4763_v4  ;;  %6021 = vrcp.f32 %v4413_v8  ;;  %v4398_v6 = vadd.f32 %v9175_v36, %v9169_v56  ;;  %v10447_v8 = vld [vmem:[#allocation28_spill] sm:$0xff] }
 0x535   : > { %v4748_v49 = vadd.f32 %v4716_v48, %v4652_v52  ;;  %v4555_v20 = vmul.f32 %v4523_v3, %v10442_v51  ;;  %v3981_v9 = vadd.f32 %v3949_v2, %v8822_v35  ;;  %v4045_v54 = vmax.f32 %v3617_v38, %v3815_v63  ;;  %v6018_v44 = vpop.eup %6017  ;;  %v3190_v3 = vpop.xlane.xlu0 %3189 }
 0x536   : > { %v4619_v17 = vmul.f32 %v4587_v28, %v10444_v21  ;;  %v10446_v33 = vmax.f32 %v10445_v43, 0.0  ;;  %6023 = vrcp.f32 %v3341_v24  ;;  %v4430_v40 = vadd.f32 %v9184_v29, %v4398_v6 }
 0x537   : > { %v4780_v16 = vmul.f32 3.0, %v4748_v49  ;;  %v4013_v45 = vmul.f32 0.33333334, %v3981_v9  ;;  %v3540_v22 = vmul.f32 %v6018_v44, %v9004_v30  ;;  %v3738_v23 = vmul.f32 %v6018_v44, %v9013_v13  ;;  %v10449_v49 = vld [vmem:[#allocation60_spill] sm:$0xff] }
 0x538   : > { %v4651_v11 = vadd.f32 %v4619_v17, %v4555_v20  ;;  %v4715_v62 = vmul.f32 %v4683_v19, %v10446_v33  ;;  %v3936_v0 = vmul.f32 %v6018_v44, %v9016_v42  ;;  %6025 = vrcp.f32 %v3358_v41  ;;  %v6020_v14 = vpop.eup %6019 }
 0x539   : > { %4812 = vst [vmem:[%s6850_s5 + $0x88] sm:$0xff] %v4780_v16  ;;  %v3357_v35 = vadd.f32 1.0, %v9057_v32  ;;  %6027 = vrcp.f32 %v4430_v40  ;;  %v4077_v48 = vmax.f32 %v4045_v54, %v4013_v45  ;;  %v3572_v24 = vadd.f32 %v3540_v22, %v8579_v7  ;;  %v10453_v22 = vld [vmem:[#allocation26_spill] sm:$0xff] }
 0x53a   : > { %v4747_v60 = vadd.f32 %v4715_v62, %v4651_v11  ;;  %v3770_v26 = vadd.f32 %v3738_v23, %v8586_v27  ;;  %v4510_v58 = vmul.f32 %v6020_v14, %v9117_v53  ;;  %v4574_v37 = vmul.f32 %v6020_v14, %v9122_v59 }
 0x53b   : > { %v4670_v52 = vmul.f32 %v6020_v14, %v9134_v39  ;;  %v4109_v28 = vsub.f32 %v3617_v38, %v4077_v48  ;;  %v4205_v19 = vsub.f32 %v3815_v63, %v4077_v48  ;;  %v4301_v4 = vsub.f32 %v4013_v45, %v4077_v48  ;;  %v10451_v63 = vld [vmem:[#allocation110_spill] sm:$0xff] }
 0x53c   : > { %v4779_v34 = vmul.f32 3.0, %v4747_v60  ;;  %v3604_v32 = vmul.f32 0.33333334, %v3572_v24  ;;  %6029 = vpow2.f32 %v9125_v18  ;;  %v10448_v2 = vmax.f32 %v10447_v8, 0.0  ;;  %v10455_v60 = vld [vmem:[#allocation59_spill] sm:$0xff] }
 0x53d   : > { %v10450_v27 = vmax.f32 %v10449_v49, 0.0  ;;  %v3802_v51 = vmul.f32 0.33333334, %v3770_v26  ;;  %v4159_v53 = vmul.f32 1.442695, %v4109_v28  ;;  %v3968_v59 = vadd.f32 %v3936_v0, %v8589_v31 }
 0x53e   : > { %4811 = vst [vmem:[%s6850_s5 + $0x80] sm:$0xff] %v4779_v34  ;;  %v4542_v7 = vmul.f32 %v4510_v58, %v10448_v2  ;;  %v4255_v20 = vmul.f32 1.442695, %v4205_v19  ;;  %v9210_v39 = vmul.f32 -1.442695, %v3190_v3  ;;  %v10452_v1 = vmax.f32 %v10451_v63, 0.0  ;;  %v6022_v18 = vpop.eup %6021 }
 0x53f   : > { %v4606_v55 = vmul.f32 %v4574_v37, %v10450_v27  ;;  %v4032_v17 = vmax.f32 %v3604_v32, %v3802_v51  ;;  %6031 = vrcp.f32 %v3357_v35  ;;  %v4351_v41 = vmul.f32 1.442695, %v4301_v4  ;;  %v10461_v27 = vld [vmem:[#allocation75_spill] sm:$0xff] }
 0x540   : > { %v4702_v21 = vmul.f32 %v4670_v52, %v10452_v1  ;;  %6033 = vpow2.f32 %v4159_v53  ;;  %v4000_v6 = vmul.f32 0.33333334, %v3968_v59  ;;  %v9215_v9 = vadd.f32 1.0, %v9059_v10  ;;  %v6024_v54 = vpop.eup %6023  ;;  %v10463_v53 = vld [vmem:[#allocation111_spill] sm:$0xff] }
 0x541   : > { %v4638_v38 = vadd.f32 %v4606_v55, %v4542_v7  ;;  %v4509_v16 = vmul.f32 %v6022_v18, %v9149_v50  ;;  %v4573_v31 = vmul.f32 %v6022_v18, %v9154_v5  ;;  %v4669_v11 = vmul.f32 %v6022_v18, %v9158_v46  ;;  %v10457_v50 = vld [vmem:[#allocation112_spill] sm:$0xff] }
 0x542   : > { %6035 = vpow2.f32 %v4255_v20  ;;  %v4064_v43 = vmax.f32 %v4032_v17, %v4000_v6  ;;  %v3539_v33 = vmul.f32 %v6024_v54, %v9004_v30  ;;  %v3737_v62 = vmul.f32 %v6024_v54, %v9013_v13  ;;  %v6026_v40 = vpop.eup %6025  ;;  %v10459_v7 = vld [vmem:[#allocation44_spill] sm:$0xff] }
 0x543   : > { %v4734_v44 = vadd.f32 %v4702_v21, %v4638_v38  ;;  %v10454_v10 = vmax.f32 %v10453_v22, 0.0  ;;  %v10456_v0 = vmax.f32 %v10455_v60, 0.0  ;;  %v10458_v14 = vmax.f32 %v10457_v50, 0.0  ;;  %v6028_v48 = vpop.eup %6027 }
 0x544   : > { %6037 = vpow2.f32 %v4351_v41  ;;  %v4096_v46 = vsub.f32 %v3604_v32, %v4064_v43  ;;  %v4192_v24 = vsub.f32 %v3802_v51, %v4064_v43  ;;  %v4288_v26 = vsub.f32 %v4000_v6, %v4064_v43 }
 0x545   : > { %v4766_v45 = vmul.f32 3.0, %v4734_v44  ;;  %v4541_v23 = vmul.f32 %v4509_v16, %v10454_v10  ;;  %v4605_v35 = vmul.f32 %v4573_v31, %v10456_v0  ;;  %v4701_v5 = vmul.f32 %v4669_v11, %v10458_v14  ;;  %v10466_v0 = vld [vmem:[#allocation148_spill] sm:$0xff] }
 0x546   : > { %v4526_v58 = vmul.f32 %v6028_v48, %v9169_v56  ;;  %v4590_v37 = vmul.f32 %v6028_v48, %v9175_v36  ;;  %v4686_v52 = vmul.f32 %v6028_v48, %v9184_v29  ;;  %v4133_v3 = vmul.f32 1.442695, %v4096_v46  ;;  %v9233_v8 = vpop.eup %6029 }
 0x547   : > { %4798 = vst [vmem:[%s6850_s5 + $0x18] sm:$0xff] %v4766_v45  ;;  %v4637_v34 = vadd.f32 %v4605_v35, %v4541_v23  ;;  %v4229_v28 = vmul.f32 1.442695, %v4192_v24  ;;  %v4325_v19 = vmul.f32 1.442695, %v4288_v26  ;;  %v3571_v4 = vadd.f32 %v3539_v33, %v8598_v47  ;;  %v10465_v23 = vld [vmem:[#allocation147_spill] sm:$0xff] }
 0x548   : > { %v10460_v32 = vmax.f32 %v10459_v7, 0.0  ;;  %v10462_v55 = vmax.f32 %v10461_v27, 0.0  ;;  %v10464_v56 = vmax.f32 %v10463_v53, 0.0  ;;  %6039 = vpow2.f32 %v4133_v3 }
 0x549   : > { %v4733_v2 = vadd.f32 %v4701_v5, %v4637_v34  ;;  %v3603_v29 = vmul.f32 0.33333334, %v3571_v4  ;;  %v3769_v20 = vadd.f32 %v3737_v62, %v8601_v25  ;;  %v3935_v59 = vmul.f32 %v6024_v54, %v9016_v42  ;;  %v6032_v47 = vpop.eup %6031  ;;  %v10467_v34 = vld [vmem:[#allocation136_spill] sm:$0xff]  ;;  %v3224_v4 = vpop.xlane.xlu1 %3223 }
 0x54a   : > { %v4558_v49 = vmul.f32 %v4526_v58, %v10460_v32  ;;  %v4622_v51 = vmul.f32 %v4590_v37, %v10462_v55  ;;  %v4718_v36 = vmul.f32 %v4686_v52, %v10464_v56  ;;  %6041 = vpow2.f32 %v4229_v28  ;;  %v9244_v21 = vpop.eup %6033 }
 0x54b   : > { %v4765_v38 = vmul.f32 3.0, %v4733_v2  ;;  %v3556_v1 = vmul.f32 %v6026_v40, %v9004_v30  ;;  %6043 = vpow2.f32 %v4325_v19  ;;  %v3801_v17 = vmul.f32 0.33333334, %v3769_v20 }
 0x54c   : > { %v4654_v63 = vadd.f32 %v4622_v51, %v4558_v49  ;;  %v3967_v18 = vadd.f32 %v3935_v59, %v8607_v12  ;;  %v3754_v41 = vmul.f32 %v6026_v40, %v9013_v13  ;;  %v3952_v54 = vmul.f32 %v6026_v40, %v9016_v42  ;;  %v9252_v16 = vpop.eup %6035 }
 0x54d   : > { %4797 = vst [vmem:[%s6850_s5 + $0x10] sm:$0xff] %v4765_v38  ;;  %v3588_v25 = vadd.f32 %v3556_v1, %v8824_v61  ;;  %v3555_v44 = vmul.f32 %v6032_v47, %v9004_v30  ;;  %v4031_v11 = vmax.f32 %v3603_v29, %v3801_v17  ;;  %v3753_v33 = vmul.f32 %v6032_v47, %v9013_v13  ;;  %v3222_v38 = vpop.xlane.xlu0 %3221 }
 0x54e   : > { %v4750_v6 = vadd.f32 %v4718_v36, %v4654_v63  ;;  %v3999_v31 = vmul.f32 0.33333334, %v3967_v18  ;;  %v3786_v43 = vadd.f32 %v3754_v41, %v8826_v57  ;;  %v4397_v62 = vadd.f32 %v9252_v16, %v9244_v21  ;;  %v9259_v22 = vpop.eup %6037  ;;  %v3196_v63 = vpop.xlane.xlu1 %3195 }
 0x54f   : > { %v3620_v45 = vmul.f32 0.33333334, %v3588_v25  ;;  %v3984_v61 = vadd.f32 %v3952_v54, %v8829_v15  ;;  %v3587_v60 = vadd.f32 %v3555_v44, %v10465_v23  ;;  %v3785_v35 = vadd.f32 %v3753_v33, %v10466_v0 }
 0x550   : > { %v4782_v12 = vmul.f32 3.0, %v4750_v6  ;;  %v4063_v40 = vmax.f32 %v4031_v11, %v3999_v31  ;;  %v3818_v10 = vmul.f32 0.33333334, %v3786_v43  ;;  %v4429_v57 = vadd.f32 %v9259_v22, %v4397_v62 }
 0x551   : > { %v4016_v50 = vmul.f32 0.33333334, %v3984_v61  ;;  %v3951_v14 = vmul.f32 %v6032_v47, %v9016_v42  ;;  %6045 = vrcp.f32 %v9215_v9  ;;  %v3619_v24 = vmul.f32 0.33333334, %v3587_v60  ;;  %v10468_v61 = vld [vmem:[#allocation163_spill] sm:$0xff]  ;;  %v10470_v60 = vld [vmem:[#allocation165_spill] sm:$0xff] }
 0x552   : > { %4814 = vst [vmem:[%s6850_s5 + $0x98] sm:$0xff] %v4782_v12  ;;  %v4095_v5 = vsub.f32 %v3603_v29, %v4063_v40  ;;  %v4191_v48 = vsub.f32 %v3801_v17, %v4063_v40  ;;  %v4287_v46 = vsub.f32 %v3999_v31, %v4063_v40  ;;  %v4048_v15 = vmax.f32 %v3620_v45, %v3818_v10  ;;  %v9268_v37 = vpop.eup %6039 }
 0x553   : > { %6047 = vrcp.f32 %v4429_v57  ;;  %v3817_v26 = vmul.f32 0.33333334, %v3785_v35  ;;  %v3983_v58 = vadd.f32 %v3951_v14, %v10467_v34  ;;  %v5308_v31 = vmul.f32 -1.442695, %v3224_v4  ;;  %v10471_v57 = vld [vmem:[#allocation91_spill] sm:$0xff] }
 0x554   : > { %v4131_v52 = vmul.f32 1.442695, %v4095_v5  ;;  %v4227_v3 = vmul.f32 1.442695, %v4191_v48  ;;  %v4323_v28 = vmul.f32 1.442695, %v4287_v46  ;;  %v4080_v19 = vmax.f32 %v4048_v15, %v4016_v50  ;;  %v9270_v2 = vpop.eup %6041 }
 0x555   : > { %v4015_v7 = vmul.f32 0.33333334, %v3983_v58  ;;  %v4047_v9 = vmax.f32 %v3619_v24, %v3817_v26  ;;  %6049 = vpow2.f32 %v9210_v39  ;;  %v9273_v32 = vpop.eup %6043  ;;  %v4384_v49 = vadd.f32 %v9270_v2, %v9268_v37  ;;  %v10472_v14 = vld [vmem:[#allocation43_spill] sm:$0xff]  ;;  %v10474_v48 = vld [vmem:[#allocation76_spill] sm:$0xff] }
 0x556   : > { %6051 = vpow2.f32 %v4131_v52  ;;  %v4112_v27 = vsub.f32 %v3620_v45, %v4080_v19  ;;  %v4208_v55 = vsub.f32 %v3818_v10, %v4080_v19  ;;  %v4304_v51 = vsub.f32 %v4016_v50, %v4080_v19  ;;  %v10469_v10 = vld [vmem:[#allocation164_spill] sm:$0xff] }
 0x557   : > { %6053 = vpow2.f32 %v4227_v3  ;;  %v4079_v53 = vmax.f32 %v4047_v9, %v4015_v7  ;;  %v4416_v56 = vadd.f32 %v9273_v32, %v4384_v49  ;;  %v5307_v11 = vmul.f32 -1.442695, %v3222_v38  ;;  %v3228_v3 = vpop.xlane.xlu1 %3227 }
 0x558   : > { %6055 = vpow2.f32 %v4323_v28  ;;  %v4165_v36 = vmul.f32 1.442695, %v4112_v27  ;;  %v4261_v29 = vmul.f32 1.442695, %v4208_v55  ;;  %v4357_v20 = vmul.f32 1.442695, %v4304_v51 }
 0x559   : > { %v4111_v59 = vsub.f32 %v3619_v24, %v4079_v53  ;;  %v4207_v47 = vsub.f32 %v3817_v26, %v4079_v53  ;;  %v4303_v39 = vsub.f32 %v4015_v7, %v4079_v53  ;;  %6057 = vrcp.f32 %v4416_v56  ;;  %v10476_v24 = vld [vmem:[#allocation113_spill] sm:$0xff] }
 0x55a   : > { %6059 = vpow2.f32 %v4165_v36  ;;  %v5294_v43 = vmul.f32 -1.442695, %v3196_v63  ;;  %v2783_v50 = vadd.f32 1.0, %v10471_v57  ;;  %v10473_v5 = vmax.f32 %v10472_v14, 0.0 }
 0x55b   : > { %v6046_v1 = vpop.eup %6045  ;;  %v4163_v17 = vmul.f32 1.442695, %v4111_v59  ;;  %v4259_v18 = vmul.f32 1.442695, %v4207_v47  ;;  %v4355_v41 = vmul.f32 1.442695, %v4303_v39  ;;  %6061 = vpow2.f32 %v4261_v29 }
 0x55c   : > { %v3542_v6 = vmul.f32 %v6046_v1, %v9004_v30  ;;  %v3740_v25 = vmul.f32 %v6046_v1, %v9013_v13  ;;  %v3938_v54 = vmul.f32 %v6046_v1, %v9016_v42  ;;  %6063 = vpow2.f32 %v4357_v20 }
 0x55d   : > { %v6048_v44 = vpop.eup %6047  ;;  %6065 = vpow2.f32 %v4163_v17  ;;  %v10477_v26 = vmax.f32 %v10476_v24, 0.0  ;;  %v5310_v56 = vmul.f32 -1.442695, %v3228_v3  ;;  %v2784_v38 = vadd.f32 1.0, %v9233_v8  ;;  %v10478_v17 = vld [vmem:[#allocation30_spill] sm:$0xff] }
 0x55e   : > { %v4525_v33 = vmul.f32 %v6048_v44, %v9244_v21  ;;  %v4589_v12 = vmul.f32 %v6048_v44, %v9252_v16  ;;  %v4685_v62 = vmul.f32 %v6048_v44, %v9259_v22  ;;  %6067 = vpow2.f32 %v4259_v18  ;;  %v3194_v22 = vpop.xlane.xlu0 %3193 }
 0x55f   : > { %v6050_v45 = vpop.eup %6049  ;;  %v3574_v40 = vadd.f32 %v3542_v6, %v10468_v61  ;;  %v3772_v23 = vadd.f32 %v3740_v25, %v10469_v10  ;;  %v3970_v0 = vadd.f32 %v3938_v54, %v10470_v60  ;;  %v10475_v16 = vmax.f32 %v10474_v48, 0.0  ;;  %v10480_v6 = vld [vmem:[#allocation61_spill] sm:$0xff] }
 0x560   : > { %v9287_v35 = vpop.eup %6051  ;;  %v4557_v21 = vmul.f32 %v4525_v33, %v10473_v5  ;;  %6069 = vpow2.f32 %v4355_v41  ;;  %v4717_v34 = vmul.f32 %v4685_v62, %v10477_v26  ;;  %v3343_v7 = vadd.f32 1.0, %v6050_v45 }
 0x561   : > { %v4621_v46 = vmul.f32 %v4589_v12, %v10475_v16  ;;  %v9294_v15 = vpop.eup %6053  ;;  %v3606_v58 = vmul.f32 0.33333334, %v3574_v40  ;;  %v3804_v52 = vmul.f32 0.33333334, %v3772_v23  ;;  %6071 = vpow2.f32 %v5308_v31 }
 0x562   : > { %v9298_v28 = vpop.eup %6055  ;;  %v4383_v4 = vadd.f32 %v9294_v15, %v9287_v35  ;;  %6073 = vpow2.f32 %v5307_v11  ;;  %v4002_v9 = vmul.f32 0.33333334, %v3970_v0  ;;  %v5293_v27 = vmul.f32 -1.442695, %v3194_v22  ;;  %v3226_v48 = vpop.xlane.xlu0 %3225 }
 0x563   : > { %v4653_v19 = vadd.f32 %v4621_v46, %v4557_v21  ;;  %v4034_v49 = vmax.f32 %v3606_v58, %v3804_v52  ;;  %6075 = vpow2.f32 %v5294_v43  ;;  %v6058_v55 = vpop.eup %6057  ;;  %v10479_v18 = vmax.f32 %v10478_v17, 0.0  ;;  %v10482_v43 = vld [vmem:[#allocation115_spill] sm:$0xff]  ;;  %v10484_v46 = vld [vmem:[#allocation89_spill] sm:$0xff]  ;;  %v10490_v17 = vld [vmem:[#allocation62_spill] sm:$0xff] }
 0x564   : > { %v4415_v53 = vadd.f32 %v9298_v28, %v4383_v4  ;;  %6077 = vrcp.f32 %v3343_v7  ;;  %v9303_v36 = vpop.eup %6059  ;;  %v4512_v29 = vmul.f32 %v6058_v55, %v9268_v37  ;;  %v4576_v20 = vmul.f32 %v6058_v55, %v9270_v2 }
 0x565   : > { %v4749_v51 = vadd.f32 %v4717_v34, %v4653_v19  ;;  %v4672_v59 = vmul.f32 %v6058_v55, %v9273_v32  ;;  %v4066_v47 = vmax.f32 %v4034_v49, %v4002_v9  ;;  %v9308_v39 = vpop.eup %6061  ;;  %v10481_v25 = vmax.f32 %v10480_v6, 0.0 }
 0x566   : > { %6079 = vrcp.f32 %v4415_v53  ;;  %v9311_v1 = vpop.eup %6063  ;;  %v4544_v41 = vmul.f32 %v4512_v29, %v10479_v18  ;;  %v4400_v2 = vadd.f32 %v9308_v39, %v9303_v36  ;;  %v10483_v33 = vmax.f32 %v10482_v43, 0.0  ;;  %v10486_v53 = vld [vmem:[#allocation167_spill] sm:$0xff]  ;;  %v10487_v29 = vld [vmem:[#allocation168_spill] sm:$0xff] }
 0x567   : > { %v4781_v63 = vmul.f32 3.0, %v4749_v51  ;;  %6081 = vrcp.f32 %v2783_v50  ;;  %v4608_v37 = vmul.f32 %v4576_v20, %v10481_v25  ;;  %v9319_v32 = vpop.eup %6065  ;;  %v4098_v54 = vsub.f32 %v3606_v58, %v4066_v47 }
 0x568   : > { %v4194_v44 = vsub.f32 %v3804_v52, %v4066_v47  ;;  %v4290_v8 = vsub.f32 %v4002_v9, %v4066_v47  ;;  %6083 = vpow2.f32 %v5293_v27  ;;  %v9322_v31 = vpop.eup %6067  ;;  %v4704_v12 = vmul.f32 %v4672_v59, %v10483_v33  ;;  %v10485_v27 = vld [vmem:[#allocation166_spill] sm:$0xff]  ;;  %v10488_v47 = vld [vmem:[#allocation29_spill] sm:$0xff] }
 0x569   : > { %4813 = vst [vmem:[%s6850_s5 + $0x90] sm:$0xff] %v4781_v63  ;;  %v4640_v11 = vadd.f32 %v4608_v37, %v4544_v41  ;;  %v4432_v62 = vadd.f32 %v9311_v1, %v4400_v2  ;;  %6085 = vpow2.f32 %v5310_v56  ;;  %v4399_v61 = vadd.f32 %v9322_v31, %v9319_v32  ;;  %v3200_v2 = vpop.xlane.xlu1 %3199 }
 0x56a   : > { %v9327_v45 = vpop.eup %6069  ;;  %6087 = vrcp.f32 %v2784_v38  ;;  %v4137_v40 = vmul.f32 1.442695, %v4098_v54  ;;  %v4233_v10 = vmul.f32 1.442695, %v4194_v44  ;;  %v4329_v0 = vmul.f32 1.442695, %v4290_v8 }
 0x56b   : > { %v6072_v23 = vpop.eup %6071  ;;  %v4736_v60 = vadd.f32 %v4704_v12, %v4640_v11  ;;  %6089 = vrcp.f32 %v4432_v62  ;;  %v4431_v50 = vadd.f32 %v9327_v45, %v4399_v61  ;;  %v5284_v22 = vmul.f32 -1.442695, %v10484_v46  ;;  %v10493_v8 = vld [vmem:[#allocation117_spill] sm:$0xff]  ;;  %v10499_v46 = vld [vmem:[#allocation116_spill] sm:$0xff] }
 0x56c   : > { %v6074_v57 = vpop.eup %6073  ;;  %6091 = vpow2.f32 %v4137_v40  ;;  %v3360_v14 = vadd.f32 1.0, %v6072_v23  ;;  %v5309_v19 = vmul.f32 -1.442695, %v3226_v48  ;;  %v10489_v38 = vmax.f32 %v10488_v47, 0.0  ;;  %v10497_v48 = vld [vmem:[#allocation77_spill] sm:$0xff] }
 0x56d   : > { %v6076_v5 = vpop.eup %6075  ;;  %v4768_v21 = vmul.f32 3.0, %v4736_v60  ;;  %6093 = vpow2.f32 %v4233_v10  ;;  %v3359_v24 = vadd.f32 1.0, %v6074_v57  ;;  %v10491_v18 = vmax.f32 %v10490_v17, 0.0 }
 0x56e   : > { %v6078_v16 = vpop.eup %6077  ;;  %6095 = vrcp.f32 %v4431_v50  ;;  %v3346_v3 = vadd.f32 1.0, %v6076_v5  ;;  %v10494_v11 = vmax.f32 %v10493_v8, 0.0  ;;  %v9363_v57 = vmul.f32 -1.442695, %v3200_v2 }
 0x56f   : > { %4800 = vst [vmem:[%s6850_s5 + $0x28] sm:$0xff] %v4768_v21  ;;  %6097 = vpow2.f32 %v4329_v0  ;;  %v3541_v26 = vmul.f32 %v6078_v16, %v9004_v30  ;;  %v3739_v34 = vmul.f32 %v6078_v16, %v9013_v13  ;;  %v3937_v58 = vmul.f32 %v6078_v16, %v9016_v42 }
 0x570   : > { %v6080_v52 = vpop.eup %6079  ;;  %6099 = vrcp.f32 %v3360_v14  ;;  %v10495_v14 = vld [vmem:[#allocation46_spill] sm:$0xff]  ;;  %v10498_v16 = vmax.f32 %v10497_v48, 0.0 }
 0x571   : > { %v9337_v4 = vpop.eup %6081  ;;  %v4511_v7 = vmul.f32 %v6080_v52, %v9287_v35  ;;  %v4575_v9 = vmul.f32 %v6080_v52, %v9294_v15  ;;  %v4671_v49 = vmul.f32 %v6080_v52, %v9298_v28  ;;  %v3573_v55 = vadd.f32 %v3541_v26, %v10485_v27  ;;  %v10492_v28 = vld [vmem:[#allocation90_spill] sm:$0xff] }
 0x572   : > { %v6084_v51 = vpop.eup %6083  ;;  %6101 = vpow2.f32 %v5284_v22  ;;  %v3771_v56 = vadd.f32 %v3739_v34, %v10486_v53  ;;  %v3969_v20 = vadd.f32 %v3937_v58, %v10487_v29  ;;  %v9352_v6 = vmul.f32 -1.442695, %v10492_v28  ;;  %v10505_v29 = vld [vmem:[#allocation118_spill] sm:$0xff] }
 0x573   : > { %v6086_v59 = vpop.eup %6085  ;;  %v4543_v63 = vmul.f32 %v4511_v7, %v10489_v38  ;;  %v4607_v41 = vmul.f32 %v4575_v9, %v10491_v18  ;;  %v3605_v35 = vmul.f32 0.33333334, %v3573_v55  ;;  %6103 = vrcp.f32 %v3359_v24 }
 0x574   : > { %v9349_v15 = vpop.eup %6087  ;;  %v3803_v25 = vmul.f32 0.33333334, %v3771_v56  ;;  %6105 = vrcp.f32 %v3346_v3  ;;  %v3345_v37 = vadd.f32 1.0, %v6084_v51  ;;  %v4703_v43 = vmul.f32 %v4671_v49, %v10494_v11  ;;  %v10501_v49 = vld [vmem:[#allocation45_spill] sm:$0xff]  ;;  %v10503_v51 = vld [vmem:[#allocation78_spill] sm:$0xff] }
 0x575   : > { %v6090_v54 = vpop.eup %6089  ;;  %v4639_v44 = vadd.f32 %v4607_v41, %v4543_v63  ;;  %v3362_v33 = vadd.f32 1.0, %v6086_v59  ;;  %6107 = vpow2.f32 %v5309_v19  ;;  %v4001_v0 = vmul.f32 0.33333334, %v3969_v20  ;;  %v10507_v41 = vld [vmem:[#allocation144_spill] sm:$0xff] }
 0x576   : > { %v9356_v12 = vpop.eup %6091  ;;  %v4528_v62 = vmul.f32 %v6090_v54, %v9303_v36  ;;  %v4592_v61 = vmul.f32 %v6090_v54, %v9308_v39  ;;  %v4688_v40 = vmul.f32 %v6090_v54, %v9311_v1  ;;  %v4033_v10 = vmax.f32 %v3605_v35, %v3803_v25 }
 0x577   : > { %v9361_v23 = vpop.eup %6093  ;;  %v4735_v60 = vadd.f32 %v4703_v43, %v4639_v44  ;;  %6109 = vrcp.f32 %v3345_v37  ;;  %v10496_v5 = vmax.f32 %v10495_v14, 0.0  ;;  %v10500_v39 = vmax.f32 %v10499_v46, 0.0  ;;  %v10511_v46 = vld [vmem:[#allocation173_spill] sm:$0xff] }
 0x578   : > { %v6096_v50 = vpop.eup %6095  ;;  %v4624_v36 = vmul.f32 %v4592_v61, %v10498_v16  ;;  %v4386_v1 = vadd.f32 %v9361_v23, %v9356_v12  ;;  %v4065_v9 = vmax.f32 %v4033_v10, %v4001_v0  ;;  %6111 = vrcp.f32 %v3362_v33  ;;  %v10510_v16 = vld [vmem:[#allocation156_spill] sm:$0xff] }
 0x579   : > { %v4560_v21 = vmul.f32 %v4528_v62, %v10496_v5  ;;  %v4720_v22 = vmul.f32 %v4688_v40, %v10500_v39  ;;  %v9373_v24 = vpop.eup %6097  ;;  %v4767_v26 = vmul.f32 3.0, %v4735_v60  ;;  %v4527_v34 = vmul.f32 %v6096_v50, %v9319_v32  ;;  %v10509_v40 = vld [vmem:[#allocation155_spill] sm:$0xff] }
 0x57a   : > { %v4591_v58 = vmul.f32 %v6096_v50, %v9322_v31  ;;  %v4687_v52 = vmul.f32 %v6096_v50, %v9327_v45  ;;  %v6100_v3 = vpop.eup %6099  ;;  %v4418_v7 = vadd.f32 %v9373_v24, %v4386_v1  ;;  %v10502_v27 = vmax.f32 %v10501_v49, 0.0  ;;  %v10512_v1 = vld [vmem:[#allocation174_spill] sm:$0xff] }
 0x57b   : > { %v4656_v19 = vadd.f32 %v4624_v36, %v4560_v21  ;;  %4799 = vst [vmem:[%s6850_s5 + $0x20] sm:$0xff] %v4767_v26  ;;  %v10504_v53 = vmax.f32 %v10503_v51, 0.0  ;;  %v10506_v20 = vmax.f32 %v10505_v29, 0.0  ;;  %v3558_v31 = vmul.f32 %v6100_v3, %v9004_v30 }
 0x57c   : > { %v4559_v55 = vmul.f32 %v4527_v34, %v10502_v27  ;;  %v9387_v59 = vpop.eup %6101  ;;  %6113 = vrcp.f32 %v4418_v7  ;;  %v4097_v47 = vsub.f32 %v3605_v35, %v4065_v9  ;;  %v4193_v38 = vsub.f32 %v3803_v25, %v4065_v9  ;;  %v10508_v25 = vld [vmem:[#allocation162_spill] sm:$0xff] }
 0x57d   : > { %v4623_v56 = vmul.f32 %v4591_v58, %v10504_v53  ;;  %v4719_v32 = vmul.f32 %v4687_v52, %v10506_v20  ;;  %v4752_v45 = vadd.f32 %v4720_v22, %v4656_v19  ;;  %v6104_v63 = vpop.eup %6103  ;;  %v4289_v18 = vsub.f32 %v4001_v0, %v4065_v9  ;;  %v10514_v53 = vld [vmem:[#allocation170_spill] sm:$0xff] }
 0x57e   : > { %v3590_v28 = vadd.f32 %v3558_v31, %v10507_v41  ;;  %v3756_v37 = vmul.f32 %v6100_v3, %v9013_v13  ;;  %v6106_v2 = vpop.eup %6105  ;;  %v4135_v44 = vmul.f32 1.442695, %v4097_v47  ;;  %v4231_v8 = vmul.f32 1.442695, %v4193_v38 }
 0x57f   : > { %v4655_v17 = vadd.f32 %v4623_v56, %v4559_v55  ;;  %v4784_v54 = vmul.f32 3.0, %v4752_v45  ;;  %v3954_v11 = vmul.f32 %v6100_v3, %v9016_v42  ;;  %v9392_v43 = vpop.eup %6107  ;;  %v4327_v62 = vmul.f32 1.442695, %v4289_v18  ;;  %v10513_v55 = vld [vmem:[#allocation169_spill] sm:$0xff]  ;;  %v10516_v45 = vld [vmem:[#allocation172_spill] sm:$0xff] }
 0x580   : > { %v3622_v35 = vmul.f32 0.33333334, %v3590_v28  ;;  %v3788_v61 = vadd.f32 %v3756_v37, %v10508_v25  ;;  %6115 = vpow2.f32 %v4135_v44  ;;  %v3557_v60 = vmul.f32 %v6104_v63, %v9004_v30  ;;  %v10517_v44 = vld [vmem:[#allocation32_spill] sm:$0xff] }
 0x581   : > { %v4751_v33 = vadd.f32 %v4719_v32, %v4655_v17  ;;  %4816 = vst [vmem:[%s6850_s5 + $0xa8] sm:$0xff] %v4784_v54  ;;  %v3986_v10 = vadd.f32 %v3954_v11, %v10509_v40  ;;  %v3755_v0 = vmul.f32 %v6104_v63, %v9013_v13  ;;  %v9399_v50 = vpop.eup %6109  ;;  %6117 = vpow2.f32 %v4231_v8  ;;  %v10515_v32 = vld [vmem:[#allocation171_spill] sm:$0xff] }
 0x582   : > { %v3820_v5 = vmul.f32 0.33333334, %v3788_v61  ;;  %v3953_v21 = vmul.f32 %v6104_v63, %v9016_v42  ;;  %6119 = vpow2.f32 %v4327_v62  ;;  %v3589_v36 = vadd.f32 %v3557_v60, %v10510_v16  ;;  %v6112_v52 = vpop.eup %6111  ;;  %v10521_v61 = vld [vmem:[#allocation123_spill] sm:$0xff] }
 0x583   : > { %v4783_v14 = vmul.f32 3.0, %v4751_v33  ;;  %v4018_v48 = vmul.f32 0.33333334, %v3986_v10  ;;  %v3787_v39 = vadd.f32 %v3755_v0, %v10511_v46  ;;  %v3544_v34 = vmul.f32 %v6106_v2, %v9004_v30  ;;  %v10519_v33 = vld [vmem:[#allocation63_spill] sm:$0xff] }
 0x584   : > { %v4050_v22 = vmax.f32 %v3622_v35, %v3820_v5  ;;  %v3985_v26 = vadd.f32 %v3953_v21, %v10512_v1  ;;  %v3742_v58 = vmul.f32 %v6106_v2, %v9013_v13  ;;  %v3621_v3 = vmul.f32 0.33333334, %v3589_v36 }
 0x585   : > { %4815 = vst [vmem:[%s6850_s5 + $0xa0] sm:$0xff] %v4783_v14  ;;  %v3819_v19 = vmul.f32 0.33333334, %v3787_v39  ;;  %v3940_v7 = vmul.f32 %v6106_v2, %v9016_v42  ;;  %v3543_v9 = vmul.f32 %v9399_v50, %v9004_v30  ;;  %v3576_v51 = vadd.f32 %v3544_v34, %v10513_v55 }
 0x586   : > { %v4082_v49 = vmax.f32 %v4050_v22, %v4018_v48  ;;  %v4017_v27 = vmul.f32 0.33333334, %v3985_v26  ;;  %v3774_v56 = vadd.f32 %v3742_v58, %v10514_v53  ;;  %v6114_v29 = vpop.eup %6113  ;;  %v3741_v38 = vmul.f32 %v9399_v50, %v9013_v13 }
 0x587   : > { %v4049_v20 = vmax.f32 %v3621_v3, %v3819_v19  ;;  %v3972_v31 = vadd.f32 %v3940_v7, %v10515_v32  ;;  %v3575_v47 = vadd.f32 %v3543_v9, %v10516_v45  ;;  %v4514_v63 = vmul.f32 %v6114_v29, %v9356_v12  ;;  %v10523_v7 = vld [vmem:[#allocation108_spill] sm:$0xff] }
 0x588   : > { %v4578_v17 = vmul.f32 %v6114_v29, %v9361_v23  ;;  %v4674_v18 = vmul.f32 %v6114_v29, %v9373_v24  ;;  %v4114_v41 = vsub.f32 %v3622_v35, %v4082_v49  ;;  %v4210_v28 = vsub.f32 %v3820_v5, %v4082_v49 }
 0x589   : > { %v4306_v37 = vsub.f32 %v4018_v48, %v4082_v49  ;;  %v4081_v2 = vmax.f32 %v4049_v20, %v4017_v27  ;;  %v3608_v54 = vmul.f32 0.33333334, %v3576_v51  ;;  %v10518_v8 = vmax.f32 %v10517_v44, 0.0 }
 0x58a   : > { %v10520_v62 = vmax.f32 %v10519_v33, 0.0  ;;  %v10522_v40 = vmax.f32 %v10521_v61, 0.0  ;;  %v4169_v60 = vmul.f32 1.442695, %v4114_v41  ;;  %v9426_v12 = vpop.eup %6115  ;;  %v4265_v23 = vmul.f32 1.442695, %v4210_v28 }
 0x58b   : > { %v4546_v11 = vmul.f32 %v4514_v63, %v10518_v8  ;;  %v4361_v0 = vmul.f32 1.442695, %v4306_v37  ;;  %v4113_v24 = vsub.f32 %v3621_v3, %v4081_v2  ;;  %v4209_v35 = vsub.f32 %v3819_v19, %v4081_v2  ;;  %v9428_v14 = vpop.eup %6117  ;;  %v10527_v41 = vld [vmem:[#allocation177_spill] sm:$0xff]  ;;  %v3198_v37 = vpop.xlane.xlu0 %3197 }
 0x58c   : > { %v4610_v25 = vmul.f32 %v4578_v17, %v10520_v62  ;;  %v4706_v10 = vmul.f32 %v4674_v18, %v10522_v40  ;;  %6121 = vpow2.f32 %v4169_v60  ;;  %v4305_v21 = vsub.f32 %v4017_v27, %v4081_v2  ;;  %v9430_v16 = vpop.eup %6119  ;;  %v10526_v17 = vld [vmem:[#allocation176_spill] sm:$0xff] }
 0x58d   : > { %v3806_v48 = vmul.f32 0.33333334, %v3774_v56  ;;  %v4385_v36 = vadd.f32 %v9428_v14, %v9426_v12  ;;  %6123 = vpow2.f32 %v4265_v23  ;;  %v4167_v46 = vmul.f32 1.442695, %v4113_v24  ;;  %v10524_v56 = vld [vmem:[#allocation109_spill] sm:$0xff] }
 0x58e   : > { %v4642_v5 = vadd.f32 %v4610_v25, %v4546_v11  ;;  %v4263_v39 = vmul.f32 1.442695, %v4209_v35  ;;  %6125 = vpow2.f32 %v4361_v0  ;;  %v4359_v1 = vmul.f32 1.442695, %v4305_v21 }
 0x58f   : > { %v4004_v26 = vmul.f32 0.33333334, %v3972_v31  ;;  %v4417_v34 = vadd.f32 %v9430_v16, %v4385_v36  ;;  %6127 = vpow2.f32 %v4167_v46  ;;  %v4036_v58 = vmax.f32 %v3608_v54, %v3806_v48 }
 0x590   : > { %v4738_v22 = vadd.f32 %v4706_v10, %v4642_v5  ;;  %v3607_v3 = vmul.f32 0.33333334, %v3575_v47  ;;  %6129 = vpow2.f32 %v4263_v39  ;;  %v3773_v9 = vadd.f32 %v3741_v38, %v10523_v7  ;;  %v10525_v47 = vld [vmem:[#allocation175_spill] sm:$0xff]  ;;  %v3232_v7 = vpop.xlane.xlu1 %3231 }
 0x591   : > { %v3939_v49 = vmul.f32 %v9399_v50, %v9016_v42  ;;  %6131 = vrcp.f32 %v4417_v34  ;;  %v4068_v27 = vmax.f32 %v4036_v58, %v4004_v26  ;;  %v3560_v55 = vmul.f32 %v6112_v52, %v9004_v30 }
 0x592   : > { %v4770_v19 = vmul.f32 3.0, %v4738_v22  ;;  %v3758_v51 = vmul.f32 %v6112_v52, %v9013_v13  ;;  %6133 = vpow2.f32 %v4359_v1  ;;  %v3805_v53 = vmul.f32 0.33333334, %v3773_v9  ;;  %v3230_v9 = vpop.xlane.xlu0 %3229 }
 0x593   : > { %v3971_v29 = vadd.f32 %v3939_v49, %v10524_v56  ;;  %v3956_v20 = vmul.f32 %v6112_v52, %v9016_v42  ;;  %v4100_v32 = vsub.f32 %v3608_v54, %v4068_v27  ;;  %v4196_v31 = vsub.f32 %v3806_v48, %v4068_v27  ;;  %v10528_v49 = vld [vmem:[#allocation31_spill] sm:$0xff] }
 0x594   : > { %4802 = vst [vmem:[%s6850_s5 + $0x38] sm:$0xff] %v4770_v19  ;;  %v4292_v45 = vsub.f32 %v4004_v26, %v4068_v27  ;;  %v3592_v38 = vadd.f32 %v3560_v55, %v10525_v47  ;;  %v4035_v50 = vmax.f32 %v3607_v3, %v3805_v53  ;;  %v3790_v18 = vadd.f32 %v3758_v51, %v10526_v17  ;;  %v10530_v51 = vld [vmem:[#allocation64_spill] sm:$0xff] }
 0x595   : > { %v4003_v63 = vmul.f32 0.33333334, %v3971_v29  ;;  %v3988_v28 = vadd.f32 %v3956_v20, %v10527_v41  ;;  %v4141_v2 = vmul.f32 1.442695, %v4100_v32  ;;  %v4237_v44 = vmul.f32 1.442695, %v4196_v31 }
 0x596   : > { %v4333_v8 = vmul.f32 1.442695, %v4292_v45  ;;  %6135 = vpow2.f32 %v9363_v57  ;;  %v9447_v11 = vpop.eup %6121  ;;  %v3624_v54 = vmul.f32 0.33333334, %v3592_v38  ;;  %v3822_v33 = vmul.f32 0.33333334, %v3790_v18 }
 0x597   : > { %6137 = vpow2.f32 %v9352_v6  ;;  %v4067_v52 = vmax.f32 %v4035_v50, %v4003_v63  ;;  %v9450_v62 = vpop.eup %6123  ;;  %v3361_v25 = vadd.f32 1.0, %v9392_v43  ;;  %v5295_v61 = vmul.f32 -1.442695, %v3198_v37  ;;  %v10532_v31 = vld [vmem:[#allocation125_spill] sm:$0xff] }
 0x598   : > { %6139 = vpow2.f32 %v4141_v2  ;;  %v9453_v40 = vpop.eup %6125  ;;  %v4402_v10 = vadd.f32 %v9450_v62, %v9447_v11  ;;  %v4020_v0 = vmul.f32 0.33333334, %v3988_v28  ;;  %v4052_v24 = vmax.f32 %v3624_v54, %v3822_v33  ;;  %v3204_v2 = vpop.xlane.xlu1 %3203 }
 0x599   : > { %6141 = vpow2.f32 %v4237_v44  ;;  %v4099_v57 = vsub.f32 %v3607_v3, %v4067_v52  ;;  %v4195_v60 = vsub.f32 %v3805_v53, %v4067_v52  ;;  %v9457_v23 = vpop.eup %6127  ;;  %v4291_v6 = vsub.f32 %v4003_v63, %v4067_v52  ;;  %v3202_v44 = vpop.xlane.xlu0 %3201 }
 0x59a   : > { %6143 = vpow2.f32 %v4333_v8  ;;  %v9459_v35 = vpop.eup %6129  ;;  %v4434_v5 = vadd.f32 %v9453_v40, %v4402_v10  ;;  %v4084_v39 = vmax.f32 %v4052_v24, %v4020_v0  ;;  %v10529_v27 = vmax.f32 %v10528_v49, 0.0  ;;  %v10539_v49 = vld [vmem:[#allocation79_spill] sm:$0xff] }
 0x59b   : > { %v4139_v43 = vmul.f32 1.442695, %v4099_v57  ;;  %v4235_v21 = vmul.f32 1.442695, %v4195_v60  ;;  %6145 = vrcp.f32 %v3361_v25  ;;  %v6132_v48 = vpop.eup %6131  ;;  %v4401_v36 = vadd.f32 %v9459_v35, %v9457_v23 }
 0x59c   : > { %v4331_v46 = vmul.f32 1.442695, %v4291_v6  ;;  %6147 = vpow2.f32 %v5295_v61  ;;  %v9464_v22 = vpop.eup %6133  ;;  %v4513_v1 = vmul.f32 %v6132_v48, %v9426_v12  ;;  %v4577_v26 = vmul.f32 %v6132_v48, %v9428_v14 }
 0x59d   : > { %v4673_v34 = vmul.f32 %v6132_v48, %v9430_v16  ;;  %6149 = vrcp.f32 %v4434_v5  ;;  %v4433_v58 = vadd.f32 %v9464_v22, %v4401_v36  ;;  %v4116_v3 = vsub.f32 %v3624_v54, %v4084_v39 }
 0x59e   : > { %6151 = vpow2.f32 %v4139_v43  ;;  %v4212_v19 = vsub.f32 %v3822_v33, %v4084_v39  ;;  %v4545_v55 = vmul.f32 %v4513_v1, %v10529_v27  ;;  %v10531_v53 = vmax.f32 %v10530_v51, 0.0  ;;  %v10535_v1 = vld [vmem:[#allocation179_spill] sm:$0xff] }
 0x59f   : > { %6153 = vpow2.f32 %v4235_v21  ;;  %v4173_v14 = vmul.f32 1.442695, %v4116_v3  ;;  %v4308_v16 = vsub.f32 %v4020_v0, %v4084_v39  ;;  %v10533_v45 = vmax.f32 %v10532_v31, 0.0 }
 0x5a0   : > { %v4609_v56 = vmul.f32 %v4577_v26, %v10531_v53  ;;  %v6136_v12 = vpop.eup %6135  ;;  %6155 = vrcp.f32 %v4433_v58  ;;  %v4269_v29 = vmul.f32 1.442695, %v4212_v19  ;;  %v3076_v18 = vadd.f32 1.0, %v9387_v59  ;;  %v10537_v19 = vld [vmem:[#allocation48_spill] sm:$0xff] }
 0x5a1   : > { %v9474_v20 = vpop.eup %6137  ;;  %v4705_v47 = vmul.f32 %v4673_v34, %v10533_v45  ;;  %6157 = vpow2.f32 %v4331_v46  ;;  %v3348_v38 = vadd.f32 1.0, %v6136_v12  ;;  %v4365_v50 = vmul.f32 1.442695, %v4308_v16  ;;  %v10534_v46 = vld [vmem:[#allocation178_spill] sm:$0xff]  ;;  %v10536_v34 = vld [vmem:[#allocation180_spill] sm:$0xff] }
 0x5a2   : > { %v4641_v32 = vadd.f32 %v4609_v56, %v4545_v55  ;;  %v9478_v63 = vpop.eup %6139  ;;  %6159 = vpow2.f32 %v4173_v14  ;;  %v5312_v54 = vmul.f32 -1.442695, %v3232_v7  ;;  %v5311_v33 = vmul.f32 -1.442695, %v3230_v9 }
 0x5a3   : > { %v9480_v17 = vpop.eup %6141  ;;  %6161 = vpow2.f32 %v4269_v29  ;;  %v5298_v0 = vmul.f32 -1.442695, %v3204_v2  ;;  %v5297_v24 = vmul.f32 -1.442695, %v3202_v44  ;;  %v10538_v7 = vmax.f32 %v10537_v19, 0.0  ;;  %v10541_v29 = vld [vmem:[#allocation124_spill] sm:$0xff] }
 0x5a4   : > { %v4737_v41 = vadd.f32 %v4705_v47, %v4641_v32  ;;  %v9483_v28 = vpop.eup %6143  ;;  %v4388_v37 = vadd.f32 %v9480_v17, %v9478_v63  ;;  %6163 = vpow2.f32 %v4365_v50  ;;  %v10542_v16 = vmax.f32 %v10541_v29, 0.0  ;;  %v10554_v29 = vld [vmem:[#allocation132_spill] sm:$0xff] }
 0x5a5   : > { %v6146_v8 = vpop.eup %6145  ;;  %6165 = vrcp.f32 %v3348_v38  ;;  %v10543_v38 = vld [vmem:[#allocation47_spill] sm:$0xff] }
 0x5a6   : > { %v4769_v52 = vmul.f32 3.0, %v4737_v41  ;;  %v6148_v25 = vpop.eup %6147  ;;  %v4420_v61 = vadd.f32 %v9483_v28, %v4388_v37  ;;  %v3559_v59 = vmul.f32 %v6146_v8, %v9004_v30  ;;  %v3757_v10 = vmul.f32 %v6146_v8, %v9013_v13 }
 0x5a7   : > { %v3955_v57 = vmul.f32 %v6146_v8, %v9016_v42  ;;  %v6150_v60 = vpop.eup %6149  ;;  %6167 = vrcp.f32 %v3076_v18  ;;  %v3347_v6 = vadd.f32 1.0, %v6148_v25  ;;  %v10544_v50 = vmax.f32 %v10543_v38, 0.0  ;;  %v10547_v25 = vld [vmem:[#allocation126_spill] sm:$0xff] }
 0x5a8   : > { %4801 = vst [vmem:[%s6850_s5 + $0x30] sm:$0xff] %v4769_v52  ;;  %v9492_v5 = vpop.eup %6151  ;;  %v4530_v43 = vmul.f32 %v6150_v60, %v9447_v11  ;;  %v4594_v21 = vmul.f32 %v6150_v60, %v9450_v62  ;;  %v4690_v48 = vmul.f32 %v6150_v60, %v9453_v40  ;;  %6169 = vrcp.f32 %v4420_v61 }
 0x5a9   : > { %v9497_v36 = vpop.eup %6153  ;;  %v3591_v39 = vadd.f32 %v3559_v59, %v10534_v46  ;;  %v3789_v26 = vadd.f32 %v3757_v10, %v10535_v1  ;;  %v3987_v58 = vadd.f32 %v3955_v57, %v10536_v34  ;;  %6171 = vrcp.f32 %v3347_v6 }
 0x5aa   : > { %v6156_v3 = vpop.eup %6155  ;;  %v4562_v9 = vmul.f32 %v4530_v43, %v10538_v7  ;;  %v10540_v11 = vmax.f32 %v10539_v49, 0.0  ;;  %v4387_v62 = vadd.f32 %v9497_v36, %v9492_v5  ;;  %6173 = vpow2.f32 %v5312_v54 }
 0x5ab   : > { %v9508_v40 = vpop.eup %6157  ;;  %v4529_v55 = vmul.f32 %v6156_v3, %v9457_v23  ;;  %v4593_v51 = vmul.f32 %v6156_v3, %v9459_v35  ;;  %v4689_v53 = vmul.f32 %v6156_v3, %v9464_v22  ;;  %v3623_v56 = vmul.f32 0.33333334, %v3591_v39  ;;  %v10545_v23 = vld [vmem:[#allocation80_spill] sm:$0xff] }
 0x5ac   : > { %v4626_v27 = vmul.f32 %v4594_v21, %v10540_v11  ;;  %v9513_v12 = vpop.eup %6159  ;;  %v4722_v32 = vmul.f32 %v4690_v48, %v10542_v16  ;;  %v4419_v31 = vadd.f32 %v9508_v40, %v4387_v62  ;;  %v3821_v45 = vmul.f32 0.33333334, %v3789_v26  ;;  %v10550_v62 = vld [vmem:[#allocation34_spill] sm:$0xff] }
 0x5ad   : > { %v9518_v47 = vpop.eup %6161  ;;  %v4561_v18 = vmul.f32 %v4529_v55, %v10544_v50  ;;  %v10546_v41 = vmax.f32 %v10545_v23, 0.0  ;;  %v4019_v37 = vmul.f32 0.33333334, %v3987_v58  ;;  %6175 = vpow2.f32 %v5311_v33 }
 0x5ae   : > { %v4658_v14 = vadd.f32 %v4626_v27, %v4562_v9  ;;  %v9524_v22 = vpop.eup %6163  ;;  %6177 = vrcp.f32 %v4419_v31  ;;  %v4404_v44 = vadd.f32 %v9518_v47, %v9513_v12  ;;  %v4051_v8 = vmax.f32 %v3623_v56, %v3821_v45  ;;  %v10557_v31 = vld [vmem:[#allocation122_spill] sm:$0xff] }
 0x5af   : > { %v4625_v35 = vmul.f32 %v4593_v51, %v10546_v41  ;;  %v6166_v52 = vpop.eup %6165  ;;  %v10548_v61 = vmax.f32 %v10547_v25, 0.0  ;;  %6179 = vpow2.f32 %v5298_v0  ;;  %v10551_v55 = vmax.f32 %v10550_v62, 0.0 }
 0x5b0   : > { %v4754_v2 = vadd.f32 %v4722_v32, %v4658_v14  ;;  %v4436_v57 = vadd.f32 %v9524_v22, %v4404_v44  ;;  %v4083_v60 = vmax.f32 %v4051_v8, %v4019_v37  ;;  %v3546_v33 = vmul.f32 %v6166_v52, %v9004_v30  ;;  %v10556_v32 = vld [vmem:[#allocation121_spill] sm:$0xff] }
 0x5b1   : > { %v4657_v54 = vadd.f32 %v4625_v35, %v4561_v18  ;;  %v4721_v59 = vmul.f32 %v4689_v53, %v10548_v61  ;;  %v9532_v6 = vpop.eup %6167  ;;  %v3744_v21 = vmul.f32 %v6166_v52, %v9013_v13  ;;  %v3942_v48 = vmul.f32 %v6166_v52, %v9016_v42  ;;  %v10552_v53 = vld [vmem:[#allocation65_spill] sm:$0xff] }
 0x5b2   : > { %v4786_v10 = vmul.f32 3.0, %v4754_v2  ;;  %6181 = vpow2.f32 %v5297_v24  ;;  %v6170_v46 = vpop.eup %6169  ;;  %v4115_v39 = vsub.f32 %v3623_v56, %v4083_v60  ;;  %v4211_v0 = vsub.f32 %v3821_v45, %v4083_v60  ;;  %v10549_v24 = vld [vmem:[#allocation141_spill] sm:$0xff]  ;;  %v10558_v2 = vld [vmem:[#allocation127_spill] sm:$0xff] }
 0x5b3   : > { %v4753_v43 = vadd.f32 %v4721_v59, %v4657_v54  ;;  %6183 = vrcp.f32 %v4436_v57  ;;  %v4307_v1 = vsub.f32 %v4019_v37, %v4083_v60  ;;  %v6172_v26 = vpop.eup %6171  ;;  %v4516_v58 = vmul.f32 %v6170_v46, %v9478_v63  ;;  %v10559_v60 = vld [vmem:[#allocation146_spill] sm:$0xff] }
 0x5b4   : > { %4818 = vst [vmem:[%s6850_s5 + $0xb8] sm:$0xff] %v4786_v10  ;;  %v4580_v3 = vmul.f32 %v6170_v46, %v9480_v17  ;;  %v4676_v19 = vmul.f32 %v6170_v46, %v9483_v28  ;;  %v6174_v7 = vpop.eup %6173  ;;  %v4171_v9 = vmul.f32 1.442695, %v4115_v39  ;;  %v4267_v49 = vmul.f32 1.442695, %v4211_v0  ;;  %v10561_v39 = vld [vmem:[#allocation33_spill] sm:$0xff] }
 0x5b5   : > { %v4785_v34 = vmul.f32 3.0, %v4753_v43  ;;  %v4363_v11 = vmul.f32 1.442695, %v4307_v1  ;;  %v3578_v27 = vadd.f32 %v3546_v33, %v10549_v24  ;;  %v4548_v51 = vmul.f32 %v4516_v58, %v10551_v55  ;;  %v10560_v43 = vld [vmem:[#allocation158_spill] sm:$0xff] }
 0x5b6   : > { %v10553_v56 = vmax.f32 %v10552_v53, 0.0  ;;  %v10555_v16 = vmax.f32 %v10554_v29, 0.0  ;;  %v3776_v17 = vadd.f32 %v3744_v21, %v10556_v32  ;;  %6185 = vpow2.f32 %v4171_v9 }
 0x5b7   : > { %4817 = vst [vmem:[%s6850_s5 + $0xb0] sm:$0xff] %v4785_v34  ;;  %v3610_v28 = vmul.f32 0.33333334, %v3578_v27  ;;  %v3974_v45 = vadd.f32 %v3942_v48, %v10557_v31  ;;  %v3545_v38 = vmul.f32 %v6172_v26, %v9004_v30  ;;  %v6176_v50 = vpop.eup %6175  ;;  %6187 = vpow2.f32 %v4267_v49 }
 0x5b8   : > { %v4612_v14 = vmul.f32 %v4580_v3, %v10553_v56  ;;  %v4708_v63 = vmul.f32 %v4676_v19, %v10555_v16  ;;  %v3808_v23 = vmul.f32 0.33333334, %v3776_v17  ;;  %v3743_v41 = vmul.f32 %v6172_v26, %v9013_v13  ;;  %v6178_v35 = vpop.eup %6177  ;;  %v10567_v16 = vld [vmem:[#allocation50_spill] sm:$0xff]  ;;  %v10569_v17 = vld [vmem:[#allocation81_spill] sm:$0xff] }
 0x5b9   : > { %6189 = vpow2.f32 %v4363_v11  ;;  %v4006_v37 = vmul.f32 0.33333334, %v3974_v45  ;;  %v3577_v44 = vadd.f32 %v3545_v38, %v10558_v2  ;;  %v3941_v8 = vmul.f32 %v6172_v26, %v9016_v42  ;;  %v6180_v52 = vpop.eup %6179  ;;  %v10563_v26 = vld [vmem:[#allocation66_spill] sm:$0xff] }
 0x5ba   : > { %v4644_v18 = vadd.f32 %v4612_v14, %v4548_v51  ;;  %v4515_v25 = vmul.f32 %v6178_v35, %v9492_v5  ;;  %v4579_v61 = vmul.f32 %v6178_v35, %v9497_v36  ;;  %v4675_v59 = vmul.f32 %v6178_v35, %v9508_v40  ;;  %v10565_v5 = vld [vmem:[#allocation134_spill] sm:$0xff] }
 0x5bb   : > { %v4038_v10 = vmax.f32 %v3610_v28, %v3808_v23  ;;  %v3609_v57 = vmul.f32 0.33333334, %v3577_v44  ;;  %v3775_v33 = vadd.f32 %v3743_v41, %v10559_v60  ;;  %v3973_v21 = vadd.f32 %v3941_v8, %v10560_v43 }
 0x5bc   : > { %v4740_v54 = vadd.f32 %v4708_v63, %v4644_v18  ;;  %v6182_v48 = vpop.eup %6181  ;;  %v10562_v0 = vmax.f32 %v10561_v39, 0.0  ;;  %v10564_v34 = vmax.f32 %v10563_v26, 0.0  ;;  %v10566_v3 = vmax.f32 %v10565_v5, 0.0  ;;  %v3234_v39 = vpop.xlane.xlu0 %3233 }
 0x5bd   : > { %v6184_v19 = vpop.eup %6183  ;;  %v4070_v9 = vmax.f32 %v4038_v10, %v4006_v37  ;;  %v3807_v40 = vmul.f32 0.33333334, %v3775_v33  ;;  %v4005_v49 = vmul.f32 0.33333334, %v3973_v21  ;;  %v3364_v11 = vadd.f32 1.0, %v6174_v7  ;;  %v10571_v7 = vld [vmem:[#allocation133_spill] sm:$0xff] }
 0x5be   : > { %v4772_v46 = vmul.f32 3.0, %v4740_v54  ;;  %v4547_v1 = vmul.f32 %v4515_v25, %v10562_v0  ;;  %v4611_v58 = vmul.f32 %v4579_v61, %v10564_v34  ;;  %v4707_v36 = vmul.f32 %v4675_v59, %v10566_v3  ;;  %v3236_v61 = vpop.xlane.xlu1 %3235 }
 0x5bf   : > { %v4532_v27 = vmul.f32 %v6184_v19, %v9513_v12  ;;  %v4596_v62 = vmul.f32 %v6184_v19, %v9518_v47  ;;  %v4692_v55 = vmul.f32 %v6184_v19, %v9524_v22  ;;  %v4102_v51 = vsub.f32 %v3610_v28, %v4070_v9 }
 0x5c0   : > { %4804 = vst [vmem:[%s6850_s5 + $0x48] sm:$0xff] %v4772_v46  ;;  %v4643_v24 = vadd.f32 %v4611_v58, %v4547_v1  ;;  %v4198_v53 = vsub.f32 %v3808_v23, %v4070_v9  ;;  %v4294_v56 = vsub.f32 %v4006_v37, %v4070_v9  ;;  %v4037_v14 = vmax.f32 %v3609_v57, %v3807_v40  ;;  %v6186_v41 = vpop.eup %6185 }
 0x5c1   : > { %v10568_v63 = vmax.f32 %v10567_v16, 0.0  ;;  %v10570_v31 = vmax.f32 %v10569_v17, 0.0  ;;  %v10572_v38 = vmax.f32 %v10571_v7, 0.0  ;;  %v4145_v12 = vmul.f32 1.442695, %v4102_v51  ;;  %v6188_v28 = vpop.eup %6187 }
 0x5c2   : > { %v4739_v29 = vadd.f32 %v4707_v36, %v4643_v24  ;;  %v4241_v47 = vmul.f32 1.442695, %v4198_v53  ;;  %v4337_v35 = vmul.f32 1.442695, %v4294_v56  ;;  %v4069_v22 = vmax.f32 %v4037_v14, %v4005_v49  ;;  %v3208_v1 = vpop.xlane.xlu1 %3207 }
 0x5c3   : > { %v4564_v32 = vmul.f32 %v4532_v27, %v10568_v63  ;;  %v4628_v45 = vmul.f32 %v4596_v62, %v10570_v31  ;;  %v4724_v18 = vmul.f32 %v4692_v55, %v10572_v38  ;;  %6191 = vrcp.f32 %v3364_v11  ;;  %v6190_v44 = vpop.eup %6189  ;;  %v10574_v11 = vld [vmem:[#allocation182_spill] sm:$0xff]  ;;  %v10575_v27 = vld [vmem:[#allocation183_spill] sm:$0xff] }
 0x5c4   : > { %v4771_v23 = vmul.f32 3.0, %v4739_v29  ;;  %v3363_v2 = vadd.f32 1.0, %v6176_v50  ;;  %v4403_v8 = vadd.f32 %v6188_v28, %v6186_v41  ;;  %6193 = vpow2.f32 %v4145_v12 }
 0x5c5   : > { %v4660_v37 = vadd.f32 %v4628_v45, %v4564_v32  ;;  %v4101_v54 = vsub.f32 %v3609_v57, %v4069_v22  ;;  %v4197_v25 = vsub.f32 %v3807_v40, %v4069_v22  ;;  %6195 = vpow2.f32 %v4241_v47  ;;  %v10573_v40 = vld [vmem:[#allocation181_spill] sm:$0xff] }
 0x5c6   : > { %4803 = vst [vmem:[%s6850_s5 + $0x40] sm:$0xff] %v4771_v23  ;;  %v4293_v10 = vsub.f32 %v4005_v49, %v4069_v22  ;;  %v4435_v60 = vadd.f32 %v6190_v44, %v4403_v8  ;;  %6197 = vpow2.f32 %v4337_v35  ;;  %v3350_v50 = vadd.f32 1.0, %v6180_v52  ;;  %v10576_v47 = vld [vmem:[#allocation49_spill] sm:$0xff]  ;;  %v10578_v23 = vld [vmem:[#allocation82_spill] sm:$0xff] }
 0x5c7   : > { %v4756_v59 = vadd.f32 %v4724_v18, %v4660_v37  ;;  %v4143_v33 = vmul.f32 1.442695, %v4101_v54  ;;  %v4239_v43 = vmul.f32 1.442695, %v4197_v25  ;;  %6199 = vrcp.f32 %v3363_v2 }
 0x5c8   : > { %v4335_v46 = vmul.f32 1.442695, %v4293_v10  ;;  %6201 = vrcp.f32 %v4435_v60  ;;  %v3349_v57 = vadd.f32 1.0, %v6182_v48  ;;  %v5314_v0 = vmul.f32 -1.442695, %v3236_v61  ;;  %v10582_v61 = vld [vmem:[#allocation184_spill] sm:$0xff] }
 0x5c9   : > { %v4788_v21 = vmul.f32 3.0, %v4756_v59  ;;  %6203 = vpow2.f32 %v4143_v33  ;;  %v5313_v26 = vmul.f32 -1.442695, %v3234_v39  ;;  %v5300_v58 = vmul.f32 -1.442695, %v3208_v1  ;;  %v10583_v10 = vld [vmem:[#allocation185_spill] sm:$0xff] }
 0x5ca   : > { %6205 = vpow2.f32 %v4239_v43  ;;  %v10577_v35 = vmax.f32 %v10576_v47, 0.0  ;;  %v10579_v37 = vmax.f32 %v10578_v23, 0.0  ;;  %v10584_v33 = vld [vmem:[#allocation186_spill] sm:$0xff]  ;;  %v10588_v47 = vld [vmem:[#allocation131_spill] sm:$0xff] }
 0x5cb   : > { %4820 = vst [vmem:[%s6850_s5 + $0xc8] sm:$0xff] %v4788_v21  ;;  %6207 = vpow2.f32 %v4335_v46 }
 0x5cc   : > { %6209 = vrcp.f32 %v3350_v50 }
 0x5cd   : > { %v6192_v34 = vpop.eup %6191  ;;  %6211 = vrcp.f32 %v3349_v57 }
 0x5ce   : > { %v9577_v5 = vpop.eup %6193  ;;  %v3562_v3 = vmul.f32 %v6192_v34, %v9004_v30  ;;  %v3760_v36 = vmul.f32 %v6192_v34, %v9013_v13  ;;  %v3958_v52 = vmul.f32 %v6192_v34, %v9016_v42  ;;  %6213 = vpow2.f32 %v5314_v0 }
 0x5cf   : > { %v9582_v19 = vpop.eup %6195  ;;  %6215 = vpow2.f32 %v5313_v26 }
 0x5d0   : > { %v9584_v48 = vpop.eup %6197  ;;  %v4390_v9 = vadd.f32 %v9582_v19, %v9577_v5  ;;  %v3594_v49 = vadd.f32 %v3562_v3, %v10573_v40  ;;  %v3792_v24 = vadd.f32 %v3760_v36, %v10574_v11  ;;  %v3990_v62 = vadd.f32 %v3958_v52, %v10575_v27 }
 0x5d1   : > { %v6200_v55 = vpop.eup %6199  ;;  %6217 = vpow2.f32 %v5300_v58 }
 0x5d2   : > { %v6202_v51 = vpop.eup %6201  ;;  %v4422_v53 = vadd.f32 %v9584_v48, %v4390_v9  ;;  %v3626_v56 = vmul.f32 0.33333334, %v3594_v49  ;;  %v3824_v14 = vmul.f32 0.33333334, %v3792_v24  ;;  %v4022_v29 = vmul.f32 0.33333334, %v3990_v62 }
 0x5d3   : > { %v9592_v16 = vpop.eup %6203  ;;  %v4531_v63 = vmul.f32 %v6202_v51, %v6186_v41  ;;  %v4595_v32 = vmul.f32 %v6202_v51, %v6188_v28  ;;  %v4691_v17 = vmul.f32 %v6202_v51, %v6190_v44  ;;  %v3561_v31 = vmul.f32 %v6200_v55, %v9004_v30  ;;  %v10580_v28 = vld [vmem:[#allocation135_spill] sm:$0xff]  ;;  %v10585_v24 = vld [vmem:[#allocation114_spill] sm:$0xff] }
 0x5d4   : > { %v9595_v45 = vpop.eup %6205  ;;  %6219 = vrcp.f32 %v4422_v53  ;;  %v4054_v7 = vmax.f32 %v3626_v56, %v3824_v14  ;;  %v3759_v38 = vmul.f32 %v6200_v55, %v9013_v13  ;;  %v3957_v18 = vmul.f32 %v6200_v55, %v9016_v42  ;;  %v10586_v53 = vld [vmem:[#allocation119_spill] sm:$0xff] }
 0x5d5   : > { %v9599_v12 = vpop.eup %6207  ;;  %v4563_v22 = vmul.f32 %v4531_v63, %v10577_v35  ;;  %v4627_v41 = vmul.f32 %v4595_v32, %v10579_v37  ;;  %v10581_v2 = vmax.f32 %v10580_v28, 0.0  ;;  %v4389_v8 = vadd.f32 %v9595_v45, %v9592_v16 }
 0x5d6   : > { %v6210_v54 = vpop.eup %6209  ;;  %v4086_v25 = vmax.f32 %v4054_v7, %v4022_v29  ;;  %v3593_v59 = vadd.f32 %v3561_v31, %v10582_v61  ;;  %v3791_v60 = vadd.f32 %v3759_v38, %v10583_v10  ;;  %v3989_v43 = vadd.f32 %v3957_v18, %v10584_v33  ;;  %v10587_v7 = vld [vmem:[#allocation120_spill] sm:$0xff]  ;;  %v10592_v33 = vld [vmem:[#allocation67_spill] sm:$0xff] }
 0x5d7   : > { %v4723_v44 = vmul.f32 %v4691_v17, %v10581_v2  ;;  %v6212_v21 = vpop.eup %6211  ;;  %v4659_v46 = vadd.f32 %v4627_v41, %v4563_v22  ;;  %v4421_v50 = vadd.f32 %v9599_v12, %v4389_v8  ;;  %v3548_v39 = vmul.f32 %v6210_v54, %v9004_v30  ;;  %v10589_v22 = vld [vmem:[#allocation137_spill] sm:$0xff] }
 0x5d8   : > { %v3746_v57 = vmul.f32 %v6210_v54, %v9013_v13  ;;  %v9615_v0 = vpop.eup %6213  ;;  %v4118_v1 = vsub.f32 %v3626_v56, %v4086_v25  ;;  %v4214_v26 = vsub.f32 %v3824_v14, %v4086_v25  ;;  %v4310_v34 = vsub.f32 %v4022_v29, %v4086_v25 }
 0x5d9   : > { %v3625_v58 = vmul.f32 0.33333334, %v3593_v59  ;;  %v9617_v3 = vpop.eup %6215  ;;  %v4755_v36 = vadd.f32 %v4723_v44, %v4659_v46  ;;  %6221 = vrcp.f32 %v4421_v50  ;;  %v3823_v52 = vmul.f32 0.33333334, %v3791_v60  ;;  %v10590_v59 = vld [vmem:[#allocation36_spill] sm:$0xff] }
 0x5da   : > { %v4021_v9 = vmul.f32 0.33333334, %v3989_v43  ;;  %v4177_v40 = vmul.f32 1.442695, %v4118_v1  ;;  %v4273_v49 = vmul.f32 1.442695, %v4214_v26  ;;  %v3580_v27 = vadd.f32 %v3548_v39, %v10585_v24 }
 0x5db   : > { %v4369_v11 = vmul.f32 1.442695, %v4310_v34  ;;  %v9620_v62 = vpop.eup %6217  ;;  %v4787_v55 = vmul.f32 3.0, %v4755_v36  ;;  %v4053_v51 = vmax.f32 %v3625_v58, %v3823_v52  ;;  %v3778_v56 = vadd.f32 %v3746_v57, %v10586_v53  ;;  %v10594_v50 = vld [vmem:[#allocation140_spill] sm:$0xff]  ;;  %v10596_v36 = vld [vmem:[#allocation138_spill] sm:$0xff] }
 0x5dc   : > { %v3944_v14 = vmul.f32 %v6210_v54, %v9016_v42  ;;  %6223 = vpow2.f32 %v4177_v40  ;;  %v3612_v29 = vmul.f32 0.33333334, %v3580_v27  ;;  %v3547_v63 = vmul.f32 %v6212_v21, %v9004_v30 }
 0x5dd   : > { %v3745_v32 = vmul.f32 %v6212_v21, %v9013_v13  ;;  %4819 = vst [vmem:[%s6850_s5 + $0xc0] sm:$0xff] %v4787_v55  ;;  %6225 = vpow2.f32 %v4273_v49  ;;  %v4085_v17 = vmax.f32 %v4053_v51, %v4021_v9  ;;  %v3810_v31 = vmul.f32 0.33333334, %v3778_v56  ;;  %v10597_v51 = vld [vmem:[#allocation35_spill] sm:$0xff] }
 0x5de   : > { %v3976_v38 = vadd.f32 %v3944_v14, %v10587_v7  ;;  %v6220_v18 = vpop.eup %6219  ;;  %6227 = vpow2.f32 %v4369_v11  ;;  %v3579_v35 = vadd.f32 %v3547_v63, %v10588_v47  ;;  %v3943_v37 = vmul.f32 %v6212_v21, %v9016_v42  ;;  %v10599_v14 = vld [vmem:[#allocation68_spill] sm:$0xff] }
 0x5df   : > { %v3777_v23 = vadd.f32 %v3745_v32, %v10589_v22  ;;  %v4518_v41 = vmul.f32 %v6220_v18, %v9577_v5  ;;  %v4582_v28 = vmul.f32 %v6220_v18, %v9582_v19  ;;  %v4678_v2 = vmul.f32 %v6220_v18, %v9584_v48 }
 0x5e0   : > { %v4117_v44 = vsub.f32 %v3625_v58, %v4085_v17  ;;  %v4213_v8 = vsub.f32 %v3823_v52, %v4085_v17  ;;  %v4309_v54 = vsub.f32 %v4021_v9, %v4085_v17  ;;  %v4008_v25 = vmul.f32 0.33333334, %v3976_v38  ;;  %v10601_v17 = vld [vmem:[#allocation142_spill] sm:$0xff] }
 0x5e1   : > { %v4040_v61 = vmax.f32 %v3612_v29, %v3810_v31  ;;  %v10591_v10 = vmax.f32 %v10590_v59, 0.0  ;;  %v10593_v43 = vmax.f32 %v10592_v33, 0.0  ;;  %v10595_v39 = vmax.f32 %v10594_v50, 0.0 }
 0x5e2   : > { %v4175_v57 = vmul.f32 1.442695, %v4117_v44  ;;  %v4271_v5 = vmul.f32 1.442695, %v4213_v8  ;;  %v4367_v1 = vmul.f32 1.442695, %v4309_v54  ;;  %v3975_v52 = vadd.f32 %v3943_v37, %v10596_v36 }
 0x5e3   : > { %v4550_v60 = vmul.f32 %v4518_v41, %v10591_v10  ;;  %v4614_v46 = vmul.f32 %v4582_v28, %v10593_v43  ;;  %v4710_v21 = vmul.f32 %v4678_v2, %v10595_v39  ;;  %v4072_v19 = vmax.f32 %v4040_v61, %v4008_v25  ;;  %v6222_v48 = vpop.eup %6221  ;;  %v3240_v39 = vpop.xlane.xlu1 %3239 }
 0x5e4   : > { %v3611_v26 = vmul.f32 0.33333334, %v3579_v35  ;;  %6229 = vpow2.f32 %v4175_v57  ;;  %v3809_v58 = vmul.f32 0.33333334, %v3777_v23  ;;  %v4517_v9 = vmul.f32 %v6222_v48, %v9592_v16 }
 0x5e5   : > { %v4646_v34 = vadd.f32 %v4614_v46, %v4550_v60  ;;  %v4581_v40 = vmul.f32 %v6222_v48, %v9595_v45  ;;  %v4677_v49 = vmul.f32 %v6222_v48, %v9599_v12  ;;  %6231 = vpow2.f32 %v4271_v5 }
 0x5e6   : > { %6233 = vpow2.f32 %v4367_v1  ;;  %v4104_v24 = vsub.f32 %v3612_v29, %v4072_v19  ;;  %v4200_v27 = vsub.f32 %v3810_v31, %v4072_v19  ;;  %v6224_v55 = vpop.eup %6223  ;;  %v10598_v53 = vmax.f32 %v10597_v51, 0.0 }
 0x5e7   : > { %v4742_v11 = vadd.f32 %v4710_v21, %v4646_v34  ;;  %v10600_v63 = vmax.f32 %v10599_v14, 0.0  ;;  %v10602_v7 = vmax.f32 %v10601_v17, 0.0  ;;  %v4296_v38 = vsub.f32 %v4008_v25, %v4072_v19  ;;  %v6226_v45 = vpop.eup %6225  ;;  %v3206_v25 = vpop.xlane.xlu0 %3205  ;;  %v10603_v14 = vld [vmem:[#allocation52_spill] sm:$0xff]  ;;  %v10605_v17 = vld [vmem:[#allocation83_spill] sm:$0xff] }
 0x5e8   : > { %v4549_v56 = vmul.f32 %v4517_v9, %v10598_v53  ;;  %v4149_v12 = vmul.f32 1.442695, %v4104_v24  ;;  %v4245_v47 = vmul.f32 1.442695, %v4200_v27  ;;  %v4039_v35 = vmax.f32 %v3611_v26, %v3809_v58  ;;  %v6228_v22 = vpop.eup %6227 }
 0x5e9   : > { %v4613_v32 = vmul.f32 %v4581_v40, %v10600_v63  ;;  %v4709_v16 = vmul.f32 %v4677_v49, %v10602_v7  ;;  %v4774_v18 = vmul.f32 3.0, %v4742_v11  ;;  %v4406_v31 = vadd.f32 %v6226_v45, %v6224_v55 }
 0x5ea   : > { %v4341_v23 = vmul.f32 1.442695, %v4296_v38  ;;  %v4007_v37 = vmul.f32 0.33333334, %v3975_v52  ;;  %6235 = vpow2.f32 %v4149_v12  ;;  %v3366_v41 = vadd.f32 1.0, %v9615_v0  ;;  %v10609_v12 = vld [vmem:[#allocation187_spill] sm:$0xff] }
 0x5eb   : > { %v4645_v29 = vadd.f32 %v4613_v32, %v4549_v56  ;;  %4806 = vst [vmem:[%s6850_s5 + $0x58] sm:$0xff] %v4774_v18  ;;  %v3365_v28 = vadd.f32 1.0, %v9617_v3  ;;  %v4438_v44 = vadd.f32 %v6228_v22, %v4406_v31  ;;  %6237 = vpow2.f32 %v4245_v47  ;;  %v3238_v1 = vpop.xlane.xlu0 %3237 }
 0x5ec   : > { %v4071_v8 = vmax.f32 %v4039_v35, %v4007_v37  ;;  %6239 = vpow2.f32 %v4341_v23  ;;  %v3352_v54 = vadd.f32 1.0, %v9620_v62  ;;  %v3075_v21 = vadd.f32 1.0, %v9474_v20  ;;  %v10610_v35 = vld [vmem:[#allocation188_spill] sm:$0xff] }
 0x5ed   : > { %v4741_v2 = vadd.f32 %v4709_v16, %v4645_v29  ;;  %6241 = vrcp.f32 %v4438_v44  ;;  %v5299_v5 = vmul.f32 -1.442695, %v3206_v25  ;;  %v5316_v19 = vmul.f32 -1.442695, %v3240_v39  ;;  %v10611_v29 = vld [vmem:[#allocation189_spill] sm:$0xff]  ;;  %v10614_v39 = vld [vmem:[#allocation192_spill] sm:$0xff] }
 0x5ee   : > { %v4103_v59 = vsub.f32 %v3611_v26, %v4071_v8  ;;  %v4199_v10 = vsub.f32 %v3809_v58, %v4071_v8  ;;  %v9654_v60 = vpop.eup %6229  ;;  %v4295_v33 = vsub.f32 %v4007_v37, %v4071_v8  ;;  %6243 = vrcp.f32 %v3366_v41 }
 0x5ef   : > { %v4773_v61 = vmul.f32 3.0, %v4741_v2  ;;  %v9656_v0 = vpop.eup %6231  ;;  %6245 = vrcp.f32 %v3365_v28  ;;  %v5315_v34 = vmul.f32 -1.442695, %v3238_v1  ;;  %v10604_v63 = vmax.f32 %v10603_v14, 0.0 }
 0x5f0   : > { %v4147_v3 = vmul.f32 1.442695, %v4103_v59  ;;  %v4243_v43 = vmul.f32 1.442695, %v4199_v10  ;;  %v6234_v46 = vpop.eup %6233  ;;  %v4405_v50 = vadd.f32 %v9656_v0, %v9654_v60  ;;  %v4339_v62 = vmul.f32 1.442695, %v4295_v33 }
 0x5f1   : > { %4805 = vst [vmem:[%s6850_s5 + $0x50] sm:$0xff] %v4773_v61  ;;  %6247 = vrcp.f32 %v3352_v54  ;;  %v10606_v7 = vmax.f32 %v10605_v17, 0.0 }
 0x5f2   : > { %6249 = vpow2.f32 %v4147_v3  ;;  %v4437_v57 = vadd.f32 %v6234_v46, %v4405_v50  ;;  %v10612_v3 = vld [vmem:[#allocation190_spill] sm:$0xff]  ;;  %v10613_v50 = vld [vmem:[#allocation191_spill] sm:$0xff] }
 0x5f3   : > { %6251 = vpow2.f32 %v4243_v43 }
 0x5f4   : > { %6253 = vpow2.f32 %v4339_v62  ;;  %v9662_v26 = vpop.eup %6235 }
 0x5f5   : > { %6255 = vrcp.f32 %v4437_v57  ;;  %v9664_v48 = vpop.eup %6237 }
 0x5f6   : > { %6257 = vrcp.f32 %v3075_v21  ;;  %v9666_v58 = vpop.eup %6239  ;;  %v4392_v36 = vadd.f32 %v9664_v48, %v9662_v26 }
 0x5f7   : > { %6259 = vpow2.f32 %v5299_v5  ;;  %v6242_v20 = vpop.eup %6241 }
 0x5f8   : > { %6261 = vpow2.f32 %v5316_v19  ;;  %v6244_v52 = vpop.eup %6243  ;;  %v4534_v9 = vmul.f32 %v6242_v20, %v6224_v55  ;;  %v4598_v40 = vmul.f32 %v6242_v20, %v6226_v45  ;;  %v4694_v49 = vmul.f32 %v6242_v20, %v6228_v22  ;;  %v10607_v55 = vld [vmem:[#allocation143_spill] sm:$0xff] }
 0x5f9   : > { %v4424_v11 = vadd.f32 %v9666_v58, %v4392_v36  ;;  %v6246_v24 = vpop.eup %6245  ;;  %v3564_v27 = vmul.f32 %v6244_v52, %v9004_v30  ;;  %v3762_v51 = vmul.f32 %v6244_v52, %v9013_v13  ;;  %v3960_v53 = vmul.f32 %v6244_v52, %v9016_v42 }
 0x5fa   : > { %6263 = vpow2.f32 %v5315_v34  ;;  %v4566_v32 = vmul.f32 %v4534_v9, %v10604_v63  ;;  %v4630_v16 = vmul.f32 %v4598_v40, %v10606_v7  ;;  %v10608_v38 = vmax.f32 %v10607_v55, 0.0  ;;  %v10619_v63 = vld [vmem:[#allocation145_spill] sm:$0xff]  ;;  %v10621_v7 = vld [vmem:[#allocation128_spill] sm:$0xff] }
 0x5fb   : > { %v6248_v56 = vpop.eup %6247  ;;  %6265 = vrcp.f32 %v4424_v11  ;;  %v3596_v47 = vadd.f32 %v3564_v27, %v10609_v12  ;;  %v3794_v22 = vadd.f32 %v3762_v51, %v10610_v35  ;;  %v3992_v31 = vadd.f32 %v3960_v53, %v10611_v29  ;;  %v10615_v11 = vld [vmem:[#allocation51_spill] sm:$0xff]  ;;  %v10617_v51 = vld [vmem:[#allocation84_spill] sm:$0xff] }
 0x5fc   : > { %v4726_v45 = vmul.f32 %v4694_v49, %v10608_v38  ;;  %v9680_v18 = vpop.eup %6249  ;;  %v3563_v23 = vmul.f32 %v6246_v24, %v9004_v30  ;;  %v4662_v41 = vadd.f32 %v4630_v16, %v4566_v32  ;;  %v3761_v28 = vmul.f32 %v6246_v24, %v9013_v13 }
 0x5fd   : > { %v9686_v37 = vpop.eup %6251  ;;  %v3959_v2 = vmul.f32 %v6246_v24, %v9016_v42  ;;  %v3550_v44 = vmul.f32 %v6248_v56, %v9004_v30  ;;  %v3628_v25 = vmul.f32 0.33333334, %v3596_v47  ;;  %v3826_v61 = vmul.f32 0.33333334, %v3794_v22 }
 0x5fe   : > { %v9691_v8 = vpop.eup %6253  ;;  %v4391_v54 = vadd.f32 %v9686_v37, %v9680_v18  ;;  %v4024_v59 = vmul.f32 0.33333334, %v3992_v31  ;;  %v4758_v33 = vadd.f32 %v4726_v45, %v4662_v41  ;;  %v3595_v43 = vadd.f32 %v3563_v23, %v10612_v3 }
 0x5ff   : > { %v6256_v10 = vpop.eup %6255  ;;  %v3793_v62 = vadd.f32 %v3761_v28, %v10613_v50  ;;  %v3991_v21 = vadd.f32 %v3959_v2, %v10614_v39  ;;  %v4056_v52 = vmax.f32 %v3628_v25, %v3826_v61  ;;  %v10616_v24 = vmax.f32 %v10615_v11, 0.0  ;;  %v10626_v39 = vld [vmem:[#allocation151_spill] sm:$0xff] }
 0x600   : > { %v9698_v57 = vpop.eup %6257  ;;  %v4533_v5 = vmul.f32 %v6256_v10, %v9654_v60  ;;  %v4597_v1 = vmul.f32 %v6256_v10, %v9656_v0  ;;  %v4693_v19 = vmul.f32 %v6256_v10, %v6234_v46  ;;  %v4423_v34 = vadd.f32 %v9691_v8, %v4391_v54 }
 0x601   : > { %v6260_v36 = vpop.eup %6259  ;;  %v4790_v20 = vmul.f32 3.0, %v4758_v33  ;;  %v3627_v9 = vmul.f32 0.33333334, %v3595_v43  ;;  %v3825_v40 = vmul.f32 0.33333334, %v3793_v62  ;;  %v10618_v53 = vmax.f32 %v10617_v51, 0.0 }
 0x602   : > { %v6262_v49 = vpop.eup %6261  ;;  %v4565_v27 = vmul.f32 %v4533_v5, %v10616_v24  ;;  %v10620_v32 = vmax.f32 %v10619_v63, 0.0  ;;  %6267 = vrcp.f32 %v4423_v34  ;;  %v4088_v0 = vmax.f32 %v4056_v52, %v4024_v59  ;;  %v10628_v34 = vld [vmem:[#allocation129_spill] sm:$0xff] }
 0x603   : > { %v4629_v14 = vmul.f32 %v4597_v1, %v10618_v53  ;;  %4822 = vst [vmem:[%s6850_s5 + $0xd8] sm:$0xff] %v4790_v20  ;;  %v4023_v46 = vmul.f32 0.33333334, %v3991_v21  ;;  %v4055_v17 = vmax.f32 %v3627_v9, %v3825_v40  ;;  %v3582_v16 = vadd.f32 %v3550_v44, %v10621_v7 }
 0x604   : > { %v4725_v60 = vmul.f32 %v4693_v19, %v10620_v32  ;;  %v6264_v55 = vpop.eup %6263  ;;  %v3748_v45 = vmul.f32 %v6248_v56, %v9013_v13  ;;  %v3946_v12 = vmul.f32 %v6248_v56, %v9016_v42  ;;  %v3351_v47 = vadd.f32 1.0, %v6260_v36  ;;  %v10622_v56 = vld [vmem:[#allocation38_spill] sm:$0xff] }
 0x605   : > { %v4661_v38 = vadd.f32 %v4629_v14, %v4565_v27  ;;  %v6266_v35 = vpop.eup %6265  ;;  %v4120_v22 = vsub.f32 %v3628_v25, %v4088_v0  ;;  %v4216_v29 = vsub.f32 %v3826_v61, %v4088_v0  ;;  %v4312_v31 = vsub.f32 %v4024_v59, %v4088_v0  ;;  %v10624_v25 = vld [vmem:[#allocation69_spill] sm:$0xff] }
 0x606   : > { %v4087_v23 = vmax.f32 %v4055_v17, %v4023_v46  ;;  %v4520_v28 = vmul.f32 %v6266_v35, %v9662_v26  ;;  %v4584_v2 = vmul.f32 %v6266_v35, %v9664_v48  ;;  %v4680_v44 = vmul.f32 %v6266_v35, %v9666_v58 }
 0x607   : > { %v4757_v41 = vadd.f32 %v4725_v60, %v4661_v38  ;;  %v4181_v54 = vmul.f32 1.442695, %v4120_v22  ;;  %v4277_v10 = vmul.f32 1.442695, %v4216_v29  ;;  %v4373_v33 = vmul.f32 1.442695, %v4312_v31 }
 0x608   : > { %v4119_v3 = vsub.f32 %v3627_v9, %v4087_v23  ;;  %v10623_v50 = vmax.f32 %v10622_v56, 0.0  ;;  %v10625_v61 = vmax.f32 %v10624_v25, 0.0  ;;  %v10627_v21 = vmax.f32 %v10626_v39, 0.0  ;;  %v10629_v9 = vld [vmem:[#allocation130_spill] sm:$0xff] }
 0x609   : > { %v4789_v43 = vmul.f32 3.0, %v4757_v41  ;;  %6269 = vpow2.f32 %v4181_v54  ;;  %v4215_v1 = vsub.f32 %v3825_v40, %v4087_v23  ;;  %v4311_v48 = vsub.f32 %v4023_v46, %v4087_v23  ;;  %v10630_v46 = vld [vmem:[#allocation37_spill] sm:$0xff]  ;;  %v10636_v41 = vld [vmem:[#allocation96_spill] sm:$0xff]  ;;  %v10640_v25 = vld [vmem:[#allocation102_spill] sm:$0xff] }
 0x60a   : > { %v4552_v62 = vmul.f32 %v4520_v28, %v10623_v50  ;;  %v4616_v59 = vmul.f32 %v4584_v2, %v10625_v61  ;;  %v4712_v5 = vmul.f32 %v4680_v44, %v10627_v21  ;;  %v4179_v26 = vmul.f32 1.442695, %v4119_v3  ;;  %v10637_v2 = vld [vmem:[#allocation97_spill] sm:$0xff]  ;;  %v10638_v44 = vld [vmem:[#allocation98_spill] sm:$0xff] }
 0x60b   : > { %4821 = vst [vmem:[%s6850_s5 + $0xd0] sm:$0xff] %v4789_v43  ;;  %6271 = vpow2.f32 %v4277_v10  ;;  %v3614_v19 = vmul.f32 0.33333334, %v3582_v16  ;;  %v3780_v36 = vadd.f32 %v3748_v45, %v10628_v34  ;;  %v4275_v20 = vmul.f32 1.442695, %v4215_v1  ;;  %v10632_v16 = vld [vmem:[#allocation70_spill] sm:$0xff] }
 0x60c   : > { %v4648_v58 = vadd.f32 %v4616_v59, %v4552_v62  ;;  %6273 = vpow2.f32 %v4373_v33  ;;  %v4371_v52 = vmul.f32 1.442695, %v4311_v48  ;;  %v3978_v11 = vadd.f32 %v3946_v12, %v10629_v9  ;;  %v6268_v24 = vpop.eup %6267  ;;  %v10639_v33 = vld [vmem:[#allocation101_spill] sm:$0xff]  ;;  %v10641_v59 = vld [vmem:[#allocation103_spill] sm:$0xff] }
 0x60d   : > { %6275 = vpow2.f32 %v4179_v26  ;;  %v3812_v51 = vmul.f32 0.33333334, %v3780_v36  ;;  %v3368_v53 = vadd.f32 1.0, %v6262_v49  ;;  %v4519_v40 = vmul.f32 %v6268_v24, %v9680_v18 }
 0x60e   : > { %v4744_v27 = vadd.f32 %v4712_v5, %v4648_v58  ;;  %v4583_v14 = vmul.f32 %v6268_v24, %v9686_v37  ;;  %v4679_v63 = vmul.f32 %v6268_v24, %v9691_v8  ;;  %6277 = vpow2.f32 %v4275_v20  ;;  %v10634_v37 = vld [vmem:[#allocation153_spill] sm:$0xff] }
 0x60f   : > { %6279 = vpow2.f32 %v4371_v52  ;;  %v4010_v60 = vmul.f32 0.33333334, %v3978_v11  ;;  %v4042_v0 = vmax.f32 %v3614_v19, %v3812_v51  ;;  %v10631_v17 = vmax.f32 %v10630_v46, 0.0  ;;  %v10642_v46 = vld [vmem:[#allocation149_spill] sm:$0xff] }
 0x610   : > { %v4776_v32 = vmul.f32 3.0, %v4744_v27  ;;  %v10633_v38 = vmax.f32 %v10632_v16, 0.0  ;;  %6281 = vrcp.f32 %v3351_v47  ;;  %v3367_v18 = vadd.f32 1.0, %v6264_v55 }
 0x611   : > { %v4551_v7 = vmul.f32 %v4519_v40, %v10631_v17  ;;  %v4074_v49 = vmax.f32 %v4042_v0, %v4010_v60  ;;  %6283 = vrcp.f32 %v3368_v53  ;;  %v10635_v35 = vmax.f32 %v10634_v37, 0.0 }
 0x612   : > { %v4615_v45 = vmul.f32 %v4583_v14, %v10633_v38  ;;  %4808 = vst [vmem:[%s6850_s5 + $0x68] sm:$0xff] %v4776_v32  ;;  %6285 = vrcp.f32 %v3367_v18  ;;  %v3466_v28 = vmul.f32 %v9349_v15, %v10636_v41  ;;  %v3664_v47 = vmul.f32 %v9349_v15, %v10637_v2  ;;  %v10644_v38 = vld [vmem:[#allocation139_spill] sm:$0xff] }
 0x613   : > { %v4711_v8 = vmul.f32 %v4679_v63, %v10635_v35  ;;  %v4106_v22 = vsub.f32 %v3614_v19, %v4074_v49  ;;  %v4202_v29 = vsub.f32 %v3812_v51, %v4074_v49  ;;  %v4298_v31 = vsub.f32 %v4010_v60, %v4074_v49  ;;  %v9735_v23 = vpop.eup %6269 }
 0x614   : > { %v4647_v12 = vadd.f32 %v4615_v45, %v4551_v7  ;;  %v3862_v54 = vmul.f32 %v9349_v15, %v10638_v44  ;;  %v3500_v3 = vmul.f32 %v9532_v6, %v10639_v33  ;;  %v3698_v61 = vmul.f32 %v9532_v6, %v10640_v25  ;;  %v10643_v7 = vld [vmem:[#allocation150_spill] sm:$0xff] }
 0x615   : > { %v9743_v10 = vpop.eup %6271  ;;  %v4153_v43 = vmul.f32 1.442695, %v4106_v22  ;;  %v4249_v56 = vmul.f32 1.442695, %v4202_v29  ;;  %v4345_v50 = vmul.f32 1.442695, %v4298_v31  ;;  %v3896_v39 = vmul.f32 %v9532_v6, %v10641_v59 }
 0x616   : > { %v4743_v55 = vadd.f32 %v4711_v8, %v4647_v12  ;;  %v9747_v62 = vpop.eup %6273  ;;  %v4408_v15 = vadd.f32 %v9743_v10, %v9735_v23  ;;  %v3465_v26 = vmul.f32 %v9337_v4, %v10636_v41  ;;  %v3663_v1 = vmul.f32 %v9337_v4, %v10637_v2 }
 0x617   : > { %v9755_v5 = vpop.eup %6275  ;;  %6287 = vpow2.f32 %v4153_v43  ;;  %v3861_v58 = vmul.f32 %v9337_v4, %v10638_v44  ;;  %v3499_v6 = vmul.f32 %v9698_v57, %v10639_v33  ;;  %v3697_v36 = vmul.f32 %v9698_v57, %v10640_v25 }
 0x618   : > { %v4775_v21 = vmul.f32 3.0, %v4743_v55  ;;  %v9761_v48 = vpop.eup %6277  ;;  %v4440_v19 = vadd.f32 %v9747_v62, %v4408_v15  ;;  %6289 = vpow2.f32 %v4249_v56  ;;  %v3895_v20 = vmul.f32 %v9698_v57, %v10641_v59 }
 0x619   : > { %v9769_v34 = vpop.eup %6279  ;;  %v4407_v52 = vadd.f32 %v9761_v48, %v9755_v5  ;;  %6291 = vpow2.f32 %v4345_v50  ;;  %v3532_v9 = vadd.f32 %v3500_v3, %v3466_v28  ;;  %v3730_v11 = vadd.f32 %v3698_v61, %v3664_v47 }
 0x61a   : > { %4807 = vst [vmem:[%s6850_s5 + $0x60] sm:$0xff] %v4775_v21  ;;  %v6282_v4 = vpop.eup %6281  ;;  %v3928_v24 = vadd.f32 %v3896_v39, %v3862_v54  ;;  %6293 = vrcp.f32 %v4440_v19  ;;  %v3531_v63 = vadd.f32 %v3499_v6, %v3465_v26  ;;  %v3729_v35 = vadd.f32 %v3697_v36, %v3663_v1 }
 0x61b   : > { %v6284_v27 = vpop.eup %6283  ;;  %v4439_v51 = vadd.f32 %v9769_v34, %v4407_v52  ;;  %v3549_v53 = vmul.f32 %v6282_v4, %v9004_v30  ;;  %v3747_v40 = vmul.f32 %v6282_v4, %v9013_v13  ;;  %v3945_v14 = vmul.f32 %v6282_v4, %v9016_v42  ;;  %v10645_v52 = vld [vmem:[#allocation54_spill] sm:$0xff] }
 0x61c   : > { %v3566_v57 = vmul.f32 %v6284_v27, %v9004_v30  ;;  %v3764_v32 = vmul.f32 %v6284_v27, %v9013_v13  ;;  %v3962_v60 = vmul.f32 %v6284_v27, %v9016_v42  ;;  %v6286_v0 = vpop.eup %6285  ;;  %v3927_v3 = vadd.f32 %v3895_v20, %v3861_v58 }
 0x61d   : > { %6295 = vrcp.f32 %v4439_v51  ;;  %v3581_v17 = vadd.f32 %v3549_v53, %v10642_v46  ;;  %v3779_v16 = vadd.f32 %v3747_v40, %v10643_v7  ;;  %v3977_v45 = vadd.f32 %v3945_v14, %v10644_v38  ;;  %v10649_v51 = vld [vmem:[#allocation152_spill] sm:$0xff]  ;;  %v10653_v7 = vld [vmem:[#allocation86_spill] sm:$0xff] }
 0x61e   : > { %v3598_v49 = vadd.f32 %v3566_v57, %v3532_v9  ;;  %v3796_v18 = vadd.f32 %v3764_v32, %v3730_v11  ;;  %v3994_v12 = vadd.f32 %v3962_v60, %v3928_v24  ;;  %v3565_v37 = vmul.f32 %v6286_v0, %v9004_v30  ;;  %v10647_v11 = vld [vmem:[#allocation85_spill] sm:$0xff] }
 0x61f   : > { %v3613_v8 = vmul.f32 0.33333334, %v3581_v17  ;;  %v3811_v22 = vmul.f32 0.33333334, %v3779_v16  ;;  %v3763_v29 = vmul.f32 %v6286_v0, %v9013_v13  ;;  %v4009_v47 = vmul.f32 0.33333334, %v3977_v45 }
 0x620   : > { %v3630_v31 = vmul.f32 0.33333334, %v3598_v49  ;;  %v3828_v41 = vmul.f32 0.33333334, %v3796_v18  ;;  %v3597_v28 = vadd.f32 %v3565_v37, %v3531_v63  ;;  %v3961_v55 = vmul.f32 %v6286_v0, %v9016_v42  ;;  %v10651_v0 = vld [vmem:[#allocation53_spill] sm:$0xff]  ;;  %v10655_v45 = vld [vmem:[#allocation154_spill] sm:$0xff] }
 0x621   : > { %v9789_v2 = vpop.eup %6287  ;;  %v4041_v44 = vmax.f32 %v3613_v8, %v3811_v22  ;;  %v3795_v54 = vadd.f32 %v3763_v29, %v3729_v35  ;;  %v4026_v43 = vmul.f32 0.33333334, %v3994_v12  ;;  %v10646_v4 = vmax.f32 %v10645_v52, 0.0 }
 0x622   : > { %v6290_v33 = vpop.eup %6289  ;;  %v4058_v56 = vmax.f32 %v3630_v31, %v3828_v41  ;;  %v3629_v59 = vmul.f32 0.33333334, %v3597_v28  ;;  %v3993_v21 = vadd.f32 %v3961_v55, %v3927_v3  ;;  %v10648_v24 = vmax.f32 %v10647_v11, 0.0 }
 0x623   : > { %v6292_v30 = vpop.eup %6291  ;;  %v4394_v50 = vadd.f32 %v6290_v33, %v9789_v2  ;;  %v4073_v25 = vmax.f32 %v4041_v44, %v4009_v47  ;;  %v3827_v39 = vmul.f32 0.33333334, %v3795_v54  ;;  %v10650_v53 = vmax.f32 %v10649_v51, 0.0 }
 0x624   : > { %v6294_v61 = vpop.eup %6293  ;;  %v4090_v13 = vmax.f32 %v4058_v56, %v4026_v43  ;;  %v10652_v46 = vmax.f32 %v10651_v0, 0.0  ;;  %v10654_v16 = vmax.f32 %v10653_v7, 0.0  ;;  %v10656_v49 = vmax.f32 %v10655_v45, 0.0 }
 0x625   : > { %v4536_v15 = vmul.f32 %v6294_v61, %v9735_v23  ;;  %v4600_v26 = vmul.f32 %v6294_v61, %v9743_v10  ;;  %v4696_v1 = vmul.f32 %v6294_v61, %v9747_v62  ;;  %v4426_v42 = vadd.f32 %v6292_v30, %v4394_v50 }
 0x626   : > { %v4105_v6 = vsub.f32 %v3613_v8, %v4073_v25  ;;  %v4201_v58 = vsub.f32 %v3811_v22, %v4073_v25  ;;  %v4297_v19 = vsub.f32 %v4009_v47, %v4073_v25  ;;  %v4122_v36 = vsub.f32 %v3630_v31, %v4090_v13 }
 0x627   : > { %v6296_v20 = vpop.eup %6295  ;;  %v4568_v9 = vmul.f32 %v4536_v15, %v10646_v4  ;;  %v4632_v27 = vmul.f32 %v4600_v26, %v10648_v24  ;;  %v4728_v40 = vmul.f32 %v4696_v1, %v10650_v53  ;;  %6297 = vrcp.f32 %v4426_v42  ;;  %v10659_v1 = vld [vmem:[#allocation71_spill] sm:$0xff] }
 0x628   : > { %v4535_v23 = vmul.f32 %v6296_v20, %v9755_v5  ;;  %v4599_v10 = vmul.f32 %v6296_v20, %v9761_v48  ;;  %v4695_v62 = vmul.f32 %v6296_v20, %v9769_v34  ;;  %v4151_v14 = vmul.f32 1.442695, %v4105_v6 }
 0x629   : > { %v4664_v63 = vadd.f32 %v4632_v27, %v4568_v9  ;;  %v4247_v57 = vmul.f32 1.442695, %v4201_v58  ;;  %v4343_v32 = vmul.f32 1.442695, %v4297_v19  ;;  %v4185_v60 = vmul.f32 1.442695, %v4122_v36 }
 0x62a   : > { %v4567_v17 = vmul.f32 %v4535_v23, %v10652_v46  ;;  %v4631_v38 = vmul.f32 %v4599_v10, %v10654_v16  ;;  %v4727_v18 = vmul.f32 %v4695_v62, %v10656_v49  ;;  %6299 = vpow2.f32 %v4151_v14  ;;  %v10661_v19 = vld [vmem:[#allocation157_spill] sm:$0xff]  ;;  %v10665_v46 = vld [vmem:[#allocation72_spill] sm:$0xff] }
 0x62b   : > { %v4760_v5 = vadd.f32 %v4728_v40, %v4664_v63  ;;  %6301 = vpow2.f32 %v4247_v57  ;;  %v4218_v48 = vsub.f32 %v3828_v41, %v4090_v13  ;;  %v4314_v34 = vsub.f32 %v4026_v43, %v4090_v13 }
 0x62c   : > { %v4663_v12 = vadd.f32 %v4631_v38, %v4567_v17  ;;  %6303 = vpow2.f32 %v4343_v32  ;;  %v4025_v37 = vmul.f32 0.33333334, %v3993_v21  ;;  %v4057_v35 = vmax.f32 %v3629_v59, %v3827_v39  ;;  %v10657_v21 = vld [vmem:[#allocation40_spill] sm:$0xff]  ;;  %v10663_v32 = vld [vmem:[#allocation39_spill] sm:$0xff] }
 0x62d   : > { %v4792_v8 = vmul.f32 3.0, %v4760_v5  ;;  %6305 = vpow2.f32 %v4185_v60  ;;  %v4281_v22 = vmul.f32 1.442695, %v4218_v48  ;;  %v4377_v29 = vmul.f32 1.442695, %v4314_v34  ;;  %v10667_v38 = vld [vmem:[#allocation159_spill] sm:$0xff] }
 0x62e   : > { %v4759_v31 = vadd.f32 %v4727_v18, %v4663_v12  ;;  %v4089_v28 = vmax.f32 %v4057_v35, %v4025_v37  ;;  %v10658_v15 = vmax.f32 %v10657_v21, 0.0  ;;  %v10660_v42 = vmax.f32 %v10659_v1, 0.0 }
 0x62f   : > { %4824 = vst [vmem:[%s6850_s5 + $0xe8] sm:$0xff] %v4792_v8  ;;  %6307 = vpow2.f32 %v4281_v22  ;;  %v10664_v60 = vmax.f32 %v10663_v32, 0.0  ;;  %v10666_v17 = vmax.f32 %v10665_v46, 0.0  ;;  %v10668_v45 = vmax.f32 %v10667_v38, 0.0  ;;  %v10671_v22 = vld [vmem:[#allocation87_spill] sm:$0xff] }
 0x630   : > { %v4791_v47 = vmul.f32 3.0, %v4759_v31  ;;  %v4121_v44 = vsub.f32 %v3629_v59, %v4089_v28  ;;  %v4217_v54 = vsub.f32 %v3827_v39, %v4089_v28  ;;  %6309 = vpow2.f32 %v4377_v29 }
 0x631   : > { %v6298_v55 = vpop.eup %6297  ;;  %v4313_v41 = vsub.f32 %v4025_v37, %v4089_v28  ;;  %v10669_v37 = vld [vmem:[#allocation56_spill] sm:$0xff]  ;;  %v10672_v29 = vmax.f32 %v10671_v22, 0.0 }
 0x632   : > { %4823 = vst [vmem:[%s6850_s5 + $0xe0] sm:$0xff] %v4791_v47  ;;  %v4522_v3 = vmul.f32 %v6298_v55, %v9789_v2  ;;  %v4586_v43 = vmul.f32 %v6298_v55, %v6290_v33  ;;  %v4682_v56 = vmul.f32 %v6298_v55, %v6292_v30  ;;  %v4183_v50 = vmul.f32 1.442695, %v4121_v44  ;;  %v10673_v44 = vld [vmem:[#allocation160_spill] sm:$0xff] }
 0x633   : > { %v4279_v25 = vmul.f32 1.442695, %v4217_v54  ;;  %v4375_v61 = vmul.f32 1.442695, %v4313_v41  ;;  %v10662_v2 = vmax.f32 %v10661_v19, 0.0  ;;  %v10670_v35 = vmax.f32 %v10669_v37, 0.0 }
 0x634   : > { %v6300_v13 = vpop.eup %6299  ;;  %v4554_v26 = vmul.f32 %v4522_v3, %v10658_v15  ;;  %v4618_v6 = vmul.f32 %v4586_v43, %v10660_v42  ;;  %6311 = vpow2.f32 %v4183_v50  ;;  %v10674_v54 = vmax.f32 %v10673_v44, 0.0  ;;  %v10677_v15 = vld [vmem:[#allocation88_spill] sm:$0xff] }
 0x635   : > { %v6302_v59 = vpop.eup %6301  ;;  %6313 = vpow2.f32 %v4279_v25  ;;  %v4714_v33 = vmul.f32 %v4682_v56, %v10662_v2 }
 0x636   : > { %v6304_v39 = vpop.eup %6303  ;;  %v4650_v58 = vadd.f32 %v4618_v6, %v4554_v26  ;;  %v4393_v30 = vadd.f32 %v6302_v59, %v6300_v13  ;;  %6315 = vpow2.f32 %v4375_v61  ;;  %v10675_v61 = vld [vmem:[#allocation55_spill] sm:$0xff]  ;;  %v10678_v26 = vmax.f32 %v10677_v15, 0.0  ;;  %v10679_v6 = vld [vmem:[#allocation161_spill] sm:$0xff] }
 0x637   : > { %v6306_v36 = vpop.eup %6305 }
 0x638   : > { %v4746_v20 = vadd.f32 %v4714_v33, %v4650_v58  ;;  %v4425_v52 = vadd.f32 %v6304_v39, %v4393_v30 }
 0x639   : > { %v6308_v4 = vpop.eup %6307 }
 0x63a   : > { %v4778_v9 = vmul.f32 3.0, %v4746_v20  ;;  %6317 = vrcp.f32 %v4425_v52  ;;  %v4410_v11 = vadd.f32 %v6308_v4, %v6306_v36  ;;  %v6310_v24 = vpop.eup %6309 }
 0x63c   : > { %4810 = vst [vmem:[%s6850_s5 + $0x78] sm:$0xff] %v4778_v9  ;;  %v4442_v27 = vadd.f32 %v6310_v24, %v4410_v11 }
 0x63e   : > { %v6312_v51 = vpop.eup %6311  ;;  %6319 = vrcp.f32 %v4442_v27 }
 0x63f   : > { %v6314_v53 = vpop.eup %6313 }
 0x640   : > { %v4409_v40 = vadd.f32 %v6314_v53, %v6312_v51  ;;  %v6316_v23 = vpop.eup %6315 }
 0x642   : > { %v4441_v10 = vadd.f32 %v6316_v23, %v4409_v40 }
 0x644   : > { %v6318_v62 = vpop.eup %6317  ;;  %6321 = vrcp.f32 %v4441_v10 }
 0x645   : > { %v4521_v14 = vmul.f32 %v6318_v62, %v6300_v13  ;;  %v4585_v63 = vmul.f32 %v6318_v62, %v6302_v59  ;;  %v4681_v57 = vmul.f32 %v6318_v62, %v6304_v39  ;;  %v10676_v13 = vmax.f32 %v10675_v61, 0.0 }
 0x646   : > { %v10680_v59 = vmax.f32 %v10679_v6, 0.0 }
 0x647   : > { %v4553_v0 = vmul.f32 %v4521_v14, %v10664_v60  ;;  %v4617_v7 = vmul.f32 %v4585_v63, %v10666_v17  ;;  %v4713_v49 = vmul.f32 %v4681_v57, %v10668_v45 }
 0x648   : > { %v6320_v16 = vpop.eup %6319 }
 0x649   : > { %v4649_v18 = vadd.f32 %v4617_v7, %v4553_v0  ;;  %v4538_v5 = vmul.f32 %v6320_v16, %v6306_v36  ;;  %v4602_v48 = vmul.f32 %v6320_v16, %v6308_v4  ;;  %v4698_v34 = vmul.f32 %v6320_v16, %v6310_v24 }
 0x64b   : > { %v4745_v12 = vadd.f32 %v4713_v49, %v4649_v18  ;;  %v4570_v8 = vmul.f32 %v4538_v5, %v10670_v35  ;;  %v4634_v31 = vmul.f32 %v4602_v48, %v10672_v29  ;;  %v4730_v55 = vmul.f32 %v4698_v34, %v10674_v54 }
 0x64d   : > { %v4777_v28 = vmul.f32 3.0, %v4745_v12  ;;  %v4666_v47 = vadd.f32 %v4634_v31, %v4570_v8 }
 0x64e   : > { %v6322_v41 = vpop.eup %6321 }
 0x64f   : > { %4809 = vst [vmem:[%s6850_s5 + $0x70] sm:$0xff] %v4777_v28  ;;  %v4762_v3 = vadd.f32 %v4730_v55, %v4666_v47  ;;  %v4537_v43 = vmul.f32 %v6322_v41, %v6312_v51  ;;  %v4601_v56 = vmul.f32 %v6322_v41, %v6314_v53  ;;  %v4697_v50 = vmul.f32 %v6322_v41, %v6316_v23 }
 0x651   : > { %v4794_v25 = vmul.f32 3.0, %v4762_v3  ;;  %v4569_v21 = vmul.f32 %v4537_v43, %v10676_v13  ;;  %v4633_v1 = vmul.f32 %v4601_v56, %v10678_v26  ;;  %v4729_v39 = vmul.f32 %v4697_v50, %v10680_v59 }
 0x653   : > { %4826 = vst [vmem:[%s6850_s5 + $0xf8] sm:$0xff] %v4794_v25  ;;  %v4665_v42 = vadd.f32 %v4633_v1, %v4569_v21 }
 0x655   : > { %v4761_v58 = vadd.f32 %v4729_v39, %v4665_v42 }
 0x657   : > { %v4793_v19 = vmul.f32 3.0, %v4761_v58 }
 0x659   : > { %4825 = vst [vmem:[%s6850_s5 + $0xf0] sm:$0xff] %v4793_v19 }
 0x65a PF: > { %s9844_s25 = scalar_lea.sflag [#allocation6], %s475_s16  ;;  %s10681_s11 = sld [smem:[#allocation21_spill]] }
 0x660   : > { %p10682_p13 = scmp.ne.s32.totalorder %s10681_s11, 0 }
 0x661   : > { %s4836_s15 = ssub.s32 (%p10682_p13), 38, %s6836_s6 }
 0x662   : > { %4834 = sbr.rel (!%p10682_p13) target bundleno = 1670 (0x686), region = 76  ;;  %p4837_p0 = scmp.lt.s32.totalorder (%p10682_p13), %s4836_s15, 32 }
 0x669   : > { %s10719_s15 = smov (!%p4837_p0, %s4836_s15), 32 }
 0x66a   : > { %s9849_s23 = sshll.u32 %s10719_s15, 7 }
 0x66b   : > { %s4841_s20 = ssub.s32 4096, %s9849_s23 }
 0x66c   : > { %4842 = vsyncadd %s9844_s25, %s4841_s20  ;;  %p5328_p6 = scmp.ne.s32.totalorder %s9849_s23, 0  ;;  %s5334_s16 = sshll.u32 %s6512_s12, 12 }
 0x66d   : > { %s10683_s3 = sld [smem:[#allocation198_spill]]  ;;  %s4847_s6 = sshll.u32 %s6850_s5, 4  ;;  %s9861_s6 = int_to_ptr.vmem [resolvable:$true] %s4847_s6 }
 0x66e   : > { %s6394_s7 = scalar_lea.vmem %s9861_s6, %s9849_s23  ;;  %s6536_s17 = smov [#allocation11]  }
 0x66f   : > { %p6395_p10 = scmp.ne.s32.totalorder %s9861_s6, %s6394_s7  ;;  %s6398_s8 = sshll.u32 %s6536_s17, 4  ;;  %s6399_s8 = int_to_ptr.vmem [resolvable:$false] %s6398_s8 }
 0x670   : > { %s6400_s12 = scalar_lea.vmem %s6399_s8, 8192  ;;  %p6401_p4 = scmp.lt.s32.totalorder %s9861_s6, %s6399_s8 }
 0x671   : > { %p6396_p7 = pnand %p6395_p10, %p5328_p6  ;;  %p6402_p8 = scmp.lt.s32.totalorder %s6400_s12, %s6394_s7 }
 0x673   : > { %s9858_s29 = scalar_lea.hbm %s10683_s3, %s5334_s16  ;;  %p6397_p1 = pneg %p6396_p7 }
 0x674   : > { %p6403_p2 = por %p6402_p8, %p6401_p4 }
 0x676   : > { %p6404_p5 = pnand %p6403_p2, %p6397_p1 }
 0x678   : > { %6407 = shalt.err (!%p6404_p5)
}
 0x679   : > { %s6408_s5 = scalar_lea.hbm %s9858_s29, %s9849_s23  ;;  %s6412_s27 = scalar_lea.hbm %s10683_s3, 4864 }
 0x67a   : > { %p6409_p3 = scmp.ne.s32.totalorder %s9858_s29, %s6408_s5  ;;  %p6413_p11 = scmp.lt.u32.totalorder %s9858_s29, %s10683_s3 }
 0x67b   : > { %p6414_p13 = scmp.lt.u32.totalorder %s6412_s27, %s6408_s5  ;;  %p6416_p10 = scmp.lt.u32.totalorder %s6408_s5, %s9858_s29 }
 0x67c   : > { %p6410_p12 = pnand %p6409_p3, %p5328_p6 }
 0x67d   : > { %p6415_p0 = por %p6414_p13, %p6413_p11 }
 0x67e   : > { %p6411_p9 = pneg %p6410_p12 }
 0x67f   : > { %p6417_p7 = por %p6416_p10, %p6415_p0 }
 0x681   : > { %p6418_p1 = pnand %p6417_p7, %p6411_p9 }
 0x683   : > { %6421 = shalt.err (!%p6418_p1)
}
 0x684   : > { %s6537_s11 = smov 128   ;;  %s6538_s15 = smov 8  }
 0x685   : > { %4853 = dma.vmem_to_hbm [thread:$0]  (%p5328_p6), %s9861_s6, %s9849_s23, %s9858_s29, %s9844_s25, %s6537_s11, %s6537_s11, %s6538_s15  }
 0x686 PF: > { %s10684_s20 = sld [smem:[#allocation18_spill]]  ;;  %s10685_s16 = sld [smem:[#allocation16_spill]] }
 0x687   : > { %s10686_s24 = sld [smem:[#allocation24_spill]] }
 0x68c   : > { %p5584_p4 = scmp.ge.s32.totalorder %s10684_s20, 2  ;;  %s4862_s30 = sand.u32 1, %s10685_s16  }
 0x68d   : > { %p10687_p8 = scmp.ne.s32.totalorder %s10686_s24, 0  ;;  %s4863_s7 = scalar_lea.sflag [#allocation6], %s4862_s30 }
 0x68f   : > { %p5579_p2 = pnand %p5584_p4, %p10687_p8 }
 0x691   : > { %6479 = dma.done.wait (!%p5579_p2), %s4863_s7, 4096  }
 0x692   : > { %6481 = vsyncadd (!%p5579_p2), %s4863_s7, 4294963200  ;;  %s28_s15 = sadd.s32 1, %s10684_s20   ;;  %s10688_s17 = sld [smem:[#allocation17_spill]] }
 0x693   : > { %p25_p5 = scmp.ge.s32.totalorder %s28_s15, 6   ;;  %s10689_s29 = sld [smem:[#allocation22_spill]] }
 0x694   : > { %s10690_s25 = sld [smem:[#allocation23_spill]]  ;;  %s10691_s23 = sld [smem:[#allocation19_spill]] }
 0x695   : > { %s10692_s6 = sld [smem:[#allocation20_spill]]  ;;  %s10693_s27 = smov %s6488_s28 }
 0x696   : > { %s10695_s30 = smov %s6500_s9  ;;  %s10696_s9 = smov %s6504_s10 }
 0x697   : > { %s10698_s11 = smov %s6516_s13  ;;  %s10699_s12 = smov %s6520_s14 }
 0x698   : > { %s10694_s28 = smov %s10688_s17  ;;  %27 = sbr.rel (!%p25_p5) target bundleno = 19 (0x13), region = 129 }
 0x69a   : > { %s10697_s10 = smov %s10690_s25  ;;  %s10700_s13 = smov %s10691_s23 }
 0x69b   : > { %s10701_s14 = smov %s10692_s6 }
 0x69f   :  { %4868 = vsyncpa [#allocation5], 1 }
 0x6a0   :  { %4870 = vsyncpa [#allocation5 + $0x1], 1 }
 0x6a1   :  { %4871 = vsyncpa [#allocation9], 1 }
 0x6a2   :  { %4873 = vsyncpa [#allocation9 + $0x1], 1 }
 0x6a3   :  { %4874 = vsyncpa [#allocation6], 1 }
 0x6a4   :  { %4876 = vsyncpa [#allocation6 + $0x1], 1 }
 0x6a5   :  { %4877 = vsyncpa [#allocation7], 1 }
 0x6a6   :  { %4879 = vsyncpa [#allocation7 + $0x1], 1 }

</bundles_post_ra>
